<compile_context>
chip_gen: v7x
topology: tpu7x:2x2x1
jax: 0.10.0
libtpu: 0.0.40
codegen_flags: <defaults>
</compile_context>

<pallas_src>
import jax
import jax.numpy as jnp
from jax.experimental import pallas as pl
from jax.experimental.pallas import tpu as pltpu

B = 2
C, H, W = 3, 96, 96
K = C * H * W          # 27648
H1 = 512
H2 = 512
OUT = 10

NH = 2                 # split H1 columns over a parallel grid axis (dual-TC on v7x)
HB = H1 // NH          # 256 columns per slice
TK = K // 2            # 13824 -> 2 reduction steps; bf16 W1 tile ~7 MiB


def layer1_kernel(x_ref, w1_ref, b1_ref, h1_ref, acc_ref):
    """h1[:, j*HB:(j+1)*HB] = relu(x @ W1[:, j*HB:(j+1)*HB] + b1), K-chunked."""
    k = pl.program_id(1)

    @pl.when(k == 0)
    def _():
        acc_ref[...] = jnp.zeros_like(acc_ref)

    # bf16 x / bf16 W1 on the MXU, f32 accumulation.
    acc_ref[...] += jnp.dot(x_ref[...], w1_ref[...],
                            preferred_element_type=jnp.float32)

    @pl.when(k == pl.num_programs(1) - 1)
    def _():
        h1_ref[...] = jnp.maximum(acc_ref[...] + b1_ref[...], 0.0)


def tail_kernel(h1_ref, w2_ref, b2_ref, w3_ref, b3_ref, o_ref):
    """Layers 2-3, fully resident (everything is tiny)."""
    h2 = jnp.dot(h1_ref[...], w2_ref[...], preferred_element_type=jnp.float32)
    h2 = jnp.maximum(h2 + b2_ref[...], 0.0)
    h3 = jnp.dot(h2, w3_ref[...], preferred_element_type=jnp.float32)
    # Final ReLU kept on purpose: the PyTorch Sequential ends with nn.ReLU().
    o_ref[...] = jnp.maximum(h3 + b3_ref[...], 0.0).astype(o_ref.dtype)


@jax.jit
def neural_network_forward(x, w1, b1, w2, b2, w3, b3):
    # Flatten (glue, plain JAX) — equivalent to nn.Flatten() on NCHW.
    # x is cast to bf16 (tiny, 108 KB) to match the bf16 W1 stream on the MXU.
    xf = x.reshape(x.shape[0], -1).astype(jnp.bfloat16)

    # --- Layer 1: HBM-bandwidth bound W1 stream --------------------------
    h1 = pl.pallas_call(
        layer1_kernel,
        out_shape=jax.ShapeDtypeStruct((B, H1), jnp.float32),
        grid_spec=pltpu.PrefetchScalarGridSpec(
            num_scalar_prefetch=0,
            grid=(NH, K // TK),                                   # (col-slice, K-chunk)
            in_specs=[
                pl.BlockSpec((B, TK), lambda j, k: (0, k)),       # x chunk (bf16)
                pl.BlockSpec((TK, HB), lambda j, k: (k, j)),      # W1 chunk (bf16)
                pl.BlockSpec((1, HB), lambda j, k: (0, j)),       # b1 slice (f32)
            ],
            out_specs=pl.BlockSpec((B, HB), lambda j, k: (0, j)),
            scratch_shapes=[pltpu.VMEM((B, HB), jnp.float32)],
        ),
        compiler_params=pltpu.CompilerParams(
            dimension_semantics=("parallel", "arbitrary"),
            vmem_limit_bytes=40 << 20,   # ~14 MiB double-buffered W1 + headroom; fits v7x 64 MiB
        ),
    )(xf, w1, b1)

    # --- Layers 2-3: tiny fused tail, fully VMEM-resident ----------------
    out = pl.pallas_call(
        tail_kernel,
        out_shape=jax.ShapeDtypeStruct((B, OUT), jnp.float32),
    )(h1, w2, b2, w3, b3)
    return out


def _init_params(key):
    # Deterministic synthetic init (uniform, roughly PyTorch-style scale).
    # W1 is stored in bf16: it is the only large tensor and the kernel is
    # HBM-bound on streaming it; everything else stays f32.
    k1, k2, k3, k4, k5, k6 = jax.random.split(key, 6)
    s1 = 1.0 / jnp.sqrt(K)
    s2 = 1.0 / jnp.sqrt(H1)
    s3 = 1.0 / jnp.sqrt(H2)
    w1 = jax.random.uniform(k1, (K, H1), jnp.float32, -s1, s1).astype(jnp.bfloat16)
    b1 = jax.random.uniform(k2, (1, H1), jnp.float32, -s1, s1)
    w2 = jax.random.uniform(k3, (H1, H2), jnp.float32, -s2, s2)
    b2 = jax.random.uniform(k4, (1, H2), jnp.float32, -s2, s2)
    w3 = jax.random.uniform(k5, (H2, OUT), jnp.float32, -s3, s3)
    b3 = jax.random.uniform(k6, (1, OUT), jnp.float32, -s3, s3)
    return w1, b1, w2, b2, w3, b3


if __name__ == "__main__":
    key = jax.random.PRNGKey(0)
    kx, kp = jax.random.split(key)
    x = jax.random.normal(kx, (B, C, H, W), jnp.float32)
    params = _init_params(kp)

    out = neural_network_forward(x, *params)
    out = jax.block_until_ready(out)

    # Reference in plain JAX using the same bf16 layer-1 precision.
    xf = x.reshape(B, -1)
    w1, b1, w2, b2, w3, b3 = params
    h1 = jnp.maximum(
        jnp.dot(xf.astype(jnp.bfloat16), w1, preferred_element_type=jnp.float32) + b1,
        0.0)
    ref = jnp.maximum(h1 @ w2 + b2, 0.0)
    ref = jnp.maximum(ref @ w3 + b3, 0.0)   # final ReLU matches nn.Sequential

    assert out.shape == (B, OUT)
    assert jnp.allclose(out, ref, atol=5e-3, rtol=5e-3)

    print("KERNEL_OK")
</pallas_src>

<mosaic_0001>
module attributes {stable_mosaic.version = 11 : i64} {
  func.func @layer1_kernel(%arg0: i32, %arg1: i32, %arg2: memref<2x13824xbf16, #tpu.memory_space<vmem>>, %arg3: memref<13824x256xbf16, #tpu.memory_space<vmem>>, %arg4: memref<1x256xf32, #tpu.memory_space<vmem>>, %arg5: memref<2x256xf32, #tpu.memory_space<vmem>>, %arg6: memref<2x256xf32, #tpu.memory_space<vmem>>) attributes {dimension_semantics = [#tpu.dimension_semantics<parallel>, #tpu.dimension_semantics<arbitrary>], iteration_bounds = array<i64: 2, 2>, scalar_prefetch = 0 : i64, scratch_operands = 1 : i64, tpu.core_type = #tpu.core_type<tc>, window_params = [{transform_indices = @transform_0, window_bounds = array<i64: 2, 13824>}, {transform_indices = @transform_1, window_bounds = array<i64: 13824, 256>}, {transform_indices = @transform_2, window_bounds = array<i64: 1, 256>}, {transform_indices = @transform_3, window_bounds = array<i64: 2, 256>}]} {
    %c0_i32 = arith.constant 0 : i32
    %0 = arith.cmpi eq, %arg1, %c0_i32 : i32
    %1 = arith.extui %0 : i1 to i32
    %c0_i32_0 = arith.constant 0 : i32
    %2 = arith.cmpi ne, %1, %c0_i32_0 : i32
    scf.if %2 {
      %cst_9 = arith.constant 0.000000e+00 : f32
      %12 = vector.broadcast %cst_9 : f32 to vector<2x256xf32>
      %c0_10 = arith.constant 0 : index
      %c0_11 = arith.constant 0 : index
      %13 = vector.load %arg6[%c0_10, %c0_11] : memref<2x256xf32, #tpu.memory_space<vmem>>, vector<2x256xf32>
      tpu.vector_store %arg6[%c0_10, %c0_11], %12 {strides = array<i32>} : memref<2x256xf32, #tpu.memory_space<vmem>>, vector<2x256xf32>,
    } else {
    }
    %c0 = arith.constant 0 : index
    %c0_1 = arith.constant 0 : index
    %3 = vector.load %arg6[%c0, %c0_1] : memref<2x256xf32, #tpu.memory_space<vmem>>, vector<2x256xf32>
    %c0_2 = arith.constant 0 : index
    %c0_3 = arith.constant 0 : index
    %4 = vector.load %arg2[%c0_2, %c0_3] : memref<2x13824xbf16, #tpu.memory_space<vmem>>, vector<2x13824xbf16>
    %c0_4 = arith.constant 0 : index
    %c0_5 = arith.constant 0 : index
    %5 = vector.load %arg3[%c0_4, %c0_5] : memref<13824x256xbf16, #tpu.memory_space<vmem>>, vector<13824x256xbf16>
    %cst = arith.constant dense<0.000000e+00> : vector<2x256xf32>
    %6 = tpu.matmul %4, %5, %cst {dimension_numbers = #tpu.dot_dimension_numbers<[1], [0], [0], [1], [0, 0, 1, 1], [], []>} : vector<2x13824xbf16>, vector<13824x256xbf16>, vector<2x256xf32> -> vector<2x256xf32>
    %7 = arith.addf %3, %6 : vector<2x256xf32>
    %c0_6 = arith.constant 0 : index
    %c0_7 = arith.constant 0 : index
    %8 = vector.load %arg6[%c0_6, %c0_7] : memref<2x256xf32, #tpu.memory_space<vmem>>, vector<2x256xf32>
    tpu.vector_store %arg6[%c0_6, %c0_7], %7 {strides = array<i32>} : memref<2x256xf32, #tpu.memory_space<vmem>>, vector<2x256xf32>,
    %c1_i32 = arith.constant 1 : i32
    %9 = arith.cmpi eq, %arg1, %c1_i32 : i32
    %10 = arith.extui %9 : i1 to i32
    %c0_i32_8 = arith.constant 0 : i32
    %11 = arith.cmpi ne, %10, %c0_i32_8 : i32
    scf.if %11 {
      %c0_9 = arith.constant 0 : index
      %c0_10 = arith.constant 0 : index
      %12 = vector.load %arg6[%c0_9, %c0_10] : memref<2x256xf32, #tpu.memory_space<vmem>>, vector<2x256xf32>
      %c0_11 = arith.constant 0 : index
      %c0_12 = arith.constant 0 : index
      %13 = vector.load %arg4[%c0_11, %c0_12] : memref<1x256xf32, #tpu.memory_space<vmem>>, vector<1x256xf32>
      %14 = vector.broadcast %13 : vector<1x256xf32> to vector<2x256xf32>
      %15 = arith.addf %12, %14 : vector<2x256xf32>
      %cst_13 = arith.constant 0.000000e+00 : f32
      %16 = vector.broadcast %cst_13 : f32 to vector<2x256xf32>
      %17 = arith.maximumf %15, %16 : vector<2x256xf32>
      %c0_14 = arith.constant 0 : index
      %c0_15 = arith.constant 0 : index
      %18 = vector.load %arg5[%c0_14, %c0_15] : memref<2x256xf32, #tpu.memory_space<vmem>>, vector<2x256xf32>
      tpu.vector_store %arg5[%c0_14, %c0_15], %17 {strides = array<i32>} : memref<2x256xf32, #tpu.memory_space<vmem>>, vector<2x256xf32>,
    } else {
    }
    return
  }
  func.func @transform_0(%arg0: i32, %arg1: i32) -> (i32, i32) {
    %c0_i32 = arith.constant 0 : i32
    %c0_i32_0 = arith.constant 0 : i32
    return %c0_i32, %arg1 : i32, i32
  }
  func.func @transform_1(%arg0: i32, %arg1: i32) -> (i32, i32) {
    %c0_i32 = arith.constant 0 : i32
    return %arg1, %arg0 : i32, i32
  }
  func.func @transform_2(%arg0: i32, %arg1: i32) -> (i32, i32) {
    %c0_i32 = arith.constant 0 : i32
    %c0_i32_0 = arith.constant 0 : i32
    return %c0_i32, %arg0 : i32, i32
  }
  func.func @transform_3(%arg0: i32, %arg1: i32) -> (i32, i32) {
    %c0_i32 = arith.constant 0 : i32
    %c0_i32_0 = arith.constant 0 : i32
    return %c0_i32, %arg0 : i32, i32
  }
}

module attributes {stable_mosaic.version = 11 : i64} {
  func.func @tail_kernel(%arg0: memref<2x512xf32, #tpu.memory_space<vmem>>, %arg1: memref<512x512xf32, #tpu.memory_space<vmem>>, %arg2: memref<1x512xf32, #tpu.memory_space<vmem>>, %arg3: memref<512x10xf32, #tpu.memory_space<vmem>>, %arg4: memref<1x10xf32, #tpu.memory_space<vmem>>, %arg5: memref<2x10xf32, #tpu.memory_space<vmem>>) attributes {dimension_semantics = [], scalar_prefetch = 0 : i64, scratch_operands = 0 : i64, tpu.core_type = #tpu.core_type<tc>} {
    %c0 = arith.constant 0 : index
    %c0_0 = arith.constant 0 : index
    %0 = vector.load %arg0[%c0, %c0_0] : memref<2x512xf32, #tpu.memory_space<vmem>>, vector<2x512xf32>
    %c0_1 = arith.constant 0 : index
    %c0_2 = arith.constant 0 : index
    %1 = vector.load %arg1[%c0_1, %c0_2] : memref<512x512xf32, #tpu.memory_space<vmem>>, vector<512x512xf32>
    %cst = arith.constant dense<0.000000e+00> : vector<2x512xf32>
    %2 = tpu.matmul %0, %1, %cst {dimension_numbers = #tpu.dot_dimension_numbers<[1], [0], [0], [1], [0, 0, 1, 1], [], []>} : vector<2x512xf32>, vector<512x512xf32>, vector<2x512xf32> -> vector<2x512xf32>
    %c0_3 = arith.constant 0 : index
    %c0_4 = arith.constant 0 : index
    %3 = vector.load %arg2[%c0_3, %c0_4] : memref<1x512xf32, #tpu.memory_space<vmem>>, vector<1x512xf32>
    %4 = vector.broadcast %3 : vector<1x512xf32> to vector<2x512xf32>
    %5 = arith.addf %2, %4 : vector<2x512xf32>
    %cst_5 = arith.constant 0.000000e+00 : f32
    %6 = vector.broadcast %cst_5 : f32 to vector<2x512xf32>
    %7 = arith.maximumf %5, %6 : vector<2x512xf32>
    %c0_6 = arith.constant 0 : index
    %c0_7 = arith.constant 0 : index
    %8 = vector.load %arg3[%c0_6, %c0_7] : memref<512x10xf32, #tpu.memory_space<vmem>>, vector<512x10xf32>
    %cst_8 = arith.constant dense<0.000000e+00> : vector<2x10xf32>
    %9 = tpu.matmul %7, %8, %cst_8 {dimension_numbers = #tpu.dot_dimension_numbers<[1], [0], [0], [1], [0, 0, 1, 1], [], []>} : vector<2x512xf32>, vector<512x10xf32>, vector<2x10xf32> -> vector<2x10xf32>
    %c0_9 = arith.constant 0 : index
    %c0_10 = arith.constant 0 : index
    %10 = vector.load %arg4[%c0_9, %c0_10] : memref<1x10xf32, #tpu.memory_space<vmem>>, vector<1x10xf32>
    %11 = vector.broadcast %10 : vector<1x10xf32> to vector<2x10xf32>
    %12 = arith.addf %9, %11 : vector<2x10xf32>
    %cst_11 = arith.constant 0.000000e+00 : f32
    %13 = vector.broadcast %cst_11 : f32 to vector<2x10xf32>
    %14 = arith.maximumf %12, %13 : vector<2x10xf32>
    %c0_12 = arith.constant 0 : index
    %c0_13 = arith.constant 0 : index
    %15 = vector.load %arg5[%c0_12, %c0_13] : memref<2x10xf32, #tpu.memory_space<vmem>>, vector<2x10xf32>
    tpu.vector_store %arg5[%c0_12, %c0_13], %14 {strides = array<i32>} : memref<2x10xf32, #tpu.memory_space<vmem>>, vector<2x10xf32>,
    return
  }
}

</mosaic_0001>

<bundles_post_ra>
// kernel: neural_network_forward.3
= control target key start
LH: loop header
LB: loop body
LE: loop exit
PB: predicated region body
PF: predicated region fallthrough
CT: control target
= control target key end

     0   :  { %s2305_s0 = inlined_call_operand.vmem [shape: f32[2,512], index: 0, kind: input, shape index: {}]   ;;  %s2306_s1 = inlined_call_operand.vmem [shape: f32[512,512], index: 1, kind: input, shape index: {}]   ;;  %s2307_s2 = inlined_call_operand.vmem [shape: f32[1,512], index: 2, kind: input, shape index: {}]   ;;  %s2308_s3 = inlined_call_operand.vmem [shape: f32[512,10], index: 3, kind: input, shape index: {}]   ;;  %s2309_s4 = inlined_call_operand.vmem [shape: f32[1,10], index: 4, kind: input, shape index: {}]   ;;  %s2310_s5 = inlined_call_operand.hbm [shape: f32[2,10], index: 5, kind: output, shape index: {}]  }
   0x1   :  { %v23_v0 = vld [vmem:[%s2306_s1 + $0x8] sm:$0xff]  ;;  %v25_v2 = vld [vmem:[%s2306_s1 + $0x18] sm:$0xff]  ;;  %v22_v5 = vld [vmem:[%s2306_s1] sm:$0xff] }
   0x2   :  { %v27_v1 = vld [vmem:[%s2306_s1 + $0x28] sm:$0xff]  ;;  %v29_v4 = vld [vmem:[%s2306_s1 + $0x38] sm:$0xff]  ;;  %v26_v6 = vld [vmem:[%s2306_s1 + $0x20] sm:$0xff] }
   0x3   :  { %v909_v3 = vpack.c.bf16 %v27_v1, %v23_v0  ;;  %v1037_v7 = vpack.c.bf16 %v29_v4, %v25_v2  ;;  %v911_v8 = vpack.c.bf16 %v26_v6, %v22_v5  ;;  %v24_v9 = vld [vmem:[%s2306_s1 + $0x10] sm:$0xff]  ;;  %v31_v11 = vld [vmem:[%s2306_s1 + $0x48] sm:$0xff]  ;;  %v33_v14 = vld [vmem:[%s2306_s1 + $0x58] sm:$0xff] }
   0x4   :  { %v28_v10 = vld [vmem:[%s2306_s1 + $0x30] sm:$0xff]  ;;  %v35_v13 = vld [vmem:[%s2306_s1 + $0x68] sm:$0xff]  ;;  %v37_v15 = vld [vmem:[%s2306_s1 + $0x78] sm:$0xff] }
   0x5   :  { %910 = vmatprep.subr.bf16.mxu0 %v909_v3  ;;  %v1039_v12 = vpack.c.bf16 %v28_v10, %v24_v9  ;;  %1038 = vmatprep.subr.bf16.mxu1 %v1037_v7  ;;  %v913_v16 = vpack.c.bf16 %v35_v13, %v31_v11  ;;  %v1041_v17 = vpack.c.bf16 %v37_v15, %v33_v14  ;;  %v30_v18 = vld [vmem:[%s2306_s1 + $0x40] sm:$0xff]  ;;  %v32_v20 = vld [vmem:[%s2306_s1 + $0x50] sm:$0xff]  ;;  %v39_v23 = vld [vmem:[%s2306_s1 + $0x88] sm:$0xff] }
   0x6   :  { %912 = vmatpush1.bf16.msra.mxu0 %v911_v8  ;;  %v34_v19 = vld [vmem:[%s2306_s1 + $0x60] sm:$0xff]  ;;  %v36_v22 = vld [vmem:[%s2306_s1 + $0x70] sm:$0xff]  ;;  %v43_v24 = vld [vmem:[%s2306_s1 + $0xa8] sm:$0xff] }
   0x7   :  { %1040 = vmatpush1.bf16.msra.mxu1 %v1039_v12  ;;  %v915_v21 = vpack.c.bf16 %v34_v19, %v30_v18  ;;  %914 = vmatprep.subr.bf16.mxu0 %v913_v16  ;;  %v1043_v25 = vpack.c.bf16 %v36_v22, %v32_v20  ;;  %v917_v26 = vpack.c.bf16 %v43_v24, %v39_v23  ;;  %v41_v27 = vld [vmem:[%s2306_s1 + $0x98] sm:$0xff]  ;;  %v38_v29 = vld [vmem:[%s2306_s1 + $0x80] sm:$0xff]  ;;  %v40_v32 = vld [vmem:[%s2306_s1 + $0x90] sm:$0xff] }
   0x8   :  { %1042 = vmatprep.subr.bf16.mxu1 %v1041_v17  ;;  %v45_v28 = vld [vmem:[%s2306_s1 + $0xb8] sm:$0xff]  ;;  %v42_v31 = vld [vmem:[%s2306_s1 + $0xa0] sm:$0xff]  ;;  %v44_v33 = vld [vmem:[%s2306_s1 + $0xb0] sm:$0xff] }
   0x9   :  { %v1045_v30 = vpack.c.bf16 %v45_v28, %v41_v27  ;;  %v919_v34 = vpack.c.bf16 %v42_v31, %v38_v29  ;;  %v47_v35 = vld [vmem:[%s2306_s1 + $0xc8] sm:$0xff]  ;;  %v49_v37 = vld [vmem:[%s2306_s1 + $0xd8] sm:$0xff]  ;;  %v1047_v38 = vpack.c.bf16 %v44_v33, %v40_v32  ;;  %v46_v41 = vld [vmem:[%s2306_s1 + $0xc0] sm:$0xff] }
   0xa   :  { %916 = vmatpush1.bf16.msra.mxu0 %v915_v21  ;;  %v51_v36 = vld [vmem:[%s2306_s1 + $0xe8] sm:$0xff]  ;;  %v53_v40 = vld [vmem:[%s2306_s1 + $0xf8] sm:$0xff]  ;;  %v50_v42 = vld [vmem:[%s2306_s1 + $0xe0] sm:$0xff] }
   0xb   :  { %1044 = vmatpush1.bf16.msra.mxu1 %v1043_v25  ;;  %918 = vmatprep.subr.bf16.mxu0 %v917_v26  ;;  %v921_v39 = vpack.c.bf16 %v51_v36, %v47_v35  ;;  %v1049_v43 = vpack.c.bf16 %v53_v40, %v49_v37  ;;  %v48_v44 = vld [vmem:[%s2306_s1 + $0xd0] sm:$0xff]  ;;  %v55_v46 = vld [vmem:[%s2306_s1 + $0x108] sm:$0xff]  ;;  %v57_v48 = vld [vmem:[%s2306_s1 + $0x118] sm:$0xff]  ;;  %v923_v50 = vpack.c.bf16 %v50_v42, %v46_v41 }
   0xc   :  { %1046 = vmatprep.subr.bf16.mxu1 %v1045_v30  ;;  %v52_v45 = vld [vmem:[%s2306_s1 + $0xf0] sm:$0xff]  ;;  %v59_v47 = vld [vmem:[%s2306_s1 + $0x128] sm:$0xff]  ;;  %v61_v49 = vld [vmem:[%s2306_s1 + $0x138] sm:$0xff] }
   0xd   :  { %v1051_v51 = vpack.c.bf16 %v52_v45, %v48_v44  ;;  %v925_v52 = vpack.c.bf16 %v59_v47, %v55_v46  ;;  %v54_v53 = vld [vmem:[%s2306_s1 + $0x100] sm:$0xff]  ;;  %v56_v55 = vld [vmem:[%s2306_s1 + $0x110] sm:$0xff]  ;;  %v1053_v56 = vpack.c.bf16 %v61_v49, %v57_v48  ;;  %v63_v58 = vld [vmem:[%s2306_s1 + $0x148] sm:$0xff]  ;;  %v280_v46 = vlaneseq }
   0xe   :  { %920 = vmatpush1.bf16.msra.mxu0 %v919_v34  ;;  %v58_v54 = vld [vmem:[%s2306_s1 + $0x120] sm:$0xff]  ;;  %v60_v57 = vld [vmem:[%s2306_s1 + $0x130] sm:$0xff]  ;;  %v67_v59 = vld [vmem:[%s2306_s1 + $0x168] sm:$0xff]  ;;  %v1264_v47 = vmov 1983009808  }
   0xf   :  { %1048 = vmatpush1.bf16.msra.mxu1 %v1047_v38  ;;  %922 = vmatprep.subr.bf16.mxu0 %v921_v39  ;;  %v65_v60 = vld [vmem:[%s2306_s1 + $0x158] sm:$0xff]  ;;  %v927_v62 = vpack.c.bf16 %v58_v54, %v54_v53  ;;  %v1055_v63 = vpack.c.bf16 %v60_v57, %v56_v55  ;;  %v929_v0 = vpack.c.bf16 %v67_v59, %v63_v58  ;;  %v62_v1 = vld [vmem:[%s2306_s1 + $0x140] sm:$0xff]  ;;  %v64_v3 = vld [vmem:[%s2306_s1 + $0x150] sm:$0xff]  ;;  %v303_v48 = vunpack.c.l.s4 %v1264_v47 }
  0x10   :  { %1050 = vmatprep.subr.bf16.mxu1 %v1049_v43  ;;  %v69_v61 = vld [vmem:[%s2306_s1 + $0x178] sm:$0xff]  ;;  %v66_v2 = vld [vmem:[%s2306_s1 + $0x160] sm:$0xff]  ;;  %v68_v5 = vld [vmem:[%s2306_s1 + $0x170] sm:$0xff] }
  0x11   :  { %v1057_v4 = vpack.c.bf16 %v69_v61, %v65_v60  ;;  %v71_v6 = vld [vmem:[%s2306_s1 + $0x188] sm:$0xff]  ;;  %v73_v8 = vld [vmem:[%s2306_s1 + $0x198] sm:$0xff]  ;;  %v931_v10 = vpack.c.bf16 %v66_v2, %v62_v1  ;;  %v1059_v11 = vpack.c.bf16 %v68_v5, %v64_v3  ;;  %v70_v13 = vld [vmem:[%s2306_s1 + $0x180] sm:$0xff]  ;;  %v1548_v61 = vshrl.u32 %v280_v46, 7 }
  0x12   :  { %924 = vmatpush1.bf16.msra.mxu0 %v923_v50  ;;  %v75_v7 = vld [vmem:[%s2306_s1 + $0x1a8] sm:$0xff]  ;;  %v77_v9 = vld [vmem:[%s2306_s1 + $0x1b8] sm:$0xff]  ;;  %v74_v14 = vld [vmem:[%s2306_s1 + $0x1a0] sm:$0xff] }
  0x13   :  { %1052 = vmatpush1.bf16.msra.mxu1 %v1051_v51  ;;  %926 = vmatprep.subr.bf16.mxu0 %v925_v52  ;;  %v933_v12 = vpack.c.bf16 %v75_v7, %v71_v6  ;;  %v72_v15 = vld [vmem:[%s2306_s1 + $0x190] sm:$0xff]  ;;  %v1061_v16 = vpack.c.bf16 %v77_v9, %v73_v8  ;;  %v79_v18 = vld [vmem:[%s2306_s1 + $0x1c8] sm:$0xff]  ;;  %v81_v20 = vld [vmem:[%s2306_s1 + $0x1d8] sm:$0xff]  ;;  %v935_v22 = vpack.c.bf16 %v74_v14, %v70_v13 }
  0x14   :  { %1054 = vmatprep.subr.bf16.mxu1 %v1053_v56  ;;  %v76_v17 = vld [vmem:[%s2306_s1 + $0x1b0] sm:$0xff]  ;;  %v83_v19 = vld [vmem:[%s2306_s1 + $0x1e8] sm:$0xff]  ;;  %v85_v21 = vld [vmem:[%s2306_s1 + $0x1f8] sm:$0xff] }
  0x15   :  { %v1063_v23 = vpack.c.bf16 %v76_v17, %v72_v15  ;;  %v937_v24 = vpack.c.bf16 %v83_v19, %v79_v18  ;;  %v78_v25 = vld [vmem:[%s2306_s1 + $0x1c0] sm:$0xff]  ;;  %v80_v27 = vld [vmem:[%s2306_s1 + $0x1d0] sm:$0xff]  ;;  %v1065_v28 = vpack.c.bf16 %v85_v21, %v81_v20  ;;  %v87_v30 = vld [vmem:[%s2306_s1 + $0x208] sm:$0xff] }
  0x16   :  { %928 = vmatpush1.bf16.msra.mxu0 %v927_v62  ;;  %v82_v26 = vld [vmem:[%s2306_s1 + $0x1e0] sm:$0xff]  ;;  %v84_v29 = vld [vmem:[%s2306_s1 + $0x1f0] sm:$0xff]  ;;  %v91_v31 = vld [vmem:[%s2306_s1 + $0x228] sm:$0xff]  ;;  %v304_v62 = vunpack.c.0.s8 %v303_v48 }
  0x17   :  { %1056 = vmatpush1.bf16.msra.mxu1 %v1055_v63  ;;  %930 = vmatprep.subr.bf16.mxu0 %v929_v0  ;;  %v89_v32 = vld [vmem:[%s2306_s1 + $0x218] sm:$0xff]  ;;  %v939_v34 = vpack.c.bf16 %v82_v26, %v78_v25  ;;  %v1067_v35 = vpack.c.bf16 %v84_v29, %v80_v27  ;;  %v941_v36 = vpack.c.bf16 %v91_v31, %v87_v30  ;;  %v86_v37 = vld [vmem:[%s2306_s1 + $0x200] sm:$0xff]  ;;  %v88_v39 = vld [vmem:[%s2306_s1 + $0x210] sm:$0xff] }
  0x18   :  { %1058 = vmatprep.subr.bf16.mxu1 %v1057_v4  ;;  %v93_v33 = vld [vmem:[%s2306_s1 + $0x238] sm:$0xff]  ;;  %v90_v38 = vld [vmem:[%s2306_s1 + $0x220] sm:$0xff]  ;;  %v92_v41 = vld [vmem:[%s2306_s1 + $0x230] sm:$0xff] }
  0x19   :  { %v1069_v40 = vpack.c.bf16 %v93_v33, %v89_v32  ;;  %v95_v42 = vld [vmem:[%s2306_s1 + $0x248] sm:$0xff]  ;;  %v97_v44 = vld [vmem:[%s2306_s1 + $0x258] sm:$0xff]  ;;  %v943_v49 = vpack.c.bf16 %v90_v38, %v86_v37  ;;  %v1071_v50 = vpack.c.bf16 %v92_v41, %v88_v39  ;;  %v94_v52 = vld [vmem:[%s2306_s1 + $0x240] sm:$0xff] }
  0x1a   :  { %932 = vmatpush1.bf16.msra.mxu0 %v931_v10  ;;  %v99_v43 = vld [vmem:[%s2306_s1 + $0x268] sm:$0xff]  ;;  %v101_v45 = vld [vmem:[%s2306_s1 + $0x278] sm:$0xff]  ;;  %v98_v53 = vld [vmem:[%s2306_s1 + $0x260] sm:$0xff] }
  0x1b   :  { %1060 = vmatpush1.bf16.msra.mxu1 %v1059_v11  ;;  %934 = vmatprep.subr.bf16.mxu0 %v933_v12  ;;  %v945_v51 = vpack.c.bf16 %v99_v43, %v95_v42  ;;  %v96_v54 = vld [vmem:[%s2306_s1 + $0x250] sm:$0xff]  ;;  %v1073_v55 = vpack.c.bf16 %v101_v45, %v97_v44  ;;  %v103_v57 = vld [vmem:[%s2306_s1 + $0x288] sm:$0xff]  ;;  %v105_v59 = vld [vmem:[%s2306_s1 + $0x298] sm:$0xff]  ;;  %v947_v63 = vpack.c.bf16 %v98_v53, %v94_v52 }
  0x1c   :  { %1062 = vmatprep.subr.bf16.mxu1 %v1061_v16  ;;  %v100_v56 = vld [vmem:[%s2306_s1 + $0x270] sm:$0xff]  ;;  %v107_v58 = vld [vmem:[%s2306_s1 + $0x2a8] sm:$0xff]  ;;  %v109_v60 = vld [vmem:[%s2306_s1 + $0x2b8] sm:$0xff]  ;;  %v1575_v11 = vsub.s32 %v304_v62, %v1548_v61 }
  0x1d   :  { %v1075_v0 = vpack.c.bf16 %v100_v56, %v96_v54  ;;  %v949_v1 = vpack.c.bf16 %v107_v58, %v103_v57  ;;  %v102_v2 = vld [vmem:[%s2306_s1 + $0x280] sm:$0xff]  ;;  %v104_v4 = vld [vmem:[%s2306_s1 + $0x290] sm:$0xff]  ;;  %v1077_v5 = vpack.c.bf16 %v109_v60, %v105_v59  ;;  %v111_v7 = vld [vmem:[%s2306_s1 + $0x2c8] sm:$0xff] }
  0x1e   :  { %936 = vmatpush1.bf16.msra.mxu0 %v935_v22  ;;  %v106_v3 = vld [vmem:[%s2306_s1 + $0x2a0] sm:$0xff]  ;;  %v108_v6 = vld [vmem:[%s2306_s1 + $0x2b0] sm:$0xff]  ;;  %v115_v8 = vld [vmem:[%s2306_s1 + $0x2e8] sm:$0xff] }
  0x1f   :  { %1064 = vmatpush1.bf16.msra.mxu1 %v1063_v23  ;;  %938 = vmatprep.subr.bf16.mxu0 %v937_v24  ;;  %v113_v9 = vld [vmem:[%s2306_s1 + $0x2d8] sm:$0xff]  ;;  %v951_v12 = vpack.c.bf16 %v106_v3, %v102_v2  ;;  %v110_v13 = vld [vmem:[%s2306_s1 + $0x2c0] sm:$0xff]  ;;  %v1079_v14 = vpack.c.bf16 %v108_v6, %v104_v4  ;;  %v953_v15 = vpack.c.bf16 %v115_v8, %v111_v7  ;;  %v112_v17 = vld [vmem:[%s2306_s1 + $0x2d0] sm:$0xff] }
  0x20   :  { %1066 = vmatprep.subr.bf16.mxu1 %v1065_v28  ;;  %v117_v10 = vld [vmem:[%s2306_s1 + $0x2f8] sm:$0xff]  ;;  %v114_v16 = vld [vmem:[%s2306_s1 + $0x2e0] sm:$0xff]  ;;  %v116_v18 = vld [vmem:[%s2306_s1 + $0x2f0] sm:$0xff] }
  0x21   :  { %v1081_v19 = vpack.c.bf16 %v117_v10, %v113_v9  ;;  %v119_v20 = vld [vmem:[%s2306_s1 + $0x308] sm:$0xff]  ;;  %v1598_v22 = vld [vmem:[%s2305_s0] sm:$0xff]  ;;  %v121_v23 = vld [vmem:[%s2306_s1 + $0x318] sm:$0xff]  ;;  %v955_v26 = vpack.c.bf16 %v114_v16, %v110_v13  ;;  %v1083_v27 = vpack.c.bf16 %v116_v18, %v112_v17 }
  0x22   :  { %940 = vmatpush1.bf16.msra.mxu0 %v939_v34  ;;  %v123_v21 = vld [vmem:[%s2306_s1 + $0x328] sm:$0xff]  ;;  %v125_v24 = vld [vmem:[%s2306_s1 + $0x338] sm:$0xff]  ;;  %v1608_v25 = vrot.slane %v1598_v22, %v1575_v11  ;;  %v118_v29 = vld [vmem:[%s2306_s1 + $0x300] sm:$0xff]  ;;  %v301_v8 = vcombine.high %v1598_v22, %v1598_v22 }
  0x23   :  { %1068 = vmatpush1.bf16.msra.mxu1 %v1067_v35  ;;  %942 = vmatprep.subr.bf16.mxu0 %v941_v36  ;;  %v957_v28 = vpack.c.bf16 %v123_v21, %v119_v20  ;;  %v122_v30 = vld [vmem:[%s2306_s1 + $0x320] sm:$0xff]  ;;  %v120_v31 = vld [vmem:[%s2306_s1 + $0x310] sm:$0xff]  ;;  %v1085_v33 = vpack.c.bf16 %v125_v24, %v121_v23  ;;  %v127_v35 = vld [vmem:[%s2306_s1 + $0x348] sm:$0xff] }
  0x24   :  { %1070 = vmatprep.subr.bf16.mxu1 %v1069_v40  ;;  %v316_v32 = vcombine.high %v1608_v25, %v1608_v25  ;;  %v124_v34 = vld [vmem:[%s2306_s1 + $0x330] sm:$0xff]  ;;  %v131_v36 = vld [vmem:[%s2306_s1 + $0x368] sm:$0xff]  ;;  %v129_v37 = vld [vmem:[%s2306_s1 + $0x358] sm:$0xff]  ;;  %v959_v39 = vpack.c.bf16 %v122_v30, %v118_v29  ;;  %v1729_v24 = vrot.slane %v301_v8, %v1575_v11 }
  0x25   :  { %v133_v38 = vld [vmem:[%s2306_s1 + $0x378] sm:$0xff]  ;;  %v1087_v40 = vpack.c.bf16 %v124_v34, %v120_v31  ;;  %v961_v41 = vpack.c.bf16 %v131_v36, %v127_v35  ;;  %v126_v42 = vld [vmem:[%s2306_s1 + $0x340] sm:$0xff]  ;;  %v128_v44 = vld [vmem:[%s2306_s1 + $0x350] sm:$0xff] }
  0x26   :  { %944 = vmatpush1.bf16.msra.mxu0 %v943_v49  ;;  %386 = vmatprep.mubr.f32.mxu0 %v316_v32  ;;  %v130_v43 = vld [vmem:[%s2306_s1 + $0x360] sm:$0xff]  ;;  %v1089_v45 = vpack.c.bf16 %v133_v38, %v129_v37  ;;  %v132_v46 = vld [vmem:[%s2306_s1 + $0x370] sm:$0xff]  ;;  %v135_v47 = vld [vmem:[%s2306_s1 + $0x388] sm:$0xff]  ;;  %v317_v37 = vcombine.high %v1729_v24, %v1729_v24 }
  0x27   :  { %1072 = vmatpush1.bf16.msra.mxu1 %v1071_v50  ;;  %946 = vmatprep.subr.bf16.mxu0 %v945_v51  ;;  %v139_v48 = vld [vmem:[%s2306_s1 + $0x3a8] sm:$0xff]  ;;  %v137_v49 = vld [vmem:[%s2306_s1 + $0x398] sm:$0xff]  ;;  %v963_v51 = vpack.c.bf16 %v130_v43, %v126_v42  ;;  %v1091_v52 = vpack.c.bf16 %v132_v46, %v128_v44  ;;  %v134_v54 = vld [vmem:[%s2306_s1 + $0x380] sm:$0xff] }
  0x28   :  { %1074 = vmatprep.subr.bf16.mxu1 %v1073_v55  ;;  %528 = vmatprep.mubr.f32.mxu1 %v316_v32  ;;  %v141_v50 = vld [vmem:[%s2306_s1 + $0x3b8] sm:$0xff]  ;;  %v965_v53 = vpack.c.bf16 %v139_v48, %v135_v47  ;;  %v138_v55 = vld [vmem:[%s2306_s1 + $0x3a0] sm:$0xff]  ;;  %v136_v56 = vld [vmem:[%s2306_s1 + $0x390] sm:$0xff] }
  0x29   :  { %v1093_v57 = vpack.c.bf16 %v141_v50, %v137_v49  ;;  %v140_v58 = vld [vmem:[%s2306_s1 + $0x3b0] sm:$0xff]  ;;  %v143_v59 = vld [vmem:[%s2306_s1 + $0x3c8] sm:$0xff]  ;;  %v145_v62 = vld [vmem:[%s2306_s1 + $0x3d8] sm:$0xff] }
  0x2a   :  { %948 = vmatpush1.bf16.msra.mxu0 %v947_v63  ;;  %v147_v60 = vld [vmem:[%s2306_s1 + $0x3e8] sm:$0xff]  ;;  %v149_v63 = vld [vmem:[%s2306_s1 + $0x3f8] sm:$0xff]  ;;  %v142_v3 = vld [vmem:[%s2306_s1 + $0x3c0] sm:$0xff] }
  0x2b   :  { %1076 = vmatpush1.bf16.msra.mxu1 %v1075_v0  ;;  %950 = vmatprep.subr.bf16.mxu0 %v949_v1  ;;  %v967_v0 = vpack.c.bf16 %v138_v55, %v134_v54  ;;  %v1095_v1 = vpack.c.bf16 %v140_v58, %v136_v56  ;;  %v969_v2 = vpack.c.bf16 %v147_v60, %v143_v59  ;;  %v146_v4 = vld [vmem:[%s2306_s1 + $0x3e0] sm:$0xff]  ;;  %v148_v7 = vld [vmem:[%s2306_s1 + $0x3f0] sm:$0xff]  ;;  %v151_v9 = vld [vmem:[%s2306_s1 + $0x408] sm:$0xff] }
  0x2c   :  { %1078 = vmatprep.subr.bf16.mxu1 %v1077_v5  ;;  %v144_v5 = vld [vmem:[%s2306_s1 + $0x3d0] sm:$0xff]  ;;  %v1097_v6 = vpack.c.bf16 %v149_v63, %v145_v62  ;;  %v155_v10 = vld [vmem:[%s2306_s1 + $0x428] sm:$0xff]  ;;  %v157_v13 = vld [vmem:[%s2306_s1 + $0x438] sm:$0xff] }
  0x2d   :  { %v973_v16 = vpack.c.bf16 %v155_v10, %v151_v9  ;;  %v150_v17 = vld [vmem:[%s2306_s1 + $0x400] sm:$0xff]  ;;  %v156_v21 = vld [vmem:[%s2306_s1 + $0x430] sm:$0xff]  ;;  %v159_v22 = vld [vmem:[%s2306_s1 + $0x448] sm:$0xff] }
  0x2e   :  { %952 = vmatpush1.bf16.msra.mxu0 %v951_v12  ;;  %v153_v12 = vld [vmem:[%s2306_s1 + $0x418] sm:$0xff]  ;;  %v154_v18 = vld [vmem:[%s2306_s1 + $0x420] sm:$0xff]  ;;  %v163_v23 = vld [vmem:[%s2306_s1 + $0x468] sm:$0xff] }
  0x2f   :  { %1080 = vmatpush1.bf16.msra.mxu1 %v1079_v14  ;;  %954 = vmatprep.subr.bf16.mxu0 %v953_v15  ;;  %v971_v14 = vpack.c.bf16 %v146_v4, %v142_v3  ;;  %v1099_v15 = vpack.c.bf16 %v148_v7, %v144_v5  ;;  %v1101_v20 = vpack.c.bf16 %v157_v13, %v153_v12  ;;  %v158_v31 = vld [vmem:[%s2306_s1 + $0x440] sm:$0xff]  ;;  %v160_v32 = vld [vmem:[%s2306_s1 + $0x450] sm:$0xff]  ;;  %v167_v35 = vld [vmem:[%s2306_s1 + $0x488] sm:$0xff] }
  0x30   :  { %1082 = vmatprep.subr.bf16.mxu1 %v1081_v19  ;;  %v152_v19 = vld [vmem:[%s2306_s1 + $0x410] sm:$0xff]  ;;  %v977_v30 = vpack.c.bf16 %v163_v23, %v159_v22  ;;  %v162_v11 = vld [vmem:[%s2306_s1 + $0x460] sm:$0xff]  ;;  %v171_v36 = vld [vmem:[%s2306_s1 + $0x4a8] sm:$0xff] }
  0x31   :  { %v1103_v29 = vpack.c.bf16 %v156_v21, %v152_v19  ;;  %v164_v34 = vld [vmem:[%s2306_s1 + $0x470] sm:$0xff]  ;;  %v169_v38 = vld [vmem:[%s2306_s1 + $0x498] sm:$0xff]  ;;  %v981_v42 = vpack.c.bf16 %v171_v36, %v167_v35  ;;  %v166_v43 = vld [vmem:[%s2306_s1 + $0x480] sm:$0xff] }
  0x32   :  { %956 = vmatpush1.bf16.msra.mxu0 %v955_v26  ;;  %v161_v26 = vld [vmem:[%s2306_s1 + $0x458] sm:$0xff]  ;;  %v170_v44 = vld [vmem:[%s2306_s1 + $0x4a0] sm:$0xff]  ;;  %v175_v47 = vld [vmem:[%s2306_s1 + $0x4c8] sm:$0xff] }
  0x33   :  { %1084 = vmatpush1.bf16.msra.mxu1 %v1083_v27  ;;  %958 = vmatprep.subr.bf16.mxu0 %v957_v28  ;;  %v165_v27 = vld [vmem:[%s2306_s1 + $0x478] sm:$0xff]  ;;  %v975_v28 = vpack.c.bf16 %v154_v18, %v150_v17  ;;  %v179_v48 = vld [vmem:[%s2306_s1 + $0x4e8] sm:$0xff]  ;;  %v174_v54 = vld [vmem:[%s2306_s1 + $0x4c0] sm:$0xff] }
  0x34   :  { %1086 = vmatprep.subr.bf16.mxu1 %v1085_v33  ;;  %v1105_v33 = vpack.c.bf16 %v165_v27, %v161_v26  ;;  %v177_v49 = vld [vmem:[%s2306_s1 + $0x4d8] sm:$0xff]  ;;  %v178_v55 = vld [vmem:[%s2306_s1 + $0x4e0] sm:$0xff]  ;;  %v176_v56 = vld [vmem:[%s2306_s1 + $0x4d0] sm:$0xff] }
  0x35   :  { %v181_v50 = vld [vmem:[%s2306_s1 + $0x4f8] sm:$0xff]  ;;  %v180_v58 = vld [vmem:[%s2306_s1 + $0x4f0] sm:$0xff]  ;;  %v183_v59 = vld [vmem:[%s2306_s1 + $0x508] sm:$0xff] }
  0x36   :  { %960 = vmatpush1.bf16.msra.mxu0 %v959_v39  ;;  %v173_v39 = vld [vmem:[%s2306_s1 + $0x4b8] sm:$0xff]  ;;  %v187_v60 = vld [vmem:[%s2306_s1 + $0x528] sm:$0xff]  ;;  %v182_v3 = vld [vmem:[%s2306_s1 + $0x500] sm:$0xff] }
  0x37   :  { %1088 = vmatpush1.bf16.msra.mxu1 %v1087_v40  ;;  %962 = vmatprep.subr.bf16.mxu0 %v961_v41  ;;  %v979_v40 = vpack.c.bf16 %v162_v11, %v158_v31  ;;  %v1107_v41 = vpack.c.bf16 %v164_v34, %v160_v32  ;;  %v1109_v46 = vpack.c.bf16 %v173_v39, %v169_v38  ;;  %v185_v62 = vld [vmem:[%s2306_s1 + $0x518] sm:$0xff]  ;;  %v186_v4 = vld [vmem:[%s2306_s1 + $0x520] sm:$0xff]  ;;  %v184_v5 = vld [vmem:[%s2306_s1 + $0x510] sm:$0xff] }
  0x38   :  { %1090 = vmatprep.subr.bf16.mxu1 %v1089_v45  ;;  %v168_v45 = vld [vmem:[%s2306_s1 + $0x490] sm:$0xff]  ;;  %v189_v63 = vld [vmem:[%s2306_s1 + $0x538] sm:$0xff]  ;;  %v191_v8 = vld [vmem:[%s2306_s1 + $0x548] sm:$0xff]  ;;  %v991_v13 = vpack.c.bf16 %v186_v4, %v182_v3 }
  0x39   :  { %v188_v7 = vld [vmem:[%s2306_s1 + $0x530] sm:$0xff]  ;;  %v195_v9 = vld [vmem:[%s2306_s1 + $0x568] sm:$0xff]  ;;  %v193_v10 = vld [vmem:[%s2306_s1 + $0x558] sm:$0xff] }
  0x3a   :  { %964 = vmatpush1.bf16.msra.mxu0 %v963_v51  ;;  %v983_v51 = vpack.c.bf16 %v170_v44, %v166_v43  ;;  %v197_v12 = vld [vmem:[%s2306_s1 + $0x578] sm:$0xff]  ;;  %v194_v17 = vld [vmem:[%s2306_s1 + $0x560] sm:$0xff]  ;;  %v192_v18 = vld [vmem:[%s2306_s1 + $0x550] sm:$0xff] }
  0x3b   :  { %1092 = vmatpush1.bf16.msra.mxu1 %v1091_v52  ;;  %966 = vmatprep.subr.bf16.mxu0 %v965_v53  ;;  %v985_v53 = vpack.c.bf16 %v179_v48, %v175_v47  ;;  %v1121_v19 = vpack.c.bf16 %v197_v12, %v193_v10  ;;  %v199_v21 = vld [vmem:[%s2306_s1 + $0x588] sm:$0xff]  ;;  %v201_v23 = vld [vmem:[%s2306_s1 + $0x598] sm:$0xff]  ;;  %v202_v31 = vld [vmem:[%s2306_s1 + $0x5a0] sm:$0xff] }
  0x3c   :  { %1094 = vmatprep.subr.bf16.mxu1 %v1093_v57  ;;  %v1113_v57 = vpack.c.bf16 %v181_v50, %v177_v49  ;;  %v203_v22 = vld [vmem:[%s2306_s1 + $0x5a8] sm:$0xff]  ;;  %v205_v26 = vld [vmem:[%s2306_s1 + $0x5b8] sm:$0xff]  ;;  %v200_v11 = vld [vmem:[%s2306_s1 + $0x590] sm:$0xff] }
  0x3d   :  { %v1125_v32 = vpack.c.bf16 %v205_v26, %v201_v23  ;;  %v207_v34 = vld [vmem:[%s2306_s1 + $0x5c8] sm:$0xff]  ;;  %v209_v36 = vld [vmem:[%s2306_s1 + $0x5d8] sm:$0xff]  ;;  %v208_v43 = vld [vmem:[%s2306_s1 + $0x5d0] sm:$0xff] }
  0x3e   :  { %968 = vmatpush1.bf16.msra.mxu0 %v967_v0  ;;  %v987_v0 = vpack.c.bf16 %v178_v55, %v174_v54  ;;  %v211_v35 = vld [vmem:[%s2306_s1 + $0x5e8] sm:$0xff]  ;;  %v217_v47 = vld [vmem:[%s2306_s1 + $0x618] sm:$0xff]  ;;  %v216_v54 = vld [vmem:[%s2306_s1 + $0x610] sm:$0xff] }
  0x3f   :  { %1096 = vmatpush1.bf16.msra.mxu1 %v1095_v1  ;;  %970 = vmatprep.subr.bf16.mxu0 %v969_v2  ;;  %v1115_v1 = vpack.c.bf16 %v180_v58, %v176_v56  ;;  %v989_v2 = vpack.c.bf16 %v187_v60, %v183_v59  ;;  %v221_v48 = vld [vmem:[%s2306_s1 + $0x638] sm:$0xff]  ;;  %v220_v56 = vld [vmem:[%s2306_s1 + $0x630] sm:$0xff]  ;;  %v227_v58 = vld [vmem:[%s2306_s1 + $0x668] sm:$0xff] }
  0x40   :  { %1098 = vmatprep.subr.bf16.mxu1 %v1097_v6  ;;  %v1117_v6 = vpack.c.bf16 %v189_v63, %v185_v62  ;;  %v1133_v55 = vpack.c.bf16 %v221_v48, %v217_v47  ;;  %v225_v59 = vld [vmem:[%s2306_s1 + $0x658] sm:$0xff]  ;;  %v1135_v63 = vpack.c.bf16 %v220_v56, %v216_v54  ;;  %v224_v3 = vld [vmem:[%s2306_s1 + $0x650] sm:$0xff] }
  0x41   :  { %v229_v60 = vld [vmem:[%s2306_s1 + $0x678] sm:$0xff] }
  0x42   :  { %972 = vmatpush1.bf16.msra.mxu0 %v971_v14  ;;  %v1119_v14 = vpack.c.bf16 %v188_v7, %v184_v5  ;;  %v1137_v4 = vpack.c.bf16 %v229_v60, %v225_v59  ;;  %v228_v5 = vld [vmem:[%s2306_s1 + $0x670] sm:$0xff]  ;;  %v235_v7 = vld [vmem:[%s2306_s1 + $0x6a8] sm:$0xff] }
  0x43   :  { %1100 = vmatpush1.bf16.msra.mxu1 %v1099_v15  ;;  %974 = vmatprep.subr.bf16.mxu0 %v973_v16  ;;  %v993_v15 = vpack.c.bf16 %v195_v9, %v191_v8  ;;  %v190_v16 = vld [vmem:[%s2306_s1 + $0x540] sm:$0xff]  ;;  %v233_v8 = vld [vmem:[%s2306_s1 + $0x698] sm:$0xff]  ;;  %v1139_v12 = vpack.c.bf16 %v228_v5, %v224_v3 }
  0x44   :  { %1102 = vmatprep.subr.bf16.mxu1 %v1101_v20  ;;  %v196_v20 = vld [vmem:[%s2306_s1 + $0x570] sm:$0xff]  ;;  %v995_v27 = vpack.c.bf16 %v194_v17, %v190_v16  ;;  %v237_v9 = vld [vmem:[%s2306_s1 + $0x6b8] sm:$0xff] }
  0x45   :  { %387 = vmatmul.mubr.f32.vlgmr.msra.gmra.mrb[0].mxu0 %v1608_v25  ;;  %v232_v16 = vld [vmem:[%s2306_s1 + $0x690] sm:$0xff]  ;;  %v1141_v17 = vpack.c.bf16 %v237_v9, %v233_v8 }
  0x46   :  { %976 = vmatpush1.bf16.msra.mxu0 %v975_v28  ;;  %529 = vmatmul.mubr.f32.vlgmr.msra.gmra.mrb[0].mxu1 %v1608_v25  ;;  %v172_v25 = vld [vmem:[%s2306_s1 + $0x4b0] sm:$0xff]  ;;  %v1123_v28 = vpack.c.bf16 %v196_v20, %v192_v18  ;;  %v243_v20 = vld [vmem:[%s2306_s1 + $0x6e8] sm:$0xff] }
  0x47   :  { %1104 = vmatpush1.bf16.msra.mxu1 %v1103_v29  ;;  %978 = vmatprep.subr.bf16.mxu0 %v977_v30  ;;  %v1111_v52 = vpack.c.bf16 %v172_v25, %v168_v45  ;;  %v997_v29 = vpack.c.bf16 %v203_v22, %v199_v21  ;;  %v198_v30 = vld [vmem:[%s2306_s1 + $0x580] sm:$0xff]  ;;  %v212_v45 = vld [vmem:[%s2306_s1 + $0x5f0] sm:$0xff]  ;;  %v219_v25 = vld [vmem:[%s2306_s1 + $0x628] sm:$0xff] }
  0x48   :  { %1106 = vmatprep.subr.bf16.mxu1 %v1105_v33  ;;  %457 = vmatprep.mubr.f32.mxu0 %v317_v37  ;;  %v204_v33 = vld [vmem:[%s2306_s1 + $0x5b0] sm:$0xff]  ;;  %v999_v38 = vpack.c.bf16 %v202_v31, %v198_v30  ;;  %v1131_v50 = vpack.c.bf16 %v212_v45, %v208_v43  ;;  %v241_v21 = vld [vmem:[%s2306_s1 + $0x6d8] sm:$0xff] }
  0x49   :  { %599 = vmatprep.mubr.f32.mxu1 %v317_v37  ;;  %v213_v37 = vld [vmem:[%s2306_s1 + $0x5f8] sm:$0xff]  ;;  %v1127_v39 = vpack.c.bf16 %v204_v33, %v200_v11  ;;  %v236_v18 = vld [vmem:[%s2306_s1 + $0x6b0] sm:$0xff] }
  0x4a   :  { %980 = vmatpush1.bf16.msra.mxu0 %v979_v40  ;;  %v1001_v40 = vpack.c.bf16 %v211_v35, %v207_v34  ;;  %v1129_v44 = vpack.c.bf16 %v213_v37, %v209_v36  ;;  %v245_v22 = vld [vmem:[%s2306_s1 + $0x6f8] sm:$0xff] }
  0x4b   :  { %1108 = vmatpush1.bf16.msra.mxu1 %v1107_v41  ;;  %982 = vmatprep.subr.bf16.mxu0 %v981_v42  ;;  %v206_v41 = vld [vmem:[%s2306_s1 + $0x5c0] sm:$0xff] }
  0x4c   :  { %1110 = vmatprep.subr.bf16.mxu1 %v1109_v46  ;;  %v210_v42 = vld [vmem:[%s2306_s1 + $0x5e0] sm:$0xff]  ;;  %v215_v46 = vld [vmem:[%s2306_s1 + $0x608] sm:$0xff] }
  0x4d   :  { %v1003_v49 = vpack.c.bf16 %v210_v42, %v206_v41 }
  0x4e   :  { %984 = vmatpush1.bf16.msra.mxu0 %v983_v51  ;;  %v1005_v51 = vpack.c.bf16 %v219_v25, %v215_v46 }
  0x4f   :  { %1112 = vmatpush1.bf16.msra.mxu1 %v1111_v52  ;;  %986 = vmatprep.subr.bf16.mxu0 %v985_v53  ;;  %v214_v52 = vld [vmem:[%s2306_s1 + $0x600] sm:$0xff] }
  0x50   :  { %1114 = vmatprep.subr.bf16.mxu1 %v1113_v57  ;;  %v218_v53 = vld [vmem:[%s2306_s1 + $0x620] sm:$0xff]  ;;  %v223_v57 = vld [vmem:[%s2306_s1 + $0x648] sm:$0xff] }
  0x51   :  { %v1007_v62 = vpack.c.bf16 %v218_v53, %v214_v52 }
  0x52   :  { %988 = vmatpush1.bf16.msra.mxu0 %v987_v0  ;;  %v1009_v0 = vpack.c.bf16 %v227_v58, %v223_v57 }
  0x53   :  { %1116 = vmatpush1.bf16.msra.mxu1 %v1115_v1  ;;  %990 = vmatprep.subr.bf16.mxu0 %v989_v2  ;;  %v222_v1 = vld [vmem:[%s2306_s1 + $0x640] sm:$0xff] }
  0x54   :  { %1118 = vmatprep.subr.bf16.mxu1 %v1117_v6  ;;  %v226_v2 = vld [vmem:[%s2306_s1 + $0x660] sm:$0xff]  ;;  %v231_v6 = vld [vmem:[%s2306_s1 + $0x688] sm:$0xff] }
  0x55   :  { %v1011_v10 = vpack.c.bf16 %v226_v2, %v222_v1 }
  0x56   :  { %992 = vmatpush1.bf16.msra.mxu0 %v991_v13  ;;  %v1013_v13 = vpack.c.bf16 %v235_v7, %v231_v6 }
  0x57   :  { %1120 = vmatpush1.bf16.msra.mxu1 %v1119_v14  ;;  %994 = vmatprep.subr.bf16.mxu0 %v993_v15  ;;  %v230_v14 = vld [vmem:[%s2306_s1 + $0x680] sm:$0xff] }
  0x58   :  { %1122 = vmatprep.subr.bf16.mxu1 %v1121_v19  ;;  %v234_v15 = vld [vmem:[%s2306_s1 + $0x6a0] sm:$0xff]  ;;  %v239_v19 = vld [vmem:[%s2306_s1 + $0x6c8] sm:$0xff] }
  0x5a   :  { %996 = vmatpush1.bf16.msra.mxu0 %v995_v27 }
  0x5b   :  { %1124 = vmatpush1.bf16.msra.mxu1 %v1123_v28  ;;  %998 = vmatprep.subr.bf16.mxu0 %v997_v29 }
  0x5c   :  { %1126 = vmatprep.subr.bf16.mxu1 %v1125_v32 }
  0x5e   :  { %1000 = vmatpush1.bf16.msra.mxu0 %v999_v38 }
  0x5f   :  { %1128 = vmatpush1.bf16.msra.mxu1 %v1127_v39  ;;  %1002 = vmatprep.subr.bf16.mxu0 %v1001_v40 }
  0x60   :  { %1130 = vmatprep.subr.bf16.mxu1 %v1129_v44 }
  0x62   :  { %1004 = vmatpush1.bf16.msra.mxu0 %v1003_v49 }
  0x63   :  { %1132 = vmatpush1.bf16.msra.mxu1 %v1131_v50  ;;  %1006 = vmatprep.subr.bf16.mxu0 %v1005_v51 }
  0x64   :  { %1134 = vmatprep.subr.bf16.mxu1 %v1133_v55 }
  0x66   :  { %1008 = vmatpush1.bf16.msra.mxu0 %v1007_v62 }
  0x67   :  { %1136 = vmatpush1.bf16.msra.mxu1 %v1135_v63  ;;  %1010 = vmatprep.subr.bf16.mxu0 %v1009_v0 }
  0x68   :  { %1138 = vmatprep.subr.bf16.mxu1 %v1137_v4 }
  0x69   :  { %10 = vsyncpa [#allocation3], 0  ;;  %v1015_v23 = vpack.c.bf16 %v234_v15, %v230_v14  ;;  %v1143_v26 = vpack.c.bf16 %v236_v18, %v232_v16  ;;  %v1017_v27 = vpack.c.bf16 %v243_v20, %v239_v19  ;;  %v238_v28 = vld [vmem:[%s2306_s1 + $0x6c0] sm:$0xff]  ;;  %v240_v30 = vld [vmem:[%s2306_s1 + $0x6d0] sm:$0xff]  ;;  %v1145_v31 = vpack.c.bf16 %v245_v22, %v241_v21  ;;  %s1265_s15 = smov [#allocation2]  }
  0x6a   :  { %1012 = vmatpush1.bf16.msra.mxu0 %v1011_v10  ;;  %v242_v29 = vld [vmem:[%s2306_s1 + $0x6e0] sm:$0xff]  ;;  %v244_v11 = vld [vmem:[%s2306_s1 + $0x6f0] sm:$0xff]  ;;  %v247_v32 = vld [vmem:[%s2306_s1 + $0x708] sm:$0xff]  ;;  %s830_s16 = sshll.u32 %s1265_s15, 4  ;;  %vm822_vm0 = vcmask 74752   ;;  %s831_s16 = int_to_ptr.vmem [resolvable:$true] %s830_s16 }
  0x6b   :  { %1140 = vmatpush1.bf16.msra.mxu1 %v1139_v12  ;;  %1014 = vmatprep.subr.bf16.mxu0 %v1013_v13  ;;  %v251_v33 = vld [vmem:[%s2306_s1 + $0x728] sm:$0xff]  ;;  %v249_v34 = vld [vmem:[%s2306_s1 + $0x718] sm:$0xff]  ;;  %v1019_v36 = vpack.c.bf16 %v242_v29, %v238_v28  ;;  %v1147_v37 = vpack.c.bf16 %v244_v11, %v240_v30  ;;  %v246_v39 = vld [vmem:[%s2306_s1 + $0x700] sm:$0xff]  ;;  %s1240_s17 = scalar_lea.vmem %s831_s16, 32  ;;  %p1245_p1 = scmp.lt.s32.totalorder %s831_s16, %s831_s16 }
  0x6c   :  { %1142 = vmatprep.subr.bf16.mxu1 %v1141_v17  ;;  %v253_v35 = vld [vmem:[%s2306_s1 + $0x738] sm:$0xff]  ;;  %v1021_v38 = vpack.c.bf16 %v251_v33, %v247_v32  ;;  %v250_v40 = vld [vmem:[%s2306_s1 + $0x720] sm:$0xff]  ;;  %v248_v41 = vld [vmem:[%s2306_s1 + $0x710] sm:$0xff]  ;;  %p1241_p0 = scmp.ne.s32.totalorder %s831_s16, %s1240_s17  ;;  %p1246_p2 = scmp.lt.s32.totalorder %s1240_s17, %s1240_s17 }
  0x6d   :  { %v1149_v42 = vpack.c.bf16 %v253_v35, %v249_v34  ;;  %v252_v43 = vld [vmem:[%s2306_s1 + $0x730] sm:$0xff]  ;;  %v255_v44 = vld [vmem:[%s2306_s1 + $0x748] sm:$0xff]  ;;  %v257_v46 = vld [vmem:[%s2306_s1 + $0x758] sm:$0xff]  ;;  %v1023_v47 = vpack.c.bf16 %v250_v40, %v246_v39 }
  0x6e   :  { %1016 = vmatpush1.bf16.msra.mxu0 %v1015_v23  ;;  %v259_v45 = vld [vmem:[%s2306_s1 + $0x768] sm:$0xff]  ;;  %v261_v25 = vld [vmem:[%s2306_s1 + $0x778] sm:$0xff]  ;;  %v1151_v48 = vpack.c.bf16 %v252_v43, %v248_v41  ;;  %v254_v50 = vld [vmem:[%s2306_s1 + $0x740] sm:$0xff]  ;;  %p1247_p3 = por %p1246_p2, %p1245_p1 }
  0x6f   :  { %1144 = vmatpush1.bf16.msra.mxu1 %v1143_v26  ;;  %1018 = vmatprep.subr.bf16.mxu0 %v1017_v27  ;;  %v1025_v49 = vpack.c.bf16 %v259_v45, %v255_v44  ;;  %v258_v51 = vld [vmem:[%s2306_s1 + $0x760] sm:$0xff]  ;;  %v256_v52 = vld [vmem:[%s2306_s1 + $0x750] sm:$0xff]  ;;  %v1153_v53 = vpack.c.bf16 %v261_v25, %v257_v46  ;;  %v263_v55 = vld [vmem:[%s2306_s1 + $0x788] sm:$0xff] }
  0x70   :  { %1146 = vmatprep.subr.bf16.mxu1 %v1145_v31  ;;  %v260_v54 = vld [vmem:[%s2306_s1 + $0x770] sm:$0xff]  ;;  %v267_v56 = vld [vmem:[%s2306_s1 + $0x7a8] sm:$0xff]  ;;  %v265_v57 = vld [vmem:[%s2306_s1 + $0x798] sm:$0xff]  ;;  %v1027_v59 = vpack.c.bf16 %v258_v51, %v254_v50  ;;  %p1248_p4 = pnand %p1247_p3, %p1241_p0 }
  0x71   :  { %v269_v58 = vld [vmem:[%s2306_s1 + $0x7b8] sm:$0xff]  ;;  %v1155_v60 = vpack.c.bf16 %v260_v54, %v256_v52  ;;  %v1029_v62 = vpack.c.bf16 %v267_v56, %v263_v55  ;;  %v262_v63 = vld [vmem:[%s2306_s1 + $0x780] sm:$0xff]  ;;  %v264_v1 = vld [vmem:[%s2306_s1 + $0x790] sm:$0xff] }
  0x72   :  { %1020 = vmatpush1.bf16.msra.mxu0 %v1019_v36  ;;  %v266_v0 = vld [vmem:[%s2306_s1 + $0x7a0] sm:$0xff]  ;;  %v1157_v2 = vpack.c.bf16 %v269_v58, %v265_v57  ;;  %v268_v3 = vld [vmem:[%s2306_s1 + $0x7b0] sm:$0xff]  ;;  %v271_v4 = vld [vmem:[%s2306_s1 + $0x7c8] sm:$0xff] }
  0x73   :  { %1148 = vmatpush1.bf16.msra.mxu1 %v1147_v37  ;;  %1022 = vmatprep.subr.bf16.mxu0 %v1021_v38  ;;  %v275_v5 = vld [vmem:[%s2306_s1 + $0x7e8] sm:$0xff]  ;;  %v273_v6 = vld [vmem:[%s2306_s1 + $0x7d8] sm:$0xff]  ;;  %v1031_v8 = vpack.c.bf16 %v266_v0, %v262_v63  ;;  %v1159_v9 = vpack.c.bf16 %v268_v3, %v264_v1  ;;  %v270_v12 = vld [vmem:[%s2306_s1 + $0x7c0] sm:$0xff] }
  0x74   :  { %1150 = vmatprep.subr.bf16.mxu1 %v1149_v42  ;;  %v277_v7 = vld [vmem:[%s2306_s1 + $0x7f8] sm:$0xff]  ;;  %v1033_v10 = vpack.c.bf16 %v275_v5, %v271_v4  ;;  %v274_v13 = vld [vmem:[%s2306_s1 + $0x7e0] sm:$0xff]  ;;  %v272_v14 = vld [vmem:[%s2306_s1 + $0x7d0] sm:$0xff] }
  0x75   :  { %v1161_v15 = vpack.c.bf16 %v277_v7, %v273_v6  ;;  %v276_v16 = vld [vmem:[%s2306_s1 + $0x7f0] sm:$0xff]  ;;  %v626_v17 = vld [vmem:[%s2308_s3 + $0x80] sm:$0xff]  ;;  %v627_v18 = vld [vmem:[%s2308_s3 + $0x88] sm:$0xff]  ;;  %v1035_v21 = vpack.c.bf16 %v274_v13, %v270_v12 }
  0x76   :  { %1024 = vmatpush1.bf16.msra.mxu0 %v1023_v47  ;;  %v658_v19 = vld [vmem:[%s2308_s3 + $0x180] sm:$0xff]  ;;  %v659_v20 = vld [vmem:[%s2308_s3 + $0x188] sm:$0xff]  ;;  %v1163_v22 = vpack.c.bf16 %v276_v16, %v272_v14  ;;  %v1165_v23 = vpack.c.bf16 %v627_v18, %v626_v17  ;;  %v628_v31 = vld [vmem:[%s2308_s3 + $0x90] sm:$0xff] }
  0x77   :  { %1152 = vmatpush1.bf16.msra.mxu1 %v1151_v48  ;;  %1026 = vmatprep.subr.bf16.mxu0 %v1025_v49  ;;  %v610_v26 = vld [vmem:[%s2308_s3] sm:$0xff]  ;;  %v611_v27 = vld [vmem:[%s2308_s3 + $0x8] sm:$0xff]  ;;  %v1197_v29 = vpack.c.bf16 %v659_v20, %v658_v19  ;;  %v629_v11 = vld [vmem:[%s2308_s3 + $0x98] sm:$0xff] }
  0x78   :  { %1154 = vmatprep.subr.bf16.mxu1 %v1153_v53  ;;  %v642_v28 = vld [vmem:[%s2308_s3 + $0x100] sm:$0xff]  ;;  %v643_v30 = vld [vmem:[%s2308_s3 + $0x108] sm:$0xff]  ;;  %v660_v32 = vld [vmem:[%s2308_s3 + $0x190] sm:$0xff]  ;;  %v1167_v34 = vpack.c.bf16 %v611_v27, %v610_v26  ;;  %v1169_v36 = vpack.c.bf16 %v629_v11, %v628_v31 }
  0x79   :  { %v661_v33 = vld [vmem:[%s2308_s3 + $0x198] sm:$0xff]  ;;  %v1199_v35 = vpack.c.bf16 %v643_v30, %v642_v28  ;;  %v612_v37 = vld [vmem:[%s2308_s3 + $0x10] sm:$0xff]  ;;  %v630_v42 = vld [vmem:[%s2308_s3 + $0xa0] sm:$0xff] }
  0x7a   :  { %1028 = vmatpush1.bf16.msra.mxu0 %v1027_v59  ;;  %v613_v38 = vld [vmem:[%s2308_s3 + $0x18] sm:$0xff]  ;;  %v644_v39 = vld [vmem:[%s2308_s3 + $0x110] sm:$0xff]  ;;  %v1201_v40 = vpack.c.bf16 %v661_v33, %v660_v32  ;;  %v631_v43 = vld [vmem:[%s2308_s3 + $0xa8] sm:$0xff] }
  0x7b   :  { %1156 = vmatpush1.bf16.msra.mxu1 %v1155_v60  ;;  %1030 = vmatprep.subr.bf16.mxu0 %v1029_v62  ;;  %v645_v41 = vld [vmem:[%s2308_s3 + $0x118] sm:$0xff]  ;;  %v662_v44 = vld [vmem:[%s2308_s3 + $0x1a0] sm:$0xff]  ;;  %v663_v45 = vld [vmem:[%s2308_s3 + $0x1a8] sm:$0xff]  ;;  %v1171_v46 = vpack.c.bf16 %v613_v38, %v612_v37  ;;  %v1173_v47 = vpack.c.bf16 %v631_v43, %v630_v42 }
  0x7c   :  { %1158 = vmatprep.subr.bf16.mxu1 %v1157_v2  ;;  %v1203_v25 = vpack.c.bf16 %v645_v41, %v644_v39  ;;  %v614_v48 = vld [vmem:[%s2308_s3 + $0x20] sm:$0xff]  ;;  %v615_v49 = vld [vmem:[%s2308_s3 + $0x28] sm:$0xff]  ;;  %v632_v52 = vld [vmem:[%s2308_s3 + $0xb0] sm:$0xff] }
  0x7d   :  { %v646_v50 = vld [vmem:[%s2308_s3 + $0x120] sm:$0xff]  ;;  %v647_v51 = vld [vmem:[%s2308_s3 + $0x128] sm:$0xff]  ;;  %v633_v53 = vld [vmem:[%s2308_s3 + $0xb8] sm:$0xff]  ;;  %v1175_v56 = vpack.c.bf16 %v615_v49, %v614_v48 }
  0x7e   :  { %1032 = vmatpush1.bf16.msra.mxu0 %v1031_v8  ;;  %v664_v54 = vld [vmem:[%s2308_s3 + $0x1b0] sm:$0xff]  ;;  %v665_v55 = vld [vmem:[%s2308_s3 + $0x1b8] sm:$0xff]  ;;  %v1207_v57 = vpack.c.bf16 %v647_v51, %v646_v50  ;;  %v1177_v58 = vpack.c.bf16 %v633_v53, %v632_v52  ;;  %v634_v1 = vld [vmem:[%s2308_s3 + $0xc0] sm:$0xff]  ;;  %v282_v51 = vsub.s32 0, %v1548_v61  ;;  %v290_v53 = vsub.s32 2, %v1548_v61 }
  0x7f   :  { %1160 = vmatpush1.bf16.msra.mxu1 %v1159_v9  ;;  %1034 = vmatprep.subr.bf16.mxu0 %v1033_v10  ;;  %v616_v59 = vld [vmem:[%s2308_s3 + $0x30] sm:$0xff]  ;;  %v617_v60 = vld [vmem:[%s2308_s3 + $0x38] sm:$0xff]  ;;  %v1209_v63 = vpack.c.bf16 %v665_v55, %v664_v54  ;;  %v635_v2 = vld [vmem:[%s2308_s3 + $0xc8] sm:$0xff]  ;;  %v286_v54 = vsub.s32 1, %v1548_v61  ;;  %v294_v55 = vsub.s32 3, %v1548_v61 }
  0x80   :  { %1162 = vmatprep.subr.bf16.mxu1 %v1161_v15  ;;  %v648_v62 = vld [vmem:[%s2308_s3 + $0x130] sm:$0xff]  ;;  %v649_v0 = vld [vmem:[%s2308_s3 + $0x138] sm:$0xff]  ;;  %v666_v3 = vld [vmem:[%s2308_s3 + $0x1c0] sm:$0xff]  ;;  %v1179_v5 = vpack.c.bf16 %v617_v60, %v616_v59  ;;  %v1181_v7 = vpack.c.bf16 %v635_v2, %v634_v1 }
  0x81   :  { %v667_v4 = vld [vmem:[%s2308_s3 + $0x1c8] sm:$0xff]  ;;  %v1211_v6 = vpack.c.bf16 %v649_v0, %v648_v62  ;;  %v618_v8 = vld [vmem:[%s2308_s3 + $0x40] sm:$0xff]  ;;  %v636_v14 = vld [vmem:[%s2308_s3 + $0xd0] sm:$0xff] }
  0x82   :  { %1036 = vmatpush1.bf16.msra.mxu0 %v1035_v21  ;;  %v619_v9 = vld [vmem:[%s2308_s3 + $0x48] sm:$0xff]  ;;  %v650_v10 = vld [vmem:[%s2308_s3 + $0x140] sm:$0xff]  ;;  %v1213_v12 = vpack.c.bf16 %v667_v4, %v666_v3  ;;  %v637_v15 = vld [vmem:[%s2308_s3 + $0xd8] sm:$0xff] }
  0x83   :  { %1164 = vmatpush1.bf16.msra.mxu1 %v1163_v22  ;;  %1166 = vmatprep.subr.bf16.mxu0 %v1165_v23  ;;  %v651_v13 = vld [vmem:[%s2308_s3 + $0x148] sm:$0xff]  ;;  %v668_v16 = vld [vmem:[%s2308_s3 + $0x1d0] sm:$0xff]  ;;  %v669_v17 = vld [vmem:[%s2308_s3 + $0x1d8] sm:$0xff]  ;;  %v1183_v18 = vpack.c.bf16 %v619_v9, %v618_v8  ;;  %v1185_v20 = vpack.c.bf16 %v637_v15, %v636_v14 }
  0x84   :  { %1198 = vmatprep.subr.bf16.mxu1 %v1197_v29  ;;  %v1215_v19 = vpack.c.bf16 %v651_v13, %v650_v10  ;;  %v620_v21 = vld [vmem:[%s2308_s3 + $0x50] sm:$0xff]  ;;  %v621_v22 = vld [vmem:[%s2308_s3 + $0x58] sm:$0xff]  ;;  %v1217_v26 = vpack.c.bf16 %v669_v17, %v668_v16  ;;  %v638_v28 = vld [vmem:[%s2308_s3 + $0xe0] sm:$0xff] }
  0x85   :  { %458 = vmatmul.mubr.f32.vlgmr.msra.gmra.mrb[0].mxu0 %v1729_v24  ;;  %v652_v23 = vld [vmem:[%s2308_s3 + $0x150] sm:$0xff]  ;;  %v653_v27 = vld [vmem:[%s2308_s3 + $0x158] sm:$0xff]  ;;  %v639_v29 = vld [vmem:[%s2308_s3 + $0xe8] sm:$0xff]  ;;  %v1187_v11 = vpack.c.bf16 %v621_v22, %v620_v21 }
  0x86   :  { %600 = vmatmul.mubr.f32.vlgmr.msra.gmra.mrb[0].mxu1 %v1729_v24  ;;  %1168 = vmatpush3.bf16.msra.mxu0 %v1167_v34  ;;  %v1205_v24 = vpack.c.bf16 %v663_v45, %v662_v44  ;;  %v670_v30 = vld [vmem:[%s2308_s3 + $0x1e0] sm:$0xff]  ;;  %v671_v31 = vld [vmem:[%s2308_s3 + $0x1e8] sm:$0xff]  ;;  %v1219_v32 = vpack.c.bf16 %v653_v27, %v652_v23  ;;  %v1189_v33 = vpack.c.bf16 %v639_v29, %v638_v28  ;;  %v640_v41 = vld [vmem:[%s2308_s3 + $0xf0] sm:$0xff] }
  0x87   :  { %1200 = vmatpush3.bf16.msra.mxu1 %v1199_v35  ;;  %1170 = vmatprep.subr.bf16.mxu0 %v1169_v36  ;;  %v1221_v34 = vpack.c.bf16 %v671_v31, %v670_v30  ;;  %v622_v35 = vld [vmem:[%s2308_s3 + $0x60] sm:$0xff]  ;;  %v623_v36 = vld [vmem:[%s2308_s3 + $0x68] sm:$0xff]  ;;  %v641_v42 = vld [vmem:[%s2308_s3 + $0xf8] sm:$0xff] }
  0x88   :  { %1202 = vmatprep.subr.bf16.mxu1 %v1201_v40  ;;  %v654_v37 = vld [vmem:[%s2308_s3 + $0x160] sm:$0xff]  ;;  %v1191_v38 = vpack.c.bf16 %v623_v36, %v622_v35  ;;  %v655_v39 = vld [vmem:[%s2308_s3 + $0x168] sm:$0xff]  ;;  %v672_v43 = vld [vmem:[%s2308_s3 + $0x1f0] sm:$0xff]  ;;  %v1193_v44 = vpack.c.bf16 %v641_v42, %v640_v41 }
  0x89   :  { %v1223_v40 = vpack.c.bf16 %v655_v39, %v654_v37  ;;  %v673_v45 = vld [vmem:[%s2308_s3 + $0x1f8] sm:$0xff]  ;;  %v656_v49 = vld [vmem:[%s2308_s3 + $0x170] sm:$0xff]  ;;  %v278_v52 = vld [vmem:[%s2307_s2] sm:$0xf] }
  0x8a   :  { %1172 = vmatpush3.bf16.msra.mxu0 %v1171_v46  ;;  %v624_v46 = vld [vmem:[%s2308_s3 + $0x70] sm:$0xff]  ;;  %v657_v50 = vld [vmem:[%s2308_s3 + $0x178] sm:$0xff]  ;;  %v295_v59 = vrot.slane %v278_v52, %v294_v55  ;;  %v838_v10 = vld [vmem:[%s2309_s4] ss:$0 sm:$0xff] }
  0x8b   :  { %1204 = vmatpush3.bf16.msra.mxu1 %v1203_v25  ;;  %1174 = vmatprep.subr.bf16.mxu0 %v1173_v47  ;;  %v625_v25 = vld [vmem:[%s2308_s3 + $0x78] sm:$0xff]  ;;  %v1225_v47 = vpack.c.bf16 %v673_v45, %v672_v43 }
  0x8c   :  { %1206 = vmatprep.subr.bf16.mxu1 %v1205_v24  ;;  %v1195_v48 = vpack.c.bf16 %v625_v25, %v624_v46  ;;  %v1227_v24 = vpack.c.bf16 %v657_v50, %v656_v49 }
  0x8e   :  { %1176 = vmatpush3.bf16.msra.mxu0 %v1175_v56  ;;  %v283_v56 = vrot.slane %v278_v52, %v282_v51 }
  0x8f   :  { %1208 = vmatpush3.bf16.msra.mxu1 %v1207_v57  ;;  %1178 = vmatprep.subr.bf16.mxu0 %v1177_v58  ;;  %v291_v57 = vrot.slane %v278_v52, %v290_v53  ;;  %v287_v58 = vrot.slane %v278_v52, %v286_v54 }
  0x90   :  { %1210 = vmatprep.subr.bf16.mxu1 %v1209_v63 }
  0x92   :  { %1180 = vmatpush3.bf16.msra.mxu0 %v1179_v5 }
  0x93   :  { %1212 = vmatpush3.bf16.msra.mxu1 %v1211_v6  ;;  %1182 = vmatprep.subr.bf16.mxu0 %v1181_v7 }
  0x94   :  { %1214 = vmatprep.subr.bf16.mxu1 %v1213_v12 }
  0x96   :  { %1184 = vmatpush3.bf16.msra.mxu0 %v1183_v18 }
  0x97   :  { %1216 = vmatpush3.bf16.msra.mxu1 %v1215_v19  ;;  %1186 = vmatprep.subr.bf16.mxu0 %v1185_v20 }
  0x98   :  { %1218 = vmatprep.subr.bf16.mxu1 %v1217_v26 }
  0x9a   :  { %1188 = vmatpush3.bf16.msra.mxu0 %v1187_v11 }
  0x9b   :  { %1220 = vmatpush3.bf16.msra.mxu1 %v1219_v32  ;;  %1190 = vmatprep.subr.bf16.mxu0 %v1189_v33 }
  0x9c   :  { %1222 = vmatprep.subr.bf16.mxu1 %v1221_v34 }
  0x9e   :  { %1192 = vmatpush3.bf16.msra.mxu0 %v1191_v38 }
  0x9f   :  { %1224 = vmatpush3.bf16.msra.mxu1 %v1223_v40  ;;  %1194 = vmatprep.subr.bf16.mxu0 %v1193_v44 }
  0xa0   :  { %1226 = vmatprep.subr.bf16.mxu1 %v1225_v47 }
  0xa2   :  { %1196 = vmatpush3.bf16.msra.mxu0 %v1195_v48 }
  0xa3   :  { %1228 = vmatpush3.bf16.msra.mxu1 %v1227_v24 }
 0x158   :  { %v459_v60 = vpop.f32.mrb[0].mxu0 }
 0x159   :  { %v1229_v62 = vadd.f32 %v459_v60, %v283_v56  ;;  %v601_v63 = vpop.f32.mrb[0].mxu1  ;;  %v461_v0 = vpop.f32.mrb[1].mxu0 }
 0x15a   :  { %v1231_v1 = vadd.f32 %v601_v63, %v291_v57  ;;  %v1230_v2 = vadd.f32 %v461_v0, %v287_v58  ;;  %v603_v3 = vpop.f32.mrb[1].mxu1 }
 0x15b   :  { %v1232_v4 = vadd.f32 %v603_v3, %v295_v59  ;;  %v606_v6 = vmax.f32 %v1229_v62, 0.0 }
 0x15c   :  { %v607_v5 = vmax.f32 %v1230_v2, 0.0  ;;  %v608_v8 = vmax.f32 %v1231_v1, 0.0 }
 0x15d   :  { %v609_v7 = vmax.f32 %v1232_v4, 0.0 }
 0x15e   :  { %745 = vmatprep.mubr.f32.mxu0 %v607_v5 }
 0x15f   :  { %815 = vmatprep.mubr.f32.mxu1 %v609_v7  ;;  %746 = vmatmul.mubr.f32.vlgmr.msra.gmra.mrb[2].mxu0 %v606_v6 }
 0x160   :  { %816 = vmatmul.mubr.f32.vlgmr.msra.gmra.mrb[2].mxu1 %v608_v8 }
 0x232   :  { %v871_v61 = vpop.f32.mrb[2].mxu0 }
 0x233   :  { %v906_v9 = vpop.f32.mrb[2].mxu1  ;;  %v872_v12 = vpop.f32.mrb[3].mxu0 }
 0x234   :  { %v873_v13 = vadd.f32 %v872_v12, %v871_v61  ;;  %v907_v14 = vpop.f32.mrb[3].mxu1 }
 0x235   :  { %v908_v15 = vadd.f32 %v907_v14, %v906_v9 }
 0x236   :  { %v748_v16 = vadd.f32 %v873_v13, %v838_v10 }
 0x238   :  { %v818_v17 = vadd.f32 %v908_v15, %v748_v16 }
 0x23a   :  { %v821_v18 = vmax.f32 %v818_v17, 0.0 }
 0x23c   :  { %823 = vst.msk [vmem:[#allocation2] sm:$0x3] %vm822_vm0, %v821_v18 }
 0x23d   :  { %1251 = shalt.err (!%p1248_p4)
}
 0x23e   :  { %s1252_s19 = scalar_lea.hbm %s2310_s5, 32 }
 0x23f   :  { %p1253_p5 = scmp.ne.s32.totalorder %s2310_s5, %s1252_s19  ;;  %p1256_p6 = scmp.lt.u32.totalorder %s1252_s19, %s2310_s5 }
 0x241   :  { %p1258_p7 = pnand %p1256_p6, %p1253_p5 }
 0x243   :  { %1261 = shalt.err (!%p1258_p7)
}
 0x244   :  { %833 = dma.vmem_to_hbm [thread:$0]  %s831_s16, 32, %s2310_s5, [#allocation3]  }
 0x245   :  { %1262 = dma.done.wait [#allocation3], 32  }
 0x246   :  { %1263 = vsyncadd [#allocation3], 4294967264 }
 0x247   :  { %837 = vsyncpa [#allocation3], 1 }

// kernel: neural_network_forward.2
= control target key start
LH: loop header
LB: loop body
LE: loop exit
PB: predicated region body
PF: predicated region fallthrough
CT: control target
= control target key end

     0   :  { %s21214_s0 = inlined_call_operand.vmem [shape: bf16[2,27648], index: 0, kind: input, shape index: {}]   ;;  %s21215_s1 = inlined_call_operand.hbm [shape: bf16[27648,512], index: 1, kind: input, shape index: {}]   ;;  %s21216_s2 = inlined_call_operand.hbm [shape: f32[1,512], index: 2, kind: input, shape index: {}]   ;;  %s21217_s3 = inlined_call_operand.vmem [shape: f32[2,512], index: 3, kind: output, shape index: {}]  }
   0x1   :  { %21223 = sst [smem:[#allocation10_spill]] %s21215_s1 }
   0x2   :  { %8 = vsyncpa [#allocation4], 0 }
   0x3   :  { %10 = vsyncpa [#allocation4 + $0x1], 0 }
   0x4   :  { %11 = vsyncpa [#allocation6], 0 }
   0x5   :  { %13 = vsyncpa [#allocation6 + $0x1], 0  ;;  %s18676_s12 = smov 0   ;;  %s18678_s13 = smov 0  }
   0x6   :  { %s18680_s14 = smov 0   ;;  %s18682_s15 = smov 0  }
   0x7   :  { %s18684_s16 = smov 0   ;;  %s18686_s17 = smov 0  }
   0x8   :  { %s18688_s18 = smov 0   ;;  %s18690_s19 = smov 0  }
   0x9   :  { %s18692_s20 = smov 0   ;;  %s18694_s21 = smov 0  }
   0xa   :  { %s18696_s22 = smov 0  }
   0xb LB: > { %s28_s23 = sadd.s32 1, %s18638_s20  ;;  %p73_p1 = scmp.ne.s32.totalorder %s18626_s17, %s18622_s16  ;;  %s18646_s22 = sphi %s18696_s22, %s19_s22   ;;  %s18642_s21 = sphi %s18694_s21, %s21251_s21   ;;  %s18638_s20 = sphi %s18692_s20, %s21250_s20   ;;  %s18634_s19 = sphi %s18690_s19, %s21249_s19   ;;  %s18630_s18 = sphi %s18688_s18, %s21248_s18   ;;  %s18626_s17 = sphi %s18686_s17, %s21247_s17   ;;  %s18622_s16 = sphi %s18684_s16, %s21246_s16   ;;  %s18618_s15 = sphi %s18682_s15, %s21245_s15   ;;  %s18614_s14 = sphi %s18680_s14, %s21244_s14   ;;  %s18610_s13 = sphi %s18678_s13, %s21243_s13   ;;  %s18606_s12 = sphi %s18676_s12, %s21242_s12  }
   0xc   : > { %p18733_p0 = scmp.ge.s32.totalorder %s28_s23, 2  ;;  %p21219_p2 = scmp.eq.s32.totalorder %s18646_s22, 0 }
   0xd   : > { %p21218_p4 = scmp.lt.s32.totalorder %s18646_s22, 4  ;;  %s163_s27 = sand.u32 1, %s18626_s17  }
   0xe   : > { %s21253_s23 = smov (%p18733_p0, %s28_s23), 0  ;;  %p75_p3 = por %p21219_p2, %p73_p1 }
   0xf   : > { %s15767_s28 = smul.u32 13824, %s163_s27  ;;  %s13812_s29 = sshll.u32 %s18642_s21, 1 }
  0x10   : > { %s15555_s30 = smul.u32 6912, %s18638_s20  ;;  %p18754_p5 = pnand %p21218_p4, %p75_p3 }
  0x11   : > { %s167_s6 = scalar_lea.vmem [#allocation3], %s15767_s28  ;;  %s21226_s1 = sld [smem:[#allocation10_spill]] }
  0x12   : > { %s174_s5 = sadd.s32 %s15555_s30, %s13812_s29  ;;  %s177_s7 = sshll.u32 %s167_s6, 4  ;;  %s18758_s7 = int_to_ptr.vmem [resolvable:$true] %s177_s7 }
  0x13   : > { %s13814_s8 = sshll.u32 %s174_s5, 6  ;;  %s18766_s24 = scalar_lea.sflag [#allocation4], %s163_s27 }
  0x14   : > { %p18494_p8 = pneg %p18754_p5 }
  0x17   : > { %s18763_s11 = scalar_lea.hbm %s21226_s1, %s13814_s8  ;;  %s18497_s30 = scalar_lea.hbm %s21226_s1, 884736 }
  0x18   : > { %s18492_s26 = scalar_lea.hbm %s18763_s11, 221184  ;;  %p18498_p11 = scmp.lt.u32.totalorder %s18763_s11, %s21226_s1 }
  0x19   : > { %p18493_p7 = scmp.ne.s32.totalorder %s18763_s11, %s18492_s26  ;;  %p18499_p12 = scmp.lt.u32.totalorder %s18497_s30, %s18492_s26 }
  0x1a   : > { %p18501_p1 = scmp.lt.u32.totalorder %s18492_s26, %s18763_s11 }
  0x1b   : > { %p18495_p9 = pnand %p18494_p8, %p18493_p7  ;;  %p18500_p13 = por %p18499_p12, %p18498_p11 }
  0x1d   : > { %p18496_p10 = pneg %p18495_p9  ;;  %p18502_p3 = por %p18501_p1, %p18500_p13 }
  0x1f   : > { %p18503_p4 = pnand %p18502_p3, %p18496_p10 }
  0x21   : > { %18506 = shalt.err (!%p18503_p4)
}
  0x22   : > { %s18507_s27 = scalar_lea.vmem %s18758_s7, 221184  ;;  %s18648_s8 = smov [#allocation3]  }
  0x23   : > { %p18508_p7 = scmp.ne.s32.totalorder %s18758_s7, %s18507_s27  ;;  %s18512_s9 = sshll.u32 %s18648_s8, 4  ;;  %s18513_s9 = int_to_ptr.vmem [resolvable:$false] %s18512_s9 }
  0x24   : > { %s18514_s10 = scalar_lea.vmem %s18513_s9, 442368  ;;  %p18515_p6 = scmp.lt.s32.totalorder %s18758_s7, %s18513_s9 }
  0x25   : > { %p18510_p9 = pnand %p18508_p7, %p18494_p8  ;;  %p18516_p11 = scmp.lt.s32.totalorder %s18514_s10, %s18507_s27 }
  0x27   : > { %p18511_p2 = pneg %p18510_p9  ;;  %p18517_p12 = por %p18516_p11, %p18515_p6 }
  0x29   : > { %p18518_p13 = pnand %p18517_p12, %p18511_p2 }
  0x2b   : > { %18521 = shalt.err (!%p18518_p13)
}
  0x2c   : > { %s18649_s26 = smov 256   ;;  %s18650_s28 = smov 128  }
  0x2d   : > { %s18651_s29 = smov 8   ;;  %p204_p2 = scmp.lt.s32.totalorder %s18646_s22, 5 }
  0x2e   : > { %15776 = dma.hbm_to_vmem [thread:$0]  (!%p18754_p5), %s18763_s11, 221184, %s18758_s7, %s18766_s24, %s18649_s26, %s18650_s28, %s18651_s29  }
  0x2f   : > { %p21227_p4 = scmp.ge.s32.totalorder %s18646_s22, 1  ;;  %s13808_s5 = sadd.s32 4294967295, %s18646_s22  }
  0x30   : > { %s31_s6 = sadd.s32 1, %s18642_s21  ;;  %p79_p8 = scmp.ne.s32.totalorder %s18622_s16, %s18618_s15 }
  0x31   : > { %p18797_p6 = pnand %p21227_p4, %p204_p2  ;;  %s21255_s6 = smov (!%p18733_p0, %s31_s6), %s18642_s21 }
  0x32   : > { %p18808_p10 = scmp.eq.s32.totalorder %s13808_s5, 0  ;;  %p33_p5 = scmp.ge.s32.totalorder %s21255_s6, 2 }
  0x33   : > { %s92_s24 = sadd.s32 1, %s18614_s14  ;;  %p99_p3 = scmp.ne.s32.totalorder %s18614_s14, %s18610_s13 }
  0x34   : > { %p18815_p1 = por %p18808_p10, %p79_p8  ;;  %s21257_s6 = smov (%p33_p5, %s21255_s6), 0 }
  0x35   : > { %21231 = sst [smem:[#allocation9_spill]] %s21257_s6  ;;  %p21232_p0 = scmp.eq.s32.totalorder %s18646_s22, 0 }
  0x36   : > { %s21230_s7 = scalar_select %p18815_p1, 1, 0 }
  0x37   : > { %p18825_p7 = por %p99_p3, %p21232_p0  ;;  %p105_p9 = scmp.ne.s32.totalorder %s18610_s13, %s18606_s12 }
  0x38   : > { %s62_s25 = ssub.s32 %s18642_s21, %s21257_s6  ;;  %s187_s11 = sand.u32 1, %s18614_s14  }
  0x39   : > { %s21234_s27 = ssub.s32 %s18638_s20, %s21253_s23  ;;  %p90_p11 = scmp.eq.s32.totalorder %s62_s25, 0 }
  0x3a   : > { %s63_s8 = sor.u32 %s62_s25, %s21234_s27  ;;  %p18839_p13 = por %p105_p9, %p18808_p10 }
  0x3b   : > { %p64_p12 = scmp.eq.s32.totalorder %s63_s8, 0  ;;  %s21236_s26 = sadd.s32 1, %s18626_s17 }
  0x3c   : > { %s21235_s9 = scalar_select %p18839_p13, 1, 0 }
  0x3d   : > { %s18844_s10 = scalar_select %p90_p11, %s18614_s14, %s92_s24  }
  0x3e   : > { %s18849_s28 = scalar_select %p64_p12, %s18626_s17, %s21236_s26  }
  0x3f   : > { %s13815_s29 = sshll.u32 %s187_s11, 1  ;;  %s15556_s5 = sshll.u32 %s18642_s21, 5 }
  0x40   : > { %s18855_s6 = scalar_lea.hbm %s21216_s2, %s15556_s5  ;;  %s191_s4 = scalar_lea.vmem [#allocation5], %s13815_s29 }
  0x41   : > { %s199_s25 = sshll.u32 %s191_s4, 4  ;;  %p21237_p2 = scmp.lt.s32.totalorder %s18646_s22, 4  ;;  %s18857_s25 = int_to_ptr.vmem [resolvable:$true] %s199_s25 }
  0x42   : > { %s188_s27 = scalar_lea.sflag [#allocation6], %s187_s11  ;;  %s18522_s1 = scalar_lea.hbm %s18855_s6, 32 }
  0x43   : > { %p18863_p4 = pnand %p21237_p2, %p18825_p7  ;;  %p18523_p8 = scmp.ne.s32.totalorder %s18855_s6, %s18522_s1 }
  0x44   : > { %s18527_s15 = scalar_lea.hbm %s21216_s2, 64  ;;  %p18528_p0 = scmp.lt.u32.totalorder %s18855_s6, %s21216_s2 }
  0x45   : > { %p18524_p10 = pneg %p18863_p4  ;;  %p18529_p7 = scmp.lt.u32.totalorder %s18527_s15, %s18522_s1 }
  0x46   : > { %p18531_p11 = scmp.lt.u32.totalorder %s18522_s1, %s18855_s6 }
  0x47   : > { %p18525_p5 = pnand %p18524_p10, %p18523_p8  ;;  %p18530_p9 = por %p18529_p7, %p18528_p0 }
  0x49   : > { %p18526_p3 = pneg %p18525_p5  ;;  %p18532_p12 = por %p18531_p11, %p18530_p9 }
  0x4b   : > { %p18533_p2 = pnand %p18532_p12, %p18526_p3 }
  0x4d   : > { %18536 = shalt.err (!%p18533_p2)
}
  0x4e   : > { %s18537_s11 = scalar_lea.vmem %s18857_s25, 32  ;;  %s18652_s12 = smov [#allocation5]  }
  0x4f   : > { %p18538_p8 = scmp.ne.s32.totalorder %s18857_s25, %s18537_s11  ;;  %s18542_s4 = sshll.u32 %s18652_s12, 4  ;;  %s18543_s4 = int_to_ptr.vmem [resolvable:$false] %s18542_s4 }
  0x50   : > { %s18544_s8 = scalar_lea.vmem %s18543_s4, 64  ;;  %p18545_p1 = scmp.lt.s32.totalorder %s18857_s25, %s18543_s4 }
  0x51   : > { %p18540_p5 = pnand %p18538_p8, %p18524_p10  ;;  %p18546_p0 = scmp.lt.s32.totalorder %s18544_s8, %s18537_s11 }
  0x53   : > { %p18541_p13 = pneg %p18540_p5  ;;  %p18547_p7 = por %p18546_p0, %p18545_p1 }
  0x55   : > { %p18548_p9 = pnand %p18547_p7, %p18541_p13 }
  0x57   : > { %18551 = shalt.err (!%p18548_p9)
}
  0x58   : > { %15779 = dma.hbm_to_vmem [thread:$0]  (!%p18863_p4), %s18855_s6, 32, %s18857_s25, %s188_s27  }
  0x59   : > { %208 = sbr.rel (%p18797_p6) target bundleno = 2075 (0x81b), region = 32  ;;  %s210_s1 = sand.u32 (!%p18797_p6), 1, %s18622_s16  }
  0x5a   : > { %s15768_s26 = smul.u32 (!%p18797_p6), 13824, %s210_s1  ;;  %s211_s15 = scalar_lea.sflag (!%p18797_p6), [#allocation4], %s210_s1 }
  0x5b   : > { %p21239_p10 = scmp.ne.s32.totalorder (!%p18797_p6), %s21230_s7, 0 }
  0x5c   : > { %s18895_s29 = scalar_lea.vmem (!%p18797_p6), [#allocation3], %s15768_s26 }
  0x60   : > { %18597 = dma.done.wait (%p21239_p10), %s211_s15, 221184  }
  0x61   : > { %18599 = vsyncadd (%p21239_p10), %s211_s15, 4294746112  ;;  %s219_s24 = sand.u32 1, %s18610_s13   ;;  %p21240_p6 = scmp.ne.s32.totalorder %s21235_s9, 0 }
  0x62   : > { %s18902_s5 = sshll.u32 %s219_s24, 1  ;;  %s220_s30 = scalar_lea.sflag [#allocation6], %s219_s24 }
  0x63   : > { %s223_s6 = scalar_lea.vmem [#allocation5], %s18902_s5 }
  0x64   : > { %18601 = dma.done.wait (%p21240_p6), %s220_s30, 32  }
  0x65   : > { %18603 = vsyncadd (%p21240_p6), %s220_s30, 4294967264  ;;  %s255_s25 = smul.u32 108, %s18630_s18  ;;  %s13820_s27 = sshll.u32 %s18634_s19, 1 }
  0x66   : > { %p264_p1 = scmp.lt.s32.totalorder %s13820_s27, 3  ;;  %p13822_p4 = scmp.ne.s32.totalorder %s18630_s18, 0 }
  0x67   : > { %p256_p13 = scmp.lt.s32.totalorder %s255_s25, 215  ;;  %v18653_v0 = vmov (!%p13822_p4), 0.0  }
  0x68   : > { %s21259_s27 = smov (!%p264_p1, %s13820_s27), 3  ;;  %272 = sbr.rel (%p13822_p4) target bundleno = 111 (0x6f), region = 44 }
  0x69   : > { %s21261_s25 = smov (!%p256_p13, %s255_s25), 215  ;;  %s13821_s7 = sshll.u32 %s21259_s27, 1  ;;  %273 = vst [vmem:[#allocation2] sm:$0xf] (!%p13822_p4), %v18653_v0 }
  0x6a   : > { %s18914_s4 = scalar_lea.vmem %s21214_s0, %s21261_s25  ;;  %s18919_s26 = scalar_lea.vmem %s21217_s3, %s13821_s7 }
  0x6f PF: > { %v15875_v1 = vld [vmem:[%s18895_s29 + $0x4] ss:$8 sps:$4 sm:$0xff]   ;;  %v15879_v3 = vld [vmem:[%s18895_s29] ss:$8 sps:$4 sm:$0xff]   ;;  %v15881_v5 = vld [vmem:[%s18895_s29 + $0x14] ss:$8 sps:$4 sm:$0xff]   ;;  %v2035_v41 = vlaneseq }
  0x70   : > { %v15877_v2 = vld [vmem:[%s18895_s29 + $0x1b04] ss:$8 sps:$4 sm:$0xff]   ;;  %11440 = vmatprep.subr.bf16.mxu1 %v15875_v1  ;;  %v15880_v4 = vld [vmem:[%s18895_s29 + $0x1b00] ss:$8 sps:$4 sm:$0xff]   ;;  %v15883_v6 = vld [vmem:[%s18895_s29 + $0x1b14] ss:$8 sps:$4 sm:$0xff]  }
  0x71   : > { %12547 = vmatprep.subr.bf16.mxu0 %v15877_v2  ;;  %11441 = vmatpush1.bf16.msra.mxu1 %v15879_v3  ;;  %v15885_v7 = vld [vmem:[%s18895_s29 + $0x10] ss:$8 sps:$4 sm:$0xff]   ;;  %v15887_v9 = vld [vmem:[%s18895_s29 + $0x24] ss:$8 sps:$4 sm:$0xff]   ;;  %v15891_v11 = vld [vmem:[%s18895_s29 + $0x20] ss:$8 sps:$4 sm:$0xff]  }
  0x72   : > { %12548 = vmatpush1.bf16.msra.mxu0 %v15880_v4  ;;  %11442 = vmatprep.subr.bf16.mxu1 %v15881_v5  ;;  %v15886_v8 = vld [vmem:[%s18895_s29 + $0x1b10] ss:$8 sps:$4 sm:$0xff]   ;;  %v15889_v10 = vld [vmem:[%s18895_s29 + $0x1b24] ss:$8 sps:$4 sm:$0xff]   ;;  %v15892_v12 = vld [vmem:[%s18895_s29 + $0x1b20] ss:$8 sps:$4 sm:$0xff]  }
  0x73   : > { %12549 = vmatprep.subr.bf16.mxu0 %v15883_v6  ;;  %v15893_v13 = vld [vmem:[%s18895_s29 + $0x34] ss:$8 sps:$4 sm:$0xff]   ;;  %v15897_v15 = vld [vmem:[%s18895_s29 + $0x30] ss:$8 sps:$4 sm:$0xff]   ;;  %v15899_v17 = vld [vmem:[%s18895_s29 + $0x44] ss:$8 sps:$4 sm:$0xff]  }
  0x74   : > { %v15895_v14 = vld [vmem:[%s18895_s29 + $0x1b34] ss:$8 sps:$4 sm:$0xff]   ;;  %v15898_v16 = vld [vmem:[%s18895_s29 + $0x1b30] ss:$8 sps:$4 sm:$0xff]   ;;  %v15901_v18 = vld [vmem:[%s18895_s29 + $0x1b44] ss:$8 sps:$4 sm:$0xff]  }
  0x75   : > { %11443 = vmatpush1.bf16.msra.mxu1 %v15885_v7  ;;  %v15903_v19 = vld [vmem:[%s18895_s29 + $0x40] ss:$8 sps:$4 sm:$0xff]   ;;  %v15905_v21 = vld [vmem:[%s18895_s29 + $0x54] ss:$8 sps:$4 sm:$0xff]   ;;  %v15909_v23 = vld [vmem:[%s18895_s29 + $0x50] ss:$8 sps:$4 sm:$0xff]  }
  0x76   : > { %12550 = vmatpush1.bf16.msra.mxu0 %v15886_v8  ;;  %11444 = vmatprep.subr.bf16.mxu1 %v15887_v9  ;;  %v15904_v20 = vld [vmem:[%s18895_s29 + $0x1b40] ss:$8 sps:$4 sm:$0xff]   ;;  %v15907_v22 = vld [vmem:[%s18895_s29 + $0x1b54] ss:$8 sps:$4 sm:$0xff]   ;;  %v15910_v24 = vld [vmem:[%s18895_s29 + $0x1b50] ss:$8 sps:$4 sm:$0xff]  }
  0x77   : > { %12551 = vmatprep.subr.bf16.mxu0 %v15889_v10  ;;  %v15911_v25 = vld [vmem:[%s18895_s29 + $0x64] ss:$8 sps:$4 sm:$0xff]   ;;  %v15915_v27 = vld [vmem:[%s18895_s29 + $0x60] ss:$8 sps:$4 sm:$0xff]   ;;  %v15917_v29 = vld [vmem:[%s18895_s29 + $0x74] ss:$8 sps:$4 sm:$0xff]  }
  0x78   : > { %v15913_v26 = vld [vmem:[%s18895_s29 + $0x1b64] ss:$8 sps:$4 sm:$0xff]   ;;  %v15916_v28 = vld [vmem:[%s18895_s29 + $0x1b60] ss:$8 sps:$4 sm:$0xff]   ;;  %v15919_v30 = vld [vmem:[%s18895_s29 + $0x1b74] ss:$8 sps:$4 sm:$0xff]  }
  0x79   : > { %11445 = vmatpush1.bf16.msra.mxu1 %v15891_v11  ;;  %v15921_v31 = vld [vmem:[%s18895_s29 + $0x70] ss:$8 sps:$4 sm:$0xff]   ;;  %v15923_v33 = vld [vmem:[%s18895_s29 + $0x84] ss:$8 sps:$4 sm:$0xff]   ;;  %v15927_v35 = vld [vmem:[%s18895_s29 + $0x80] ss:$8 sps:$4 sm:$0xff]  }
  0x7a   : > { %12552 = vmatpush1.bf16.msra.mxu0 %v15892_v12  ;;  %11446 = vmatprep.subr.bf16.mxu1 %v15893_v13  ;;  %v15922_v32 = vld [vmem:[%s18895_s29 + $0x1b70] ss:$8 sps:$4 sm:$0xff]   ;;  %v15925_v34 = vld [vmem:[%s18895_s29 + $0x1b84] ss:$8 sps:$4 sm:$0xff]   ;;  %v15928_v36 = vld [vmem:[%s18895_s29 + $0x1b80] ss:$8 sps:$4 sm:$0xff]  }
  0x7b   : > { %12553 = vmatprep.subr.bf16.mxu0 %v15895_v14  ;;  %v15929_v37 = vld [vmem:[%s18895_s29 + $0x94] ss:$8 sps:$4 sm:$0xff]   ;;  %v18654_v39 = vmov 1966171168   ;;  %v15933_v42 = vld [vmem:[%s18895_s29 + $0x90] ss:$8 sps:$4 sm:$0xff]  }
  0x7c   : > { %v15931_v38 = vld [vmem:[%s18895_s29 + $0x1b94] ss:$8 sps:$4 sm:$0xff]   ;;  %v2033_v40 = vunpack.c.l.s4 %v18654_v39  ;;  %v15934_v43 = vld [vmem:[%s18895_s29 + $0x1b90] ss:$8 sps:$4 sm:$0xff]   ;;  %v15935_v44 = vld [vmem:[%s18895_s29 + $0xa4] ss:$8 sps:$4 sm:$0xff]  }
  0x7d   : > { %11447 = vmatpush1.bf16.msra.mxu1 %v15897_v15  ;;  %v15937_v45 = vld [vmem:[%s18895_s29 + $0x1ba4] ss:$8 sps:$4 sm:$0xff]   ;;  %v18964_v47 = vshrl.u32 %v2035_v41, 7  ;;  %v15939_v48 = vld [vmem:[%s18895_s29 + $0xa0] ss:$8 sps:$4 sm:$0xff]   ;;  %p15552_p3 = scmp.ne.s32.totalorder %s18630_s18, 1 }
  0x7e   : > { %12554 = vmatpush1.bf16.msra.mxu0 %v15898_v16  ;;  %11448 = vmatprep.subr.bf16.mxu1 %v15899_v17  ;;  %v2034_v46 = vunpack.c.0.s8 %v2033_v40  ;;  %v15940_v49 = vld [vmem:[%s18895_s29 + $0x1ba0] ss:$8 sps:$4 sm:$0xff]   ;;  %v15941_v50 = vld [vmem:[%s18895_s29 + $0xb4] ss:$8 sps:$4 sm:$0xff]   ;;  %v15945_v54 = vld [vmem:[%s18895_s29 + $0xb0] ss:$8 sps:$4 sm:$0xff]  }
  0x7f   : > { %12555 = vmatprep.subr.bf16.mxu0 %v15901_v18  ;;  %v15943_v51 = vld [vmem:[%s18895_s29 + $0x1bb4] ss:$8 sps:$4 sm:$0xff]   ;;  %v15946_v56 = vld [vmem:[%s18895_s29 + $0x1bb0] ss:$8 sps:$4 sm:$0xff]   ;;  %v15947_v58 = vld [vmem:[%s18895_s29 + $0xc4] ss:$8 sps:$4 sm:$0xff]  }
  0x80   : > { %v18971_v52 = vsub.s32 %v2034_v46, %v18964_v47  ;;  %v18974_v53 = vld [vmem:[%s18914_s4] sm:$0xff]  ;;  %v281_v57 = vld [vmem:[%s18914_s4 + $0x30] sm:$0xff] }
  0x81   : > { %11449 = vmatpush1.bf16.msra.mxu1 %v15903_v19  ;;  %v15949_v59 = vld [vmem:[%s18895_s29 + $0x1bc4] ss:$8 sps:$4 sm:$0xff]   ;;  %v2325_v61 = vcombine.high %v281_v57, %v281_v57  ;;  %v15951_v0 = vld [vmem:[%s18895_s29 + $0xc0] ss:$8 sps:$4 sm:$0xff]   ;;  %v15953_v2 = vld [vmem:[%s18895_s29 + $0xd4] ss:$8 sps:$4 sm:$0xff]  }
  0x82   : > { %12556 = vmatpush1.bf16.msra.mxu0 %v15904_v20  ;;  %11450 = vmatprep.subr.bf16.mxu1 %v15905_v21  ;;  %v2038_v55 = vrot.slane %v18974_v53, %v18971_v52  ;;  %v15952_v1 = vld [vmem:[%s18895_s29 + $0x1bc0] ss:$8 sps:$4 sm:$0xff]   ;;  %v15955_v3 = vld [vmem:[%s18895_s29 + $0x1bd4] ss:$8 sps:$4 sm:$0xff]   ;;  %v15957_v6 = vld [vmem:[%s18895_s29 + $0xd0] ss:$8 sps:$4 sm:$0xff]  }
  0x83   : > { %12557 = vmatprep.subr.bf16.mxu0 %v15907_v22  ;;  %v2339_v63 = vrot.slane %v2325_v61, %v18971_v52  ;;  %v15958_v7 = vld [vmem:[%s18895_s29 + $0x1bd0] ss:$8 sps:$4 sm:$0xff]   ;;  %v15959_v8 = vld [vmem:[%s18895_s29 + $0xe4] ss:$8 sps:$4 sm:$0xff]   ;;  %v15963_v11 = vld [vmem:[%s18895_s29 + $0xe0] ss:$8 sps:$4 sm:$0xff]  }
  0x84   : > { %v2046_v60 = vcombine.high %v2038_v55, %v2038_v55  ;;  %v15961_v9 = vld [vmem:[%s18895_s29 + $0x1be4] ss:$8 sps:$4 sm:$0xff]   ;;  %v15964_v12 = vld [vmem:[%s18895_s29 + $0x1be0] ss:$8 sps:$4 sm:$0xff]   ;;  %v15965_v13 = vld [vmem:[%s18895_s29 + $0xf4] ss:$8 sps:$4 sm:$0xff]   ;;  %v19010_v20 = vrot.slane %v2038_v55, %v18971_v52 }
  0x85   : > { %11451 = vmatpush1.bf16.msra.mxu1 %v15909_v23  ;;  %v2341_v4 = vcombine.high %v2339_v63, %v2339_v63  ;;  %v15967_v14 = vld [vmem:[%s18895_s29 + $0x1bf4] ss:$8 sps:$4 sm:$0xff]   ;;  %v19003_v15 = vrot.slane %v2339_v63, %v18971_v52  ;;  %v15969_v16 = vld [vmem:[%s18895_s29 + $0xf0] ss:$8 sps:$4 sm:$0xff]   ;;  %v15974_v18 = vld [vmem:[%s18895_s29 + $0x104] ss:$8 sps:$4 sm:$0xff]  }
  0x86   : > { %12558 = vmatpush1.bf16.msra.mxu0 %v15910_v24  ;;  %11452 = vmatprep.subr.bf16.mxu1 %v15911_v25  ;;  %v2068_v62 = vrot.slane %v2046_v60, %v18971_v52  ;;  %v15970_v17 = vld [vmem:[%s18895_s29 + $0x1bf0] ss:$8 sps:$4 sm:$0xff]   ;;  %v15978_v19 = vld [vmem:[%s18895_s29 + $0x1c04] ss:$8 sps:$4 sm:$0xff]   ;;  %v15972_v22 = vld [vmem:[%s18895_s29 + $0x100] ss:$8 sps:$4 sm:$0xff]  }
  0x87   : > { %12559 = vmatprep.subr.bf16.mxu0 %v15913_v26  ;;  %v18990_v5 = vrot.slane %v2341_v4, %v18971_v52  ;;  %v2371_v21 = vcombine.high %v19003_v15, %v19003_v15  ;;  %v15976_v23 = vld [vmem:[%s18895_s29 + $0x1c00] ss:$8 sps:$4 sm:$0xff]   ;;  %v15981_v24 = vld [vmem:[%s18895_s29 + $0x114] ss:$8 sps:$4 sm:$0xff]   ;;  %v16014_v46 = vld [vmem:[%s18895_s29 + $0x1c64] ss:$8 sps:$4 sm:$0xff]  }
  0x88   : > { %11472 = vmatprep.mubr.bf16.mxu1 %v2068_v62  ;;  %v15984_v25 = vld [vmem:[%s18895_s29 + $0x1c14] ss:$8 sps:$4 sm:$0xff]   ;;  %v2078_v26 = vcombine.high %v2068_v62, %v2068_v62  ;;  %v15997_v39 = vld [vmem:[%s18895_s29 + $0x140] ss:$8 sps:$4 sm:$0xff]   ;;  %v16015_v57 = vld [vmem:[%s18895_s29 + $0x170] ss:$8 sps:$4 sm:$0xff]  }
  0x89   : > { %11453 = vmatpush1.bf16.msra.mxu1 %v15915_v27  ;;  %v2373_v10 = vcombine.high %v18990_v5, %v18990_v5  ;;  %v15979_v27 = vld [vmem:[%s18895_s29 + $0x110] ss:$8 sps:$4 sm:$0xff]   ;;  %v16000_v40 = vld [vmem:[%s18895_s29 + $0x1c40] ss:$8 sps:$4 sm:$0xff]   ;;  %v16005_v41 = vld [vmem:[%s18895_s29 + $0x154] ss:$8 sps:$4 sm:$0xff]  }
  0x8a   : > { %12560 = vmatpush1.bf16.msra.mxu0 %v15916_v28  ;;  %11454 = vmatprep.subr.bf16.mxu1 %v15917_v29  ;;  %v15982_v28 = vld [vmem:[%s18895_s29 + $0x1c10] ss:$8 sps:$4 sm:$0xff]   ;;  %v15987_v29 = vld [vmem:[%s18895_s29 + $0x124] ss:$8 sps:$4 sm:$0xff]   ;;  %v16020_v55 = vld [vmem:[%s18895_s29 + $0x1c74] ss:$8 sps:$4 sm:$0xff]  }
  0x8b   : > { %12561 = vmatprep.subr.bf16.mxu0 %v15919_v30  ;;  %12579 = vmatprep.mubr.bf16.mxu0 %v2373_v10  ;;  %v15990_v30 = vld [vmem:[%s18895_s29 + $0x1c24] ss:$8 sps:$4 sm:$0xff]   ;;  %v16021_v62 = vld [vmem:[%s18895_s29 + $0x180] ss:$8 sps:$4 sm:$0xff]   ;;  %v16044_v10 = vld [vmem:[%s18895_s29 + $0x1cb4] ss:$8 sps:$4 sm:$0xff]  }
  0x8c   : > { %v16026_v61 = vld [vmem:[%s18895_s29 + $0x1c84] ss:$8 sps:$4 sm:$0xff]   ;;  %v16024_v63 = vld [vmem:[%s18895_s29 + $0x1c80] ss:$8 sps:$4 sm:$0xff]  }
  0x8d   : > { %11455 = vmatpush1.bf16.msra.mxu1 %v15921_v31  ;;  %v15985_v31 = vld [vmem:[%s18895_s29 + $0x120] ss:$8 sps:$4 sm:$0xff]   ;;  %v16035_v4 = vld [vmem:[%s18895_s29 + $0x1a4] ss:$8 sps:$4 sm:$0xff]  }
  0x8e   : > { %12562 = vmatpush1.bf16.msra.mxu0 %v15922_v32  ;;  %11456 = vmatprep.subr.bf16.mxu1 %v15923_v33  ;;  %v15988_v32 = vld [vmem:[%s18895_s29 + $0x1c20] ss:$8 sps:$4 sm:$0xff]   ;;  %v15993_v33 = vld [vmem:[%s18895_s29 + $0x134] ss:$8 sps:$4 sm:$0xff]  }
  0x8f   : > { %12563 = vmatprep.subr.bf16.mxu0 %v15925_v34  ;;  %v15996_v34 = vld [vmem:[%s18895_s29 + $0x1c34] ss:$8 sps:$4 sm:$0xff]  }
  0x91   : > { %11457 = vmatpush1.bf16.msra.mxu1 %v15927_v35  ;;  %v15991_v35 = vld [vmem:[%s18895_s29 + $0x130] ss:$8 sps:$4 sm:$0xff]  }
  0x92   : > { %12564 = vmatpush1.bf16.msra.mxu0 %v15928_v36  ;;  %11458 = vmatprep.subr.bf16.mxu1 %v15929_v37  ;;  %v15994_v36 = vld [vmem:[%s18895_s29 + $0x1c30] ss:$8 sps:$4 sm:$0xff]   ;;  %v15999_v37 = vld [vmem:[%s18895_s29 + $0x144] ss:$8 sps:$4 sm:$0xff]  }
  0x93   : > { %12565 = vmatprep.subr.bf16.mxu0 %v15931_v38  ;;  %v16002_v38 = vld [vmem:[%s18895_s29 + $0x1c44] ss:$8 sps:$4 sm:$0xff]  }
  0x95   : > { %11459 = vmatpush1.bf16.msra.mxu1 %v15933_v42  ;;  %v16008_v42 = vld [vmem:[%s18895_s29 + $0x1c54] ss:$8 sps:$4 sm:$0xff]  }
  0x96   : > { %12566 = vmatpush1.bf16.msra.mxu0 %v15934_v43  ;;  %11460 = vmatprep.subr.bf16.mxu1 %v15935_v44  ;;  %v16003_v43 = vld [vmem:[%s18895_s29 + $0x150] ss:$8 sps:$4 sm:$0xff]  }
  0x97   : > { %12567 = vmatprep.subr.bf16.mxu0 %v15937_v45  ;;  %v16006_v44 = vld [vmem:[%s18895_s29 + $0x1c50] ss:$8 sps:$4 sm:$0xff]   ;;  %v16011_v45 = vld [vmem:[%s18895_s29 + $0x164] ss:$8 sps:$4 sm:$0xff]  }
  0x99   : > { %11461 = vmatpush1.bf16.msra.mxu1 %v15939_v48  ;;  %v16009_v48 = vld [vmem:[%s18895_s29 + $0x160] ss:$8 sps:$4 sm:$0xff]  }
  0x9a   : > { %12568 = vmatpush1.bf16.msra.mxu0 %v15940_v49  ;;  %11462 = vmatprep.subr.bf16.mxu1 %v15941_v50  ;;  %v19041_v49 = vld [vmem:[%s18914_s4 + $0x38] sm:$0xff]  ;;  %v16012_v50 = vld [vmem:[%s18895_s29 + $0x1c60] ss:$8 sps:$4 sm:$0xff]  }
  0x9b   : > { %12569 = vmatprep.subr.bf16.mxu0 %v15943_v51  ;;  %v16017_v51 = vld [vmem:[%s18895_s29 + $0x174] ss:$8 sps:$4 sm:$0xff]  }
  0x9d   : > { %11463 = vmatpush1.bf16.msra.mxu1 %v15945_v54  ;;  %v19047_v54 = vrot.slane %v19041_v49, %v18971_v52 }
  0x9e   : > { %12570 = vmatpush1.bf16.msra.mxu0 %v15946_v56  ;;  %11464 = vmatprep.subr.bf16.mxu1 %v15947_v58  ;;  %v16018_v58 = vld [vmem:[%s18895_s29 + $0x1c70] ss:$8 sps:$4 sm:$0xff]  }
  0x9f   : > { %12571 = vmatprep.subr.bf16.mxu0 %v15949_v59  ;;  %v2389_v56 = vcombine.high %v19047_v54, %v19047_v54  ;;  %v16023_v59 = vld [vmem:[%s18895_s29 + $0x184] ss:$8 sps:$4 sm:$0xff]  }
  0xa1   : > { %11465 = vmatpush1.bf16.msra.mxu1 %v15951_v0  ;;  %v19056_v60 = vrot.slane %v2389_v56, %v18971_v52  ;;  %v16029_v0 = vld [vmem:[%s18895_s29 + $0x194] ss:$8 sps:$4 sm:$0xff]   ;;  %v16095_v56 = vld [vmem:[%s18895_s29 + $0x244] ss:$8 sps:$4 sm:$0xff]  }
  0xa2   : > { %12572 = vmatpush1.bf16.msra.mxu0 %v15952_v1  ;;  %11466 = vmatprep.subr.bf16.mxu1 %v15953_v2  ;;  %v16032_v1 = vld [vmem:[%s18895_s29 + $0x1c94] ss:$8 sps:$4 sm:$0xff]   ;;  %v16027_v2 = vld [vmem:[%s18895_s29 + $0x190] ss:$8 sps:$4 sm:$0xff]  }
  0xa3   : > { %12573 = vmatprep.subr.bf16.mxu0 %v15955_v3  ;;  %v16030_v3 = vld [vmem:[%s18895_s29 + $0x1c90] ss:$8 sps:$4 sm:$0xff]  }
  0xa5   : > { %11467 = vmatpush1.bf16.msra.mxu1 %v15957_v6  ;;  %v16038_v6 = vld [vmem:[%s18895_s29 + $0x1ca4] ss:$8 sps:$4 sm:$0xff]  }
  0xa6   : > { %12574 = vmatpush1.bf16.msra.mxu0 %v15958_v7  ;;  %11468 = vmatprep.subr.bf16.mxu1 %v15959_v8  ;;  %v16033_v7 = vld [vmem:[%s18895_s29 + $0x1a0] ss:$8 sps:$4 sm:$0xff]  }
  0xa7   : > { %12575 = vmatprep.subr.bf16.mxu0 %v15961_v9  ;;  %v16036_v8 = vld [vmem:[%s18895_s29 + $0x1ca0] ss:$8 sps:$4 sm:$0xff]   ;;  %v16041_v9 = vld [vmem:[%s18895_s29 + $0x1b4] ss:$8 sps:$4 sm:$0xff]  }
  0xa9   : > { %11469 = vmatpush1.bf16.msra.mxu1 %v15963_v11  ;;  %v16039_v11 = vld [vmem:[%s18895_s29 + $0x1b0] ss:$8 sps:$4 sm:$0xff]  }
  0xaa   : > { %12576 = vmatpush1.bf16.msra.mxu0 %v15964_v12  ;;  %11470 = vmatprep.subr.bf16.mxu1 %v15965_v13  ;;  %v16042_v12 = vld [vmem:[%s18895_s29 + $0x1cb0] ss:$8 sps:$4 sm:$0xff]   ;;  %v16047_v13 = vld [vmem:[%s18895_s29 + $0x1c4] ss:$8 sps:$4 sm:$0xff]  }
  0xab   : > { %12577 = vmatprep.subr.bf16.mxu0 %v15967_v14  ;;  %v16050_v14 = vld [vmem:[%s18895_s29 + $0x1cc4] ss:$8 sps:$4 sm:$0xff]  }
  0xad   : > { %11471 = vmatpush1.bf16.msra.mxu1 %v15969_v16  ;;  %v16045_v16 = vld [vmem:[%s18895_s29 + $0x1c0] ss:$8 sps:$4 sm:$0xff]  }
  0xae   : > { %12578 = vmatpush1.bf16.msra.mxu0 %v15970_v17  ;;  %11481 = vmatprep.subr.bf16.mxu1 %v15974_v18  ;;  %v16048_v17 = vld [vmem:[%s18895_s29 + $0x1cc0] ss:$8 sps:$4 sm:$0xff]   ;;  %v16053_v18 = vld [vmem:[%s18895_s29 + $0x1d4] ss:$8 sps:$4 sm:$0xff]  }
  0xaf   : > { %12588 = vmatprep.subr.bf16.mxu0 %v15978_v19  ;;  %v16056_v19 = vld [vmem:[%s18895_s29 + $0x1cd4] ss:$8 sps:$4 sm:$0xff]  }
  0xb0   : > { %11473 = vmatmul.mubr.bf16.vlgmr.msra.gmra.mrb[0].mxu1 %v19010_v20 }
  0xb1   : > { %12580 = vmatmul.mubr.bf16.vlgmr.msra.gmra.mrb[0].mxu0 %v2371_v21  ;;  %11482 = vmatpush1.bf16.msra.mxu1 %v15972_v22  ;;  %v16051_v21 = vld [vmem:[%s18895_s29 + $0x1d0] ss:$8 sps:$4 sm:$0xff]  }
  0xb2   : > { %12589 = vmatpush1.bf16.msra.mxu0 %v15976_v23  ;;  %11483 = vmatprep.subr.bf16.mxu1 %v15981_v24  ;;  %v16054_v22 = vld [vmem:[%s18895_s29 + $0x1cd0] ss:$8 sps:$4 sm:$0xff]   ;;  %v16059_v23 = vld [vmem:[%s18895_s29 + $0x1e4] ss:$8 sps:$4 sm:$0xff]  }
  0xb3   : > { %12590 = vmatprep.subr.bf16.mxu0 %v15984_v25  ;;  %11513 = vmatprep.mubr.bf16.mxu1 %v2078_v26  ;;  %v16062_v24 = vld [vmem:[%s18895_s29 + $0x1ce4] ss:$8 sps:$4 sm:$0xff]   ;;  %v2031_v25 = vcombine.high %v18974_v53, %v18974_v53  ;;  %v16057_v26 = vld [vmem:[%s18895_s29 + $0x1e0] ss:$8 sps:$4 sm:$0xff]   ;;  %v16066_v53 = vld [vmem:[%s18895_s29 + $0x1cf0] ss:$8 sps:$4 sm:$0xff]  }
  0xb4   : > { %12620 = vmatprep.mubr.bf16.mxu0 %v19056_v60 }
  0xb5   : > { %11484 = vmatpush1.bf16.msra.mxu1 %v15979_v27  ;;  %v16060_v27 = vld [vmem:[%s18895_s29 + $0x1ce0] ss:$8 sps:$4 sm:$0xff]  }
  0xb6   : > { %12591 = vmatpush1.bf16.msra.mxu0 %v15982_v28  ;;  %11485 = vmatprep.subr.bf16.mxu1 %v15987_v29  ;;  %v16065_v28 = vld [vmem:[%s18895_s29 + $0x1f4] ss:$8 sps:$4 sm:$0xff]  }
  0xb7   : > { %12592 = vmatprep.subr.bf16.mxu0 %v15990_v30  ;;  %v16068_v29 = vld [vmem:[%s18895_s29 + $0x1cf4] ss:$8 sps:$4 sm:$0xff]   ;;  %v19091_v30 = vrot.slane %v2031_v25, %v18971_v52  ;;  %v16135_v25 = vld [vmem:[%s18895_s29 + $0x2b0] ss:$8 sps:$4 sm:$0xff]  }
  0xb9   : > { %11486 = vmatpush1.bf16.msra.mxu1 %v15985_v31  ;;  %v16063_v31 = vld [vmem:[%s18895_s29 + $0x1f0] ss:$8 sps:$4 sm:$0xff]  }
  0xba   : > { %12593 = vmatpush1.bf16.msra.mxu0 %v15988_v32  ;;  %11487 = vmatprep.subr.bf16.mxu1 %v15993_v33  ;;  %v16071_v32 = vld [vmem:[%s18895_s29 + $0x204] ss:$8 sps:$4 sm:$0xff]  }
  0xbb   : > { %12594 = vmatprep.subr.bf16.mxu0 %v15996_v34  ;;  %v16074_v33 = vld [vmem:[%s18895_s29 + $0x1d04] ss:$8 sps:$4 sm:$0xff]   ;;  %v2047_v34 = vcombine.high %v19091_v30, %v19091_v30 }
  0xbd   : > { %11488 = vmatpush1.bf16.msra.mxu1 %v15991_v35  ;;  %v2076_v35 = vcombine.high %v19010_v20, %v19010_v20  ;;  %v2421_v20 = vcombine.high %v19056_v60, %v19056_v60  ;;  %v16101_v60 = vld [vmem:[%s18895_s29 + $0x254] ss:$8 sps:$4 sm:$0xff]  }
  0xbe   : > { %12595 = vmatpush1.bf16.msra.mxu0 %v15994_v36  ;;  %11489 = vmatprep.subr.bf16.mxu1 %v15999_v37  ;;  %v16069_v36 = vld [vmem:[%s18895_s29 + $0x200] ss:$8 sps:$4 sm:$0xff]   ;;  %v19104_v37 = vrot.slane %v19047_v54, %v18971_v52  ;;  %v16087_v54 = vld [vmem:[%s18895_s29 + $0x230] ss:$8 sps:$4 sm:$0xff]  }
  0xbf   : > { %12596 = vmatprep.subr.bf16.mxu0 %v16002_v38  ;;  %v16072_v38 = vld [vmem:[%s18895_s29 + $0x1d00] ss:$8 sps:$4 sm:$0xff]  }
  0xc1   : > { %11490 = vmatpush1.bf16.msra.mxu1 %v15997_v39  ;;  %v16077_v39 = vld [vmem:[%s18895_s29 + $0x214] ss:$8 sps:$4 sm:$0xff]  }
  0xc2   : > { %12597 = vmatpush1.bf16.msra.mxu0 %v16000_v40  ;;  %11491 = vmatprep.subr.bf16.mxu1 %v16005_v41  ;;  %v16080_v40 = vld [vmem:[%s18895_s29 + $0x1d14] ss:$8 sps:$4 sm:$0xff]   ;;  %v19110_v41 = vrot.slane %v2047_v34, %v18971_v52  ;;  %v16150_v34 = vld [vmem:[%s18895_s29 + $0x1dd0] ss:$8 sps:$4 sm:$0xff]  }
  0xc3   : > { %12598 = vmatprep.subr.bf16.mxu0 %v16008_v42  ;;  %v16075_v42 = vld [vmem:[%s18895_s29 + $0x210] ss:$8 sps:$4 sm:$0xff]  }
  0xc5   : > { %11492 = vmatpush1.bf16.msra.mxu1 %v16003_v43  ;;  %v16078_v43 = vld [vmem:[%s18895_s29 + $0x1d10] ss:$8 sps:$4 sm:$0xff]  }
  0xc6   : > { %12599 = vmatpush1.bf16.msra.mxu0 %v16006_v44  ;;  %11493 = vmatprep.subr.bf16.mxu1 %v16011_v45  ;;  %v16083_v44 = vld [vmem:[%s18895_s29 + $0x224] ss:$8 sps:$4 sm:$0xff]  }
  0xc7   : > { %12600 = vmatprep.subr.bf16.mxu0 %v16014_v46  ;;  %v16086_v45 = vld [vmem:[%s18895_s29 + $0x1d24] ss:$8 sps:$4 sm:$0xff]   ;;  %v16081_v46 = vld [vmem:[%s18895_s29 + $0x220] ss:$8 sps:$4 sm:$0xff]  }
  0xc9   : > { %11494 = vmatpush1.bf16.msra.mxu1 %v16009_v48  ;;  %v16084_v48 = vld [vmem:[%s18895_s29 + $0x1d20] ss:$8 sps:$4 sm:$0xff]  }
  0xca   : > { %12601 = vmatpush1.bf16.msra.mxu0 %v16012_v50  ;;  %11495 = vmatprep.subr.bf16.mxu1 %v16017_v51  ;;  %v16089_v50 = vld [vmem:[%s18895_s29 + $0x234] ss:$8 sps:$4 sm:$0xff]  }
  0xcb   : > { %12602 = vmatprep.subr.bf16.mxu0 %v16020_v55  ;;  %v16092_v51 = vld [vmem:[%s18895_s29 + $0x1d34] ss:$8 sps:$4 sm:$0xff]   ;;  %v16090_v55 = vld [vmem:[%s18895_s29 + $0x1d30] ss:$8 sps:$4 sm:$0xff]  }
  0xcd   : > { %11496 = vmatpush1.bf16.msra.mxu1 %v16015_v57  ;;  %v16098_v57 = vld [vmem:[%s18895_s29 + $0x1d44] ss:$8 sps:$4 sm:$0xff]  }
  0xce   : > { %12603 = vmatpush1.bf16.msra.mxu0 %v16018_v58  ;;  %11497 = vmatprep.subr.bf16.mxu1 %v16023_v59  ;;  %v16093_v58 = vld [vmem:[%s18895_s29 + $0x240] ss:$8 sps:$4 sm:$0xff]  }
  0xcf   : > { %12604 = vmatprep.subr.bf16.mxu0 %v16026_v61  ;;  %v16096_v59 = vld [vmem:[%s18895_s29 + $0x1d40] ss:$8 sps:$4 sm:$0xff]   ;;  %v16104_v61 = vld [vmem:[%s18895_s29 + $0x1d54] ss:$8 sps:$4 sm:$0xff]  }
  0xd1   : > { %11498 = vmatpush1.bf16.msra.mxu1 %v16021_v62  ;;  %v16099_v62 = vld [vmem:[%s18895_s29 + $0x250] ss:$8 sps:$4 sm:$0xff]  }
  0xd2   : > { %12605 = vmatpush1.bf16.msra.mxu0 %v16024_v63  ;;  %11499 = vmatprep.subr.bf16.mxu1 %v16029_v0  ;;  %v16102_v63 = vld [vmem:[%s18895_s29 + $0x1d50] ss:$8 sps:$4 sm:$0xff]   ;;  %v16107_v0 = vld [vmem:[%s18895_s29 + $0x264] ss:$8 sps:$4 sm:$0xff]  }
  0xd3   : > { %12606 = vmatprep.subr.bf16.mxu0 %v16032_v1  ;;  %v16110_v1 = vld [vmem:[%s18895_s29 + $0x1d64] ss:$8 sps:$4 sm:$0xff]  }
  0xd5   : > { %11500 = vmatpush1.bf16.msra.mxu1 %v16027_v2  ;;  %v16105_v2 = vld [vmem:[%s18895_s29 + $0x260] ss:$8 sps:$4 sm:$0xff]  }
  0xd6   : > { %12607 = vmatpush1.bf16.msra.mxu0 %v16030_v3  ;;  %11501 = vmatprep.subr.bf16.mxu1 %v16035_v4  ;;  %v16108_v3 = vld [vmem:[%s18895_s29 + $0x1d60] ss:$8 sps:$4 sm:$0xff]   ;;  %v16113_v4 = vld [vmem:[%s18895_s29 + $0x274] ss:$8 sps:$4 sm:$0xff]  }
  0xd7   : > { %12608 = vmatprep.subr.bf16.mxu0 %v16038_v6  ;;  %v16116_v6 = vld [vmem:[%s18895_s29 + $0x1d74] ss:$8 sps:$4 sm:$0xff]  }
  0xd9   : > { %11502 = vmatpush1.bf16.msra.mxu1 %v16033_v7  ;;  %v16111_v7 = vld [vmem:[%s18895_s29 + $0x270] ss:$8 sps:$4 sm:$0xff]  }
  0xda   : > { %12609 = vmatpush1.bf16.msra.mxu0 %v16036_v8  ;;  %11503 = vmatprep.subr.bf16.mxu1 %v16041_v9  ;;  %v16114_v8 = vld [vmem:[%s18895_s29 + $0x1d70] ss:$8 sps:$4 sm:$0xff]   ;;  %v16119_v9 = vld [vmem:[%s18895_s29 + $0x284] ss:$8 sps:$4 sm:$0xff]  }
  0xdb   : > { %12610 = vmatprep.subr.bf16.mxu0 %v16044_v10  ;;  %v16122_v10 = vld [vmem:[%s18895_s29 + $0x1d84] ss:$8 sps:$4 sm:$0xff]  }
  0xdd   : > { %11504 = vmatpush1.bf16.msra.mxu1 %v16039_v11  ;;  %v16117_v11 = vld [vmem:[%s18895_s29 + $0x280] ss:$8 sps:$4 sm:$0xff]  }
  0xde   : > { %12611 = vmatpush1.bf16.msra.mxu0 %v16042_v12  ;;  %11505 = vmatprep.subr.bf16.mxu1 %v16047_v13  ;;  %v16120_v12 = vld [vmem:[%s18895_s29 + $0x1d80] ss:$8 sps:$4 sm:$0xff]   ;;  %v16125_v13 = vld [vmem:[%s18895_s29 + $0x294] ss:$8 sps:$4 sm:$0xff]  }
  0xdf   : > { %12612 = vmatprep.subr.bf16.mxu0 %v16050_v14  ;;  %v16128_v14 = vld [vmem:[%s18895_s29 + $0x1d94] ss:$8 sps:$4 sm:$0xff]  }
  0xe1   : > { %11506 = vmatpush1.bf16.msra.mxu1 %v16045_v16  ;;  %v16123_v16 = vld [vmem:[%s18895_s29 + $0x290] ss:$8 sps:$4 sm:$0xff]  }
  0xe2   : > { %12613 = vmatpush1.bf16.msra.mxu0 %v16048_v17  ;;  %11507 = vmatprep.subr.bf16.mxu1 %v16053_v18  ;;  %v16126_v17 = vld [vmem:[%s18895_s29 + $0x1d90] ss:$8 sps:$4 sm:$0xff]   ;;  %v16131_v18 = vld [vmem:[%s18895_s29 + $0x2a4] ss:$8 sps:$4 sm:$0xff]  }
  0xe3   : > { %12614 = vmatprep.subr.bf16.mxu0 %v16056_v19  ;;  %v16134_v19 = vld [vmem:[%s18895_s29 + $0x1da4] ss:$8 sps:$4 sm:$0xff]  }
  0xe5   : > { %11508 = vmatpush1.bf16.msra.mxu1 %v16051_v21  ;;  %v16129_v21 = vld [vmem:[%s18895_s29 + $0x2a0] ss:$8 sps:$4 sm:$0xff]  }
  0xe6   : > { %12615 = vmatpush1.bf16.msra.mxu0 %v16054_v22  ;;  %11509 = vmatprep.subr.bf16.mxu1 %v16059_v23  ;;  %v16132_v22 = vld [vmem:[%s18895_s29 + $0x1da0] ss:$8 sps:$4 sm:$0xff]   ;;  %v16137_v23 = vld [vmem:[%s18895_s29 + $0x2b4] ss:$8 sps:$4 sm:$0xff]  }
  0xe7   : > { %12616 = vmatprep.subr.bf16.mxu0 %v16062_v24  ;;  %v16140_v24 = vld [vmem:[%s18895_s29 + $0x1db4] ss:$8 sps:$4 sm:$0xff]  }
  0xe9   : > { %11510 = vmatpush1.bf16.msra.mxu1 %v16057_v26  ;;  %v16138_v26 = vld [vmem:[%s18895_s29 + $0x1db0] ss:$8 sps:$4 sm:$0xff]  }
  0xea   : > { %12617 = vmatpush1.bf16.msra.mxu0 %v16060_v27  ;;  %11511 = vmatprep.subr.bf16.mxu1 %v16065_v28  ;;  %v16143_v27 = vld [vmem:[%s18895_s29 + $0x2c4] ss:$8 sps:$4 sm:$0xff]  }
  0xeb   : > { %12618 = vmatprep.subr.bf16.mxu0 %v16068_v29  ;;  %v16146_v28 = vld [vmem:[%s18895_s29 + $0x1dc4] ss:$8 sps:$4 sm:$0xff]   ;;  %v16141_v29 = vld [vmem:[%s18895_s29 + $0x2c0] ss:$8 sps:$4 sm:$0xff]  }
  0xed   : > { %11512 = vmatpush1.bf16.msra.mxu1 %v16063_v31  ;;  %v16144_v31 = vld [vmem:[%s18895_s29 + $0x1dc0] ss:$8 sps:$4 sm:$0xff]  }
  0xee   : > { %12619 = vmatpush1.bf16.msra.mxu0 %v16066_v53  ;;  %11522 = vmatprep.subr.bf16.mxu1 %v16071_v32  ;;  %v16149_v53 = vld [vmem:[%s18895_s29 + $0x2d4] ss:$8 sps:$4 sm:$0xff]  }
  0xef   : > { %12629 = vmatprep.subr.bf16.mxu0 %v16074_v33  ;;  %v16152_v32 = vld [vmem:[%s18895_s29 + $0x1dd4] ss:$8 sps:$4 sm:$0xff]   ;;  %v16147_v33 = vld [vmem:[%s18895_s29 + $0x2d0] ss:$8 sps:$4 sm:$0xff]  }
  0xf0   : > { %11514 = vmatmul.mubr.bf16.vlgmr.msra.gmra.mrb[0].mxu1 %v2076_v35  ;;  %v16155_v35 = vld [vmem:[%s18895_s29 + $0x2e4] ss:$8 sps:$4 sm:$0xff]  }
  0xf1   : > { %12621 = vmatmul.mubr.bf16.vlgmr.msra.gmra.mrb[0].mxu0 %v19104_v37  ;;  %11523 = vmatpush1.bf16.msra.mxu1 %v16069_v36  ;;  %v16158_v36 = vld [vmem:[%s18895_s29 + $0x1de4] ss:$8 sps:$4 sm:$0xff]  }
  0xf2   : > { %12630 = vmatpush1.bf16.msra.mxu0 %v16072_v38  ;;  %11524 = vmatprep.subr.bf16.mxu1 %v16077_v39  ;;  %v2374_v38 = vcombine.high %v19041_v49, %v19041_v49  ;;  %v16153_v39 = vld [vmem:[%s18895_s29 + $0x2e0] ss:$8 sps:$4 sm:$0xff]   ;;  %v16162_v49 = vld [vmem:[%s18895_s29 + $0x1df0] ss:$8 sps:$4 sm:$0xff]  }
  0xf3   : > { %12631 = vmatprep.subr.bf16.mxu0 %v16080_v40  ;;  %11554 = vmatprep.mubr.bf16.mxu1 %v19110_v41  ;;  %v16156_v40 = vld [vmem:[%s18895_s29 + $0x1de0] ss:$8 sps:$4 sm:$0xff]  }
  0xf4   : > { %12661 = vmatprep.mubr.bf16.mxu0 %v2421_v20  ;;  %v16161_v20 = vld [vmem:[%s18895_s29 + $0x2f4] ss:$8 sps:$4 sm:$0xff]  }
  0xf5   : > { %11525 = vmatpush1.bf16.msra.mxu1 %v16075_v42  ;;  %v16164_v42 = vld [vmem:[%s18895_s29 + $0x1df4] ss:$8 sps:$4 sm:$0xff]  }
  0xf6   : > { %12632 = vmatpush1.bf16.msra.mxu0 %v16078_v43  ;;  %11526 = vmatprep.subr.bf16.mxu1 %v16083_v44  ;;  %v19175_v43 = vrot.slane %v2374_v38, %v18971_v52  ;;  %v16159_v44 = vld [vmem:[%s18895_s29 + $0x2f0] ss:$8 sps:$4 sm:$0xff]  }
  0xf7   : > { %12633 = vmatprep.subr.bf16.mxu0 %v16086_v45  ;;  %v16167_v45 = vld [vmem:[%s18895_s29 + $0x304] ss:$8 sps:$4 sm:$0xff]   ;;  %v16234_v38 = vld [vmem:[%s18895_s29 + $0x1eb0] ss:$8 sps:$4 sm:$0xff]  }
  0xf9   : > { %11527 = vmatpush1.bf16.msra.mxu1 %v16081_v46  ;;  %v16170_v46 = vld [vmem:[%s18895_s29 + $0x1e04] ss:$8 sps:$4 sm:$0xff]  }
  0xfa   : > { %12634 = vmatpush1.bf16.msra.mxu0 %v16084_v48  ;;  %11528 = vmatprep.subr.bf16.mxu1 %v16089_v50  ;;  %v2390_v48 = vcombine.high %v19175_v43, %v19175_v43  ;;  %v16165_v50 = vld [vmem:[%s18895_s29 + $0x300] ss:$8 sps:$4 sm:$0xff]  }
  0xfb   : > { %12635 = vmatprep.subr.bf16.mxu0 %v16092_v51  ;;  %v19186_v51 = vrot.slane %v19091_v30, %v18971_v52 }
  0xfc   : > { %v19196_v30 = vrot.slane %v2390_v48, %v18971_v52  ;;  %v16251_v48 = vld [vmem:[%s18895_s29 + $0x3e4] ss:$8 sps:$4 sm:$0xff]  }
  0xfd   : > { %11529 = vmatpush1.bf16.msra.mxu1 %v16087_v54  ;;  %v2419_v54 = vcombine.high %v19104_v37, %v19104_v37  ;;  %v16171_v37 = vld [vmem:[%s18895_s29 + $0x310] ss:$8 sps:$4 sm:$0xff]  }
  0xfe   : > { %12636 = vmatpush1.bf16.msra.mxu0 %v16090_v55  ;;  %11530 = vmatprep.subr.bf16.mxu1 %v16095_v56  ;;  %v16168_v55 = vld [vmem:[%s18895_s29 + $0x1e00] ss:$8 sps:$4 sm:$0xff]   ;;  %v16173_v56 = vld [vmem:[%s18895_s29 + $0x314] ss:$8 sps:$4 sm:$0xff]  }
  0xff   : > { %12637 = vmatprep.subr.bf16.mxu0 %v16098_v57  ;;  %v16176_v57 = vld [vmem:[%s18895_s29 + $0x1e14] ss:$8 sps:$4 sm:$0xff]  }
 0x101   : > { %11531 = vmatpush1.bf16.msra.mxu1 %v16093_v58  ;;  %v2079_v58 = vcombine.high %v19110_v41, %v19110_v41  ;;  %v16182_v41 = vld [vmem:[%s18895_s29 + $0x1e24] ss:$8 sps:$4 sm:$0xff]  }
 0x102   : > { %12638 = vmatpush1.bf16.msra.mxu0 %v16096_v59  ;;  %11532 = vmatprep.subr.bf16.mxu1 %v16101_v60  ;;  %v16174_v59 = vld [vmem:[%s18895_s29 + $0x1e10] ss:$8 sps:$4 sm:$0xff]   ;;  %v16179_v60 = vld [vmem:[%s18895_s29 + $0x324] ss:$8 sps:$4 sm:$0xff]  }
 0x103   : > { %12639 = vmatprep.subr.bf16.mxu0 %v16104_v61  ;;  %v16177_v61 = vld [vmem:[%s18895_s29 + $0x320] ss:$8 sps:$4 sm:$0xff]  }
 0x105   : > { %11533 = vmatpush1.bf16.msra.mxu1 %v16099_v62  ;;  %v16180_v62 = vld [vmem:[%s18895_s29 + $0x1e20] ss:$8 sps:$4 sm:$0xff]  }
 0x106   : > { %12640 = vmatpush1.bf16.msra.mxu0 %v16102_v63  ;;  %11534 = vmatprep.subr.bf16.mxu1 %v16107_v0  ;;  %v16185_v63 = vld [vmem:[%s18895_s29 + $0x334] ss:$8 sps:$4 sm:$0xff]  }
 0x107   : > { %12641 = vmatprep.subr.bf16.mxu0 %v16110_v1  ;;  %v16188_v0 = vld [vmem:[%s18895_s29 + $0x1e34] ss:$8 sps:$4 sm:$0xff]   ;;  %v16183_v1 = vld [vmem:[%s18895_s29 + $0x330] ss:$8 sps:$4 sm:$0xff]  }
 0x109   : > { %11535 = vmatpush1.bf16.msra.mxu1 %v16105_v2  ;;  %v16186_v2 = vld [vmem:[%s18895_s29 + $0x1e30] ss:$8 sps:$4 sm:$0xff]  }
 0x10a   : > { %12642 = vmatpush1.bf16.msra.mxu0 %v16108_v3  ;;  %11536 = vmatprep.subr.bf16.mxu1 %v16113_v4  ;;  %v16191_v3 = vld [vmem:[%s18895_s29 + $0x344] ss:$8 sps:$4 sm:$0xff]  }
 0x10b   : > { %12643 = vmatprep.subr.bf16.mxu0 %v16116_v6  ;;  %v16194_v4 = vld [vmem:[%s18895_s29 + $0x1e44] ss:$8 sps:$4 sm:$0xff]   ;;  %v16189_v6 = vld [vmem:[%s18895_s29 + $0x340] ss:$8 sps:$4 sm:$0xff]  }
 0x10d   : > { %11537 = vmatpush1.bf16.msra.mxu1 %v16111_v7  ;;  %v16192_v7 = vld [vmem:[%s18895_s29 + $0x1e40] ss:$8 sps:$4 sm:$0xff]  }
 0x10e   : > { %12644 = vmatpush1.bf16.msra.mxu0 %v16114_v8  ;;  %11538 = vmatprep.subr.bf16.mxu1 %v16119_v9  ;;  %v16197_v8 = vld [vmem:[%s18895_s29 + $0x354] ss:$8 sps:$4 sm:$0xff]  }
 0x10f   : > { %12645 = vmatprep.subr.bf16.mxu0 %v16122_v10  ;;  %v16200_v9 = vld [vmem:[%s18895_s29 + $0x1e54] ss:$8 sps:$4 sm:$0xff]   ;;  %v16195_v10 = vld [vmem:[%s18895_s29 + $0x350] ss:$8 sps:$4 sm:$0xff]  }
 0x111   : > { %11539 = vmatpush1.bf16.msra.mxu1 %v16117_v11  ;;  %v16198_v11 = vld [vmem:[%s18895_s29 + $0x1e50] ss:$8 sps:$4 sm:$0xff]  }
 0x112   : > { %12646 = vmatpush1.bf16.msra.mxu0 %v16120_v12  ;;  %11540 = vmatprep.subr.bf16.mxu1 %v16125_v13  ;;  %v16203_v12 = vld [vmem:[%s18895_s29 + $0x364] ss:$8 sps:$4 sm:$0xff]  }
 0x113   : > { %12647 = vmatprep.subr.bf16.mxu0 %v16128_v14  ;;  %v16206_v13 = vld [vmem:[%s18895_s29 + $0x1e64] ss:$8 sps:$4 sm:$0xff]   ;;  %v16201_v14 = vld [vmem:[%s18895_s29 + $0x360] ss:$8 sps:$4 sm:$0xff]  }
 0x115   : > { %11541 = vmatpush1.bf16.msra.mxu1 %v16123_v16  ;;  %v16204_v16 = vld [vmem:[%s18895_s29 + $0x1e60] ss:$8 sps:$4 sm:$0xff]  }
 0x116   : > { %12648 = vmatpush1.bf16.msra.mxu0 %v16126_v17  ;;  %11542 = vmatprep.subr.bf16.mxu1 %v16131_v18  ;;  %v16209_v17 = vld [vmem:[%s18895_s29 + $0x374] ss:$8 sps:$4 sm:$0xff]  }
 0x117   : > { %12649 = vmatprep.subr.bf16.mxu0 %v16134_v19  ;;  %v16212_v18 = vld [vmem:[%s18895_s29 + $0x1e74] ss:$8 sps:$4 sm:$0xff]   ;;  %v16207_v19 = vld [vmem:[%s18895_s29 + $0x370] ss:$8 sps:$4 sm:$0xff]  }
 0x119   : > { %11543 = vmatpush1.bf16.msra.mxu1 %v16129_v21  ;;  %v16210_v21 = vld [vmem:[%s18895_s29 + $0x1e70] ss:$8 sps:$4 sm:$0xff]  }
 0x11a   : > { %12650 = vmatpush1.bf16.msra.mxu0 %v16132_v22  ;;  %11544 = vmatprep.subr.bf16.mxu1 %v16137_v23  ;;  %v16215_v22 = vld [vmem:[%s18895_s29 + $0x384] ss:$8 sps:$4 sm:$0xff]  }
 0x11b   : > { %12651 = vmatprep.subr.bf16.mxu0 %v16140_v24  ;;  %v16218_v23 = vld [vmem:[%s18895_s29 + $0x1e84] ss:$8 sps:$4 sm:$0xff]   ;;  %v16213_v24 = vld [vmem:[%s18895_s29 + $0x380] ss:$8 sps:$4 sm:$0xff]  }
 0x11d   : > { %11545 = vmatpush1.bf16.msra.mxu1 %v16135_v25  ;;  %v16216_v25 = vld [vmem:[%s18895_s29 + $0x1e80] ss:$8 sps:$4 sm:$0xff]  }
 0x11e   : > { %12652 = vmatpush1.bf16.msra.mxu0 %v16138_v26  ;;  %11546 = vmatprep.subr.bf16.mxu1 %v16143_v27  ;;  %v16221_v26 = vld [vmem:[%s18895_s29 + $0x394] ss:$8 sps:$4 sm:$0xff]  }
 0x11f   : > { %12653 = vmatprep.subr.bf16.mxu0 %v16146_v28  ;;  %v16224_v27 = vld [vmem:[%s18895_s29 + $0x1e94] ss:$8 sps:$4 sm:$0xff]   ;;  %v16219_v28 = vld [vmem:[%s18895_s29 + $0x390] ss:$8 sps:$4 sm:$0xff]  }
 0x121   : > { %11547 = vmatpush1.bf16.msra.mxu1 %v16141_v29  ;;  %v16222_v29 = vld [vmem:[%s18895_s29 + $0x1e90] ss:$8 sps:$4 sm:$0xff]  }
 0x122   : > { %12654 = vmatpush1.bf16.msra.mxu0 %v16144_v31  ;;  %11548 = vmatprep.subr.bf16.mxu1 %v16149_v53  ;;  %v16227_v31 = vld [vmem:[%s18895_s29 + $0x3a4] ss:$8 sps:$4 sm:$0xff]  }
 0x123   : > { %12655 = vmatprep.subr.bf16.mxu0 %v16152_v32  ;;  %v16230_v53 = vld [vmem:[%s18895_s29 + $0x1ea4] ss:$8 sps:$4 sm:$0xff]   ;;  %v16225_v32 = vld [vmem:[%s18895_s29 + $0x3a0] ss:$8 sps:$4 sm:$0xff]  }
 0x125   : > { %11549 = vmatpush1.bf16.msra.mxu1 %v16147_v33  ;;  %v16228_v33 = vld [vmem:[%s18895_s29 + $0x1ea0] ss:$8 sps:$4 sm:$0xff]  }
 0x126   : > { %12656 = vmatpush1.bf16.msra.mxu0 %v16150_v34  ;;  %11550 = vmatprep.subr.bf16.mxu1 %v16155_v35  ;;  %v16233_v34 = vld [vmem:[%s18895_s29 + $0x3b4] ss:$8 sps:$4 sm:$0xff]  }
 0x127   : > { %12657 = vmatprep.subr.bf16.mxu0 %v16158_v36  ;;  %v16236_v35 = vld [vmem:[%s18895_s29 + $0x1eb4] ss:$8 sps:$4 sm:$0xff]   ;;  %v16231_v36 = vld [vmem:[%s18895_s29 + $0x3b0] ss:$8 sps:$4 sm:$0xff]  }
 0x129   : > { %11551 = vmatpush1.bf16.msra.mxu1 %v16153_v39  ;;  %v16239_v39 = vld [vmem:[%s18895_s29 + $0x3c4] ss:$8 sps:$4 sm:$0xff]  }
 0x12a   : > { %12658 = vmatpush1.bf16.msra.mxu0 %v16156_v40  ;;  %11552 = vmatprep.subr.bf16.mxu1 %v16161_v20  ;;  %v16242_v40 = vld [vmem:[%s18895_s29 + $0x1ec4] ss:$8 sps:$4 sm:$0xff]   ;;  %v16237_v20 = vld [vmem:[%s18895_s29 + $0x3c0] ss:$8 sps:$4 sm:$0xff]  }
 0x12b   : > { %12659 = vmatprep.subr.bf16.mxu0 %v16164_v42  ;;  %v16240_v42 = vld [vmem:[%s18895_s29 + $0x1ec0] ss:$8 sps:$4 sm:$0xff]  }
 0x12d   : > { %11553 = vmatpush1.bf16.msra.mxu1 %v16159_v44  ;;  %v16245_v44 = vld [vmem:[%s18895_s29 + $0x3d4] ss:$8 sps:$4 sm:$0xff]  }
 0x12e   : > { %12660 = vmatpush1.bf16.msra.mxu0 %v16162_v49  ;;  %11563 = vmatprep.subr.bf16.mxu1 %v16167_v45  ;;  %v16248_v49 = vld [vmem:[%s18895_s29 + $0x1ed4] ss:$8 sps:$4 sm:$0xff]   ;;  %v16243_v45 = vld [vmem:[%s18895_s29 + $0x3d0] ss:$8 sps:$4 sm:$0xff]  }
 0x12f   : > { %12670 = vmatprep.subr.bf16.mxu0 %v16170_v46  ;;  %v16246_v46 = vld [vmem:[%s18895_s29 + $0x1ed0] ss:$8 sps:$4 sm:$0xff]  }
 0x130   : > { %11555 = vmatmul.mubr.bf16.vlgmr.msra.gmra.mrb[0].mxu1 %v19186_v51 }
 0x131   : > { %12662 = vmatmul.mubr.bf16.vlgmr.msra.gmra.mrb[0].mxu0 %v2419_v54  ;;  %11564 = vmatpush1.bf16.msra.mxu1 %v16165_v50  ;;  %v16254_v50 = vld [vmem:[%s18895_s29 + $0x1ee4] ss:$8 sps:$4 sm:$0xff]   ;;  %v16249_v54 = vld [vmem:[%s18895_s29 + $0x3e0] ss:$8 sps:$4 sm:$0xff]  }
 0x132   : > { %12671 = vmatpush1.bf16.msra.mxu0 %v16168_v55  ;;  %11565 = vmatprep.subr.bf16.mxu1 %v16173_v56  ;;  %v16252_v55 = vld [vmem:[%s18895_s29 + $0x1ee0] ss:$8 sps:$4 sm:$0xff]  }
 0x133   : > { %12672 = vmatprep.subr.bf16.mxu0 %v16176_v57  ;;  %11595 = vmatprep.mubr.bf16.mxu1 %v2079_v58  ;;  %v19255_v56 = vld.sshfl [vmem:[%s18914_s4 + $0x8] sm:$0xff pattern:$0x75316420]  ;;  %v16257_v57 = vld [vmem:[%s18895_s29 + $0x3f4] ss:$8 sps:$4 sm:$0xff]  }
 0x134   : > { %12702 = vmatprep.mubr.bf16.mxu0 %v19196_v30  ;;  %v16260_v58 = vld [vmem:[%s18895_s29 + $0x1ef4] ss:$8 sps:$4 sm:$0xff]  }
 0x135   : > { %11566 = vmatpush1.bf16.msra.mxu1 %v16171_v37  ;;  %v16255_v37 = vld [vmem:[%s18895_s29 + $0x3f0] ss:$8 sps:$4 sm:$0xff]  }
 0x136   : > { %12673 = vmatpush1.bf16.msra.mxu0 %v16174_v59  ;;  %11567 = vmatprep.subr.bf16.mxu1 %v16179_v60  ;;  %v16258_v59 = vld [vmem:[%s18895_s29 + $0x1ef0] ss:$8 sps:$4 sm:$0xff]   ;;  %v16263_v60 = vld [vmem:[%s18895_s29 + $0x404] ss:$8 sps:$4 sm:$0xff]  }
 0x137   : > { %12674 = vmatprep.subr.bf16.mxu0 %v16182_v41  ;;  %v16267_v41 = vld [vmem:[%s18895_s29 + $0x1f04] ss:$8 sps:$4 sm:$0xff]  }
 0x139   : > { %11568 = vmatpush1.bf16.msra.mxu1 %v16177_v61  ;;  %v2095_v61 = vcombine.high %v19255_v56, %v19255_v56 }
 0x13a   : > { %12675 = vmatpush1.bf16.msra.mxu0 %v16180_v62  ;;  %11569 = vmatprep.subr.bf16.mxu1 %v16185_v63  ;;  %v16261_v62 = vld [vmem:[%s18895_s29 + $0x400] ss:$8 sps:$4 sm:$0xff]  }
 0x13b   : > { %12676 = vmatprep.subr.bf16.mxu0 %v16188_v0  ;;  %v16265_v63 = vld [vmem:[%s18895_s29 + $0x1f00] ss:$8 sps:$4 sm:$0xff]   ;;  %v2077_v0 = vcombine.high %v19186_v51, %v19186_v51  ;;  %v16271_v51 = vld [vmem:[%s18895_s29 + $0x1f10] ss:$8 sps:$4 sm:$0xff]  }
 0x13d   : > { %11570 = vmatpush1.bf16.msra.mxu1 %v16183_v1  ;;  %v19271_v1 = vrot.slane %v19175_v43, %v18971_v52  ;;  %v16268_v43 = vld [vmem:[%s18895_s29 + $0x410] ss:$8 sps:$4 sm:$0xff]  }
 0x13e   : > { %12677 = vmatpush1.bf16.msra.mxu0 %v16186_v2  ;;  %11571 = vmatprep.subr.bf16.mxu1 %v16191_v3  ;;  %v16270_v2 = vld [vmem:[%s18895_s29 + $0x414] ss:$8 sps:$4 sm:$0xff]  }
 0x13f   : > { %12678 = vmatprep.subr.bf16.mxu0 %v16194_v4  ;;  %v16273_v3 = vld [vmem:[%s18895_s29 + $0x1f14] ss:$8 sps:$4 sm:$0xff]   ;;  %v19276_v4 = vrot.slane %v2095_v61, %v18971_v52  ;;  %v16348_v61 = vld [vmem:[%s18895_s29 + $0x4e4] ss:$8 sps:$4 sm:$0xff]  }
 0x141   : > { %11572 = vmatpush1.bf16.msra.mxu1 %v16189_v6  ;;  %v2422_v6 = vcombine.high %v19196_v30, %v19196_v30  ;;  %v16274_v30 = vld [vmem:[%s18895_s29 + $0x420] ss:$8 sps:$4 sm:$0xff]  }
 0x142   : > { %12679 = vmatpush1.bf16.msra.mxu0 %v16192_v7  ;;  %11573 = vmatprep.subr.bf16.mxu1 %v16197_v8  ;;  %v16276_v7 = vld [vmem:[%s18895_s29 + $0x424] ss:$8 sps:$4 sm:$0xff]  }
 0x143   : > { %12680 = vmatprep.subr.bf16.mxu0 %v16200_v9  ;;  %v16279_v8 = vld [vmem:[%s18895_s29 + $0x1f24] ss:$8 sps:$4 sm:$0xff]   ;;  %v16277_v9 = vld [vmem:[%s18895_s29 + $0x1f20] ss:$8 sps:$4 sm:$0xff]  }
 0x145   : > { %11574 = vmatpush1.bf16.msra.mxu1 %v16195_v10  ;;  %v16282_v10 = vld [vmem:[%s18895_s29 + $0x434] ss:$8 sps:$4 sm:$0xff]  }
 0x146   : > { %12681 = vmatpush1.bf16.msra.mxu0 %v16198_v11  ;;  %11575 = vmatprep.subr.bf16.mxu1 %v16203_v12  ;;  %v16285_v11 = vld [vmem:[%s18895_s29 + $0x1f34] ss:$8 sps:$4 sm:$0xff]   ;;  %v16280_v12 = vld [vmem:[%s18895_s29 + $0x430] ss:$8 sps:$4 sm:$0xff]  }
 0x147   : > { %12682 = vmatprep.subr.bf16.mxu0 %v16206_v13  ;;  %v16283_v13 = vld [vmem:[%s18895_s29 + $0x1f30] ss:$8 sps:$4 sm:$0xff]  }
 0x149   : > { %11576 = vmatpush1.bf16.msra.mxu1 %v16201_v14  ;;  %v16288_v14 = vld [vmem:[%s18895_s29 + $0x444] ss:$8 sps:$4 sm:$0xff]  }
 0x14a   : > { %12683 = vmatpush1.bf16.msra.mxu0 %v16204_v16  ;;  %11577 = vmatprep.subr.bf16.mxu1 %v16209_v17  ;;  %v16291_v16 = vld [vmem:[%s18895_s29 + $0x1f44] ss:$8 sps:$4 sm:$0xff]   ;;  %v16286_v17 = vld [vmem:[%s18895_s29 + $0x440] ss:$8 sps:$4 sm:$0xff]  }
 0x14b   : > { %12684 = vmatprep.subr.bf16.mxu0 %v16212_v18  ;;  %v16289_v18 = vld [vmem:[%s18895_s29 + $0x1f40] ss:$8 sps:$4 sm:$0xff]  }
 0x14d   : > { %11578 = vmatpush1.bf16.msra.mxu1 %v16207_v19  ;;  %v16294_v19 = vld [vmem:[%s18895_s29 + $0x454] ss:$8 sps:$4 sm:$0xff]  }
 0x14e   : > { %12685 = vmatpush1.bf16.msra.mxu0 %v16210_v21  ;;  %11579 = vmatprep.subr.bf16.mxu1 %v16215_v22  ;;  %v16297_v21 = vld [vmem:[%s18895_s29 + $0x1f54] ss:$8 sps:$4 sm:$0xff]   ;;  %v16292_v22 = vld [vmem:[%s18895_s29 + $0x450] ss:$8 sps:$4 sm:$0xff]  }
 0x14f   : > { %12686 = vmatprep.subr.bf16.mxu0 %v16218_v23  ;;  %v16295_v23 = vld [vmem:[%s18895_s29 + $0x1f50] ss:$8 sps:$4 sm:$0xff]  }
 0x151   : > { %11580 = vmatpush1.bf16.msra.mxu1 %v16213_v24  ;;  %v16300_v24 = vld [vmem:[%s18895_s29 + $0x464] ss:$8 sps:$4 sm:$0xff]  }
 0x152   : > { %12687 = vmatpush1.bf16.msra.mxu0 %v16216_v25  ;;  %11581 = vmatprep.subr.bf16.mxu1 %v16221_v26  ;;  %v16303_v25 = vld [vmem:[%s18895_s29 + $0x1f64] ss:$8 sps:$4 sm:$0xff]   ;;  %v16298_v26 = vld [vmem:[%s18895_s29 + $0x460] ss:$8 sps:$4 sm:$0xff]  }
 0x153   : > { %12688 = vmatprep.subr.bf16.mxu0 %v16224_v27  ;;  %v16301_v27 = vld [vmem:[%s18895_s29 + $0x1f60] ss:$8 sps:$4 sm:$0xff]  }
 0x155   : > { %11582 = vmatpush1.bf16.msra.mxu1 %v16219_v28  ;;  %v16306_v28 = vld [vmem:[%s18895_s29 + $0x474] ss:$8 sps:$4 sm:$0xff]  }
 0x156   : > { %12689 = vmatpush1.bf16.msra.mxu0 %v16222_v29  ;;  %11583 = vmatprep.subr.bf16.mxu1 %v16227_v31  ;;  %v16309_v29 = vld [vmem:[%s18895_s29 + $0x1f74] ss:$8 sps:$4 sm:$0xff]   ;;  %v16304_v31 = vld [vmem:[%s18895_s29 + $0x470] ss:$8 sps:$4 sm:$0xff]  }
 0x157   : > { %12690 = vmatprep.subr.bf16.mxu0 %v16230_v53  ;;  %v16307_v53 = vld [vmem:[%s18895_s29 + $0x1f70] ss:$8 sps:$4 sm:$0xff]  }
 0x159   : > { %11584 = vmatpush1.bf16.msra.mxu1 %v16225_v32  ;;  %v16312_v32 = vld [vmem:[%s18895_s29 + $0x484] ss:$8 sps:$4 sm:$0xff]  }
 0x15a   : > { %12691 = vmatpush1.bf16.msra.mxu0 %v16228_v33  ;;  %11585 = vmatprep.subr.bf16.mxu1 %v16233_v34  ;;  %v16315_v33 = vld [vmem:[%s18895_s29 + $0x1f84] ss:$8 sps:$4 sm:$0xff]   ;;  %v16310_v34 = vld [vmem:[%s18895_s29 + $0x480] ss:$8 sps:$4 sm:$0xff]  }
 0x15b   : > { %12692 = vmatprep.subr.bf16.mxu0 %v16236_v35  ;;  %v16313_v35 = vld [vmem:[%s18895_s29 + $0x1f80] ss:$8 sps:$4 sm:$0xff]  }
 0x15d   : > { %11586 = vmatpush1.bf16.msra.mxu1 %v16231_v36  ;;  %v16318_v36 = vld [vmem:[%s18895_s29 + $0x494] ss:$8 sps:$4 sm:$0xff]  }
 0x15e   : > { %12693 = vmatpush1.bf16.msra.mxu0 %v16234_v38  ;;  %11587 = vmatprep.subr.bf16.mxu1 %v16239_v39  ;;  %v16321_v38 = vld [vmem:[%s18895_s29 + $0x1f94] ss:$8 sps:$4 sm:$0xff]   ;;  %v16316_v39 = vld [vmem:[%s18895_s29 + $0x490] ss:$8 sps:$4 sm:$0xff]  }
 0x15f   : > { %12694 = vmatprep.subr.bf16.mxu0 %v16242_v40  ;;  %v16319_v40 = vld [vmem:[%s18895_s29 + $0x1f90] ss:$8 sps:$4 sm:$0xff]  }
 0x161   : > { %11588 = vmatpush1.bf16.msra.mxu1 %v16237_v20  ;;  %v16324_v20 = vld [vmem:[%s18895_s29 + $0x4a4] ss:$8 sps:$4 sm:$0xff]  }
 0x162   : > { %12695 = vmatpush1.bf16.msra.mxu0 %v16240_v42  ;;  %11589 = vmatprep.subr.bf16.mxu1 %v16245_v44  ;;  %v16327_v42 = vld [vmem:[%s18895_s29 + $0x1fa4] ss:$8 sps:$4 sm:$0xff]   ;;  %v16322_v44 = vld [vmem:[%s18895_s29 + $0x4a0] ss:$8 sps:$4 sm:$0xff]  }
 0x163   : > { %12696 = vmatprep.subr.bf16.mxu0 %v16248_v49  ;;  %v16325_v49 = vld [vmem:[%s18895_s29 + $0x1fa0] ss:$8 sps:$4 sm:$0xff]  }
 0x165   : > { %11590 = vmatpush1.bf16.msra.mxu1 %v16243_v45  ;;  %v16330_v45 = vld [vmem:[%s18895_s29 + $0x4b4] ss:$8 sps:$4 sm:$0xff]  }
 0x166   : > { %12697 = vmatpush1.bf16.msra.mxu0 %v16246_v46  ;;  %11591 = vmatprep.subr.bf16.mxu1 %v16251_v48  ;;  %v16333_v46 = vld [vmem:[%s18895_s29 + $0x1fb4] ss:$8 sps:$4 sm:$0xff]   ;;  %v16328_v48 = vld [vmem:[%s18895_s29 + $0x4b0] ss:$8 sps:$4 sm:$0xff]  }
 0x167   : > { %12698 = vmatprep.subr.bf16.mxu0 %v16254_v50  ;;  %v16331_v50 = vld [vmem:[%s18895_s29 + $0x1fb0] ss:$8 sps:$4 sm:$0xff]  }
 0x169   : > { %11592 = vmatpush1.bf16.msra.mxu1 %v16249_v54  ;;  %v16336_v54 = vld [vmem:[%s18895_s29 + $0x4c4] ss:$8 sps:$4 sm:$0xff]  }
 0x16a   : > { %12699 = vmatpush1.bf16.msra.mxu0 %v16252_v55  ;;  %11593 = vmatprep.subr.bf16.mxu1 %v16257_v57  ;;  %v16339_v55 = vld [vmem:[%s18895_s29 + $0x1fc4] ss:$8 sps:$4 sm:$0xff]   ;;  %v16334_v57 = vld [vmem:[%s18895_s29 + $0x4c0] ss:$8 sps:$4 sm:$0xff]  }
 0x16b   : > { %12700 = vmatprep.subr.bf16.mxu0 %v16260_v58  ;;  %v16337_v58 = vld [vmem:[%s18895_s29 + $0x1fc0] ss:$8 sps:$4 sm:$0xff]  }
 0x16d   : > { %11594 = vmatpush1.bf16.msra.mxu1 %v16255_v37  ;;  %v16342_v37 = vld [vmem:[%s18895_s29 + $0x4d4] ss:$8 sps:$4 sm:$0xff]  }
 0x16e   : > { %12701 = vmatpush1.bf16.msra.mxu0 %v16258_v59  ;;  %11604 = vmatprep.subr.bf16.mxu1 %v16263_v60  ;;  %v16345_v59 = vld [vmem:[%s18895_s29 + $0x1fd4] ss:$8 sps:$4 sm:$0xff]   ;;  %v16340_v60 = vld [vmem:[%s18895_s29 + $0x4d0] ss:$8 sps:$4 sm:$0xff]  }
 0x16f   : > { %12711 = vmatprep.subr.bf16.mxu0 %v16267_v41  ;;  %v16343_v41 = vld [vmem:[%s18895_s29 + $0x1fd0] ss:$8 sps:$4 sm:$0xff]  }
 0x170   : > { %11596 = vmatmul.mubr.bf16.vlgmr.msra.gmra.mrb[0].mxu1 %v2077_v0  ;;  %v16346_v0 = vld [vmem:[%s18895_s29 + $0x4e0] ss:$8 sps:$4 sm:$0xff]  }
 0x171   : > { %12703 = vmatmul.mubr.bf16.vlgmr.msra.gmra.mrb[0].mxu0 %v19271_v1  ;;  %11605 = vmatpush1.bf16.msra.mxu1 %v16261_v62  ;;  %v16351_v62 = vld [vmem:[%s18895_s29 + $0x1fe4] ss:$8 sps:$4 sm:$0xff]  }
 0x172   : > { %12712 = vmatpush1.bf16.msra.mxu0 %v16265_v63  ;;  %11606 = vmatprep.subr.bf16.mxu1 %v16270_v2  ;;  %v19335_v63 = vld.sshfl [vmem:[%s18914_s4 + $0x40] sm:$0xff pattern:$0x75316420] }
 0x173   : > { %12713 = vmatprep.subr.bf16.mxu0 %v16273_v3  ;;  %11636 = vmatprep.mubr.bf16.mxu1 %v19276_v4  ;;  %v16349_v2 = vld [vmem:[%s18895_s29 + $0x1fe0] ss:$8 sps:$4 sm:$0xff]   ;;  %v16354_v3 = vld [vmem:[%s18895_s29 + $0x4f4] ss:$8 sps:$4 sm:$0xff]  }
 0x174   : > { %12743 = vmatprep.mubr.bf16.mxu0 %v2422_v6  ;;  %v16357_v6 = vld [vmem:[%s18895_s29 + $0x1ff4] ss:$8 sps:$4 sm:$0xff]  }
 0x175   : > { %11607 = vmatpush1.bf16.msra.mxu1 %v16268_v43  ;;  %v16352_v43 = vld [vmem:[%s18895_s29 + $0x4f0] ss:$8 sps:$4 sm:$0xff]  }
 0x176   : > { %12714 = vmatpush1.bf16.msra.mxu0 %v16271_v51  ;;  %11608 = vmatprep.subr.bf16.mxu1 %v16276_v7  ;;  %v16355_v51 = vld [vmem:[%s18895_s29 + $0x1ff0] ss:$8 sps:$4 sm:$0xff]   ;;  %v16360_v7 = vld [vmem:[%s18895_s29 + $0x504] ss:$8 sps:$4 sm:$0xff]  }
 0x177   : > { %12715 = vmatprep.subr.bf16.mxu0 %v16279_v8  ;;  %v16363_v8 = vld [vmem:[%s18895_s29 + $0x2004] ss:$8 sps:$4 sm:$0xff]  }
 0x179   : > { %11609 = vmatpush1.bf16.msra.mxu1 %v16274_v30  ;;  %v2438_v30 = vcombine.high %v19335_v63, %v19335_v63 }
 0x17a   : > { %12716 = vmatpush1.bf16.msra.mxu0 %v16277_v9  ;;  %11610 = vmatprep.subr.bf16.mxu1 %v16282_v10  ;;  %v19349_v9 = vrot.slane %v19255_v56, %v18971_v52  ;;  %v2420_v10 = vcombine.high %v19271_v1, %v19271_v1  ;;  %v16364_v1 = vld [vmem:[%s18895_s29 + $0x510] ss:$8 sps:$4 sm:$0xff]  }
 0x17b   : > { %12717 = vmatprep.subr.bf16.mxu0 %v16285_v11  ;;  %v16358_v11 = vld [vmem:[%s18895_s29 + $0x500] ss:$8 sps:$4 sm:$0xff]   ;;  %v19360_v56 = vrot.slane %v2438_v30, %v18971_v52  ;;  %v16444_v30 = vld [vmem:[%s18895_s29 + $0x5e4] ss:$8 sps:$4 sm:$0xff]  }
 0x17d   : > { %11611 = vmatpush1.bf16.msra.mxu1 %v16280_v12  ;;  %v16361_v12 = vld [vmem:[%s18895_s29 + $0x2000] ss:$8 sps:$4 sm:$0xff]  }
 0x17e   : > { %12718 = vmatpush1.bf16.msra.mxu0 %v16283_v13  ;;  %11612 = vmatprep.subr.bf16.mxu1 %v16288_v14  ;;  %v16366_v13 = vld [vmem:[%s18895_s29 + $0x514] ss:$8 sps:$4 sm:$0xff]  }
 0x17f   : > { %12719 = vmatprep.subr.bf16.mxu0 %v16291_v16  ;;  %v16369_v14 = vld [vmem:[%s18895_s29 + $0x2014] ss:$8 sps:$4 sm:$0xff]   ;;  %v2127_v16 = vcombine.high %v19276_v4, %v19276_v4  ;;  %v16375_v4 = vld [vmem:[%s18895_s29 + $0x2024] ss:$8 sps:$4 sm:$0xff]  }
 0x181   : > { %11613 = vmatpush1.bf16.msra.mxu1 %v16286_v17  ;;  %v16367_v17 = vld [vmem:[%s18895_s29 + $0x2010] ss:$8 sps:$4 sm:$0xff]  }
 0x182   : > { %12720 = vmatpush1.bf16.msra.mxu0 %v16289_v18  ;;  %11614 = vmatprep.subr.bf16.mxu1 %v16294_v19  ;;  %v16372_v18 = vld [vmem:[%s18895_s29 + $0x524] ss:$8 sps:$4 sm:$0xff]   ;;  %v16370_v19 = vld [vmem:[%s18895_s29 + $0x520] ss:$8 sps:$4 sm:$0xff]  }
 0x183   : > { %12721 = vmatprep.subr.bf16.mxu0 %v16297_v21  ;;  %v16373_v21 = vld [vmem:[%s18895_s29 + $0x2020] ss:$8 sps:$4 sm:$0xff]  }
 0x185   : > { %11615 = vmatpush1.bf16.msra.mxu1 %v16292_v22  ;;  %v16378_v22 = vld [vmem:[%s18895_s29 + $0x534] ss:$8 sps:$4 sm:$0xff]  }
 0x186   : > { %12722 = vmatpush1.bf16.msra.mxu0 %v16295_v23  ;;  %11616 = vmatprep.subr.bf16.mxu1 %v16300_v24  ;;  %v16381_v23 = vld [vmem:[%s18895_s29 + $0x2034] ss:$8 sps:$4 sm:$0xff]   ;;  %v16376_v24 = vld [vmem:[%s18895_s29 + $0x530] ss:$8 sps:$4 sm:$0xff]  }
 0x187   : > { %12723 = vmatprep.subr.bf16.mxu0 %v16303_v25  ;;  %v16379_v25 = vld [vmem:[%s18895_s29 + $0x2030] ss:$8 sps:$4 sm:$0xff]  }
 0x189   : > { %11617 = vmatpush1.bf16.msra.mxu1 %v16298_v26  ;;  %v16384_v26 = vld [vmem:[%s18895_s29 + $0x544] ss:$8 sps:$4 sm:$0xff]  }
 0x18a   : > { %12724 = vmatpush1.bf16.msra.mxu0 %v16301_v27  ;;  %11618 = vmatprep.subr.bf16.mxu1 %v16306_v28  ;;  %v16387_v27 = vld [vmem:[%s18895_s29 + $0x2044] ss:$8 sps:$4 sm:$0xff]   ;;  %v16382_v28 = vld [vmem:[%s18895_s29 + $0x540] ss:$8 sps:$4 sm:$0xff]  }
 0x18b   : > { %12725 = vmatprep.subr.bf16.mxu0 %v16309_v29  ;;  %v16385_v29 = vld [vmem:[%s18895_s29 + $0x2040] ss:$8 sps:$4 sm:$0xff]  }
 0x18d   : > { %11619 = vmatpush1.bf16.msra.mxu1 %v16304_v31  ;;  %v16390_v31 = vld [vmem:[%s18895_s29 + $0x554] ss:$8 sps:$4 sm:$0xff]  }
 0x18e   : > { %12726 = vmatpush1.bf16.msra.mxu0 %v16307_v53  ;;  %11620 = vmatprep.subr.bf16.mxu1 %v16312_v32  ;;  %v16393_v53 = vld [vmem:[%s18895_s29 + $0x2054] ss:$8 sps:$4 sm:$0xff]   ;;  %v16388_v32 = vld [vmem:[%s18895_s29 + $0x550] ss:$8 sps:$4 sm:$0xff]  }
 0x18f   : > { %12727 = vmatprep.subr.bf16.mxu0 %v16315_v33  ;;  %v16391_v33 = vld [vmem:[%s18895_s29 + $0x2050] ss:$8 sps:$4 sm:$0xff]  }
 0x191   : > { %11621 = vmatpush1.bf16.msra.mxu1 %v16310_v34  ;;  %v16396_v34 = vld [vmem:[%s18895_s29 + $0x564] ss:$8 sps:$4 sm:$0xff]  }
 0x192   : > { %12728 = vmatpush1.bf16.msra.mxu0 %v16313_v35  ;;  %11622 = vmatprep.subr.bf16.mxu1 %v16318_v36  ;;  %v16399_v35 = vld [vmem:[%s18895_s29 + $0x2064] ss:$8 sps:$4 sm:$0xff]   ;;  %v16394_v36 = vld [vmem:[%s18895_s29 + $0x560] ss:$8 sps:$4 sm:$0xff]  }
 0x193   : > { %12729 = vmatprep.subr.bf16.mxu0 %v16321_v38  ;;  %v16397_v38 = vld [vmem:[%s18895_s29 + $0x2060] ss:$8 sps:$4 sm:$0xff]  }
 0x195   : > { %11623 = vmatpush1.bf16.msra.mxu1 %v16316_v39  ;;  %v16402_v39 = vld [vmem:[%s18895_s29 + $0x574] ss:$8 sps:$4 sm:$0xff]  }
 0x196   : > { %12730 = vmatpush1.bf16.msra.mxu0 %v16319_v40  ;;  %11624 = vmatprep.subr.bf16.mxu1 %v16324_v20  ;;  %v16405_v40 = vld [vmem:[%s18895_s29 + $0x2074] ss:$8 sps:$4 sm:$0xff]   ;;  %v16400_v20 = vld [vmem:[%s18895_s29 + $0x570] ss:$8 sps:$4 sm:$0xff]  }
 0x197   : > { %12731 = vmatprep.subr.bf16.mxu0 %v16327_v42  ;;  %v16403_v42 = vld [vmem:[%s18895_s29 + $0x2070] ss:$8 sps:$4 sm:$0xff]  }
 0x199   : > { %11625 = vmatpush1.bf16.msra.mxu1 %v16322_v44  ;;  %v16408_v44 = vld [vmem:[%s18895_s29 + $0x584] ss:$8 sps:$4 sm:$0xff]  }
 0x19a   : > { %12732 = vmatpush1.bf16.msra.mxu0 %v16325_v49  ;;  %11626 = vmatprep.subr.bf16.mxu1 %v16330_v45  ;;  %v16411_v49 = vld [vmem:[%s18895_s29 + $0x2084] ss:$8 sps:$4 sm:$0xff]   ;;  %v16406_v45 = vld [vmem:[%s18895_s29 + $0x580] ss:$8 sps:$4 sm:$0xff]  }
 0x19b   : > { %12733 = vmatprep.subr.bf16.mxu0 %v16333_v46  ;;  %v16409_v46 = vld [vmem:[%s18895_s29 + $0x2080] ss:$8 sps:$4 sm:$0xff]  }
 0x19d   : > { %11627 = vmatpush1.bf16.msra.mxu1 %v16328_v48  ;;  %v16414_v48 = vld [vmem:[%s18895_s29 + $0x594] ss:$8 sps:$4 sm:$0xff]  }
 0x19e   : > { %12734 = vmatpush1.bf16.msra.mxu0 %v16331_v50  ;;  %11628 = vmatprep.subr.bf16.mxu1 %v16336_v54  ;;  %v16417_v50 = vld [vmem:[%s18895_s29 + $0x2094] ss:$8 sps:$4 sm:$0xff]   ;;  %v16412_v54 = vld [vmem:[%s18895_s29 + $0x590] ss:$8 sps:$4 sm:$0xff]  }
 0x19f   : > { %12735 = vmatprep.subr.bf16.mxu0 %v16339_v55  ;;  %v16415_v55 = vld [vmem:[%s18895_s29 + $0x2090] ss:$8 sps:$4 sm:$0xff]  }
 0x1a1   : > { %11629 = vmatpush1.bf16.msra.mxu1 %v16334_v57  ;;  %v16420_v57 = vld [vmem:[%s18895_s29 + $0x5a4] ss:$8 sps:$4 sm:$0xff]  }
 0x1a2   : > { %12736 = vmatpush1.bf16.msra.mxu0 %v16337_v58  ;;  %11630 = vmatprep.subr.bf16.mxu1 %v16342_v37  ;;  %v16423_v58 = vld [vmem:[%s18895_s29 + $0x20a4] ss:$8 sps:$4 sm:$0xff]   ;;  %v16418_v37 = vld [vmem:[%s18895_s29 + $0x5a0] ss:$8 sps:$4 sm:$0xff]  }
 0x1a3   : > { %12737 = vmatprep.subr.bf16.mxu0 %v16345_v59  ;;  %v16421_v59 = vld [vmem:[%s18895_s29 + $0x20a0] ss:$8 sps:$4 sm:$0xff]  }
 0x1a5   : > { %11631 = vmatpush1.bf16.msra.mxu1 %v16340_v60  ;;  %v16426_v60 = vld [vmem:[%s18895_s29 + $0x5b4] ss:$8 sps:$4 sm:$0xff]  }
 0x1a6   : > { %12738 = vmatpush1.bf16.msra.mxu0 %v16343_v41  ;;  %11632 = vmatprep.subr.bf16.mxu1 %v16348_v61  ;;  %v16429_v41 = vld [vmem:[%s18895_s29 + $0x20b4] ss:$8 sps:$4 sm:$0xff]   ;;  %v16424_v61 = vld [vmem:[%s18895_s29 + $0x5b0] ss:$8 sps:$4 sm:$0xff]  }
 0x1a7   : > { %12739 = vmatprep.subr.bf16.mxu0 %v16351_v62  ;;  %v16427_v62 = vld [vmem:[%s18895_s29 + $0x20b0] ss:$8 sps:$4 sm:$0xff]  }
 0x1a9   : > { %11633 = vmatpush1.bf16.msra.mxu1 %v16346_v0  ;;  %v16432_v0 = vld [vmem:[%s18895_s29 + $0x5c4] ss:$8 sps:$4 sm:$0xff]  }
 0x1aa   : > { %12740 = vmatpush1.bf16.msra.mxu0 %v16349_v2  ;;  %11634 = vmatprep.subr.bf16.mxu1 %v16354_v3  ;;  %v16435_v2 = vld [vmem:[%s18895_s29 + $0x20c4] ss:$8 sps:$4 sm:$0xff]   ;;  %v16430_v3 = vld [vmem:[%s18895_s29 + $0x5c0] ss:$8 sps:$4 sm:$0xff]  }
 0x1ab   : > { %12741 = vmatprep.subr.bf16.mxu0 %v16357_v6  ;;  %v16433_v6 = vld [vmem:[%s18895_s29 + $0x20c0] ss:$8 sps:$4 sm:$0xff]  }
 0x1ad   : > { %11635 = vmatpush1.bf16.msra.mxu1 %v16352_v43  ;;  %v16438_v43 = vld [vmem:[%s18895_s29 + $0x5d4] ss:$8 sps:$4 sm:$0xff]  }
 0x1ae   : > { %12742 = vmatpush1.bf16.msra.mxu0 %v16355_v51  ;;  %11645 = vmatprep.subr.bf16.mxu1 %v16360_v7  ;;  %v16441_v51 = vld [vmem:[%s18895_s29 + $0x20d4] ss:$8 sps:$4 sm:$0xff]   ;;  %v16436_v7 = vld [vmem:[%s18895_s29 + $0x5d0] ss:$8 sps:$4 sm:$0xff]  }
 0x1af   : > { %12752 = vmatprep.subr.bf16.mxu0 %v16363_v8  ;;  %v16439_v8 = vld [vmem:[%s18895_s29 + $0x20d0] ss:$8 sps:$4 sm:$0xff]  }
 0x1b0   : > { %11637 = vmatmul.mubr.bf16.vlgmr.msra.gmra.mrb[0].mxu1 %v19349_v9 }
 0x1b1   : > { %12744 = vmatmul.mubr.bf16.vlgmr.msra.gmra.mrb[0].mxu0 %v2420_v10  ;;  %11646 = vmatpush1.bf16.msra.mxu1 %v16358_v11  ;;  %v16447_v10 = vld [vmem:[%s18895_s29 + $0x20e4] ss:$8 sps:$4 sm:$0xff]  }
 0x1b2   : > { %12753 = vmatpush1.bf16.msra.mxu0 %v16361_v12  ;;  %11647 = vmatprep.subr.bf16.mxu1 %v16366_v13  ;;  %v18480_v11 = vld [vmem:[%s18914_s4 + $0x8] sm:$0xff] }
 0x1b3   : > { %12754 = vmatprep.subr.bf16.mxu0 %v16369_v14  ;;  %11677 = vmatprep.mubr.bf16.mxu1 %v2127_v16  ;;  %v2080_v12 = vcombine.high %v18480_v11, %v18480_v11  ;;  %v16442_v13 = vld [vmem:[%s18895_s29 + $0x5e0] ss:$8 sps:$4 sm:$0xff]   ;;  %v16450_v16 = vld [vmem:[%s18895_s29 + $0x5f4] ss:$8 sps:$4 sm:$0xff]   ;;  %v16520_v11 = vld [vmem:[%s18895_s29 + $0x6b0] ss:$8 sps:$4 sm:$0xff]  }
 0x1b4   : > { %12784 = vmatprep.mubr.bf16.mxu0 %v19360_v56  ;;  %v16445_v14 = vld [vmem:[%s18895_s29 + $0x20e0] ss:$8 sps:$4 sm:$0xff]  }
 0x1b5   : > { %11648 = vmatpush1.bf16.msra.mxu1 %v16364_v1  ;;  %v16453_v1 = vld [vmem:[%s18895_s29 + $0x20f4] ss:$8 sps:$4 sm:$0xff]  }
 0x1b6   : > { %12755 = vmatpush1.bf16.msra.mxu0 %v16367_v17  ;;  %11649 = vmatprep.subr.bf16.mxu1 %v16372_v18  ;;  %v19422_v17 = vrot.slane %v2080_v12, %v18971_v52  ;;  %v16448_v18 = vld [vmem:[%s18895_s29 + $0x5f0] ss:$8 sps:$4 sm:$0xff]  }
 0x1b7   : > { %12756 = vmatprep.subr.bf16.mxu0 %v16375_v4  ;;  %v16451_v4 = vld [vmem:[%s18895_s29 + $0x20f0] ss:$8 sps:$4 sm:$0xff]  }
 0x1b8   : > { %v16523_v12 = vld [vmem:[%s18895_s29 + $0x21b0] ss:$8 sps:$4 sm:$0xff]  }
 0x1b9   : > { %11650 = vmatpush1.bf16.msra.mxu1 %v16370_v19  ;;  %v16456_v19 = vld [vmem:[%s18895_s29 + $0x604] ss:$8 sps:$4 sm:$0xff]  }
 0x1ba   : > { %12757 = vmatpush1.bf16.msra.mxu0 %v16373_v21  ;;  %11651 = vmatprep.subr.bf16.mxu1 %v16378_v22  ;;  %v16459_v21 = vld [vmem:[%s18895_s29 + $0x2104] ss:$8 sps:$4 sm:$0xff]   ;;  %v2096_v22 = vcombine.high %v19422_v17, %v19422_v17 }
 0x1bb   : > { %12758 = vmatprep.subr.bf16.mxu0 %v16381_v23  ;;  %v2125_v23 = vcombine.high %v19349_v9, %v19349_v9  ;;  %v2470_v9 = vcombine.high %v19360_v56, %v19360_v56  ;;  %v16466_v56 = vld [vmem:[%s18895_s29 + $0x620] ss:$8 sps:$4 sm:$0xff]  }
 0x1bd   : > { %11652 = vmatpush1.bf16.msra.mxu1 %v16376_v24  ;;  %v19434_v24 = vrot.slane %v19335_v63, %v18971_v52  ;;  %v16460_v63 = vld [vmem:[%s18895_s29 + $0x610] ss:$8 sps:$4 sm:$0xff]  }
 0x1be   : > { %12759 = vmatpush1.bf16.msra.mxu0 %v16379_v25  ;;  %11653 = vmatprep.subr.bf16.mxu1 %v16384_v26  ;;  %v16454_v25 = vld [vmem:[%s18895_s29 + $0x600] ss:$8 sps:$4 sm:$0xff]  }
 0x1bf   : > { %12760 = vmatprep.subr.bf16.mxu0 %v16387_v27  ;;  %v16457_v26 = vld [vmem:[%s18895_s29 + $0x2100] ss:$8 sps:$4 sm:$0xff]   ;;  %v16462_v27 = vld [vmem:[%s18895_s29 + $0x614] ss:$8 sps:$4 sm:$0xff]  }
 0x1c1   : > { %11654 = vmatpush1.bf16.msra.mxu1 %v16382_v28  ;;  %v16465_v28 = vld [vmem:[%s18895_s29 + $0x2114] ss:$8 sps:$4 sm:$0xff]  }
 0x1c2   : > { %12761 = vmatpush1.bf16.msra.mxu0 %v16385_v29  ;;  %11655 = vmatprep.subr.bf16.mxu1 %v16390_v31  ;;  %v19441_v29 = vrot.slane %v2096_v22, %v18971_v52  ;;  %v16463_v31 = vld [vmem:[%s18895_s29 + $0x2110] ss:$8 sps:$4 sm:$0xff]   ;;  %v16540_v22 = vld [vmem:[%s18895_s29 + $0x6e4] ss:$8 sps:$4 sm:$0xff]  }
 0x1c3   : > { %12762 = vmatprep.subr.bf16.mxu0 %v16393_v53  ;;  %v16468_v53 = vld [vmem:[%s18895_s29 + $0x624] ss:$8 sps:$4 sm:$0xff]  }
 0x1c5   : > { %11656 = vmatpush1.bf16.msra.mxu1 %v16388_v32  ;;  %v16471_v32 = vld [vmem:[%s18895_s29 + $0x2124] ss:$8 sps:$4 sm:$0xff]  }
 0x1c6   : > { %12763 = vmatpush1.bf16.msra.mxu0 %v16391_v33  ;;  %11657 = vmatprep.subr.bf16.mxu1 %v16396_v34  ;;  %v16469_v33 = vld [vmem:[%s18895_s29 + $0x2120] ss:$8 sps:$4 sm:$0xff]   ;;  %v16474_v34 = vld [vmem:[%s18895_s29 + $0x634] ss:$8 sps:$4 sm:$0xff]  }
 0x1c7   : > { %12764 = vmatprep.subr.bf16.mxu0 %v16399_v35  ;;  %v16477_v35 = vld [vmem:[%s18895_s29 + $0x2134] ss:$8 sps:$4 sm:$0xff]  }
 0x1c9   : > { %11658 = vmatpush1.bf16.msra.mxu1 %v16394_v36  ;;  %v16472_v36 = vld [vmem:[%s18895_s29 + $0x630] ss:$8 sps:$4 sm:$0xff]  }
 0x1ca   : > { %12765 = vmatpush1.bf16.msra.mxu0 %v16397_v38  ;;  %11659 = vmatprep.subr.bf16.mxu1 %v16402_v39  ;;  %v16475_v38 = vld [vmem:[%s18895_s29 + $0x2130] ss:$8 sps:$4 sm:$0xff]   ;;  %v16480_v39 = vld [vmem:[%s18895_s29 + $0x644] ss:$8 sps:$4 sm:$0xff]  }
 0x1cb   : > { %12766 = vmatprep.subr.bf16.mxu0 %v16405_v40  ;;  %v16483_v40 = vld [vmem:[%s18895_s29 + $0x2144] ss:$8 sps:$4 sm:$0xff]  }
 0x1cd   : > { %11660 = vmatpush1.bf16.msra.mxu1 %v16400_v20  ;;  %v16478_v20 = vld [vmem:[%s18895_s29 + $0x640] ss:$8 sps:$4 sm:$0xff]  }
 0x1ce   : > { %12767 = vmatpush1.bf16.msra.mxu0 %v16403_v42  ;;  %11661 = vmatprep.subr.bf16.mxu1 %v16408_v44  ;;  %v16481_v42 = vld [vmem:[%s18895_s29 + $0x2140] ss:$8 sps:$4 sm:$0xff]   ;;  %v16486_v44 = vld [vmem:[%s18895_s29 + $0x654] ss:$8 sps:$4 sm:$0xff]  }
 0x1cf   : > { %12768 = vmatprep.subr.bf16.mxu0 %v16411_v49  ;;  %v16489_v49 = vld [vmem:[%s18895_s29 + $0x2154] ss:$8 sps:$4 sm:$0xff]  }
 0x1d1   : > { %11662 = vmatpush1.bf16.msra.mxu1 %v16406_v45  ;;  %v16484_v45 = vld [vmem:[%s18895_s29 + $0x650] ss:$8 sps:$4 sm:$0xff]  }
 0x1d2   : > { %12769 = vmatpush1.bf16.msra.mxu0 %v16409_v46  ;;  %11663 = vmatprep.subr.bf16.mxu1 %v16414_v48  ;;  %v16487_v46 = vld [vmem:[%s18895_s29 + $0x2150] ss:$8 sps:$4 sm:$0xff]   ;;  %v16492_v48 = vld [vmem:[%s18895_s29 + $0x664] ss:$8 sps:$4 sm:$0xff]  }
 0x1d3   : > { %12770 = vmatprep.subr.bf16.mxu0 %v16417_v50  ;;  %v16495_v50 = vld [vmem:[%s18895_s29 + $0x2164] ss:$8 sps:$4 sm:$0xff]  }
 0x1d5   : > { %11664 = vmatpush1.bf16.msra.mxu1 %v16412_v54  ;;  %v16490_v54 = vld [vmem:[%s18895_s29 + $0x660] ss:$8 sps:$4 sm:$0xff]  }
 0x1d6   : > { %12771 = vmatpush1.bf16.msra.mxu0 %v16415_v55  ;;  %11665 = vmatprep.subr.bf16.mxu1 %v16420_v57  ;;  %v16493_v55 = vld [vmem:[%s18895_s29 + $0x2160] ss:$8 sps:$4 sm:$0xff]   ;;  %v16498_v57 = vld [vmem:[%s18895_s29 + $0x674] ss:$8 sps:$4 sm:$0xff]  }
 0x1d7   : > { %12772 = vmatprep.subr.bf16.mxu0 %v16423_v58  ;;  %v16501_v58 = vld [vmem:[%s18895_s29 + $0x2174] ss:$8 sps:$4 sm:$0xff]  }
 0x1d9   : > { %11666 = vmatpush1.bf16.msra.mxu1 %v16418_v37  ;;  %v16496_v37 = vld [vmem:[%s18895_s29 + $0x670] ss:$8 sps:$4 sm:$0xff]  }
 0x1da   : > { %12773 = vmatpush1.bf16.msra.mxu0 %v16421_v59  ;;  %11667 = vmatprep.subr.bf16.mxu1 %v16426_v60  ;;  %v16499_v59 = vld [vmem:[%s18895_s29 + $0x2170] ss:$8 sps:$4 sm:$0xff]   ;;  %v16504_v60 = vld [vmem:[%s18895_s29 + $0x684] ss:$8 sps:$4 sm:$0xff]  }
 0x1db   : > { %12774 = vmatprep.subr.bf16.mxu0 %v16429_v41  ;;  %v16507_v41 = vld [vmem:[%s18895_s29 + $0x2184] ss:$8 sps:$4 sm:$0xff]  }
 0x1dd   : > { %11668 = vmatpush1.bf16.msra.mxu1 %v16424_v61  ;;  %v16502_v61 = vld [vmem:[%s18895_s29 + $0x680] ss:$8 sps:$4 sm:$0xff]  }
 0x1de   : > { %12775 = vmatpush1.bf16.msra.mxu0 %v16427_v62  ;;  %11669 = vmatprep.subr.bf16.mxu1 %v16432_v0  ;;  %v16505_v62 = vld [vmem:[%s18895_s29 + $0x2180] ss:$8 sps:$4 sm:$0xff]   ;;  %v16510_v0 = vld [vmem:[%s18895_s29 + $0x694] ss:$8 sps:$4 sm:$0xff]  }
 0x1df   : > { %12776 = vmatprep.subr.bf16.mxu0 %v16435_v2  ;;  %v16513_v2 = vld [vmem:[%s18895_s29 + $0x2194] ss:$8 sps:$4 sm:$0xff]  }
 0x1e1   : > { %11670 = vmatpush1.bf16.msra.mxu1 %v16430_v3  ;;  %v16508_v3 = vld [vmem:[%s18895_s29 + $0x690] ss:$8 sps:$4 sm:$0xff]  }
 0x1e2   : > { %12777 = vmatpush1.bf16.msra.mxu0 %v16433_v6  ;;  %11671 = vmatprep.subr.bf16.mxu1 %v16438_v43  ;;  %v16511_v6 = vld [vmem:[%s18895_s29 + $0x2190] ss:$8 sps:$4 sm:$0xff]   ;;  %v16516_v43 = vld [vmem:[%s18895_s29 + $0x6a4] ss:$8 sps:$4 sm:$0xff]  }
 0x1e3   : > { %12778 = vmatprep.subr.bf16.mxu0 %v16441_v51  ;;  %v16519_v51 = vld [vmem:[%s18895_s29 + $0x21a4] ss:$8 sps:$4 sm:$0xff]  }
 0x1e5   : > { %11672 = vmatpush1.bf16.msra.mxu1 %v16436_v7  ;;  %v16514_v7 = vld [vmem:[%s18895_s29 + $0x6a0] ss:$8 sps:$4 sm:$0xff]  }
 0x1e6   : > { %12779 = vmatpush1.bf16.msra.mxu0 %v16439_v8  ;;  %11673 = vmatprep.subr.bf16.mxu1 %v16444_v30  ;;  %v16517_v8 = vld [vmem:[%s18895_s29 + $0x21a0] ss:$8 sps:$4 sm:$0xff]   ;;  %v16522_v30 = vld [vmem:[%s18895_s29 + $0x6b4] ss:$8 sps:$4 sm:$0xff]  }
 0x1e7   : > { %12780 = vmatprep.subr.bf16.mxu0 %v16447_v10  ;;  %v16525_v10 = vld [vmem:[%s18895_s29 + $0x21b4] ss:$8 sps:$4 sm:$0xff]  }
 0x1e9   : > { %11674 = vmatpush1.bf16.msra.mxu1 %v16442_v13  ;;  %v16528_v13 = vld [vmem:[%s18895_s29 + $0x6c4] ss:$8 sps:$4 sm:$0xff]  }
 0x1ea   : > { %12781 = vmatpush1.bf16.msra.mxu0 %v16445_v14  ;;  %11675 = vmatprep.subr.bf16.mxu1 %v16450_v16  ;;  %v16531_v14 = vld [vmem:[%s18895_s29 + $0x21c4] ss:$8 sps:$4 sm:$0xff]   ;;  %v16526_v16 = vld [vmem:[%s18895_s29 + $0x6c0] ss:$8 sps:$4 sm:$0xff]  }
 0x1eb   : > { %12782 = vmatprep.subr.bf16.mxu0 %v16453_v1  ;;  %v16529_v1 = vld [vmem:[%s18895_s29 + $0x21c0] ss:$8 sps:$4 sm:$0xff]  }
 0x1ed   : > { %11676 = vmatpush1.bf16.msra.mxu1 %v16448_v18  ;;  %v16534_v18 = vld [vmem:[%s18895_s29 + $0x6d4] ss:$8 sps:$4 sm:$0xff]  }
 0x1ee   : > { %12783 = vmatpush1.bf16.msra.mxu0 %v16451_v4  ;;  %11686 = vmatprep.subr.bf16.mxu1 %v16456_v19  ;;  %v16537_v4 = vld [vmem:[%s18895_s29 + $0x21d4] ss:$8 sps:$4 sm:$0xff]   ;;  %v16532_v19 = vld [vmem:[%s18895_s29 + $0x6d0] ss:$8 sps:$4 sm:$0xff]  }
 0x1ef   : > { %12793 = vmatprep.subr.bf16.mxu0 %v16459_v21  ;;  %v16535_v21 = vld [vmem:[%s18895_s29 + $0x21d0] ss:$8 sps:$4 sm:$0xff]  }
 0x1f0   : > { %11678 = vmatmul.mubr.bf16.vlgmr.msra.gmra.mrb[0].mxu1 %v2125_v23  ;;  %v16543_v23 = vld [vmem:[%s18895_s29 + $0x21e4] ss:$8 sps:$4 sm:$0xff]  }
 0x1f1   : > { %12785 = vmatmul.mubr.bf16.vlgmr.msra.gmra.mrb[0].mxu0 %v19434_v24  ;;  %11687 = vmatpush1.bf16.msra.mxu1 %v16454_v25  ;;  %v18481_v25 = vld [vmem:[%s18914_s4 + $0x40] sm:$0xff] }
 0x1f2   : > { %12794 = vmatpush1.bf16.msra.mxu0 %v16457_v26  ;;  %11688 = vmatprep.subr.bf16.mxu1 %v16462_v27  ;;  %v2423_v26 = vcombine.high %v18481_v25, %v18481_v25  ;;  %v16538_v27 = vld [vmem:[%s18895_s29 + $0x6e0] ss:$8 sps:$4 sm:$0xff]   ;;  %v16617_v25 = vld [vmem:[%s18895_s29 + $0x7b0] ss:$8 sps:$4 sm:$0xff]  }
 0x1f3   : > { %12795 = vmatprep.subr.bf16.mxu0 %v16465_v28  ;;  %11718 = vmatprep.mubr.bf16.mxu1 %v19441_v29  ;;  %v16541_v28 = vld [vmem:[%s18895_s29 + $0x21e0] ss:$8 sps:$4 sm:$0xff]  }
 0x1f4   : > { %12825 = vmatprep.mubr.bf16.mxu0 %v2470_v9  ;;  %v16546_v9 = vld [vmem:[%s18895_s29 + $0x6f4] ss:$8 sps:$4 sm:$0xff]  }
 0x1f5   : > { %11689 = vmatpush1.bf16.msra.mxu1 %v16460_v63  ;;  %v16549_v63 = vld [vmem:[%s18895_s29 + $0x21f4] ss:$8 sps:$4 sm:$0xff]  }
 0x1f6   : > { %12796 = vmatpush1.bf16.msra.mxu0 %v16463_v31  ;;  %11690 = vmatprep.subr.bf16.mxu1 %v16468_v53  ;;  %v19505_v31 = vrot.slane %v2423_v26, %v18971_v52  ;;  %v16544_v53 = vld [vmem:[%s18895_s29 + $0x6f0] ss:$8 sps:$4 sm:$0xff]  }
 0x1f7   : > { %12797 = vmatprep.subr.bf16.mxu0 %v16471_v32  ;;  %v16547_v32 = vld [vmem:[%s18895_s29 + $0x21f0] ss:$8 sps:$4 sm:$0xff]  }
 0x1f8   : > { %v16620_v26 = vld [vmem:[%s18895_s29 + $0x22b0] ss:$8 sps:$4 sm:$0xff]  }
 0x1f9   : > { %11691 = vmatpush1.bf16.msra.mxu1 %v16466_v56  ;;  %v16553_v56 = vld [vmem:[%s18895_s29 + $0x704] ss:$8 sps:$4 sm:$0xff]  }
 0x1fa   : > { %12798 = vmatpush1.bf16.msra.mxu0 %v16469_v33  ;;  %11692 = vmatprep.subr.bf16.mxu1 %v16474_v34  ;;  %v16556_v33 = vld [vmem:[%s18895_s29 + $0x2204] ss:$8 sps:$4 sm:$0xff]   ;;  %v2439_v34 = vcombine.high %v19505_v31, %v19505_v31 }
 0x1fb   : > { %12799 = vmatprep.subr.bf16.mxu0 %v16477_v35  ;;  %v19515_v35 = vrot.slane %v19422_v17, %v18971_v52 }
 0x1fc   : > { %v19526_v17 = vrot.slane %v2439_v34, %v18971_v52  ;;  %v16637_v34 = vld [vmem:[%s18895_s29 + $0x7e4] ss:$8 sps:$4 sm:$0xff]  }
 0x1fd   : > { %11693 = vmatpush1.bf16.msra.mxu1 %v16472_v36  ;;  %v2468_v36 = vcombine.high %v19434_v24, %v19434_v24  ;;  %v16557_v24 = vld [vmem:[%s18895_s29 + $0x710] ss:$8 sps:$4 sm:$0xff]  }
 0x1fe   : > { %12800 = vmatpush1.bf16.msra.mxu0 %v16475_v38  ;;  %11694 = vmatprep.subr.bf16.mxu1 %v16480_v39  ;;  %v16551_v38 = vld [vmem:[%s18895_s29 + $0x700] ss:$8 sps:$4 sm:$0xff]  }
 0x1ff   : > { %12801 = vmatprep.subr.bf16.mxu0 %v16483_v40  ;;  %v16554_v39 = vld [vmem:[%s18895_s29 + $0x2200] ss:$8 sps:$4 sm:$0xff]   ;;  %v16559_v40 = vld [vmem:[%s18895_s29 + $0x714] ss:$8 sps:$4 sm:$0xff]  }
 0x201   : > { %11695 = vmatpush1.bf16.msra.mxu1 %v16478_v20  ;;  %v16562_v20 = vld [vmem:[%s18895_s29 + $0x2214] ss:$8 sps:$4 sm:$0xff]  }
 0x202   : > { %12802 = vmatpush1.bf16.msra.mxu0 %v16481_v42  ;;  %11696 = vmatprep.subr.bf16.mxu1 %v16486_v44  ;;  %v2128_v42 = vcombine.high %v19441_v29, %v19441_v29  ;;  %v16560_v44 = vld [vmem:[%s18895_s29 + $0x2210] ss:$8 sps:$4 sm:$0xff]   ;;  %v16568_v29 = vld [vmem:[%s18895_s29 + $0x2224] ss:$8 sps:$4 sm:$0xff]  }
 0x203   : > { %12803 = vmatprep.subr.bf16.mxu0 %v16489_v49  ;;  %v16565_v49 = vld [vmem:[%s18895_s29 + $0x724] ss:$8 sps:$4 sm:$0xff]  }
 0x205   : > { %11697 = vmatpush1.bf16.msra.mxu1 %v16484_v45  ;;  %v16563_v45 = vld [vmem:[%s18895_s29 + $0x720] ss:$8 sps:$4 sm:$0xff]  }
 0x206   : > { %12804 = vmatpush1.bf16.msra.mxu0 %v16487_v46  ;;  %11698 = vmatprep.subr.bf16.mxu1 %v16492_v48  ;;  %v16566_v46 = vld [vmem:[%s18895_s29 + $0x2220] ss:$8 sps:$4 sm:$0xff]   ;;  %v16571_v48 = vld [vmem:[%s18895_s29 + $0x734] ss:$8 sps:$4 sm:$0xff]  }
 0x207   : > { %12805 = vmatprep.subr.bf16.mxu0 %v16495_v50  ;;  %v16574_v50 = vld [vmem:[%s18895_s29 + $0x2234] ss:$8 sps:$4 sm:$0xff]  }
 0x209   : > { %11699 = vmatpush1.bf16.msra.mxu1 %v16490_v54  ;;  %v16569_v54 = vld [vmem:[%s18895_s29 + $0x730] ss:$8 sps:$4 sm:$0xff]  }
 0x20a   : > { %12806 = vmatpush1.bf16.msra.mxu0 %v16493_v55  ;;  %11700 = vmatprep.subr.bf16.mxu1 %v16498_v57  ;;  %v16572_v55 = vld [vmem:[%s18895_s29 + $0x2230] ss:$8 sps:$4 sm:$0xff]   ;;  %v16577_v57 = vld [vmem:[%s18895_s29 + $0x744] ss:$8 sps:$4 sm:$0xff]  }
 0x20b   : > { %12807 = vmatprep.subr.bf16.mxu0 %v16501_v58  ;;  %v16580_v58 = vld [vmem:[%s18895_s29 + $0x2244] ss:$8 sps:$4 sm:$0xff]  }
 0x20d   : > { %11701 = vmatpush1.bf16.msra.mxu1 %v16496_v37  ;;  %v16575_v37 = vld [vmem:[%s18895_s29 + $0x740] ss:$8 sps:$4 sm:$0xff]  }
 0x20e   : > { %12808 = vmatpush1.bf16.msra.mxu0 %v16499_v59  ;;  %11702 = vmatprep.subr.bf16.mxu1 %v16504_v60  ;;  %v16578_v59 = vld [vmem:[%s18895_s29 + $0x2240] ss:$8 sps:$4 sm:$0xff]   ;;  %v16583_v60 = vld [vmem:[%s18895_s29 + $0x754] ss:$8 sps:$4 sm:$0xff]  }
 0x20f   : > { %12809 = vmatprep.subr.bf16.mxu0 %v16507_v41  ;;  %v16586_v41 = vld [vmem:[%s18895_s29 + $0x2254] ss:$8 sps:$4 sm:$0xff]  }
 0x211   : > { %11703 = vmatpush1.bf16.msra.mxu1 %v16502_v61  ;;  %v16581_v61 = vld [vmem:[%s18895_s29 + $0x750] ss:$8 sps:$4 sm:$0xff]  }
 0x212   : > { %12810 = vmatpush1.bf16.msra.mxu0 %v16505_v62  ;;  %11704 = vmatprep.subr.bf16.mxu1 %v16510_v0  ;;  %v16584_v62 = vld [vmem:[%s18895_s29 + $0x2250] ss:$8 sps:$4 sm:$0xff]   ;;  %v16589_v0 = vld [vmem:[%s18895_s29 + $0x764] ss:$8 sps:$4 sm:$0xff]  }
 0x213   : > { %12811 = vmatprep.subr.bf16.mxu0 %v16513_v2  ;;  %v16592_v2 = vld [vmem:[%s18895_s29 + $0x2264] ss:$8 sps:$4 sm:$0xff]  }
 0x215   : > { %11705 = vmatpush1.bf16.msra.mxu1 %v16508_v3  ;;  %v16587_v3 = vld [vmem:[%s18895_s29 + $0x760] ss:$8 sps:$4 sm:$0xff]  }
 0x216   : > { %12812 = vmatpush1.bf16.msra.mxu0 %v16511_v6  ;;  %11706 = vmatprep.subr.bf16.mxu1 %v16516_v43  ;;  %v16590_v6 = vld [vmem:[%s18895_s29 + $0x2260] ss:$8 sps:$4 sm:$0xff]   ;;  %v16595_v43 = vld [vmem:[%s18895_s29 + $0x774] ss:$8 sps:$4 sm:$0xff]  }
 0x217   : > { %12813 = vmatprep.subr.bf16.mxu0 %v16519_v51  ;;  %v16598_v51 = vld [vmem:[%s18895_s29 + $0x2274] ss:$8 sps:$4 sm:$0xff]  }
 0x219   : > { %11707 = vmatpush1.bf16.msra.mxu1 %v16514_v7  ;;  %v16593_v7 = vld [vmem:[%s18895_s29 + $0x770] ss:$8 sps:$4 sm:$0xff]  }
 0x21a   : > { %12814 = vmatpush1.bf16.msra.mxu0 %v16517_v8  ;;  %11708 = vmatprep.subr.bf16.mxu1 %v16522_v30  ;;  %v16596_v8 = vld [vmem:[%s18895_s29 + $0x2270] ss:$8 sps:$4 sm:$0xff]   ;;  %v16601_v30 = vld [vmem:[%s18895_s29 + $0x784] ss:$8 sps:$4 sm:$0xff]  }
 0x21b   : > { %12815 = vmatprep.subr.bf16.mxu0 %v16525_v10  ;;  %v16604_v10 = vld [vmem:[%s18895_s29 + $0x2284] ss:$8 sps:$4 sm:$0xff]  }
 0x21d   : > { %11709 = vmatpush1.bf16.msra.mxu1 %v16520_v11  ;;  %v16599_v11 = vld [vmem:[%s18895_s29 + $0x780] ss:$8 sps:$4 sm:$0xff]  }
 0x21e   : > { %12816 = vmatpush1.bf16.msra.mxu0 %v16523_v12  ;;  %11710 = vmatprep.subr.bf16.mxu1 %v16528_v13  ;;  %v16602_v12 = vld [vmem:[%s18895_s29 + $0x2280] ss:$8 sps:$4 sm:$0xff]   ;;  %v16607_v13 = vld [vmem:[%s18895_s29 + $0x794] ss:$8 sps:$4 sm:$0xff]  }
 0x21f   : > { %12817 = vmatprep.subr.bf16.mxu0 %v16531_v14  ;;  %v16610_v14 = vld [vmem:[%s18895_s29 + $0x2294] ss:$8 sps:$4 sm:$0xff]  }
 0x221   : > { %11711 = vmatpush1.bf16.msra.mxu1 %v16526_v16  ;;  %v16605_v16 = vld [vmem:[%s18895_s29 + $0x790] ss:$8 sps:$4 sm:$0xff]  }
 0x222   : > { %12818 = vmatpush1.bf16.msra.mxu0 %v16529_v1  ;;  %11712 = vmatprep.subr.bf16.mxu1 %v16534_v18  ;;  %v16608_v1 = vld [vmem:[%s18895_s29 + $0x2290] ss:$8 sps:$4 sm:$0xff]   ;;  %v16613_v18 = vld [vmem:[%s18895_s29 + $0x7a4] ss:$8 sps:$4 sm:$0xff]  }
 0x223   : > { %12819 = vmatprep.subr.bf16.mxu0 %v16537_v4  ;;  %v16616_v4 = vld [vmem:[%s18895_s29 + $0x22a4] ss:$8 sps:$4 sm:$0xff]  }
 0x225   : > { %11713 = vmatpush1.bf16.msra.mxu1 %v16532_v19  ;;  %v16611_v19 = vld [vmem:[%s18895_s29 + $0x7a0] ss:$8 sps:$4 sm:$0xff]  }
 0x226   : > { %12820 = vmatpush1.bf16.msra.mxu0 %v16535_v21  ;;  %11714 = vmatprep.subr.bf16.mxu1 %v16540_v22  ;;  %v16614_v21 = vld [vmem:[%s18895_s29 + $0x22a0] ss:$8 sps:$4 sm:$0xff]   ;;  %v16619_v22 = vld [vmem:[%s18895_s29 + $0x7b4] ss:$8 sps:$4 sm:$0xff]  }
 0x227   : > { %12821 = vmatprep.subr.bf16.mxu0 %v16543_v23  ;;  %v16622_v23 = vld [vmem:[%s18895_s29 + $0x22b4] ss:$8 sps:$4 sm:$0xff]  }
 0x229   : > { %11715 = vmatpush1.bf16.msra.mxu1 %v16538_v27  ;;  %v16625_v27 = vld [vmem:[%s18895_s29 + $0x7c4] ss:$8 sps:$4 sm:$0xff]  }
 0x22a   : > { %12822 = vmatpush1.bf16.msra.mxu0 %v16541_v28  ;;  %11716 = vmatprep.subr.bf16.mxu1 %v16546_v9  ;;  %v16628_v28 = vld [vmem:[%s18895_s29 + $0x22c4] ss:$8 sps:$4 sm:$0xff]   ;;  %v16623_v9 = vld [vmem:[%s18895_s29 + $0x7c0] ss:$8 sps:$4 sm:$0xff]  }
 0x22b   : > { %12823 = vmatprep.subr.bf16.mxu0 %v16549_v63  ;;  %v16626_v63 = vld [vmem:[%s18895_s29 + $0x22c0] ss:$8 sps:$4 sm:$0xff]  }
 0x22d   : > { %11717 = vmatpush1.bf16.msra.mxu1 %v16544_v53  ;;  %v16631_v53 = vld [vmem:[%s18895_s29 + $0x7d4] ss:$8 sps:$4 sm:$0xff]  }
 0x22e   : > { %12824 = vmatpush1.bf16.msra.mxu0 %v16547_v32  ;;  %11727 = vmatprep.subr.bf16.mxu1 %v16553_v56  ;;  %v16634_v32 = vld [vmem:[%s18895_s29 + $0x22d4] ss:$8 sps:$4 sm:$0xff]   ;;  %v16629_v56 = vld [vmem:[%s18895_s29 + $0x7d0] ss:$8 sps:$4 sm:$0xff]  }
 0x22f   : > { %12834 = vmatprep.subr.bf16.mxu0 %v16556_v33  ;;  %v16632_v33 = vld [vmem:[%s18895_s29 + $0x22d0] ss:$8 sps:$4 sm:$0xff]  }
 0x230   : > { %11719 = vmatmul.mubr.bf16.vlgmr.msra.gmra.mrb[0].mxu1 %v19515_v35 }
 0x231   : > { %12826 = vmatmul.mubr.bf16.vlgmr.msra.gmra.mrb[0].mxu0 %v2468_v36  ;;  %11728 = vmatpush1.bf16.msra.mxu1 %v16551_v38  ;;  %v16640_v36 = vld [vmem:[%s18895_s29 + $0x22e4] ss:$8 sps:$4 sm:$0xff]  }
 0x232   : > { %12835 = vmatpush1.bf16.msra.mxu0 %v16554_v39  ;;  %11729 = vmatprep.subr.bf16.mxu1 %v16559_v40  ;;  %v19583_v38 = vld.sshfl [vmem:[%s18914_s4 + $0x10] sm:$0xff pattern:$0x75316420]  ;;  %v16635_v39 = vld [vmem:[%s18895_s29 + $0x7e0] ss:$8 sps:$4 sm:$0xff]  }
 0x233   : > { %12836 = vmatprep.subr.bf16.mxu0 %v16562_v20  ;;  %11759 = vmatprep.mubr.bf16.mxu1 %v2128_v42  ;;  %v16638_v40 = vld [vmem:[%s18895_s29 + $0x22e0] ss:$8 sps:$4 sm:$0xff]   ;;  %v16643_v20 = vld [vmem:[%s18895_s29 + $0x7f4] ss:$8 sps:$4 sm:$0xff]  }
 0x234   : > { %12866 = vmatprep.mubr.bf16.mxu0 %v19526_v17  ;;  %v16646_v42 = vld [vmem:[%s18895_s29 + $0x22f4] ss:$8 sps:$4 sm:$0xff]  }
 0x235   : > { %11730 = vmatpush1.bf16.msra.mxu1 %v16557_v24  ;;  %v16641_v24 = vld [vmem:[%s18895_s29 + $0x7f0] ss:$8 sps:$4 sm:$0xff]  }
 0x236   : > { %12837 = vmatpush1.bf16.msra.mxu0 %v16560_v44  ;;  %11731 = vmatprep.subr.bf16.mxu1 %v16565_v49  ;;  %v16644_v44 = vld [vmem:[%s18895_s29 + $0x22f0] ss:$8 sps:$4 sm:$0xff]   ;;  %v16649_v49 = vld [vmem:[%s18895_s29 + $0x804] ss:$8 sps:$4 sm:$0xff]  }
 0x237   : > { %12838 = vmatprep.subr.bf16.mxu0 %v16568_v29  ;;  %v16653_v29 = vld [vmem:[%s18895_s29 + $0x2304] ss:$8 sps:$4 sm:$0xff]  }
 0x239   : > { %11732 = vmatpush1.bf16.msra.mxu1 %v16563_v45  ;;  %v2144_v45 = vcombine.high %v19583_v38, %v19583_v38 }
 0x23a   : > { %12839 = vmatpush1.bf16.msra.mxu0 %v16566_v46  ;;  %11733 = vmatprep.subr.bf16.mxu1 %v16571_v48  ;;  %v2126_v46 = vcombine.high %v19515_v35, %v19515_v35  ;;  %v19599_v48 = vrot.slane %v19505_v31, %v18971_v52  ;;  %v2471_v35 = vcombine.high %v19526_v17, %v19526_v17  ;;  %v16654_v31 = vld [vmem:[%s18895_s29 + $0x810] ss:$8 sps:$4 sm:$0xff]   ;;  %v16660_v17 = vld [vmem:[%s18895_s29 + $0x820] ss:$8 sps:$4 sm:$0xff]  }
 0x23b   : > { %12840 = vmatprep.subr.bf16.mxu0 %v16574_v50  ;;  %v16647_v50 = vld [vmem:[%s18895_s29 + $0x800] ss:$8 sps:$4 sm:$0xff]  }
 0x23d   : > { %11734 = vmatpush1.bf16.msra.mxu1 %v16569_v54  ;;  %v16651_v54 = vld [vmem:[%s18895_s29 + $0x2300] ss:$8 sps:$4 sm:$0xff]  }
 0x23e   : > { %12841 = vmatpush1.bf16.msra.mxu0 %v16572_v55  ;;  %11735 = vmatprep.subr.bf16.mxu1 %v16577_v57  ;;  %v16656_v55 = vld [vmem:[%s18895_s29 + $0x814] ss:$8 sps:$4 sm:$0xff]  }
 0x23f   : > { %12842 = vmatprep.subr.bf16.mxu0 %v16580_v58  ;;  %v16659_v57 = vld [vmem:[%s18895_s29 + $0x2314] ss:$8 sps:$4 sm:$0xff]   ;;  %v19606_v58 = vrot.slane %v2144_v45, %v18971_v52  ;;  %v16734_v45 = vld [vmem:[%s18895_s29 + $0x8e4] ss:$8 sps:$4 sm:$0xff]  }
 0x241   : > { %11736 = vmatpush1.bf16.msra.mxu1 %v16575_v37  ;;  %v16657_v37 = vld [vmem:[%s18895_s29 + $0x2310] ss:$8 sps:$4 sm:$0xff]  }
 0x242   : > { %12843 = vmatpush1.bf16.msra.mxu0 %v16578_v59  ;;  %11737 = vmatprep.subr.bf16.mxu1 %v16583_v60  ;;  %v16662_v59 = vld [vmem:[%s18895_s29 + $0x824] ss:$8 sps:$4 sm:$0xff]  }
 0x243   : > { %12844 = vmatprep.subr.bf16.mxu0 %v16586_v41  ;;  %v16665_v60 = vld [vmem:[%s18895_s29 + $0x2324] ss:$8 sps:$4 sm:$0xff]   ;;  %v16663_v41 = vld [vmem:[%s18895_s29 + $0x2320] ss:$8 sps:$4 sm:$0xff]  }
 0x245   : > { %11738 = vmatpush1.bf16.msra.mxu1 %v16581_v61  ;;  %v16668_v61 = vld [vmem:[%s18895_s29 + $0x834] ss:$8 sps:$4 sm:$0xff]  }
 0x246   : > { %12845 = vmatpush1.bf16.msra.mxu0 %v16584_v62  ;;  %11739 = vmatprep.subr.bf16.mxu1 %v16589_v0  ;;  %v16671_v62 = vld [vmem:[%s18895_s29 + $0x2334] ss:$8 sps:$4 sm:$0xff]   ;;  %v16666_v0 = vld [vmem:[%s18895_s29 + $0x830] ss:$8 sps:$4 sm:$0xff]  }
 0x247   : > { %12846 = vmatprep.subr.bf16.mxu0 %v16592_v2  ;;  %v16669_v2 = vld [vmem:[%s18895_s29 + $0x2330] ss:$8 sps:$4 sm:$0xff]  }
 0x249   : > { %11740 = vmatpush1.bf16.msra.mxu1 %v16587_v3  ;;  %v16674_v3 = vld [vmem:[%s18895_s29 + $0x844] ss:$8 sps:$4 sm:$0xff]  }
 0x24a   : > { %12847 = vmatpush1.bf16.msra.mxu0 %v16590_v6  ;;  %11741 = vmatprep.subr.bf16.mxu1 %v16595_v43  ;;  %v16677_v6 = vld [vmem:[%s18895_s29 + $0x2344] ss:$8 sps:$4 sm:$0xff]   ;;  %v16672_v43 = vld [vmem:[%s18895_s29 + $0x840] ss:$8 sps:$4 sm:$0xff]  }
 0x24b   : > { %12848 = vmatprep.subr.bf16.mxu0 %v16598_v51  ;;  %v16675_v51 = vld [vmem:[%s18895_s29 + $0x2340] ss:$8 sps:$4 sm:$0xff]  }
 0x24d   : > { %11742 = vmatpush1.bf16.msra.mxu1 %v16593_v7  ;;  %v16680_v7 = vld [vmem:[%s18895_s29 + $0x854] ss:$8 sps:$4 sm:$0xff]  }
 0x24e   : > { %12849 = vmatpush1.bf16.msra.mxu0 %v16596_v8  ;;  %11743 = vmatprep.subr.bf16.mxu1 %v16601_v30  ;;  %v16683_v8 = vld [vmem:[%s18895_s29 + $0x2354] ss:$8 sps:$4 sm:$0xff]   ;;  %v16678_v30 = vld [vmem:[%s18895_s29 + $0x850] ss:$8 sps:$4 sm:$0xff]  }
 0x24f   : > { %12850 = vmatprep.subr.bf16.mxu0 %v16604_v10  ;;  %v16681_v10 = vld [vmem:[%s18895_s29 + $0x2350] ss:$8 sps:$4 sm:$0xff]  }
 0x251   : > { %11744 = vmatpush1.bf16.msra.mxu1 %v16599_v11  ;;  %v16686_v11 = vld [vmem:[%s18895_s29 + $0x864] ss:$8 sps:$4 sm:$0xff]  }
 0x252   : > { %12851 = vmatpush1.bf16.msra.mxu0 %v16602_v12  ;;  %11745 = vmatprep.subr.bf16.mxu1 %v16607_v13  ;;  %v16689_v12 = vld [vmem:[%s18895_s29 + $0x2364] ss:$8 sps:$4 sm:$0xff]   ;;  %v16684_v13 = vld [vmem:[%s18895_s29 + $0x860] ss:$8 sps:$4 sm:$0xff]  }
 0x253   : > { %12852 = vmatprep.subr.bf16.mxu0 %v16610_v14  ;;  %v16687_v14 = vld [vmem:[%s18895_s29 + $0x2360] ss:$8 sps:$4 sm:$0xff]  }
 0x255   : > { %11746 = vmatpush1.bf16.msra.mxu1 %v16605_v16  ;;  %v16692_v16 = vld [vmem:[%s18895_s29 + $0x874] ss:$8 sps:$4 sm:$0xff]  }
 0x256   : > { %12853 = vmatpush1.bf16.msra.mxu0 %v16608_v1  ;;  %11747 = vmatprep.subr.bf16.mxu1 %v16613_v18  ;;  %v16695_v1 = vld [vmem:[%s18895_s29 + $0x2374] ss:$8 sps:$4 sm:$0xff]   ;;  %v16690_v18 = vld [vmem:[%s18895_s29 + $0x870] ss:$8 sps:$4 sm:$0xff]  }
 0x257   : > { %12854 = vmatprep.subr.bf16.mxu0 %v16616_v4  ;;  %v16693_v4 = vld [vmem:[%s18895_s29 + $0x2370] ss:$8 sps:$4 sm:$0xff]  }
 0x259   : > { %11748 = vmatpush1.bf16.msra.mxu1 %v16611_v19  ;;  %v16698_v19 = vld [vmem:[%s18895_s29 + $0x884] ss:$8 sps:$4 sm:$0xff]  }
 0x25a   : > { %12855 = vmatpush1.bf16.msra.mxu0 %v16614_v21  ;;  %11749 = vmatprep.subr.bf16.mxu1 %v16619_v22  ;;  %v16701_v21 = vld [vmem:[%s18895_s29 + $0x2384] ss:$8 sps:$4 sm:$0xff]   ;;  %v16696_v22 = vld [vmem:[%s18895_s29 + $0x880] ss:$8 sps:$4 sm:$0xff]  }
 0x25b   : > { %12856 = vmatprep.subr.bf16.mxu0 %v16622_v23  ;;  %v16699_v23 = vld [vmem:[%s18895_s29 + $0x2380] ss:$8 sps:$4 sm:$0xff]  }
 0x25d   : > { %11750 = vmatpush1.bf16.msra.mxu1 %v16617_v25  ;;  %v16704_v25 = vld [vmem:[%s18895_s29 + $0x894] ss:$8 sps:$4 sm:$0xff]  }
 0x25e   : > { %12857 = vmatpush1.bf16.msra.mxu0 %v16620_v26  ;;  %11751 = vmatprep.subr.bf16.mxu1 %v16625_v27  ;;  %v16707_v26 = vld [vmem:[%s18895_s29 + $0x2394] ss:$8 sps:$4 sm:$0xff]   ;;  %v16702_v27 = vld [vmem:[%s18895_s29 + $0x890] ss:$8 sps:$4 sm:$0xff]  }
 0x25f   : > { %12858 = vmatprep.subr.bf16.mxu0 %v16628_v28  ;;  %v16705_v28 = vld [vmem:[%s18895_s29 + $0x2390] ss:$8 sps:$4 sm:$0xff]  }
 0x261   : > { %11752 = vmatpush1.bf16.msra.mxu1 %v16623_v9  ;;  %v16710_v9 = vld [vmem:[%s18895_s29 + $0x8a4] ss:$8 sps:$4 sm:$0xff]  }
 0x262   : > { %12859 = vmatpush1.bf16.msra.mxu0 %v16626_v63  ;;  %11753 = vmatprep.subr.bf16.mxu1 %v16631_v53  ;;  %v16713_v63 = vld [vmem:[%s18895_s29 + $0x23a4] ss:$8 sps:$4 sm:$0xff]   ;;  %v16708_v53 = vld [vmem:[%s18895_s29 + $0x8a0] ss:$8 sps:$4 sm:$0xff]  }
 0x263   : > { %12860 = vmatprep.subr.bf16.mxu0 %v16634_v32  ;;  %v16711_v32 = vld [vmem:[%s18895_s29 + $0x23a0] ss:$8 sps:$4 sm:$0xff]  }
 0x265   : > { %11754 = vmatpush1.bf16.msra.mxu1 %v16629_v56  ;;  %v16716_v56 = vld [vmem:[%s18895_s29 + $0x8b4] ss:$8 sps:$4 sm:$0xff]  }
 0x266   : > { %12861 = vmatpush1.bf16.msra.mxu0 %v16632_v33  ;;  %11755 = vmatprep.subr.bf16.mxu1 %v16637_v34  ;;  %v16719_v33 = vld [vmem:[%s18895_s29 + $0x23b4] ss:$8 sps:$4 sm:$0xff]   ;;  %v16714_v34 = vld [vmem:[%s18895_s29 + $0x8b0] ss:$8 sps:$4 sm:$0xff]  }
 0x267   : > { %12862 = vmatprep.subr.bf16.mxu0 %v16640_v36  ;;  %v16717_v36 = vld [vmem:[%s18895_s29 + $0x23b0] ss:$8 sps:$4 sm:$0xff]  }
 0x269   : > { %11756 = vmatpush1.bf16.msra.mxu1 %v16635_v39  ;;  %v16722_v39 = vld [vmem:[%s18895_s29 + $0x8c4] ss:$8 sps:$4 sm:$0xff]  }
 0x26a   : > { %12863 = vmatpush1.bf16.msra.mxu0 %v16638_v40  ;;  %11757 = vmatprep.subr.bf16.mxu1 %v16643_v20  ;;  %v16725_v40 = vld [vmem:[%s18895_s29 + $0x23c4] ss:$8 sps:$4 sm:$0xff]   ;;  %v16720_v20 = vld [vmem:[%s18895_s29 + $0x8c0] ss:$8 sps:$4 sm:$0xff]  }
 0x26b   : > { %12864 = vmatprep.subr.bf16.mxu0 %v16646_v42  ;;  %v16723_v42 = vld [vmem:[%s18895_s29 + $0x23c0] ss:$8 sps:$4 sm:$0xff]  }
 0x26d   : > { %11758 = vmatpush1.bf16.msra.mxu1 %v16641_v24  ;;  %v16728_v24 = vld [vmem:[%s18895_s29 + $0x8d4] ss:$8 sps:$4 sm:$0xff]  }
 0x26e   : > { %12865 = vmatpush1.bf16.msra.mxu0 %v16644_v44  ;;  %11768 = vmatprep.subr.bf16.mxu1 %v16649_v49  ;;  %v16731_v44 = vld [vmem:[%s18895_s29 + $0x23d4] ss:$8 sps:$4 sm:$0xff]   ;;  %v16726_v49 = vld [vmem:[%s18895_s29 + $0x8d0] ss:$8 sps:$4 sm:$0xff]  }
 0x26f   : > { %12875 = vmatprep.subr.bf16.mxu0 %v16653_v29  ;;  %v16729_v29 = vld [vmem:[%s18895_s29 + $0x23d0] ss:$8 sps:$4 sm:$0xff]  }
 0x270   : > { %11760 = vmatmul.mubr.bf16.vlgmr.msra.gmra.mrb[0].mxu1 %v2126_v46  ;;  %v16737_v46 = vld [vmem:[%s18895_s29 + $0x23e4] ss:$8 sps:$4 sm:$0xff]  }
 0x271   : > { %12867 = vmatmul.mubr.bf16.vlgmr.msra.gmra.mrb[0].mxu0 %v19599_v48  ;;  %11769 = vmatpush1.bf16.msra.mxu1 %v16647_v50  ;;  %v19665_v50 = vld.sshfl [vmem:[%s18914_s4 + $0x48] sm:$0xff pattern:$0x75316420] }
 0x272   : > { %12876 = vmatpush1.bf16.msra.mxu0 %v16651_v54  ;;  %11770 = vmatprep.subr.bf16.mxu1 %v16656_v55  ;;  %v16732_v54 = vld [vmem:[%s18895_s29 + $0x8e0] ss:$8 sps:$4 sm:$0xff]  }
 0x273   : > { %12877 = vmatprep.subr.bf16.mxu0 %v16659_v57  ;;  %11800 = vmatprep.mubr.bf16.mxu1 %v19606_v58  ;;  %v16735_v55 = vld [vmem:[%s18895_s29 + $0x23e0] ss:$8 sps:$4 sm:$0xff]   ;;  %v16740_v57 = vld [vmem:[%s18895_s29 + $0x8f4] ss:$8 sps:$4 sm:$0xff]  }
 0x274   : > { %12907 = vmatprep.mubr.bf16.mxu0 %v2471_v35  ;;  %v16743_v35 = vld [vmem:[%s18895_s29 + $0x23f4] ss:$8 sps:$4 sm:$0xff]  }
 0x275   : > { %11771 = vmatpush1.bf16.msra.mxu1 %v16654_v31  ;;  %v16738_v31 = vld [vmem:[%s18895_s29 + $0x8f0] ss:$8 sps:$4 sm:$0xff]  }
 0x276   : > { %12878 = vmatpush1.bf16.msra.mxu0 %v16657_v37  ;;  %11772 = vmatprep.subr.bf16.mxu1 %v16662_v59  ;;  %v16741_v37 = vld [vmem:[%s18895_s29 + $0x23f0] ss:$8 sps:$4 sm:$0xff]   ;;  %v16746_v59 = vld [vmem:[%s18895_s29 + $0x904] ss:$8 sps:$4 sm:$0xff]  }
 0x277   : > { %12879 = vmatprep.subr.bf16.mxu0 %v16665_v60  ;;  %v16749_v60 = vld [vmem:[%s18895_s29 + $0x2404] ss:$8 sps:$4 sm:$0xff]  }
 0x279   : > { %11773 = vmatpush1.bf16.msra.mxu1 %v16660_v17  ;;  %v2487_v17 = vcombine.high %v19665_v50, %v19665_v50 }
 0x27a   : > { %12880 = vmatpush1.bf16.msra.mxu0 %v16663_v41  ;;  %11774 = vmatprep.subr.bf16.mxu1 %v16668_v61  ;;  %v19679_v41 = vrot.slane %v19583_v38, %v18971_v52  ;;  %v2469_v61 = vcombine.high %v19599_v48, %v19599_v48  ;;  %v16750_v48 = vld [vmem:[%s18895_s29 + $0x910] ss:$8 sps:$4 sm:$0xff]  }
 0x27b   : > { %12881 = vmatprep.subr.bf16.mxu0 %v16671_v62  ;;  %v16744_v62 = vld [vmem:[%s18895_s29 + $0x900] ss:$8 sps:$4 sm:$0xff]   ;;  %v19690_v38 = vrot.slane %v2487_v17, %v18971_v52  ;;  %v16830_v17 = vld [vmem:[%s18895_s29 + $0x9e4] ss:$8 sps:$4 sm:$0xff]  }
 0x27d   : > { %11775 = vmatpush1.bf16.msra.mxu1 %v16666_v0  ;;  %v16747_v0 = vld [vmem:[%s18895_s29 + $0x2400] ss:$8 sps:$4 sm:$0xff]  }
 0x27e   : > { %12882 = vmatpush1.bf16.msra.mxu0 %v16669_v2  ;;  %11776 = vmatprep.subr.bf16.mxu1 %v16674_v3  ;;  %v16752_v2 = vld [vmem:[%s18895_s29 + $0x914] ss:$8 sps:$4 sm:$0xff]  }
 0x27f   : > { %12883 = vmatprep.subr.bf16.mxu0 %v16677_v6  ;;  %v16755_v3 = vld [vmem:[%s18895_s29 + $0x2414] ss:$8 sps:$4 sm:$0xff]   ;;  %v2176_v6 = vcombine.high %v19606_v58, %v19606_v58  ;;  %v16761_v58 = vld [vmem:[%s18895_s29 + $0x2424] ss:$8 sps:$4 sm:$0xff]  }
 0x281   : > { %11777 = vmatpush1.bf16.msra.mxu1 %v16672_v43  ;;  %v16753_v43 = vld [vmem:[%s18895_s29 + $0x2410] ss:$8 sps:$4 sm:$0xff]  }
 0x282   : > { %12884 = vmatpush1.bf16.msra.mxu0 %v16675_v51  ;;  %11778 = vmatprep.subr.bf16.mxu1 %v16680_v7  ;;  %v16758_v51 = vld [vmem:[%s18895_s29 + $0x924] ss:$8 sps:$4 sm:$0xff]   ;;  %v16756_v7 = vld [vmem:[%s18895_s29 + $0x920] ss:$8 sps:$4 sm:$0xff]  }
 0x283   : > { %12885 = vmatprep.subr.bf16.mxu0 %v16683_v8  ;;  %v16759_v8 = vld [vmem:[%s18895_s29 + $0x2420] ss:$8 sps:$4 sm:$0xff]  }
 0x285   : > { %11779 = vmatpush1.bf16.msra.mxu1 %v16678_v30  ;;  %v16764_v30 = vld [vmem:[%s18895_s29 + $0x934] ss:$8 sps:$4 sm:$0xff]  }
 0x286   : > { %12886 = vmatpush1.bf16.msra.mxu0 %v16681_v10  ;;  %11780 = vmatprep.subr.bf16.mxu1 %v16686_v11  ;;  %v16767_v10 = vld [vmem:[%s18895_s29 + $0x2434] ss:$8 sps:$4 sm:$0xff]   ;;  %v16762_v11 = vld [vmem:[%s18895_s29 + $0x930] ss:$8 sps:$4 sm:$0xff]  }
 0x287   : > { %12887 = vmatprep.subr.bf16.mxu0 %v16689_v12  ;;  %v16765_v12 = vld [vmem:[%s18895_s29 + $0x2430] ss:$8 sps:$4 sm:$0xff]  }
 0x289   : > { %11781 = vmatpush1.bf16.msra.mxu1 %v16684_v13  ;;  %v16770_v13 = vld [vmem:[%s18895_s29 + $0x944] ss:$8 sps:$4 sm:$0xff]  }
 0x28a   : > { %12888 = vmatpush1.bf16.msra.mxu0 %v16687_v14  ;;  %11782 = vmatprep.subr.bf16.mxu1 %v16692_v16  ;;  %v16773_v14 = vld [vmem:[%s18895_s29 + $0x2444] ss:$8 sps:$4 sm:$0xff]   ;;  %v16768_v16 = vld [vmem:[%s18895_s29 + $0x940] ss:$8 sps:$4 sm:$0xff]  }
 0x28b   : > { %12889 = vmatprep.subr.bf16.mxu0 %v16695_v1  ;;  %v16771_v1 = vld [vmem:[%s18895_s29 + $0x2440] ss:$8 sps:$4 sm:$0xff]  }
 0x28d   : > { %11783 = vmatpush1.bf16.msra.mxu1 %v16690_v18  ;;  %v16776_v18 = vld [vmem:[%s18895_s29 + $0x954] ss:$8 sps:$4 sm:$0xff]  }
 0x28e   : > { %12890 = vmatpush1.bf16.msra.mxu0 %v16693_v4  ;;  %11784 = vmatprep.subr.bf16.mxu1 %v16698_v19  ;;  %v16779_v4 = vld [vmem:[%s18895_s29 + $0x2454] ss:$8 sps:$4 sm:$0xff]   ;;  %v16774_v19 = vld [vmem:[%s18895_s29 + $0x950] ss:$8 sps:$4 sm:$0xff]  }
 0x28f   : > { %12891 = vmatprep.subr.bf16.mxu0 %v16701_v21  ;;  %v16777_v21 = vld [vmem:[%s18895_s29 + $0x2450] ss:$8 sps:$4 sm:$0xff]  }
 0x291   : > { %11785 = vmatpush1.bf16.msra.mxu1 %v16696_v22  ;;  %v16782_v22 = vld [vmem:[%s18895_s29 + $0x964] ss:$8 sps:$4 sm:$0xff]  }
 0x292   : > { %12892 = vmatpush1.bf16.msra.mxu0 %v16699_v23  ;;  %11786 = vmatprep.subr.bf16.mxu1 %v16704_v25  ;;  %v16785_v23 = vld [vmem:[%s18895_s29 + $0x2464] ss:$8 sps:$4 sm:$0xff]   ;;  %v16780_v25 = vld [vmem:[%s18895_s29 + $0x960] ss:$8 sps:$4 sm:$0xff]  }
 0x293   : > { %12893 = vmatprep.subr.bf16.mxu0 %v16707_v26  ;;  %v16783_v26 = vld [vmem:[%s18895_s29 + $0x2460] ss:$8 sps:$4 sm:$0xff]  }
 0x295   : > { %11787 = vmatpush1.bf16.msra.mxu1 %v16702_v27  ;;  %v16788_v27 = vld [vmem:[%s18895_s29 + $0x974] ss:$8 sps:$4 sm:$0xff]  }
 0x296   : > { %12894 = vmatpush1.bf16.msra.mxu0 %v16705_v28  ;;  %11788 = vmatprep.subr.bf16.mxu1 %v16710_v9  ;;  %v16791_v28 = vld [vmem:[%s18895_s29 + $0x2474] ss:$8 sps:$4 sm:$0xff]   ;;  %v16786_v9 = vld [vmem:[%s18895_s29 + $0x970] ss:$8 sps:$4 sm:$0xff]  }
 0x297   : > { %12895 = vmatprep.subr.bf16.mxu0 %v16713_v63  ;;  %v16789_v63 = vld [vmem:[%s18895_s29 + $0x2470] ss:$8 sps:$4 sm:$0xff]  }
 0x299   : > { %11789 = vmatpush1.bf16.msra.mxu1 %v16708_v53  ;;  %v16794_v53 = vld [vmem:[%s18895_s29 + $0x984] ss:$8 sps:$4 sm:$0xff]  }
 0x29a   : > { %12896 = vmatpush1.bf16.msra.mxu0 %v16711_v32  ;;  %11790 = vmatprep.subr.bf16.mxu1 %v16716_v56  ;;  %v16797_v32 = vld [vmem:[%s18895_s29 + $0x2484] ss:$8 sps:$4 sm:$0xff]   ;;  %v16792_v56 = vld [vmem:[%s18895_s29 + $0x980] ss:$8 sps:$4 sm:$0xff]  }
 0x29b   : > { %12897 = vmatprep.subr.bf16.mxu0 %v16719_v33  ;;  %v16795_v33 = vld [vmem:[%s18895_s29 + $0x2480] ss:$8 sps:$4 sm:$0xff]  }
 0x29d   : > { %11791 = vmatpush1.bf16.msra.mxu1 %v16714_v34  ;;  %v16800_v34 = vld [vmem:[%s18895_s29 + $0x994] ss:$8 sps:$4 sm:$0xff]  }
 0x29e   : > { %12898 = vmatpush1.bf16.msra.mxu0 %v16717_v36  ;;  %11792 = vmatprep.subr.bf16.mxu1 %v16722_v39  ;;  %v16803_v36 = vld [vmem:[%s18895_s29 + $0x2494] ss:$8 sps:$4 sm:$0xff]   ;;  %v16798_v39 = vld [vmem:[%s18895_s29 + $0x990] ss:$8 sps:$4 sm:$0xff]  }
 0x29f   : > { %12899 = vmatprep.subr.bf16.mxu0 %v16725_v40  ;;  %v16801_v40 = vld [vmem:[%s18895_s29 + $0x2490] ss:$8 sps:$4 sm:$0xff]  }
 0x2a1   : > { %11793 = vmatpush1.bf16.msra.mxu1 %v16720_v20  ;;  %v16806_v20 = vld [vmem:[%s18895_s29 + $0x9a4] ss:$8 sps:$4 sm:$0xff]  }
 0x2a2   : > { %12900 = vmatpush1.bf16.msra.mxu0 %v16723_v42  ;;  %11794 = vmatprep.subr.bf16.mxu1 %v16728_v24  ;;  %v16809_v42 = vld [vmem:[%s18895_s29 + $0x24a4] ss:$8 sps:$4 sm:$0xff]   ;;  %v16804_v24 = vld [vmem:[%s18895_s29 + $0x9a0] ss:$8 sps:$4 sm:$0xff]  }
 0x2a3   : > { %12901 = vmatprep.subr.bf16.mxu0 %v16731_v44  ;;  %v16807_v44 = vld [vmem:[%s18895_s29 + $0x24a0] ss:$8 sps:$4 sm:$0xff]  }
 0x2a5   : > { %11795 = vmatpush1.bf16.msra.mxu1 %v16726_v49  ;;  %v16812_v49 = vld [vmem:[%s18895_s29 + $0x9b4] ss:$8 sps:$4 sm:$0xff]  }
 0x2a6   : > { %12902 = vmatpush1.bf16.msra.mxu0 %v16729_v29  ;;  %11796 = vmatprep.subr.bf16.mxu1 %v16734_v45  ;;  %v16815_v29 = vld [vmem:[%s18895_s29 + $0x24b4] ss:$8 sps:$4 sm:$0xff]   ;;  %v16810_v45 = vld [vmem:[%s18895_s29 + $0x9b0] ss:$8 sps:$4 sm:$0xff]  }
 0x2a7   : > { %12903 = vmatprep.subr.bf16.mxu0 %v16737_v46  ;;  %v16813_v46 = vld [vmem:[%s18895_s29 + $0x24b0] ss:$8 sps:$4 sm:$0xff]  }
 0x2a9   : > { %11797 = vmatpush1.bf16.msra.mxu1 %v16732_v54  ;;  %v16818_v54 = vld [vmem:[%s18895_s29 + $0x9c4] ss:$8 sps:$4 sm:$0xff]  }
 0x2aa   : > { %12904 = vmatpush1.bf16.msra.mxu0 %v16735_v55  ;;  %11798 = vmatprep.subr.bf16.mxu1 %v16740_v57  ;;  %v16821_v55 = vld [vmem:[%s18895_s29 + $0x24c4] ss:$8 sps:$4 sm:$0xff]   ;;  %v16816_v57 = vld [vmem:[%s18895_s29 + $0x9c0] ss:$8 sps:$4 sm:$0xff]  }
 0x2ab   : > { %12905 = vmatprep.subr.bf16.mxu0 %v16743_v35  ;;  %v16819_v35 = vld [vmem:[%s18895_s29 + $0x24c0] ss:$8 sps:$4 sm:$0xff]  }
 0x2ad   : > { %11799 = vmatpush1.bf16.msra.mxu1 %v16738_v31  ;;  %v16824_v31 = vld [vmem:[%s18895_s29 + $0x9d4] ss:$8 sps:$4 sm:$0xff]  }
 0x2ae   : > { %12906 = vmatpush1.bf16.msra.mxu0 %v16741_v37  ;;  %11809 = vmatprep.subr.bf16.mxu1 %v16746_v59  ;;  %v16827_v37 = vld [vmem:[%s18895_s29 + $0x24d4] ss:$8 sps:$4 sm:$0xff]   ;;  %v16822_v59 = vld [vmem:[%s18895_s29 + $0x9d0] ss:$8 sps:$4 sm:$0xff]  }
 0x2af   : > { %12916 = vmatprep.subr.bf16.mxu0 %v16749_v60  ;;  %v16825_v60 = vld [vmem:[%s18895_s29 + $0x24d0] ss:$8 sps:$4 sm:$0xff]  }
 0x2b0   : > { %11801 = vmatmul.mubr.bf16.vlgmr.msra.gmra.mrb[0].mxu1 %v19679_v41 }
 0x2b1   : > { %12908 = vmatmul.mubr.bf16.vlgmr.msra.gmra.mrb[0].mxu0 %v2469_v61  ;;  %11810 = vmatpush1.bf16.msra.mxu1 %v16744_v62  ;;  %v16833_v61 = vld [vmem:[%s18895_s29 + $0x24e4] ss:$8 sps:$4 sm:$0xff]  }
 0x2b2   : > { %12917 = vmatpush1.bf16.msra.mxu0 %v16747_v0  ;;  %11811 = vmatprep.subr.bf16.mxu1 %v16752_v2  ;;  %v18482_v62 = vld [vmem:[%s18914_s4 + $0x10] sm:$0xff]  ;;  %v16828_v2 = vld [vmem:[%s18895_s29 + $0x9e0] ss:$8 sps:$4 sm:$0xff]  }
 0x2b3   : > { %12918 = vmatprep.subr.bf16.mxu0 %v16755_v3  ;;  %11841 = vmatprep.mubr.bf16.mxu1 %v2176_v6  ;;  %v2129_v0 = vcombine.high %v18482_v62, %v18482_v62  ;;  %v16831_v3 = vld [vmem:[%s18895_s29 + $0x24e0] ss:$8 sps:$4 sm:$0xff]   ;;  %v16836_v6 = vld [vmem:[%s18895_s29 + $0x9f4] ss:$8 sps:$4 sm:$0xff]   ;;  %v16906_v62 = vld [vmem:[%s18895_s29 + $0xab0] ss:$8 sps:$4 sm:$0xff]  }
 0x2b4   : > { %12948 = vmatprep.mubr.bf16.mxu0 %v19690_v38 }
 0x2b5   : > { %11812 = vmatpush1.bf16.msra.mxu1 %v16750_v48  ;;  %v16839_v48 = vld [vmem:[%s18895_s29 + $0x24f4] ss:$8 sps:$4 sm:$0xff]  }
 0x2b6   : > { %12919 = vmatpush1.bf16.msra.mxu0 %v16753_v43  ;;  %11813 = vmatprep.subr.bf16.mxu1 %v16758_v51  ;;  %v19752_v43 = vrot.slane %v2129_v0, %v18971_v52  ;;  %v16834_v51 = vld [vmem:[%s18895_s29 + $0x9f0] ss:$8 sps:$4 sm:$0xff]  }
 0x2b7   : > { %12920 = vmatprep.subr.bf16.mxu0 %v16761_v58  ;;  %v16837_v58 = vld [vmem:[%s18895_s29 + $0x24f0] ss:$8 sps:$4 sm:$0xff]  }
 0x2b8   : > { %v16909_v0 = vld [vmem:[%s18895_s29 + $0x25b0] ss:$8 sps:$4 sm:$0xff]  }
 0x2b9   : > { %11814 = vmatpush1.bf16.msra.mxu1 %v16756_v7  ;;  %v16842_v7 = vld [vmem:[%s18895_s29 + $0xa04] ss:$8 sps:$4 sm:$0xff]  }
 0x2ba   : > { %12921 = vmatpush1.bf16.msra.mxu0 %v16759_v8  ;;  %11815 = vmatprep.subr.bf16.mxu1 %v16764_v30  ;;  %v16845_v8 = vld [vmem:[%s18895_s29 + $0x2504] ss:$8 sps:$4 sm:$0xff]   ;;  %v2145_v30 = vcombine.high %v19752_v43, %v19752_v43 }
 0x2bb   : > { %12922 = vmatprep.subr.bf16.mxu0 %v16767_v10  ;;  %v2174_v10 = vcombine.high %v19679_v41, %v19679_v41  ;;  %v2519_v41 = vcombine.high %v19690_v38, %v19690_v38  ;;  %v16852_v38 = vld [vmem:[%s18895_s29 + $0xa20] ss:$8 sps:$4 sm:$0xff]  }
 0x2bd   : > { %11816 = vmatpush1.bf16.msra.mxu1 %v16762_v11  ;;  %v19764_v11 = vrot.slane %v19665_v50, %v18971_v52  ;;  %v16846_v50 = vld [vmem:[%s18895_s29 + $0xa10] ss:$8 sps:$4 sm:$0xff]  }
 0x2be   : > { %12923 = vmatpush1.bf16.msra.mxu0 %v16765_v12  ;;  %11817 = vmatprep.subr.bf16.mxu1 %v16770_v13  ;;  %v16840_v12 = vld [vmem:[%s18895_s29 + $0xa00] ss:$8 sps:$4 sm:$0xff]  }
 0x2bf   : > { %12924 = vmatprep.subr.bf16.mxu0 %v16773_v14  ;;  %v16843_v13 = vld [vmem:[%s18895_s29 + $0x2500] ss:$8 sps:$4 sm:$0xff]   ;;  %v16848_v14 = vld [vmem:[%s18895_s29 + $0xa14] ss:$8 sps:$4 sm:$0xff]  }
 0x2c1   : > { %11818 = vmatpush1.bf16.msra.mxu1 %v16768_v16  ;;  %v16851_v16 = vld [vmem:[%s18895_s29 + $0x2514] ss:$8 sps:$4 sm:$0xff]  }
 0x2c2   : > { %12925 = vmatpush1.bf16.msra.mxu0 %v16771_v1  ;;  %11819 = vmatprep.subr.bf16.mxu1 %v16776_v18  ;;  %v19771_v1 = vrot.slane %v2145_v30, %v18971_v52  ;;  %v16849_v18 = vld [vmem:[%s18895_s29 + $0x2510] ss:$8 sps:$4 sm:$0xff]   ;;  %v16926_v30 = vld [vmem:[%s18895_s29 + $0xae4] ss:$8 sps:$4 sm:$0xff]  }
 0x2c3   : > { %12926 = vmatprep.subr.bf16.mxu0 %v16779_v4  ;;  %v16854_v4 = vld [vmem:[%s18895_s29 + $0xa24] ss:$8 sps:$4 sm:$0xff]  }
 0x2c5   : > { %11820 = vmatpush1.bf16.msra.mxu1 %v16774_v19  ;;  %v16857_v19 = vld [vmem:[%s18895_s29 + $0x2524] ss:$8 sps:$4 sm:$0xff]  }
 0x2c6   : > { %12927 = vmatpush1.bf16.msra.mxu0 %v16777_v21  ;;  %11821 = vmatprep.subr.bf16.mxu1 %v16782_v22  ;;  %v16855_v21 = vld [vmem:[%s18895_s29 + $0x2520] ss:$8 sps:$4 sm:$0xff]   ;;  %v16860_v22 = vld [vmem:[%s18895_s29 + $0xa34] ss:$8 sps:$4 sm:$0xff]  }
 0x2c7   : > { %12928 = vmatprep.subr.bf16.mxu0 %v16785_v23  ;;  %v16863_v23 = vld [vmem:[%s18895_s29 + $0x2534] ss:$8 sps:$4 sm:$0xff]  }
 0x2c9   : > { %11822 = vmatpush1.bf16.msra.mxu1 %v16780_v25  ;;  %v16858_v25 = vld [vmem:[%s18895_s29 + $0xa30] ss:$8 sps:$4 sm:$0xff]  }
 0x2ca   : > { %12929 = vmatpush1.bf16.msra.mxu0 %v16783_v26  ;;  %11823 = vmatprep.subr.bf16.mxu1 %v16788_v27  ;;  %v16861_v26 = vld [vmem:[%s18895_s29 + $0x2530] ss:$8 sps:$4 sm:$0xff]   ;;  %v16866_v27 = vld [vmem:[%s18895_s29 + $0xa44] ss:$8 sps:$4 sm:$0xff]  }
 0x2cb   : > { %12930 = vmatprep.subr.bf16.mxu0 %v16791_v28  ;;  %v16869_v28 = vld [vmem:[%s18895_s29 + $0x2544] ss:$8 sps:$4 sm:$0xff]  }
 0x2cd   : > { %11824 = vmatpush1.bf16.msra.mxu1 %v16786_v9  ;;  %v16864_v9 = vld [vmem:[%s18895_s29 + $0xa40] ss:$8 sps:$4 sm:$0xff]  }
 0x2ce   : > { %12931 = vmatpush1.bf16.msra.mxu0 %v16789_v63  ;;  %11825 = vmatprep.subr.bf16.mxu1 %v16794_v53  ;;  %v16867_v63 = vld [vmem:[%s18895_s29 + $0x2540] ss:$8 sps:$4 sm:$0xff]   ;;  %v16872_v53 = vld [vmem:[%s18895_s29 + $0xa54] ss:$8 sps:$4 sm:$0xff]  }
 0x2cf   : > { %12932 = vmatprep.subr.bf16.mxu0 %v16797_v32  ;;  %v16875_v32 = vld [vmem:[%s18895_s29 + $0x2554] ss:$8 sps:$4 sm:$0xff]  }
 0x2d1   : > { %11826 = vmatpush1.bf16.msra.mxu1 %v16792_v56  ;;  %v16870_v56 = vld [vmem:[%s18895_s29 + $0xa50] ss:$8 sps:$4 sm:$0xff]  }
 0x2d2   : > { %12933 = vmatpush1.bf16.msra.mxu0 %v16795_v33  ;;  %11827 = vmatprep.subr.bf16.mxu1 %v16800_v34  ;;  %v16873_v33 = vld [vmem:[%s18895_s29 + $0x2550] ss:$8 sps:$4 sm:$0xff]   ;;  %v16878_v34 = vld [vmem:[%s18895_s29 + $0xa64] ss:$8 sps:$4 sm:$0xff]  }
 0x2d3   : > { %12934 = vmatprep.subr.bf16.mxu0 %v16803_v36  ;;  %v16881_v36 = vld [vmem:[%s18895_s29 + $0x2564] ss:$8 sps:$4 sm:$0xff]  }
 0x2d5   : > { %11828 = vmatpush1.bf16.msra.mxu1 %v16798_v39  ;;  %v16876_v39 = vld [vmem:[%s18895_s29 + $0xa60] ss:$8 sps:$4 sm:$0xff]  }
 0x2d6   : > { %12935 = vmatpush1.bf16.msra.mxu0 %v16801_v40  ;;  %11829 = vmatprep.subr.bf16.mxu1 %v16806_v20  ;;  %v16879_v40 = vld [vmem:[%s18895_s29 + $0x2560] ss:$8 sps:$4 sm:$0xff]   ;;  %v16884_v20 = vld [vmem:[%s18895_s29 + $0xa74] ss:$8 sps:$4 sm:$0xff]  }
 0x2d7   : > { %12936 = vmatprep.subr.bf16.mxu0 %v16809_v42  ;;  %v16887_v42 = vld [vmem:[%s18895_s29 + $0x2574] ss:$8 sps:$4 sm:$0xff]  }
 0x2d9   : > { %11830 = vmatpush1.bf16.msra.mxu1 %v16804_v24  ;;  %v16882_v24 = vld [vmem:[%s18895_s29 + $0xa70] ss:$8 sps:$4 sm:$0xff]  }
 0x2da   : > { %12937 = vmatpush1.bf16.msra.mxu0 %v16807_v44  ;;  %11831 = vmatprep.subr.bf16.mxu1 %v16812_v49  ;;  %v16885_v44 = vld [vmem:[%s18895_s29 + $0x2570] ss:$8 sps:$4 sm:$0xff]   ;;  %v16890_v49 = vld [vmem:[%s18895_s29 + $0xa84] ss:$8 sps:$4 sm:$0xff]  }
 0x2db   : > { %12938 = vmatprep.subr.bf16.mxu0 %v16815_v29  ;;  %v16893_v29 = vld [vmem:[%s18895_s29 + $0x2584] ss:$8 sps:$4 sm:$0xff]  }
 0x2dd   : > { %11832 = vmatpush1.bf16.msra.mxu1 %v16810_v45  ;;  %v16888_v45 = vld [vmem:[%s18895_s29 + $0xa80] ss:$8 sps:$4 sm:$0xff]  }
 0x2de   : > { %12939 = vmatpush1.bf16.msra.mxu0 %v16813_v46  ;;  %11833 = vmatprep.subr.bf16.mxu1 %v16818_v54  ;;  %v16891_v46 = vld [vmem:[%s18895_s29 + $0x2580] ss:$8 sps:$4 sm:$0xff]   ;;  %v16896_v54 = vld [vmem:[%s18895_s29 + $0xa94] ss:$8 sps:$4 sm:$0xff]  }
 0x2df   : > { %12940 = vmatprep.subr.bf16.mxu0 %v16821_v55  ;;  %v16899_v55 = vld [vmem:[%s18895_s29 + $0x2594] ss:$8 sps:$4 sm:$0xff]  }
 0x2e1   : > { %11834 = vmatpush1.bf16.msra.mxu1 %v16816_v57  ;;  %v16894_v57 = vld [vmem:[%s18895_s29 + $0xa90] ss:$8 sps:$4 sm:$0xff]  }
 0x2e2   : > { %12941 = vmatpush1.bf16.msra.mxu0 %v16819_v35  ;;  %11835 = vmatprep.subr.bf16.mxu1 %v16824_v31  ;;  %v16897_v35 = vld [vmem:[%s18895_s29 + $0x2590] ss:$8 sps:$4 sm:$0xff]   ;;  %v16902_v31 = vld [vmem:[%s18895_s29 + $0xaa4] ss:$8 sps:$4 sm:$0xff]  }
 0x2e3   : > { %12942 = vmatprep.subr.bf16.mxu0 %v16827_v37  ;;  %v16905_v37 = vld [vmem:[%s18895_s29 + $0x25a4] ss:$8 sps:$4 sm:$0xff]  }
 0x2e5   : > { %11836 = vmatpush1.bf16.msra.mxu1 %v16822_v59  ;;  %v16900_v59 = vld [vmem:[%s18895_s29 + $0xaa0] ss:$8 sps:$4 sm:$0xff]  }
 0x2e6   : > { %12943 = vmatpush1.bf16.msra.mxu0 %v16825_v60  ;;  %11837 = vmatprep.subr.bf16.mxu1 %v16830_v17  ;;  %v16903_v60 = vld [vmem:[%s18895_s29 + $0x25a0] ss:$8 sps:$4 sm:$0xff]   ;;  %v16908_v17 = vld [vmem:[%s18895_s29 + $0xab4] ss:$8 sps:$4 sm:$0xff]  }
 0x2e7   : > { %12944 = vmatprep.subr.bf16.mxu0 %v16833_v61  ;;  %v16911_v61 = vld [vmem:[%s18895_s29 + $0x25b4] ss:$8 sps:$4 sm:$0xff]  }
 0x2e9   : > { %11838 = vmatpush1.bf16.msra.mxu1 %v16828_v2  ;;  %v16914_v2 = vld [vmem:[%s18895_s29 + $0xac4] ss:$8 sps:$4 sm:$0xff]  }
 0x2ea   : > { %12945 = vmatpush1.bf16.msra.mxu0 %v16831_v3  ;;  %11839 = vmatprep.subr.bf16.mxu1 %v16836_v6  ;;  %v16917_v3 = vld [vmem:[%s18895_s29 + $0x25c4] ss:$8 sps:$4 sm:$0xff]   ;;  %v16912_v6 = vld [vmem:[%s18895_s29 + $0xac0] ss:$8 sps:$4 sm:$0xff]  }
 0x2eb   : > { %12946 = vmatprep.subr.bf16.mxu0 %v16839_v48  ;;  %v16915_v48 = vld [vmem:[%s18895_s29 + $0x25c0] ss:$8 sps:$4 sm:$0xff]  }
 0x2ed   : > { %11840 = vmatpush1.bf16.msra.mxu1 %v16834_v51  ;;  %v16920_v51 = vld [vmem:[%s18895_s29 + $0xad4] ss:$8 sps:$4 sm:$0xff]  }
 0x2ee   : > { %12947 = vmatpush1.bf16.msra.mxu0 %v16837_v58  ;;  %11850 = vmatprep.subr.bf16.mxu1 %v16842_v7  ;;  %v16923_v58 = vld [vmem:[%s18895_s29 + $0x25d4] ss:$8 sps:$4 sm:$0xff]   ;;  %v16918_v7 = vld [vmem:[%s18895_s29 + $0xad0] ss:$8 sps:$4 sm:$0xff]  }
 0x2ef   : > { %12957 = vmatprep.subr.bf16.mxu0 %v16845_v8  ;;  %v16921_v8 = vld [vmem:[%s18895_s29 + $0x25d0] ss:$8 sps:$4 sm:$0xff]  }
 0x2f0   : > { %11842 = vmatmul.mubr.bf16.vlgmr.msra.gmra.mrb[0].mxu1 %v2174_v10  ;;  %v16929_v10 = vld [vmem:[%s18895_s29 + $0x25e4] ss:$8 sps:$4 sm:$0xff]  }
 0x2f1   : > { %12949 = vmatmul.mubr.bf16.vlgmr.msra.gmra.mrb[0].mxu0 %v19764_v11  ;;  %11851 = vmatpush1.bf16.msra.mxu1 %v16840_v12  ;;  %v18483_v12 = vld [vmem:[%s18914_s4 + $0x48] sm:$0xff] }
 0x2f2   : > { %12958 = vmatpush1.bf16.msra.mxu0 %v16843_v13  ;;  %11852 = vmatprep.subr.bf16.mxu1 %v16848_v14  ;;  %v2472_v13 = vcombine.high %v18483_v12, %v18483_v12  ;;  %v16924_v14 = vld [vmem:[%s18895_s29 + $0xae0] ss:$8 sps:$4 sm:$0xff]   ;;  %v17003_v12 = vld [vmem:[%s18895_s29 + $0xbb0] ss:$8 sps:$4 sm:$0xff]  }
 0x2f3   : > { %12959 = vmatprep.subr.bf16.mxu0 %v16851_v16  ;;  %11882 = vmatprep.mubr.bf16.mxu1 %v19771_v1  ;;  %v16927_v16 = vld [vmem:[%s18895_s29 + $0x25e0] ss:$8 sps:$4 sm:$0xff]  }
 0x2f4   : > { %12989 = vmatprep.mubr.bf16.mxu0 %v2519_v41  ;;  %v16932_v41 = vld [vmem:[%s18895_s29 + $0xaf4] ss:$8 sps:$4 sm:$0xff]  }
 0x2f5   : > { %11853 = vmatpush1.bf16.msra.mxu1 %v16846_v50  ;;  %v16935_v50 = vld [vmem:[%s18895_s29 + $0x25f4] ss:$8 sps:$4 sm:$0xff]  }
 0x2f6   : > { %12960 = vmatpush1.bf16.msra.mxu0 %v16849_v18  ;;  %11854 = vmatprep.subr.bf16.mxu1 %v16854_v4  ;;  %v19835_v18 = vrot.slane %v2472_v13, %v18971_v52  ;;  %v16930_v4 = vld [vmem:[%s18895_s29 + $0xaf0] ss:$8 sps:$4 sm:$0xff]  }
 0x2f7   : > { %12961 = vmatprep.subr.bf16.mxu0 %v16857_v19  ;;  %v16933_v19 = vld [vmem:[%s18895_s29 + $0x25f0] ss:$8 sps:$4 sm:$0xff]  }
 0x2f8   : > { %v17006_v13 = vld [vmem:[%s18895_s29 + $0x26b0] ss:$8 sps:$4 sm:$0xff]  }
 0x2f9   : > { %11855 = vmatpush1.bf16.msra.mxu1 %v16852_v38  ;;  %v16939_v38 = vld [vmem:[%s18895_s29 + $0xb04] ss:$8 sps:$4 sm:$0xff]  }
 0x2fa   : > { %12962 = vmatpush1.bf16.msra.mxu0 %v16855_v21  ;;  %11856 = vmatprep.subr.bf16.mxu1 %v16860_v22  ;;  %v16942_v21 = vld [vmem:[%s18895_s29 + $0x2604] ss:$8 sps:$4 sm:$0xff]   ;;  %v2488_v22 = vcombine.high %v19835_v18, %v19835_v18 }
 0x2fb   : > { %12963 = vmatprep.subr.bf16.mxu0 %v16863_v23  ;;  %v19845_v23 = vrot.slane %v19752_v43, %v18971_v52 }
 0x2fc   : > { %v19856_v43 = vrot.slane %v2488_v22, %v18971_v52  ;;  %v17023_v22 = vld [vmem:[%s18895_s29 + $0xbe4] ss:$8 sps:$4 sm:$0xff]  }
 0x2fd   : > { %11857 = vmatpush1.bf16.msra.mxu1 %v16858_v25  ;;  %v2517_v25 = vcombine.high %v19764_v11, %v19764_v11  ;;  %v16943_v11 = vld [vmem:[%s18895_s29 + $0xb10] ss:$8 sps:$4 sm:$0xff]  }
 0x2fe   : > { %12964 = vmatpush1.bf16.msra.mxu0 %v16861_v26  ;;  %11858 = vmatprep.subr.bf16.mxu1 %v16866_v27  ;;  %v16937_v26 = vld [vmem:[%s18895_s29 + $0xb00] ss:$8 sps:$4 sm:$0xff]  }
 0x2ff   : > { %12965 = vmatprep.subr.bf16.mxu0 %v16869_v28  ;;  %v16940_v27 = vld [vmem:[%s18895_s29 + $0x2600] ss:$8 sps:$4 sm:$0xff]   ;;  %v16945_v28 = vld [vmem:[%s18895_s29 + $0xb14] ss:$8 sps:$4 sm:$0xff]  }
 0x301   : > { %11859 = vmatpush1.bf16.msra.mxu1 %v16864_v9  ;;  %v16948_v9 = vld [vmem:[%s18895_s29 + $0x2614] ss:$8 sps:$4 sm:$0xff]  }
 0x302   : > { %12966 = vmatpush1.bf16.msra.mxu0 %v16867_v63  ;;  %11860 = vmatprep.subr.bf16.mxu1 %v16872_v53  ;;  %v2177_v63 = vcombine.high %v19771_v1, %v19771_v1  ;;  %v16946_v53 = vld [vmem:[%s18895_s29 + $0x2610] ss:$8 sps:$4 sm:$0xff]   ;;  %v16954_v1 = vld [vmem:[%s18895_s29 + $0x2624] ss:$8 sps:$4 sm:$0xff]  }
 0x303   : > { %12967 = vmatprep.subr.bf16.mxu0 %v16875_v32  ;;  %v16951_v32 = vld [vmem:[%s18895_s29 + $0xb24] ss:$8 sps:$4 sm:$0xff]  }
 0x305   : > { %11861 = vmatpush1.bf16.msra.mxu1 %v16870_v56  ;;  %v16949_v56 = vld [vmem:[%s18895_s29 + $0xb20] ss:$8 sps:$4 sm:$0xff]  }
 0x306   : > { %12968 = vmatpush1.bf16.msra.mxu0 %v16873_v33  ;;  %11862 = vmatprep.subr.bf16.mxu1 %v16878_v34  ;;  %v16952_v33 = vld [vmem:[%s18895_s29 + $0x2620] ss:$8 sps:$4 sm:$0xff]   ;;  %v16957_v34 = vld [vmem:[%s18895_s29 + $0xb34] ss:$8 sps:$4 sm:$0xff]  }
 0x307   : > { %12969 = vmatprep.subr.bf16.mxu0 %v16881_v36  ;;  %v16960_v36 = vld [vmem:[%s18895_s29 + $0x2634] ss:$8 sps:$4 sm:$0xff]  }
 0x309   : > { %11863 = vmatpush1.bf16.msra.mxu1 %v16876_v39  ;;  %v16955_v39 = vld [vmem:[%s18895_s29 + $0xb30] ss:$8 sps:$4 sm:$0xff]  }
 0x30a   : > { %12970 = vmatpush1.bf16.msra.mxu0 %v16879_v40  ;;  %11864 = vmatprep.subr.bf16.mxu1 %v16884_v20  ;;  %v16958_v40 = vld [vmem:[%s18895_s29 + $0x2630] ss:$8 sps:$4 sm:$0xff]   ;;  %v16963_v20 = vld [vmem:[%s18895_s29 + $0xb44] ss:$8 sps:$4 sm:$0xff]  }
 0x30b   : > { %12971 = vmatprep.subr.bf16.mxu0 %v16887_v42  ;;  %v16966_v42 = vld [vmem:[%s18895_s29 + $0x2644] ss:$8 sps:$4 sm:$0xff]  }
 0x30d   : > { %11865 = vmatpush1.bf16.msra.mxu1 %v16882_v24  ;;  %v16961_v24 = vld [vmem:[%s18895_s29 + $0xb40] ss:$8 sps:$4 sm:$0xff]  }
 0x30e   : > { %12972 = vmatpush1.bf16.msra.mxu0 %v16885_v44  ;;  %11866 = vmatprep.subr.bf16.mxu1 %v16890_v49  ;;  %v16964_v44 = vld [vmem:[%s18895_s29 + $0x2640] ss:$8 sps:$4 sm:$0xff]   ;;  %v16969_v49 = vld [vmem:[%s18895_s29 + $0xb54] ss:$8 sps:$4 sm:$0xff]  }
 0x30f   : > { %12973 = vmatprep.subr.bf16.mxu0 %v16893_v29  ;;  %v16972_v29 = vld [vmem:[%s18895_s29 + $0x2654] ss:$8 sps:$4 sm:$0xff]  }
 0x311   : > { %11867 = vmatpush1.bf16.msra.mxu1 %v16888_v45  ;;  %v16967_v45 = vld [vmem:[%s18895_s29 + $0xb50] ss:$8 sps:$4 sm:$0xff]  }
 0x312   : > { %12974 = vmatpush1.bf16.msra.mxu0 %v16891_v46  ;;  %11868 = vmatprep.subr.bf16.mxu1 %v16896_v54  ;;  %v16970_v46 = vld [vmem:[%s18895_s29 + $0x2650] ss:$8 sps:$4 sm:$0xff]   ;;  %v16975_v54 = vld [vmem:[%s18895_s29 + $0xb64] ss:$8 sps:$4 sm:$0xff]  }
 0x313   : > { %12975 = vmatprep.subr.bf16.mxu0 %v16899_v55  ;;  %v16978_v55 = vld [vmem:[%s18895_s29 + $0x2664] ss:$8 sps:$4 sm:$0xff]  }
 0x315   : > { %11869 = vmatpush1.bf16.msra.mxu1 %v16894_v57  ;;  %v16973_v57 = vld [vmem:[%s18895_s29 + $0xb60] ss:$8 sps:$4 sm:$0xff]  }
 0x316   : > { %12976 = vmatpush1.bf16.msra.mxu0 %v16897_v35  ;;  %11870 = vmatprep.subr.bf16.mxu1 %v16902_v31  ;;  %v16976_v35 = vld [vmem:[%s18895_s29 + $0x2660] ss:$8 sps:$4 sm:$0xff]   ;;  %v16981_v31 = vld [vmem:[%s18895_s29 + $0xb74] ss:$8 sps:$4 sm:$0xff]  }
 0x317   : > { %12977 = vmatprep.subr.bf16.mxu0 %v16905_v37  ;;  %v16984_v37 = vld [vmem:[%s18895_s29 + $0x2674] ss:$8 sps:$4 sm:$0xff]  }
 0x319   : > { %11871 = vmatpush1.bf16.msra.mxu1 %v16900_v59  ;;  %v16979_v59 = vld [vmem:[%s18895_s29 + $0xb70] ss:$8 sps:$4 sm:$0xff]  }
 0x31a   : > { %12978 = vmatpush1.bf16.msra.mxu0 %v16903_v60  ;;  %11872 = vmatprep.subr.bf16.mxu1 %v16908_v17  ;;  %v16982_v60 = vld [vmem:[%s18895_s29 + $0x2670] ss:$8 sps:$4 sm:$0xff]   ;;  %v16987_v17 = vld [vmem:[%s18895_s29 + $0xb84] ss:$8 sps:$4 sm:$0xff]  }
 0x31b   : > { %12979 = vmatprep.subr.bf16.mxu0 %v16911_v61  ;;  %v16990_v61 = vld [vmem:[%s18895_s29 + $0x2684] ss:$8 sps:$4 sm:$0xff]  }
 0x31d   : > { %11873 = vmatpush1.bf16.msra.mxu1 %v16906_v62  ;;  %v16985_v62 = vld [vmem:[%s18895_s29 + $0xb80] ss:$8 sps:$4 sm:$0xff]  }
 0x31e   : > { %12980 = vmatpush1.bf16.msra.mxu0 %v16909_v0  ;;  %11874 = vmatprep.subr.bf16.mxu1 %v16914_v2  ;;  %v16988_v0 = vld [vmem:[%s18895_s29 + $0x2680] ss:$8 sps:$4 sm:$0xff]   ;;  %v16993_v2 = vld [vmem:[%s18895_s29 + $0xb94] ss:$8 sps:$4 sm:$0xff]  }
 0x31f   : > { %12981 = vmatprep.subr.bf16.mxu0 %v16917_v3  ;;  %v16996_v3 = vld [vmem:[%s18895_s29 + $0x2694] ss:$8 sps:$4 sm:$0xff]  }
 0x321   : > { %11875 = vmatpush1.bf16.msra.mxu1 %v16912_v6  ;;  %v16991_v6 = vld [vmem:[%s18895_s29 + $0xb90] ss:$8 sps:$4 sm:$0xff]  }
 0x322   : > { %12982 = vmatpush1.bf16.msra.mxu0 %v16915_v48  ;;  %11876 = vmatprep.subr.bf16.mxu1 %v16920_v51  ;;  %v16994_v48 = vld [vmem:[%s18895_s29 + $0x2690] ss:$8 sps:$4 sm:$0xff]   ;;  %v16999_v51 = vld [vmem:[%s18895_s29 + $0xba4] ss:$8 sps:$4 sm:$0xff]  }
 0x323   : > { %12983 = vmatprep.subr.bf16.mxu0 %v16923_v58  ;;  %v17002_v58 = vld [vmem:[%s18895_s29 + $0x26a4] ss:$8 sps:$4 sm:$0xff]  }
 0x325   : > { %11877 = vmatpush1.bf16.msra.mxu1 %v16918_v7  ;;  %v16997_v7 = vld [vmem:[%s18895_s29 + $0xba0] ss:$8 sps:$4 sm:$0xff]  }
 0x326   : > { %12984 = vmatpush1.bf16.msra.mxu0 %v16921_v8  ;;  %11878 = vmatprep.subr.bf16.mxu1 %v16926_v30  ;;  %v17000_v8 = vld [vmem:[%s18895_s29 + $0x26a0] ss:$8 sps:$4 sm:$0xff]   ;;  %v17005_v30 = vld [vmem:[%s18895_s29 + $0xbb4] ss:$8 sps:$4 sm:$0xff]  }
 0x327   : > { %12985 = vmatprep.subr.bf16.mxu0 %v16929_v10  ;;  %v17008_v10 = vld [vmem:[%s18895_s29 + $0x26b4] ss:$8 sps:$4 sm:$0xff]  }
 0x329   : > { %11879 = vmatpush1.bf16.msra.mxu1 %v16924_v14  ;;  %v17011_v14 = vld [vmem:[%s18895_s29 + $0xbc4] ss:$8 sps:$4 sm:$0xff]  }
 0x32a   : > { %12986 = vmatpush1.bf16.msra.mxu0 %v16927_v16  ;;  %11880 = vmatprep.subr.bf16.mxu1 %v16932_v41  ;;  %v17014_v16 = vld [vmem:[%s18895_s29 + $0x26c4] ss:$8 sps:$4 sm:$0xff]   ;;  %v17009_v41 = vld [vmem:[%s18895_s29 + $0xbc0] ss:$8 sps:$4 sm:$0xff]  }
 0x32b   : > { %12987 = vmatprep.subr.bf16.mxu0 %v16935_v50  ;;  %v17012_v50 = vld [vmem:[%s18895_s29 + $0x26c0] ss:$8 sps:$4 sm:$0xff]  }
 0x32d   : > { %11881 = vmatpush1.bf16.msra.mxu1 %v16930_v4  ;;  %v17017_v4 = vld [vmem:[%s18895_s29 + $0xbd4] ss:$8 sps:$4 sm:$0xff]  }
 0x32e   : > { %12988 = vmatpush1.bf16.msra.mxu0 %v16933_v19  ;;  %11891 = vmatprep.subr.bf16.mxu1 %v16939_v38  ;;  %v17020_v19 = vld [vmem:[%s18895_s29 + $0x26d4] ss:$8 sps:$4 sm:$0xff]   ;;  %v17015_v38 = vld [vmem:[%s18895_s29 + $0xbd0] ss:$8 sps:$4 sm:$0xff]  }
 0x32f   : > { %12998 = vmatprep.subr.bf16.mxu0 %v16942_v21  ;;  %v17018_v21 = vld [vmem:[%s18895_s29 + $0x26d0] ss:$8 sps:$4 sm:$0xff]  }
 0x330   : > { %11883 = vmatmul.mubr.bf16.vlgmr.msra.gmra.mrb[0].mxu1 %v19845_v23 }
 0x331   : > { %12990 = vmatmul.mubr.bf16.vlgmr.msra.gmra.mrb[0].mxu0 %v2517_v25  ;;  %11892 = vmatpush1.bf16.msra.mxu1 %v16937_v26  ;;  %v17026_v25 = vld [vmem:[%s18895_s29 + $0x26e4] ss:$8 sps:$4 sm:$0xff]   ;;  %v19913_v26 = vld.sshfl [vmem:[%s18914_s4 + $0x18] sm:$0xff pattern:$0x75316420] }
 0x332   : > { %12999 = vmatpush1.bf16.msra.mxu0 %v16940_v27  ;;  %11893 = vmatprep.subr.bf16.mxu1 %v16945_v28  ;;  %v17021_v27 = vld [vmem:[%s18895_s29 + $0xbe0] ss:$8 sps:$4 sm:$0xff]  }
 0x333   : > { %13000 = vmatprep.subr.bf16.mxu0 %v16948_v9  ;;  %11923 = vmatprep.mubr.bf16.mxu1 %v2177_v63  ;;  %v17024_v28 = vld [vmem:[%s18895_s29 + $0x26e0] ss:$8 sps:$4 sm:$0xff]   ;;  %v17029_v9 = vld [vmem:[%s18895_s29 + $0xbf4] ss:$8 sps:$4 sm:$0xff]  }
 0x334   : > { %13030 = vmatprep.mubr.bf16.mxu0 %v19856_v43  ;;  %v17032_v63 = vld [vmem:[%s18895_s29 + $0x26f4] ss:$8 sps:$4 sm:$0xff]  }
 0x335   : > { %11894 = vmatpush1.bf16.msra.mxu1 %v16943_v11  ;;  %v17027_v11 = vld [vmem:[%s18895_s29 + $0xbf0] ss:$8 sps:$4 sm:$0xff]  }
 0x336   : > { %13001 = vmatpush1.bf16.msra.mxu0 %v16946_v53  ;;  %11895 = vmatprep.subr.bf16.mxu1 %v16951_v32  ;;  %v17030_v53 = vld [vmem:[%s18895_s29 + $0x26f0] ss:$8 sps:$4 sm:$0xff]   ;;  %v17035_v32 = vld [vmem:[%s18895_s29 + $0xc04] ss:$8 sps:$4 sm:$0xff]  }
 0x337   : > { %13002 = vmatprep.subr.bf16.mxu0 %v16954_v1  ;;  %v17039_v1 = vld [vmem:[%s18895_s29 + $0x2704] ss:$8 sps:$4 sm:$0xff]  }
 0x339   : > { %11896 = vmatpush1.bf16.msra.mxu1 %v16949_v56  ;;  %v2193_v56 = vcombine.high %v19913_v26, %v19913_v26 }
 0x33a   : > { %13003 = vmatpush1.bf16.msra.mxu0 %v16952_v33  ;;  %11897 = vmatprep.subr.bf16.mxu1 %v16957_v34  ;;  %v2175_v33 = vcombine.high %v19845_v23, %v19845_v23  ;;  %v19929_v34 = vrot.slane %v19835_v18, %v18971_v52  ;;  %v2520_v23 = vcombine.high %v19856_v43, %v19856_v43  ;;  %v17040_v18 = vld [vmem:[%s18895_s29 + $0xc10] ss:$8 sps:$4 sm:$0xff]   ;;  %v17046_v43 = vld [vmem:[%s18895_s29 + $0xc20] ss:$8 sps:$4 sm:$0xff]  }
 0x33b   : > { %13004 = vmatprep.subr.bf16.mxu0 %v16960_v36  ;;  %v17033_v36 = vld [vmem:[%s18895_s29 + $0xc00] ss:$8 sps:$4 sm:$0xff]  }
 0x33d   : > { %11898 = vmatpush1.bf16.msra.mxu1 %v16955_v39  ;;  %v17037_v39 = vld [vmem:[%s18895_s29 + $0x2700] ss:$8 sps:$4 sm:$0xff]  }
 0x33e   : > { %13005 = vmatpush1.bf16.msra.mxu0 %v16958_v40  ;;  %11899 = vmatprep.subr.bf16.mxu1 %v16963_v20  ;;  %v17042_v40 = vld [vmem:[%s18895_s29 + $0xc14] ss:$8 sps:$4 sm:$0xff]  }
 0x33f   : > { %13006 = vmatprep.subr.bf16.mxu0 %v16966_v42  ;;  %v17045_v20 = vld [vmem:[%s18895_s29 + $0x2714] ss:$8 sps:$4 sm:$0xff]   ;;  %v19936_v42 = vrot.slane %v2193_v56, %v18971_v52  ;;  %v17120_v56 = vld [vmem:[%s18895_s29 + $0xce4] ss:$8 sps:$4 sm:$0xff]  }
 0x341   : > { %11900 = vmatpush1.bf16.msra.mxu1 %v16961_v24  ;;  %v17043_v24 = vld [vmem:[%s18895_s29 + $0x2710] ss:$8 sps:$4 sm:$0xff]  }
 0x342   : > { %13007 = vmatpush1.bf16.msra.mxu0 %v16964_v44  ;;  %11901 = vmatprep.subr.bf16.mxu1 %v16969_v49  ;;  %v17048_v44 = vld [vmem:[%s18895_s29 + $0xc24] ss:$8 sps:$4 sm:$0xff]  }
 0x343   : > { %13008 = vmatprep.subr.bf16.mxu0 %v16972_v29  ;;  %v17051_v49 = vld [vmem:[%s18895_s29 + $0x2724] ss:$8 sps:$4 sm:$0xff]   ;;  %v17049_v29 = vld [vmem:[%s18895_s29 + $0x2720] ss:$8 sps:$4 sm:$0xff]  }
 0x345   : > { %11902 = vmatpush1.bf16.msra.mxu1 %v16967_v45  ;;  %v17054_v45 = vld [vmem:[%s18895_s29 + $0xc34] ss:$8 sps:$4 sm:$0xff]  }
 0x346   : > { %13009 = vmatpush1.bf16.msra.mxu0 %v16970_v46  ;;  %11903 = vmatprep.subr.bf16.mxu1 %v16975_v54  ;;  %v17057_v46 = vld [vmem:[%s18895_s29 + $0x2734] ss:$8 sps:$4 sm:$0xff]   ;;  %v17052_v54 = vld [vmem:[%s18895_s29 + $0xc30] ss:$8 sps:$4 sm:$0xff]  }
 0x347   : > { %13010 = vmatprep.subr.bf16.mxu0 %v16978_v55  ;;  %v17055_v55 = vld [vmem:[%s18895_s29 + $0x2730] ss:$8 sps:$4 sm:$0xff]  }
 0x349   : > { %11904 = vmatpush1.bf16.msra.mxu1 %v16973_v57  ;;  %v17060_v57 = vld [vmem:[%s18895_s29 + $0xc44] ss:$8 sps:$4 sm:$0xff]  }
 0x34a   : > { %13011 = vmatpush1.bf16.msra.mxu0 %v16976_v35  ;;  %11905 = vmatprep.subr.bf16.mxu1 %v16981_v31  ;;  %v17063_v35 = vld [vmem:[%s18895_s29 + $0x2744] ss:$8 sps:$4 sm:$0xff]   ;;  %v17058_v31 = vld [vmem:[%s18895_s29 + $0xc40] ss:$8 sps:$4 sm:$0xff]  }
 0x34b   : > { %13012 = vmatprep.subr.bf16.mxu0 %v16984_v37  ;;  %v17061_v37 = vld [vmem:[%s18895_s29 + $0x2740] ss:$8 sps:$4 sm:$0xff]  }
 0x34d   : > { %11906 = vmatpush1.bf16.msra.mxu1 %v16979_v59  ;;  %v17066_v59 = vld [vmem:[%s18895_s29 + $0xc54] ss:$8 sps:$4 sm:$0xff]  }
 0x34e   : > { %13013 = vmatpush1.bf16.msra.mxu0 %v16982_v60  ;;  %11907 = vmatprep.subr.bf16.mxu1 %v16987_v17  ;;  %v17069_v60 = vld [vmem:[%s18895_s29 + $0x2754] ss:$8 sps:$4 sm:$0xff]   ;;  %v17064_v17 = vld [vmem:[%s18895_s29 + $0xc50] ss:$8 sps:$4 sm:$0xff]  }
 0x34f   : > { %13014 = vmatprep.subr.bf16.mxu0 %v16990_v61  ;;  %v17067_v61 = vld [vmem:[%s18895_s29 + $0x2750] ss:$8 sps:$4 sm:$0xff]  }
 0x351   : > { %11908 = vmatpush1.bf16.msra.mxu1 %v16985_v62  ;;  %v17072_v62 = vld [vmem:[%s18895_s29 + $0xc64] ss:$8 sps:$4 sm:$0xff]  }
 0x352   : > { %13015 = vmatpush1.bf16.msra.mxu0 %v16988_v0  ;;  %11909 = vmatprep.subr.bf16.mxu1 %v16993_v2  ;;  %v17075_v0 = vld [vmem:[%s18895_s29 + $0x2764] ss:$8 sps:$4 sm:$0xff]   ;;  %v17070_v2 = vld [vmem:[%s18895_s29 + $0xc60] ss:$8 sps:$4 sm:$0xff]  }
 0x353   : > { %13016 = vmatprep.subr.bf16.mxu0 %v16996_v3  ;;  %v17073_v3 = vld [vmem:[%s18895_s29 + $0x2760] ss:$8 sps:$4 sm:$0xff]  }
 0x355   : > { %11910 = vmatpush1.bf16.msra.mxu1 %v16991_v6  ;;  %v17078_v6 = vld [vmem:[%s18895_s29 + $0xc74] ss:$8 sps:$4 sm:$0xff]  }
 0x356   : > { %13017 = vmatpush1.bf16.msra.mxu0 %v16994_v48  ;;  %11911 = vmatprep.subr.bf16.mxu1 %v16999_v51  ;;  %v17081_v48 = vld [vmem:[%s18895_s29 + $0x2774] ss:$8 sps:$4 sm:$0xff]   ;;  %v17076_v51 = vld [vmem:[%s18895_s29 + $0xc70] ss:$8 sps:$4 sm:$0xff]  }
 0x357   : > { %13018 = vmatprep.subr.bf16.mxu0 %v17002_v58  ;;  %v17079_v58 = vld [vmem:[%s18895_s29 + $0x2770] ss:$8 sps:$4 sm:$0xff]  }
 0x359   : > { %11912 = vmatpush1.bf16.msra.mxu1 %v16997_v7  ;;  %v17084_v7 = vld [vmem:[%s18895_s29 + $0xc84] ss:$8 sps:$4 sm:$0xff]  }
 0x35a   : > { %13019 = vmatpush1.bf16.msra.mxu0 %v17000_v8  ;;  %11913 = vmatprep.subr.bf16.mxu1 %v17005_v30  ;;  %v17087_v8 = vld [vmem:[%s18895_s29 + $0x2784] ss:$8 sps:$4 sm:$0xff]   ;;  %v17082_v30 = vld [vmem:[%s18895_s29 + $0xc80] ss:$8 sps:$4 sm:$0xff]  }
 0x35b   : > { %13020 = vmatprep.subr.bf16.mxu0 %v17008_v10  ;;  %v17085_v10 = vld [vmem:[%s18895_s29 + $0x2780] ss:$8 sps:$4 sm:$0xff]  }
 0x35d   : > { %11914 = vmatpush1.bf16.msra.mxu1 %v17003_v12  ;;  %v17090_v12 = vld [vmem:[%s18895_s29 + $0xc94] ss:$8 sps:$4 sm:$0xff]  }
 0x35e   : > { %13021 = vmatpush1.bf16.msra.mxu0 %v17006_v13  ;;  %11915 = vmatprep.subr.bf16.mxu1 %v17011_v14  ;;  %v17093_v13 = vld [vmem:[%s18895_s29 + $0x2794] ss:$8 sps:$4 sm:$0xff]   ;;  %v17088_v14 = vld [vmem:[%s18895_s29 + $0xc90] ss:$8 sps:$4 sm:$0xff]  }
 0x35f   : > { %13022 = vmatprep.subr.bf16.mxu0 %v17014_v16  ;;  %v17091_v16 = vld [vmem:[%s18895_s29 + $0x2790] ss:$8 sps:$4 sm:$0xff]  }
 0x361   : > { %11916 = vmatpush1.bf16.msra.mxu1 %v17009_v41  ;;  %v17096_v41 = vld [vmem:[%s18895_s29 + $0xca4] ss:$8 sps:$4 sm:$0xff]  }
 0x362   : > { %13023 = vmatpush1.bf16.msra.mxu0 %v17012_v50  ;;  %11917 = vmatprep.subr.bf16.mxu1 %v17017_v4  ;;  %v17099_v50 = vld [vmem:[%s18895_s29 + $0x27a4] ss:$8 sps:$4 sm:$0xff]   ;;  %v17094_v4 = vld [vmem:[%s18895_s29 + $0xca0] ss:$8 sps:$4 sm:$0xff]  }
 0x363   : > { %13024 = vmatprep.subr.bf16.mxu0 %v17020_v19  ;;  %v17097_v19 = vld [vmem:[%s18895_s29 + $0x27a0] ss:$8 sps:$4 sm:$0xff]  }
 0x365   : > { %11918 = vmatpush1.bf16.msra.mxu1 %v17015_v38  ;;  %v17102_v38 = vld [vmem:[%s18895_s29 + $0xcb4] ss:$8 sps:$4 sm:$0xff]  }
 0x366   : > { %13025 = vmatpush1.bf16.msra.mxu0 %v17018_v21  ;;  %11919 = vmatprep.subr.bf16.mxu1 %v17023_v22  ;;  %v17105_v21 = vld [vmem:[%s18895_s29 + $0x27b4] ss:$8 sps:$4 sm:$0xff]   ;;  %v17100_v22 = vld [vmem:[%s18895_s29 + $0xcb0] ss:$8 sps:$4 sm:$0xff]  }
 0x367   : > { %13026 = vmatprep.subr.bf16.mxu0 %v17026_v25  ;;  %v17103_v25 = vld [vmem:[%s18895_s29 + $0x27b0] ss:$8 sps:$4 sm:$0xff]  }
 0x369   : > { %11920 = vmatpush1.bf16.msra.mxu1 %v17021_v27  ;;  %v17108_v27 = vld [vmem:[%s18895_s29 + $0xcc4] ss:$8 sps:$4 sm:$0xff]  }
 0x36a   : > { %13027 = vmatpush1.bf16.msra.mxu0 %v17024_v28  ;;  %11921 = vmatprep.subr.bf16.mxu1 %v17029_v9  ;;  %v17111_v28 = vld [vmem:[%s18895_s29 + $0x27c4] ss:$8 sps:$4 sm:$0xff]   ;;  %v17106_v9 = vld [vmem:[%s18895_s29 + $0xcc0] ss:$8 sps:$4 sm:$0xff]  }
 0x36b   : > { %13028 = vmatprep.subr.bf16.mxu0 %v17032_v63  ;;  %v17109_v63 = vld [vmem:[%s18895_s29 + $0x27c0] ss:$8 sps:$4 sm:$0xff]  }
 0x36d   : > { %11922 = vmatpush1.bf16.msra.mxu1 %v17027_v11  ;;  %v17114_v11 = vld [vmem:[%s18895_s29 + $0xcd4] ss:$8 sps:$4 sm:$0xff]  }
 0x36e   : > { %13029 = vmatpush1.bf16.msra.mxu0 %v17030_v53  ;;  %11932 = vmatprep.subr.bf16.mxu1 %v17035_v32  ;;  %v17117_v53 = vld [vmem:[%s18895_s29 + $0x27d4] ss:$8 sps:$4 sm:$0xff]   ;;  %v17112_v32 = vld [vmem:[%s18895_s29 + $0xcd0] ss:$8 sps:$4 sm:$0xff]  }
 0x36f   : > { %13039 = vmatprep.subr.bf16.mxu0 %v17039_v1  ;;  %v17115_v1 = vld [vmem:[%s18895_s29 + $0x27d0] ss:$8 sps:$4 sm:$0xff]  }
 0x370   : > { %11924 = vmatmul.mubr.bf16.vlgmr.msra.gmra.mrb[0].mxu1 %v2175_v33  ;;  %v17123_v33 = vld [vmem:[%s18895_s29 + $0x27e4] ss:$8 sps:$4 sm:$0xff]  }
 0x371   : > { %13031 = vmatmul.mubr.bf16.vlgmr.msra.gmra.mrb[0].mxu0 %v19929_v34  ;;  %11933 = vmatpush1.bf16.msra.mxu1 %v17033_v36  ;;  %v19995_v36 = vld [vmem:[%s18914_s4 + $0x50] sm:$0xff] }
 0x372   : > { %13040 = vmatpush1.bf16.msra.mxu0 %v17037_v39  ;;  %11934 = vmatprep.subr.bf16.mxu1 %v17042_v40  ;;  %v17118_v39 = vld [vmem:[%s18895_s29 + $0xce0] ss:$8 sps:$4 sm:$0xff]  }
 0x373   : > { %13041 = vmatprep.subr.bf16.mxu0 %v17045_v20  ;;  %11964 = vmatprep.mubr.bf16.mxu1 %v19936_v42  ;;  %v17121_v40 = vld [vmem:[%s18895_s29 + $0x27e0] ss:$8 sps:$4 sm:$0xff]   ;;  %v17126_v20 = vld [vmem:[%s18895_s29 + $0xcf4] ss:$8 sps:$4 sm:$0xff]  }
 0x374   : > { %13071 = vmatprep.mubr.bf16.mxu0 %v2520_v23  ;;  %v17129_v23 = vld [vmem:[%s18895_s29 + $0x27f4] ss:$8 sps:$4 sm:$0xff]  }
 0x375   : > { %11935 = vmatpush1.bf16.msra.mxu1 %v17040_v18  ;;  %v20003_v18 = vrot.slane %v19995_v36, %v18971_v52 }
 0x376   : > { %13042 = vmatpush1.bf16.msra.mxu0 %v17043_v24  ;;  %11936 = vmatprep.subr.bf16.mxu1 %v17048_v44  ;;  %v17124_v24 = vld [vmem:[%s18895_s29 + $0xcf0] ss:$8 sps:$4 sm:$0xff]  }
 0x377   : > { %13043 = vmatprep.subr.bf16.mxu0 %v17051_v49  ;;  %v17127_v44 = vld [vmem:[%s18895_s29 + $0x27f0] ss:$8 sps:$4 sm:$0xff]   ;;  %v17132_v49 = vld [vmem:[%s18895_s29 + $0xd04] ss:$8 sps:$4 sm:$0xff]  }
 0x379   : > { %11937 = vmatpush1.bf16.msra.mxu1 %v17046_v43  ;;  %v17135_v43 = vld [vmem:[%s18895_s29 + $0x2804] ss:$8 sps:$4 sm:$0xff]  }
 0x37a   : > { %13044 = vmatpush1.bf16.msra.mxu0 %v17049_v29  ;;  %11938 = vmatprep.subr.bf16.mxu1 %v17054_v45  ;;  %v2536_v29 = vcombine.high %v20003_v18, %v20003_v18  ;;  %v20013_v45 = vrot.slane %v19913_v26, %v18971_v52 }
 0x37b   : > { %13045 = vmatprep.subr.bf16.mxu0 %v17057_v46  ;;  %v2518_v46 = vcombine.high %v19929_v34, %v19929_v34  ;;  %v17136_v34 = vld [vmem:[%s18895_s29 + $0xd10] ss:$8 sps:$4 sm:$0xff]  }
 0x37c   : > { %v20024_v26 = vrot.slane %v2536_v29, %v18971_v52  ;;  %v17211_v29 = vld [vmem:[%s18895_s29 + $0x28d0] ss:$8 sps:$4 sm:$0xff]  }
 0x37d   : > { %11939 = vmatpush1.bf16.msra.mxu1 %v17052_v54  ;;  %v17130_v54 = vld [vmem:[%s18895_s29 + $0xd00] ss:$8 sps:$4 sm:$0xff]  }
 0x37e   : > { %13046 = vmatpush1.bf16.msra.mxu0 %v17055_v55  ;;  %11940 = vmatprep.subr.bf16.mxu1 %v17060_v57  ;;  %v17133_v55 = vld [vmem:[%s18895_s29 + $0x2800] ss:$8 sps:$4 sm:$0xff]   ;;  %v17138_v57 = vld [vmem:[%s18895_s29 + $0xd14] ss:$8 sps:$4 sm:$0xff]  }
 0x37f   : > { %13047 = vmatprep.subr.bf16.mxu0 %v17063_v35  ;;  %v17141_v35 = vld [vmem:[%s18895_s29 + $0x2814] ss:$8 sps:$4 sm:$0xff]  }
 0x381   : > { %11941 = vmatpush1.bf16.msra.mxu1 %v17058_v31  ;;  %v2225_v31 = vcombine.high %v19936_v42, %v19936_v42  ;;  %v17147_v42 = vld [vmem:[%s18895_s29 + $0x2824] ss:$8 sps:$4 sm:$0xff]  }
 0x382   : > { %13048 = vmatpush1.bf16.msra.mxu0 %v17061_v37  ;;  %11942 = vmatprep.subr.bf16.mxu1 %v17066_v59  ;;  %v17139_v37 = vld [vmem:[%s18895_s29 + $0x2810] ss:$8 sps:$4 sm:$0xff]   ;;  %v17144_v59 = vld [vmem:[%s18895_s29 + $0xd24] ss:$8 sps:$4 sm:$0xff]  }
 0x383   : > { %13049 = vmatprep.subr.bf16.mxu0 %v17069_v60  ;;  %v17142_v60 = vld [vmem:[%s18895_s29 + $0xd20] ss:$8 sps:$4 sm:$0xff]  }
 0x385   : > { %11943 = vmatpush1.bf16.msra.mxu1 %v17064_v17  ;;  %v17145_v17 = vld [vmem:[%s18895_s29 + $0x2820] ss:$8 sps:$4 sm:$0xff]  }
 0x386   : > { %13050 = vmatpush1.bf16.msra.mxu0 %v17067_v61  ;;  %11944 = vmatprep.subr.bf16.mxu1 %v17072_v62  ;;  %v17150_v61 = vld [vmem:[%s18895_s29 + $0xd34] ss:$8 sps:$4 sm:$0xff]  }
 0x387   : > { %13051 = vmatprep.subr.bf16.mxu0 %v17075_v0  ;;  %v17153_v62 = vld [vmem:[%s18895_s29 + $0x2834] ss:$8 sps:$4 sm:$0xff]   ;;  %v17148_v0 = vld [vmem:[%s18895_s29 + $0xd30] ss:$8 sps:$4 sm:$0xff]  }
 0x389   : > { %11945 = vmatpush1.bf16.msra.mxu1 %v17070_v2  ;;  %v17151_v2 = vld [vmem:[%s18895_s29 + $0x2830] ss:$8 sps:$4 sm:$0xff]  }
 0x38a   : > { %13052 = vmatpush1.bf16.msra.mxu0 %v17073_v3  ;;  %11946 = vmatprep.subr.bf16.mxu1 %v17078_v6  ;;  %v17156_v3 = vld [vmem:[%s18895_s29 + $0xd44] ss:$8 sps:$4 sm:$0xff]  }
 0x38b   : > { %13053 = vmatprep.subr.bf16.mxu0 %v17081_v48  ;;  %v17159_v6 = vld [vmem:[%s18895_s29 + $0x2844] ss:$8 sps:$4 sm:$0xff]   ;;  %v17154_v48 = vld [vmem:[%s18895_s29 + $0xd40] ss:$8 sps:$4 sm:$0xff]  }
 0x38d   : > { %11947 = vmatpush1.bf16.msra.mxu1 %v17076_v51  ;;  %v17157_v51 = vld [vmem:[%s18895_s29 + $0x2840] ss:$8 sps:$4 sm:$0xff]  }
 0x38e   : > { %13054 = vmatpush1.bf16.msra.mxu0 %v17079_v58  ;;  %11948 = vmatprep.subr.bf16.mxu1 %v17084_v7  ;;  %v17162_v58 = vld [vmem:[%s18895_s29 + $0xd54] ss:$8 sps:$4 sm:$0xff]  }
 0x38f   : > { %13055 = vmatprep.subr.bf16.mxu0 %v17087_v8  ;;  %v17165_v7 = vld [vmem:[%s18895_s29 + $0x2854] ss:$8 sps:$4 sm:$0xff]   ;;  %v17160_v8 = vld [vmem:[%s18895_s29 + $0xd50] ss:$8 sps:$4 sm:$0xff]  }
 0x391   : > { %11949 = vmatpush1.bf16.msra.mxu1 %v17082_v30  ;;  %v17163_v30 = vld [vmem:[%s18895_s29 + $0x2850] ss:$8 sps:$4 sm:$0xff]  }
 0x392   : > { %13056 = vmatpush1.bf16.msra.mxu0 %v17085_v10  ;;  %11950 = vmatprep.subr.bf16.mxu1 %v17090_v12  ;;  %v17168_v10 = vld [vmem:[%s18895_s29 + $0xd64] ss:$8 sps:$4 sm:$0xff]  }
 0x393   : > { %13057 = vmatprep.subr.bf16.mxu0 %v17093_v13  ;;  %v17171_v12 = vld [vmem:[%s18895_s29 + $0x2864] ss:$8 sps:$4 sm:$0xff]   ;;  %v17166_v13 = vld [vmem:[%s18895_s29 + $0xd60] ss:$8 sps:$4 sm:$0xff]  }
 0x395   : > { %11951 = vmatpush1.bf16.msra.mxu1 %v17088_v14  ;;  %v17169_v14 = vld [vmem:[%s18895_s29 + $0x2860] ss:$8 sps:$4 sm:$0xff]  }
 0x396   : > { %13058 = vmatpush1.bf16.msra.mxu0 %v17091_v16  ;;  %11952 = vmatprep.subr.bf16.mxu1 %v17096_v41  ;;  %v17174_v16 = vld [vmem:[%s18895_s29 + $0xd74] ss:$8 sps:$4 sm:$0xff]  }
 0x397   : > { %13059 = vmatprep.subr.bf16.mxu0 %v17099_v50  ;;  %v17177_v41 = vld [vmem:[%s18895_s29 + $0x2874] ss:$8 sps:$4 sm:$0xff]   ;;  %v17172_v50 = vld [vmem:[%s18895_s29 + $0xd70] ss:$8 sps:$4 sm:$0xff]  }
 0x399   : > { %11953 = vmatpush1.bf16.msra.mxu1 %v17094_v4  ;;  %v17175_v4 = vld [vmem:[%s18895_s29 + $0x2870] ss:$8 sps:$4 sm:$0xff]  }
 0x39a   : > { %13060 = vmatpush1.bf16.msra.mxu0 %v17097_v19  ;;  %11954 = vmatprep.subr.bf16.mxu1 %v17102_v38  ;;  %v17180_v19 = vld [vmem:[%s18895_s29 + $0xd84] ss:$8 sps:$4 sm:$0xff]  }
 0x39b   : > { %13061 = vmatprep.subr.bf16.mxu0 %v17105_v21  ;;  %v17183_v38 = vld [vmem:[%s18895_s29 + $0x2884] ss:$8 sps:$4 sm:$0xff]   ;;  %v17178_v21 = vld [vmem:[%s18895_s29 + $0xd80] ss:$8 sps:$4 sm:$0xff]  }
 0x39d   : > { %11955 = vmatpush1.bf16.msra.mxu1 %v17100_v22  ;;  %v17181_v22 = vld [vmem:[%s18895_s29 + $0x2880] ss:$8 sps:$4 sm:$0xff]  }
 0x39e   : > { %13062 = vmatpush1.bf16.msra.mxu0 %v17103_v25  ;;  %11956 = vmatprep.subr.bf16.mxu1 %v17108_v27  ;;  %v17186_v25 = vld [vmem:[%s18895_s29 + $0xd94] ss:$8 sps:$4 sm:$0xff]  }
 0x39f   : > { %13063 = vmatprep.subr.bf16.mxu0 %v17111_v28  ;;  %v17189_v27 = vld [vmem:[%s18895_s29 + $0x2894] ss:$8 sps:$4 sm:$0xff]   ;;  %v17184_v28 = vld [vmem:[%s18895_s29 + $0xd90] ss:$8 sps:$4 sm:$0xff]  }
 0x3a1   : > { %11957 = vmatpush1.bf16.msra.mxu1 %v17106_v9  ;;  %v17187_v9 = vld [vmem:[%s18895_s29 + $0x2890] ss:$8 sps:$4 sm:$0xff]  }
 0x3a2   : > { %13064 = vmatpush1.bf16.msra.mxu0 %v17109_v63  ;;  %11958 = vmatprep.subr.bf16.mxu1 %v17114_v11  ;;  %v17192_v63 = vld [vmem:[%s18895_s29 + $0xda4] ss:$8 sps:$4 sm:$0xff]  }
 0x3a3   : > { %13065 = vmatprep.subr.bf16.mxu0 %v17117_v53  ;;  %v17195_v11 = vld [vmem:[%s18895_s29 + $0x28a4] ss:$8 sps:$4 sm:$0xff]   ;;  %v17190_v53 = vld [vmem:[%s18895_s29 + $0xda0] ss:$8 sps:$4 sm:$0xff]  }
 0x3a5   : > { %11959 = vmatpush1.bf16.msra.mxu1 %v17112_v32  ;;  %v17193_v32 = vld [vmem:[%s18895_s29 + $0x28a0] ss:$8 sps:$4 sm:$0xff]  }
 0x3a6   : > { %13066 = vmatpush1.bf16.msra.mxu0 %v17115_v1  ;;  %11960 = vmatprep.subr.bf16.mxu1 %v17120_v56  ;;  %v17198_v1 = vld [vmem:[%s18895_s29 + $0xdb4] ss:$8 sps:$4 sm:$0xff]  }
 0x3a7   : > { %13067 = vmatprep.subr.bf16.mxu0 %v17123_v33  ;;  %v17201_v56 = vld [vmem:[%s18895_s29 + $0x28b4] ss:$8 sps:$4 sm:$0xff]   ;;  %v17196_v33 = vld [vmem:[%s18895_s29 + $0xdb0] ss:$8 sps:$4 sm:$0xff]  }
 0x3a9   : > { %11961 = vmatpush1.bf16.msra.mxu1 %v17118_v39  ;;  %v17199_v39 = vld [vmem:[%s18895_s29 + $0x28b0] ss:$8 sps:$4 sm:$0xff]  }
 0x3aa   : > { %13068 = vmatpush1.bf16.msra.mxu0 %v17121_v40  ;;  %11962 = vmatprep.subr.bf16.mxu1 %v17126_v20  ;;  %v17204_v40 = vld [vmem:[%s18895_s29 + $0xdc4] ss:$8 sps:$4 sm:$0xff]  }
 0x3ab   : > { %13069 = vmatprep.subr.bf16.mxu0 %v17129_v23  ;;  %v17207_v20 = vld [vmem:[%s18895_s29 + $0x28c4] ss:$8 sps:$4 sm:$0xff]   ;;  %v17202_v23 = vld [vmem:[%s18895_s29 + $0xdc0] ss:$8 sps:$4 sm:$0xff]  }
 0x3ad   : > { %11963 = vmatpush1.bf16.msra.mxu1 %v17124_v24  ;;  %v17205_v24 = vld [vmem:[%s18895_s29 + $0x28c0] ss:$8 sps:$4 sm:$0xff]  }
 0x3ae   : > { %13070 = vmatpush1.bf16.msra.mxu0 %v17127_v44  ;;  %11973 = vmatprep.subr.bf16.mxu1 %v17132_v49  ;;  %v17210_v44 = vld [vmem:[%s18895_s29 + $0xdd4] ss:$8 sps:$4 sm:$0xff]  }
 0x3af   : > { %13080 = vmatprep.subr.bf16.mxu0 %v17135_v43  ;;  %v17213_v49 = vld [vmem:[%s18895_s29 + $0x28d4] ss:$8 sps:$4 sm:$0xff]   ;;  %v17208_v43 = vld [vmem:[%s18895_s29 + $0xdd0] ss:$8 sps:$4 sm:$0xff]  }
 0x3b0   : > { %11965 = vmatmul.mubr.bf16.vlgmr.msra.gmra.mrb[0].mxu1 %v20013_v45 }
 0x3b1   : > { %13072 = vmatmul.mubr.bf16.vlgmr.msra.gmra.mrb[0].mxu0 %v2518_v46  ;;  %11974 = vmatpush1.bf16.msra.mxu1 %v17130_v54  ;;  %v17216_v46 = vld [vmem:[%s18895_s29 + $0xde4] ss:$8 sps:$4 sm:$0xff]  }
 0x3b2   : > { %13081 = vmatpush1.bf16.msra.mxu0 %v17133_v55  ;;  %11975 = vmatprep.subr.bf16.mxu1 %v17138_v57  ;;  %v17219_v54 = vld [vmem:[%s18895_s29 + $0x28e4] ss:$8 sps:$4 sm:$0xff]   ;;  %v18484_v55 = vld [vmem:[%s18914_s4 + $0x18] sm:$0xff] }
 0x3b3   : > { %13082 = vmatprep.subr.bf16.mxu0 %v17141_v35  ;;  %12005 = vmatprep.mubr.bf16.mxu1 %v2225_v31  ;;  %v2178_v57 = vcombine.high %v18484_v55, %v18484_v55  ;;  %v17214_v35 = vld [vmem:[%s18895_s29 + $0xde0] ss:$8 sps:$4 sm:$0xff]   ;;  %v17297_v55 = vld [vmem:[%s18895_s29 + $0x29b4] ss:$8 sps:$4 sm:$0xff]  }
 0x3b4   : > { %13112 = vmatprep.mubr.bf16.mxu0 %v20024_v26  ;;  %v17217_v31 = vld [vmem:[%s18895_s29 + $0x28e0] ss:$8 sps:$4 sm:$0xff]  }
 0x3b5   : > { %11976 = vmatpush1.bf16.msra.mxu1 %v17136_v34  ;;  %v17222_v34 = vld [vmem:[%s18895_s29 + $0xdf4] ss:$8 sps:$4 sm:$0xff]  }
 0x3b6   : > { %13083 = vmatpush1.bf16.msra.mxu0 %v17139_v37  ;;  %11977 = vmatprep.subr.bf16.mxu1 %v17144_v59  ;;  %v17225_v37 = vld [vmem:[%s18895_s29 + $0x28f4] ss:$8 sps:$4 sm:$0xff]   ;;  %v20086_v59 = vrot.slane %v2178_v57, %v18971_v52  ;;  %v17292_v57 = vld [vmem:[%s18895_s29 + $0xeb0] ss:$8 sps:$4 sm:$0xff]  }
 0x3b7   : > { %13084 = vmatprep.subr.bf16.mxu0 %v17147_v42  ;;  %v17220_v42 = vld [vmem:[%s18895_s29 + $0xdf0] ss:$8 sps:$4 sm:$0xff]  }
 0x3b9   : > { %11978 = vmatpush1.bf16.msra.mxu1 %v17142_v60  ;;  %v17223_v60 = vld [vmem:[%s18895_s29 + $0x28f0] ss:$8 sps:$4 sm:$0xff]  }
 0x3ba   : > { %13085 = vmatpush1.bf16.msra.mxu0 %v17145_v17  ;;  %11979 = vmatprep.subr.bf16.mxu1 %v17150_v61  ;;  %v17228_v17 = vld [vmem:[%s18895_s29 + $0xe04] ss:$8 sps:$4 sm:$0xff]  }
 0x3bb   : > { %13086 = vmatprep.subr.bf16.mxu0 %v17153_v62  ;;  %v17231_v61 = vld [vmem:[%s18895_s29 + $0x2904] ss:$8 sps:$4 sm:$0xff]   ;;  %v2194_v62 = vcombine.high %v20086_v59, %v20086_v59 }
 0x3bd   : > { %11980 = vmatpush1.bf16.msra.mxu1 %v17148_v0  ;;  %v2223_v0 = vcombine.high %v20013_v45, %v20013_v45  ;;  %v2568_v45 = vcombine.high %v20024_v26, %v20024_v26  ;;  %v17238_v26 = vld [vmem:[%s18895_s29 + $0xe20] ss:$8 sps:$4 sm:$0xff]  }
 0x3be   : > { %13087 = vmatpush1.bf16.msra.mxu0 %v17151_v2  ;;  %11981 = vmatprep.subr.bf16.mxu1 %v17156_v3  ;;  %v20098_v2 = vrot.slane %v20003_v18, %v18971_v52  ;;  %v17226_v3 = vld [vmem:[%s18895_s29 + $0xe00] ss:$8 sps:$4 sm:$0xff]   ;;  %v17232_v18 = vld [vmem:[%s18895_s29 + $0xe10] ss:$8 sps:$4 sm:$0xff]  }
 0x3bf   : > { %13088 = vmatprep.subr.bf16.mxu0 %v17159_v6  ;;  %v17229_v6 = vld [vmem:[%s18895_s29 + $0x2900] ss:$8 sps:$4 sm:$0xff]  }
 0x3c1   : > { %11982 = vmatpush1.bf16.msra.mxu1 %v17154_v48  ;;  %v17234_v48 = vld [vmem:[%s18895_s29 + $0xe14] ss:$8 sps:$4 sm:$0xff]  }
 0x3c2   : > { %13089 = vmatpush1.bf16.msra.mxu0 %v17157_v51  ;;  %11983 = vmatprep.subr.bf16.mxu1 %v17162_v58  ;;  %v17237_v51 = vld [vmem:[%s18895_s29 + $0x2914] ss:$8 sps:$4 sm:$0xff]   ;;  %v20105_v58 = vrot.slane %v2194_v62, %v18971_v52  ;;  %v17307_v62 = vld [vmem:[%s18895_s29 + $0x29d0] ss:$8 sps:$4 sm:$0xff]  }
 0x3c3   : > { %13090 = vmatprep.subr.bf16.mxu0 %v17165_v7  ;;  %v17235_v7 = vld [vmem:[%s18895_s29 + $0x2910] ss:$8 sps:$4 sm:$0xff]  }
 0x3c5   : > { %11984 = vmatpush1.bf16.msra.mxu1 %v17160_v8  ;;  %v17240_v8 = vld [vmem:[%s18895_s29 + $0xe24] ss:$8 sps:$4 sm:$0xff]  }
 0x3c6   : > { %13091 = vmatpush1.bf16.msra.mxu0 %v17163_v30  ;;  %11985 = vmatprep.subr.bf16.mxu1 %v17168_v10  ;;  %v17243_v30 = vld [vmem:[%s18895_s29 + $0x2924] ss:$8 sps:$4 sm:$0xff]   ;;  %v17241_v10 = vld [vmem:[%s18895_s29 + $0x2920] ss:$8 sps:$4 sm:$0xff]  }
 0x3c7   : > { %13092 = vmatprep.subr.bf16.mxu0 %v17171_v12  ;;  %v17246_v12 = vld [vmem:[%s18895_s29 + $0xe34] ss:$8 sps:$4 sm:$0xff]  }
 0x3c9   : > { %11986 = vmatpush1.bf16.msra.mxu1 %v17166_v13  ;;  %v17249_v13 = vld [vmem:[%s18895_s29 + $0x2934] ss:$8 sps:$4 sm:$0xff]  }
 0x3ca   : > { %13093 = vmatpush1.bf16.msra.mxu0 %v17169_v14  ;;  %11987 = vmatprep.subr.bf16.mxu1 %v17174_v16  ;;  %v17244_v14 = vld [vmem:[%s18895_s29 + $0xe30] ss:$8 sps:$4 sm:$0xff]  }
 0x3cb   : > { %13094 = vmatprep.subr.bf16.mxu0 %v17177_v41  ;;  %v17247_v16 = vld [vmem:[%s18895_s29 + $0x2930] ss:$8 sps:$4 sm:$0xff]   ;;  %v17252_v41 = vld [vmem:[%s18895_s29 + $0xe44] ss:$8 sps:$4 sm:$0xff]  }
 0x3cd   : > { %11988 = vmatpush1.bf16.msra.mxu1 %v17172_v50  ;;  %v17255_v50 = vld [vmem:[%s18895_s29 + $0x2944] ss:$8 sps:$4 sm:$0xff]  }
 0x3ce   : > { %13095 = vmatpush1.bf16.msra.mxu0 %v17175_v4  ;;  %11989 = vmatprep.subr.bf16.mxu1 %v17180_v19  ;;  %v17250_v4 = vld [vmem:[%s18895_s29 + $0xe40] ss:$8 sps:$4 sm:$0xff]  }
 0x3cf   : > { %13096 = vmatprep.subr.bf16.mxu0 %v17183_v38  ;;  %v17253_v19 = vld [vmem:[%s18895_s29 + $0x2940] ss:$8 sps:$4 sm:$0xff]   ;;  %v17258_v38 = vld [vmem:[%s18895_s29 + $0xe54] ss:$8 sps:$4 sm:$0xff]  }
 0x3d1   : > { %11990 = vmatpush1.bf16.msra.mxu1 %v17178_v21  ;;  %v17261_v21 = vld [vmem:[%s18895_s29 + $0x2954] ss:$8 sps:$4 sm:$0xff]  }
 0x3d2   : > { %13097 = vmatpush1.bf16.msra.mxu0 %v17181_v22  ;;  %11991 = vmatprep.subr.bf16.mxu1 %v17186_v25  ;;  %v17256_v22 = vld [vmem:[%s18895_s29 + $0xe50] ss:$8 sps:$4 sm:$0xff]  }
 0x3d3   : > { %13098 = vmatprep.subr.bf16.mxu0 %v17189_v27  ;;  %v17259_v25 = vld [vmem:[%s18895_s29 + $0x2950] ss:$8 sps:$4 sm:$0xff]   ;;  %v17264_v27 = vld [vmem:[%s18895_s29 + $0xe64] ss:$8 sps:$4 sm:$0xff]  }
 0x3d5   : > { %11992 = vmatpush1.bf16.msra.mxu1 %v17184_v28  ;;  %v17267_v28 = vld [vmem:[%s18895_s29 + $0x2964] ss:$8 sps:$4 sm:$0xff]  }
 0x3d6   : > { %13099 = vmatpush1.bf16.msra.mxu0 %v17187_v9  ;;  %11993 = vmatprep.subr.bf16.mxu1 %v17192_v63  ;;  %v17262_v9 = vld [vmem:[%s18895_s29 + $0xe60] ss:$8 sps:$4 sm:$0xff]  }
 0x3d7   : > { %13100 = vmatprep.subr.bf16.mxu0 %v17195_v11  ;;  %v17265_v63 = vld [vmem:[%s18895_s29 + $0x2960] ss:$8 sps:$4 sm:$0xff]   ;;  %v17270_v11 = vld [vmem:[%s18895_s29 + $0xe74] ss:$8 sps:$4 sm:$0xff]  }
 0x3d9   : > { %11994 = vmatpush1.bf16.msra.mxu1 %v17190_v53  ;;  %v17273_v53 = vld [vmem:[%s18895_s29 + $0x2974] ss:$8 sps:$4 sm:$0xff]  }
 0x3da   : > { %13101 = vmatpush1.bf16.msra.mxu0 %v17193_v32  ;;  %11995 = vmatprep.subr.bf16.mxu1 %v17198_v1  ;;  %v17268_v32 = vld [vmem:[%s18895_s29 + $0xe70] ss:$8 sps:$4 sm:$0xff]  }
 0x3db   : > { %13102 = vmatprep.subr.bf16.mxu0 %v17201_v56  ;;  %v17271_v1 = vld [vmem:[%s18895_s29 + $0x2970] ss:$8 sps:$4 sm:$0xff]   ;;  %v17276_v56 = vld [vmem:[%s18895_s29 + $0xe84] ss:$8 sps:$4 sm:$0xff]  }
 0x3dd   : > { %11996 = vmatpush1.bf16.msra.mxu1 %v17196_v33  ;;  %v17279_v33 = vld [vmem:[%s18895_s29 + $0x2984] ss:$8 sps:$4 sm:$0xff]  }
 0x3de   : > { %13103 = vmatpush1.bf16.msra.mxu0 %v17199_v39  ;;  %11997 = vmatprep.subr.bf16.mxu1 %v17204_v40  ;;  %v17274_v39 = vld [vmem:[%s18895_s29 + $0xe80] ss:$8 sps:$4 sm:$0xff]  }
 0x3df   : > { %13104 = vmatprep.subr.bf16.mxu0 %v17207_v20  ;;  %v17277_v40 = vld [vmem:[%s18895_s29 + $0x2980] ss:$8 sps:$4 sm:$0xff]   ;;  %v17282_v20 = vld [vmem:[%s18895_s29 + $0xe94] ss:$8 sps:$4 sm:$0xff]  }
 0x3e1   : > { %11998 = vmatpush1.bf16.msra.mxu1 %v17202_v23  ;;  %v17285_v23 = vld [vmem:[%s18895_s29 + $0x2994] ss:$8 sps:$4 sm:$0xff]  }
 0x3e2   : > { %13105 = vmatpush1.bf16.msra.mxu0 %v17205_v24  ;;  %11999 = vmatprep.subr.bf16.mxu1 %v17210_v44  ;;  %v17280_v24 = vld [vmem:[%s18895_s29 + $0xe90] ss:$8 sps:$4 sm:$0xff]  }
 0x3e3   : > { %13106 = vmatprep.subr.bf16.mxu0 %v17213_v49  ;;  %v17283_v44 = vld [vmem:[%s18895_s29 + $0x2990] ss:$8 sps:$4 sm:$0xff]   ;;  %v17288_v49 = vld [vmem:[%s18895_s29 + $0xea4] ss:$8 sps:$4 sm:$0xff]  }
 0x3e5   : > { %12000 = vmatpush1.bf16.msra.mxu1 %v17208_v43  ;;  %v17291_v43 = vld [vmem:[%s18895_s29 + $0x29a4] ss:$8 sps:$4 sm:$0xff]  }
 0x3e6   : > { %13107 = vmatpush1.bf16.msra.mxu0 %v17211_v29  ;;  %12001 = vmatprep.subr.bf16.mxu1 %v17216_v46  ;;  %v17286_v29 = vld [vmem:[%s18895_s29 + $0xea0] ss:$8 sps:$4 sm:$0xff]  }
 0x3e7   : > { %13108 = vmatprep.subr.bf16.mxu0 %v17219_v54  ;;  %v17289_v46 = vld [vmem:[%s18895_s29 + $0x29a0] ss:$8 sps:$4 sm:$0xff]   ;;  %v17294_v54 = vld [vmem:[%s18895_s29 + $0xeb4] ss:$8 sps:$4 sm:$0xff]  }
 0x3e9   : > { %12002 = vmatpush1.bf16.msra.mxu1 %v17214_v35  ;;  %v17295_v35 = vld [vmem:[%s18895_s29 + $0x29b0] ss:$8 sps:$4 sm:$0xff]  }
 0x3ea   : > { %13109 = vmatpush1.bf16.msra.mxu0 %v17217_v31  ;;  %12003 = vmatprep.subr.bf16.mxu1 %v17222_v34  ;;  %v17300_v31 = vld [vmem:[%s18895_s29 + $0xec4] ss:$8 sps:$4 sm:$0xff]  }
 0x3eb   : > { %13110 = vmatprep.subr.bf16.mxu0 %v17225_v37  ;;  %v17303_v34 = vld [vmem:[%s18895_s29 + $0x29c4] ss:$8 sps:$4 sm:$0xff]   ;;  %v17298_v37 = vld [vmem:[%s18895_s29 + $0xec0] ss:$8 sps:$4 sm:$0xff]  }
 0x3ed   : > { %12004 = vmatpush1.bf16.msra.mxu1 %v17220_v42  ;;  %v17301_v42 = vld [vmem:[%s18895_s29 + $0x29c0] ss:$8 sps:$4 sm:$0xff]  }
 0x3ee   : > { %13111 = vmatpush1.bf16.msra.mxu0 %v17223_v60  ;;  %12014 = vmatprep.subr.bf16.mxu1 %v17228_v17  ;;  %v17306_v60 = vld [vmem:[%s18895_s29 + $0xed4] ss:$8 sps:$4 sm:$0xff]  }
 0x3ef   : > { %13121 = vmatprep.subr.bf16.mxu0 %v17231_v61  ;;  %v17309_v17 = vld [vmem:[%s18895_s29 + $0x29d4] ss:$8 sps:$4 sm:$0xff]   ;;  %v17304_v61 = vld [vmem:[%s18895_s29 + $0xed0] ss:$8 sps:$4 sm:$0xff]  }
 0x3f0   : > { %12006 = vmatmul.mubr.bf16.vlgmr.msra.gmra.mrb[0].mxu1 %v2223_v0  ;;  %v17312_v0 = vld [vmem:[%s18895_s29 + $0xee4] ss:$8 sps:$4 sm:$0xff]  }
 0x3f1   : > { %13113 = vmatmul.mubr.bf16.vlgmr.msra.gmra.mrb[0].mxu0 %v20098_v2  ;;  %12015 = vmatpush1.bf16.msra.mxu1 %v17226_v3  ;;  %v17315_v3 = vld [vmem:[%s18895_s29 + $0x29e4] ss:$8 sps:$4 sm:$0xff]  }
 0x3f2   : > { %13122 = vmatpush1.bf16.msra.mxu0 %v17229_v6  ;;  %12016 = vmatprep.subr.bf16.mxu1 %v17234_v48  ;;  %v2521_v6 = vcombine.high %v19995_v36, %v19995_v36  ;;  %v17310_v48 = vld [vmem:[%s18895_s29 + $0xee0] ss:$8 sps:$4 sm:$0xff]   ;;  %v17319_v36 = vld [vmem:[%s18895_s29 + $0x29f0] ss:$8 sps:$4 sm:$0xff]  }
 0x3f3   : > { %13123 = vmatprep.subr.bf16.mxu0 %v17237_v51  ;;  %12046 = vmatprep.mubr.bf16.mxu1 %v20105_v58  ;;  %v17313_v51 = vld [vmem:[%s18895_s29 + $0x29e0] ss:$8 sps:$4 sm:$0xff]  }
 0x3f4   : > { %13153 = vmatprep.mubr.bf16.mxu0 %v2568_v45  ;;  %v17318_v45 = vld [vmem:[%s18895_s29 + $0xef4] ss:$8 sps:$4 sm:$0xff]  }
 0x3f5   : > { %12017 = vmatpush1.bf16.msra.mxu1 %v17232_v18  ;;  %v17321_v18 = vld [vmem:[%s18895_s29 + $0x29f4] ss:$8 sps:$4 sm:$0xff]  }
 0x3f6   : > { %13124 = vmatpush1.bf16.msra.mxu0 %v17235_v7  ;;  %12018 = vmatprep.subr.bf16.mxu1 %v17240_v8  ;;  %v20170_v7 = vrot.slane %v2521_v6, %v18971_v52  ;;  %v17316_v8 = vld [vmem:[%s18895_s29 + $0xef0] ss:$8 sps:$4 sm:$0xff]  }
 0x3f7   : > { %13125 = vmatprep.subr.bf16.mxu0 %v17243_v30  ;;  %v17325_v30 = vld [vmem:[%s18895_s29 + $0xf04] ss:$8 sps:$4 sm:$0xff]   ;;  %v17392_v6 = vld [vmem:[%s18895_s29 + $0x2ab0] ss:$8 sps:$4 sm:$0xff]  }
 0x3f9   : > { %12019 = vmatpush1.bf16.msra.mxu1 %v17238_v26  ;;  %v17328_v26 = vld [vmem:[%s18895_s29 + $0x2a04] ss:$8 sps:$4 sm:$0xff]  }
 0x3fa   : > { %13126 = vmatpush1.bf16.msra.mxu0 %v17241_v10  ;;  %12020 = vmatprep.subr.bf16.mxu1 %v17246_v12  ;;  %v2537_v10 = vcombine.high %v20170_v7, %v20170_v7  ;;  %v20180_v12 = vrot.slane %v20086_v59, %v18971_v52 }
 0x3fb   : > { %13127 = vmatprep.subr.bf16.mxu0 %v17249_v13  ;;  %v2566_v13 = vcombine.high %v20098_v2, %v20098_v2  ;;  %v17329_v2 = vld [vmem:[%s18895_s29 + $0xf10] ss:$8 sps:$4 sm:$0xff]  }
 0x3fc   : > { %v20191_v59 = vrot.slane %v2537_v10, %v18971_v52  ;;  %v17409_v10 = vld [vmem:[%s18895_s29 + $0xfe4] ss:$8 sps:$4 sm:$0xff]  }
 0x3fd   : > { %12021 = vmatpush1.bf16.msra.mxu1 %v17244_v14  ;;  %v17323_v14 = vld [vmem:[%s18895_s29 + $0xf00] ss:$8 sps:$4 sm:$0xff]  }
 0x3fe   : > { %13128 = vmatpush1.bf16.msra.mxu0 %v17247_v16  ;;  %12022 = vmatprep.subr.bf16.mxu1 %v17252_v41  ;;  %v17326_v16 = vld [vmem:[%s18895_s29 + $0x2a00] ss:$8 sps:$4 sm:$0xff]   ;;  %v17331_v41 = vld [vmem:[%s18895_s29 + $0xf14] ss:$8 sps:$4 sm:$0xff]  }
 0x3ff   : > { %13129 = vmatprep.subr.bf16.mxu0 %v17255_v50  ;;  %v17334_v50 = vld [vmem:[%s18895_s29 + $0x2a14] ss:$8 sps:$4 sm:$0xff]  }
 0x401   : > { %12023 = vmatpush1.bf16.msra.mxu1 %v17250_v4  ;;  %v2226_v4 = vcombine.high %v20105_v58, %v20105_v58  ;;  %v17340_v58 = vld [vmem:[%s18895_s29 + $0x2a24] ss:$8 sps:$4 sm:$0xff]  }
 0x402   : > { %13130 = vmatpush1.bf16.msra.mxu0 %v17253_v19  ;;  %12024 = vmatprep.subr.bf16.mxu1 %v17258_v38  ;;  %v17332_v19 = vld [vmem:[%s18895_s29 + $0x2a10] ss:$8 sps:$4 sm:$0xff]   ;;  %v17337_v38 = vld [vmem:[%s18895_s29 + $0xf24] ss:$8 sps:$4 sm:$0xff]  }
 0x403   : > { %13131 = vmatprep.subr.bf16.mxu0 %v17261_v21  ;;  %v17335_v21 = vld [vmem:[%s18895_s29 + $0xf20] ss:$8 sps:$4 sm:$0xff]  }
 0x405   : > { %12025 = vmatpush1.bf16.msra.mxu1 %v17256_v22  ;;  %v17338_v22 = vld [vmem:[%s18895_s29 + $0x2a20] ss:$8 sps:$4 sm:$0xff]  }
 0x406   : > { %13132 = vmatpush1.bf16.msra.mxu0 %v17259_v25  ;;  %12026 = vmatprep.subr.bf16.mxu1 %v17264_v27  ;;  %v17343_v25 = vld [vmem:[%s18895_s29 + $0xf34] ss:$8 sps:$4 sm:$0xff]  }
 0x407   : > { %13133 = vmatprep.subr.bf16.mxu0 %v17267_v28  ;;  %v17346_v27 = vld [vmem:[%s18895_s29 + $0x2a34] ss:$8 sps:$4 sm:$0xff]   ;;  %v17341_v28 = vld [vmem:[%s18895_s29 + $0xf30] ss:$8 sps:$4 sm:$0xff]  }
 0x409   : > { %12027 = vmatpush1.bf16.msra.mxu1 %v17262_v9  ;;  %v17344_v9 = vld [vmem:[%s18895_s29 + $0x2a30] ss:$8 sps:$4 sm:$0xff]  }
 0x40a   : > { %13134 = vmatpush1.bf16.msra.mxu0 %v17265_v63  ;;  %12028 = vmatprep.subr.bf16.mxu1 %v17270_v11  ;;  %v17349_v63 = vld [vmem:[%s18895_s29 + $0xf44] ss:$8 sps:$4 sm:$0xff]  }
 0x40b   : > { %13135 = vmatprep.subr.bf16.mxu0 %v17273_v53  ;;  %v17352_v11 = vld [vmem:[%s18895_s29 + $0x2a44] ss:$8 sps:$4 sm:$0xff]   ;;  %v17347_v53 = vld [vmem:[%s18895_s29 + $0xf40] ss:$8 sps:$4 sm:$0xff]  }
 0x40d   : > { %12029 = vmatpush1.bf16.msra.mxu1 %v17268_v32  ;;  %v17350_v32 = vld [vmem:[%s18895_s29 + $0x2a40] ss:$8 sps:$4 sm:$0xff]  }
 0x40e   : > { %13136 = vmatpush1.bf16.msra.mxu0 %v17271_v1  ;;  %12030 = vmatprep.subr.bf16.mxu1 %v17276_v56  ;;  %v17355_v1 = vld [vmem:[%s18895_s29 + $0xf54] ss:$8 sps:$4 sm:$0xff]  }
 0x40f   : > { %13137 = vmatprep.subr.bf16.mxu0 %v17279_v33  ;;  %v17358_v56 = vld [vmem:[%s18895_s29 + $0x2a54] ss:$8 sps:$4 sm:$0xff]   ;;  %v17353_v33 = vld [vmem:[%s18895_s29 + $0xf50] ss:$8 sps:$4 sm:$0xff]  }
 0x411   : > { %12031 = vmatpush1.bf16.msra.mxu1 %v17274_v39  ;;  %v17356_v39 = vld [vmem:[%s18895_s29 + $0x2a50] ss:$8 sps:$4 sm:$0xff]  }
 0x412   : > { %13138 = vmatpush1.bf16.msra.mxu0 %v17277_v40  ;;  %12032 = vmatprep.subr.bf16.mxu1 %v17282_v20  ;;  %v17361_v40 = vld [vmem:[%s18895_s29 + $0xf64] ss:$8 sps:$4 sm:$0xff]  }
 0x413   : > { %13139 = vmatprep.subr.bf16.mxu0 %v17285_v23  ;;  %v17364_v20 = vld [vmem:[%s18895_s29 + $0x2a64] ss:$8 sps:$4 sm:$0xff]   ;;  %v17359_v23 = vld [vmem:[%s18895_s29 + $0xf60] ss:$8 sps:$4 sm:$0xff]  }
 0x415   : > { %12033 = vmatpush1.bf16.msra.mxu1 %v17280_v24  ;;  %v17362_v24 = vld [vmem:[%s18895_s29 + $0x2a60] ss:$8 sps:$4 sm:$0xff]  }
 0x416   : > { %13140 = vmatpush1.bf16.msra.mxu0 %v17283_v44  ;;  %12034 = vmatprep.subr.bf16.mxu1 %v17288_v49  ;;  %v17367_v44 = vld [vmem:[%s18895_s29 + $0xf74] ss:$8 sps:$4 sm:$0xff]  }
 0x417   : > { %13141 = vmatprep.subr.bf16.mxu0 %v17291_v43  ;;  %v17370_v49 = vld [vmem:[%s18895_s29 + $0x2a74] ss:$8 sps:$4 sm:$0xff]   ;;  %v17365_v43 = vld [vmem:[%s18895_s29 + $0xf70] ss:$8 sps:$4 sm:$0xff]  }
 0x419   : > { %12035 = vmatpush1.bf16.msra.mxu1 %v17286_v29  ;;  %v17368_v29 = vld [vmem:[%s18895_s29 + $0x2a70] ss:$8 sps:$4 sm:$0xff]  }
 0x41a   : > { %13142 = vmatpush1.bf16.msra.mxu0 %v17289_v46  ;;  %12036 = vmatprep.subr.bf16.mxu1 %v17294_v54  ;;  %v17373_v46 = vld [vmem:[%s18895_s29 + $0xf84] ss:$8 sps:$4 sm:$0xff]  }
 0x41b   : > { %13143 = vmatprep.subr.bf16.mxu0 %v17297_v55  ;;  %v17376_v54 = vld [vmem:[%s18895_s29 + $0x2a84] ss:$8 sps:$4 sm:$0xff]   ;;  %v17371_v55 = vld [vmem:[%s18895_s29 + $0xf80] ss:$8 sps:$4 sm:$0xff]  }
 0x41d   : > { %12037 = vmatpush1.bf16.msra.mxu1 %v17292_v57  ;;  %v17374_v57 = vld [vmem:[%s18895_s29 + $0x2a80] ss:$8 sps:$4 sm:$0xff]  }
 0x41e   : > { %13144 = vmatpush1.bf16.msra.mxu0 %v17295_v35  ;;  %12038 = vmatprep.subr.bf16.mxu1 %v17300_v31  ;;  %v17379_v35 = vld [vmem:[%s18895_s29 + $0xf94] ss:$8 sps:$4 sm:$0xff]  }
 0x41f   : > { %13145 = vmatprep.subr.bf16.mxu0 %v17303_v34  ;;  %v17382_v31 = vld [vmem:[%s18895_s29 + $0x2a94] ss:$8 sps:$4 sm:$0xff]   ;;  %v17377_v34 = vld [vmem:[%s18895_s29 + $0xf90] ss:$8 sps:$4 sm:$0xff]  }
 0x421   : > { %12039 = vmatpush1.bf16.msra.mxu1 %v17298_v37  ;;  %v17380_v37 = vld [vmem:[%s18895_s29 + $0x2a90] ss:$8 sps:$4 sm:$0xff]  }
 0x422   : > { %13146 = vmatpush1.bf16.msra.mxu0 %v17301_v42  ;;  %12040 = vmatprep.subr.bf16.mxu1 %v17306_v60  ;;  %v17385_v42 = vld [vmem:[%s18895_s29 + $0xfa4] ss:$8 sps:$4 sm:$0xff]  }
 0x423   : > { %13147 = vmatprep.subr.bf16.mxu0 %v17309_v17  ;;  %v17388_v60 = vld [vmem:[%s18895_s29 + $0x2aa4] ss:$8 sps:$4 sm:$0xff]   ;;  %v17383_v17 = vld [vmem:[%s18895_s29 + $0xfa0] ss:$8 sps:$4 sm:$0xff]  }
 0x425   : > { %12041 = vmatpush1.bf16.msra.mxu1 %v17304_v61  ;;  %v17386_v61 = vld [vmem:[%s18895_s29 + $0x2aa0] ss:$8 sps:$4 sm:$0xff]  }
 0x426   : > { %13148 = vmatpush1.bf16.msra.mxu0 %v17307_v62  ;;  %12042 = vmatprep.subr.bf16.mxu1 %v17312_v0  ;;  %v17391_v62 = vld [vmem:[%s18895_s29 + $0xfb4] ss:$8 sps:$4 sm:$0xff]  }
 0x427   : > { %13149 = vmatprep.subr.bf16.mxu0 %v17315_v3  ;;  %v17394_v0 = vld [vmem:[%s18895_s29 + $0x2ab4] ss:$8 sps:$4 sm:$0xff]   ;;  %v17389_v3 = vld [vmem:[%s18895_s29 + $0xfb0] ss:$8 sps:$4 sm:$0xff]  }
 0x429   : > { %12043 = vmatpush1.bf16.msra.mxu1 %v17310_v48  ;;  %v17397_v48 = vld [vmem:[%s18895_s29 + $0xfc4] ss:$8 sps:$4 sm:$0xff]  }
 0x42a   : > { %13150 = vmatpush1.bf16.msra.mxu0 %v17313_v51  ;;  %12044 = vmatprep.subr.bf16.mxu1 %v17318_v45  ;;  %v17400_v51 = vld [vmem:[%s18895_s29 + $0x2ac4] ss:$8 sps:$4 sm:$0xff]   ;;  %v17395_v45 = vld [vmem:[%s18895_s29 + $0xfc0] ss:$8 sps:$4 sm:$0xff]  }
 0x42b   : > { %13151 = vmatprep.subr.bf16.mxu0 %v17321_v18  ;;  %v17398_v18 = vld [vmem:[%s18895_s29 + $0x2ac0] ss:$8 sps:$4 sm:$0xff]  }
 0x42d   : > { %12045 = vmatpush1.bf16.msra.mxu1 %v17316_v8  ;;  %v17403_v8 = vld [vmem:[%s18895_s29 + $0xfd4] ss:$8 sps:$4 sm:$0xff]  }
 0x42e   : > { %13152 = vmatpush1.bf16.msra.mxu0 %v17319_v36  ;;  %12055 = vmatprep.subr.bf16.mxu1 %v17325_v30  ;;  %v17406_v36 = vld [vmem:[%s18895_s29 + $0x2ad4] ss:$8 sps:$4 sm:$0xff]   ;;  %v17401_v30 = vld [vmem:[%s18895_s29 + $0xfd0] ss:$8 sps:$4 sm:$0xff]  }
 0x42f   : > { %13162 = vmatprep.subr.bf16.mxu0 %v17328_v26  ;;  %v17404_v26 = vld [vmem:[%s18895_s29 + $0x2ad0] ss:$8 sps:$4 sm:$0xff]  }
 0x430   : > { %12047 = vmatmul.mubr.bf16.vlgmr.msra.gmra.mrb[0].mxu1 %v20180_v12 }
 0x431   : > { %13154 = vmatmul.mubr.bf16.vlgmr.msra.gmra.mrb[0].mxu0 %v2566_v13  ;;  %12056 = vmatpush1.bf16.msra.mxu1 %v17323_v14  ;;  %v17412_v13 = vld [vmem:[%s18895_s29 + $0x2ae4] ss:$8 sps:$4 sm:$0xff]   ;;  %v20248_v14 = vld [vmem:[%s18914_s4 + $0x20] sm:$0xff] }
 0x432   : > { %13163 = vmatpush1.bf16.msra.mxu0 %v17326_v16  ;;  %12057 = vmatprep.subr.bf16.mxu1 %v17331_v41  ;;  %v17407_v16 = vld [vmem:[%s18895_s29 + $0xfe0] ss:$8 sps:$4 sm:$0xff]  }
 0x433   : > { %13164 = vmatprep.subr.bf16.mxu0 %v17334_v50  ;;  %12087 = vmatprep.mubr.bf16.mxu1 %v2226_v4  ;;  %v17410_v41 = vld [vmem:[%s18895_s29 + $0x2ae0] ss:$8 sps:$4 sm:$0xff]   ;;  %v17415_v50 = vld [vmem:[%s18895_s29 + $0xff4] ss:$8 sps:$4 sm:$0xff]  }
 0x434   : > { %13194 = vmatprep.mubr.bf16.mxu0 %v20191_v59  ;;  %v17418_v4 = vld [vmem:[%s18895_s29 + $0x2af4] ss:$8 sps:$4 sm:$0xff]  }
 0x435   : > { %12058 = vmatpush1.bf16.msra.mxu1 %v17329_v2  ;;  %v20256_v2 = vrot.slane %v20248_v14, %v18971_v52 }
 0x436   : > { %13165 = vmatpush1.bf16.msra.mxu0 %v17332_v19  ;;  %12059 = vmatprep.subr.bf16.mxu1 %v17337_v38  ;;  %v17413_v19 = vld [vmem:[%s18895_s29 + $0xff0] ss:$8 sps:$4 sm:$0xff]  }
 0x437   : > { %13166 = vmatprep.subr.bf16.mxu0 %v17340_v58  ;;  %v17416_v38 = vld [vmem:[%s18895_s29 + $0x2af0] ss:$8 sps:$4 sm:$0xff]   ;;  %v17421_v58 = vld [vmem:[%s18895_s29 + $0x1004] ss:$8 sps:$4 sm:$0xff]  }
 0x439   : > { %12060 = vmatpush1.bf16.msra.mxu1 %v17335_v21  ;;  %v17425_v21 = vld [vmem:[%s18895_s29 + $0x2b04] ss:$8 sps:$4 sm:$0xff]  }
 0x43a   : > { %13167 = vmatpush1.bf16.msra.mxu0 %v17338_v22  ;;  %12061 = vmatprep.subr.bf16.mxu1 %v17343_v25  ;;  %v2242_v22 = vcombine.high %v20256_v2, %v20256_v2  ;;  %v2224_v25 = vcombine.high %v20180_v12, %v20180_v12  ;;  %v2569_v12 = vcombine.high %v20191_v59, %v20191_v59  ;;  %v17432_v59 = vld [vmem:[%s18895_s29 + $0x1020] ss:$8 sps:$4 sm:$0xff]  }
 0x43b   : > { %13168 = vmatprep.subr.bf16.mxu0 %v17346_v27  ;;  %v20268_v27 = vrot.slane %v20170_v7, %v18971_v52  ;;  %v17426_v7 = vld [vmem:[%s18895_s29 + $0x1010] ss:$8 sps:$4 sm:$0xff]  }
 0x43d   : > { %12062 = vmatpush1.bf16.msra.mxu1 %v17341_v28  ;;  %v17419_v28 = vld [vmem:[%s18895_s29 + $0x1000] ss:$8 sps:$4 sm:$0xff]  }
 0x43e   : > { %13169 = vmatpush1.bf16.msra.mxu0 %v17344_v9  ;;  %12063 = vmatprep.subr.bf16.mxu1 %v17349_v63  ;;  %v17423_v9 = vld [vmem:[%s18895_s29 + $0x2b00] ss:$8 sps:$4 sm:$0xff]   ;;  %v17428_v63 = vld [vmem:[%s18895_s29 + $0x1014] ss:$8 sps:$4 sm:$0xff]  }
 0x43f   : > { %13170 = vmatprep.subr.bf16.mxu0 %v17352_v11  ;;  %v17431_v11 = vld [vmem:[%s18895_s29 + $0x2b14] ss:$8 sps:$4 sm:$0xff]  }
 0x441   : > { %12064 = vmatpush1.bf16.msra.mxu1 %v17347_v53  ;;  %v20275_v53 = vrot.slane %v2242_v22, %v18971_v52  ;;  %v17501_v22 = vld [vmem:[%s18895_s29 + $0x2bd0] ss:$8 sps:$4 sm:$0xff]  }
 0x442   : > { %13171 = vmatpush1.bf16.msra.mxu0 %v17350_v32  ;;  %12065 = vmatprep.subr.bf16.mxu1 %v17355_v1  ;;  %v17429_v32 = vld [vmem:[%s18895_s29 + $0x2b10] ss:$8 sps:$4 sm:$0xff]   ;;  %v17434_v1 = vld [vmem:[%s18895_s29 + $0x1024] ss:$8 sps:$4 sm:$0xff]  }
 0x443   : > { %13172 = vmatprep.subr.bf16.mxu0 %v17358_v56  ;;  %v17437_v56 = vld [vmem:[%s18895_s29 + $0x2b24] ss:$8 sps:$4 sm:$0xff]  }
 0x445   : > { %12066 = vmatpush1.bf16.msra.mxu1 %v17353_v33  ;;  %v17435_v33 = vld [vmem:[%s18895_s29 + $0x2b20] ss:$8 sps:$4 sm:$0xff]  }
 0x446   : > { %13173 = vmatpush1.bf16.msra.mxu0 %v17356_v39  ;;  %12067 = vmatprep.subr.bf16.mxu1 %v17361_v40  ;;  %v17440_v39 = vld [vmem:[%s18895_s29 + $0x1034] ss:$8 sps:$4 sm:$0xff]  }
 0x447   : > { %13174 = vmatprep.subr.bf16.mxu0 %v17364_v20  ;;  %v17443_v40 = vld [vmem:[%s18895_s29 + $0x2b34] ss:$8 sps:$4 sm:$0xff]   ;;  %v17438_v20 = vld [vmem:[%s18895_s29 + $0x1030] ss:$8 sps:$4 sm:$0xff]  }
 0x449   : > { %12068 = vmatpush1.bf16.msra.mxu1 %v17359_v23  ;;  %v17441_v23 = vld [vmem:[%s18895_s29 + $0x2b30] ss:$8 sps:$4 sm:$0xff]  }
 0x44a   : > { %13175 = vmatpush1.bf16.msra.mxu0 %v17362_v24  ;;  %12069 = vmatprep.subr.bf16.mxu1 %v17367_v44  ;;  %v17446_v24 = vld [vmem:[%s18895_s29 + $0x1044] ss:$8 sps:$4 sm:$0xff]  }
 0x44b   : > { %13176 = vmatprep.subr.bf16.mxu0 %v17370_v49  ;;  %v17449_v44 = vld [vmem:[%s18895_s29 + $0x2b44] ss:$8 sps:$4 sm:$0xff]   ;;  %v17444_v49 = vld [vmem:[%s18895_s29 + $0x1040] ss:$8 sps:$4 sm:$0xff]  }
 0x44d   : > { %12070 = vmatpush1.bf16.msra.mxu1 %v17365_v43  ;;  %v17447_v43 = vld [vmem:[%s18895_s29 + $0x2b40] ss:$8 sps:$4 sm:$0xff]  }
 0x44e   : > { %13177 = vmatpush1.bf16.msra.mxu0 %v17368_v29  ;;  %12071 = vmatprep.subr.bf16.mxu1 %v17373_v46  ;;  %v17452_v29 = vld [vmem:[%s18895_s29 + $0x1054] ss:$8 sps:$4 sm:$0xff]  }
 0x44f   : > { %13178 = vmatprep.subr.bf16.mxu0 %v17376_v54  ;;  %v17455_v46 = vld [vmem:[%s18895_s29 + $0x2b54] ss:$8 sps:$4 sm:$0xff]   ;;  %v17450_v54 = vld [vmem:[%s18895_s29 + $0x1050] ss:$8 sps:$4 sm:$0xff]  }
 0x451   : > { %12072 = vmatpush1.bf16.msra.mxu1 %v17371_v55  ;;  %v17453_v55 = vld [vmem:[%s18895_s29 + $0x2b50] ss:$8 sps:$4 sm:$0xff]  }
 0x452   : > { %13179 = vmatpush1.bf16.msra.mxu0 %v17374_v57  ;;  %12073 = vmatprep.subr.bf16.mxu1 %v17379_v35  ;;  %v17458_v57 = vld [vmem:[%s18895_s29 + $0x1064] ss:$8 sps:$4 sm:$0xff]  }
 0x453   : > { %13180 = vmatprep.subr.bf16.mxu0 %v17382_v31  ;;  %v17461_v35 = vld [vmem:[%s18895_s29 + $0x2b64] ss:$8 sps:$4 sm:$0xff]   ;;  %v17456_v31 = vld [vmem:[%s18895_s29 + $0x1060] ss:$8 sps:$4 sm:$0xff]  }
 0x455   : > { %12074 = vmatpush1.bf16.msra.mxu1 %v17377_v34  ;;  %v17459_v34 = vld [vmem:[%s18895_s29 + $0x2b60] ss:$8 sps:$4 sm:$0xff]  }
 0x456   : > { %13181 = vmatpush1.bf16.msra.mxu0 %v17380_v37  ;;  %12075 = vmatprep.subr.bf16.mxu1 %v17385_v42  ;;  %v17464_v37 = vld [vmem:[%s18895_s29 + $0x1074] ss:$8 sps:$4 sm:$0xff]  }
 0x457   : > { %13182 = vmatprep.subr.bf16.mxu0 %v17388_v60  ;;  %v17467_v42 = vld [vmem:[%s18895_s29 + $0x2b74] ss:$8 sps:$4 sm:$0xff]   ;;  %v17462_v60 = vld [vmem:[%s18895_s29 + $0x1070] ss:$8 sps:$4 sm:$0xff]  }
 0x459   : > { %12076 = vmatpush1.bf16.msra.mxu1 %v17383_v17  ;;  %v17465_v17 = vld [vmem:[%s18895_s29 + $0x2b70] ss:$8 sps:$4 sm:$0xff]  }
 0x45a   : > { %13183 = vmatpush1.bf16.msra.mxu0 %v17386_v61  ;;  %12077 = vmatprep.subr.bf16.mxu1 %v17391_v62  ;;  %v17470_v61 = vld [vmem:[%s18895_s29 + $0x1084] ss:$8 sps:$4 sm:$0xff]  }
 0x45b   : > { %13184 = vmatprep.subr.bf16.mxu0 %v17394_v0  ;;  %v17473_v62 = vld [vmem:[%s18895_s29 + $0x2b84] ss:$8 sps:$4 sm:$0xff]   ;;  %v17468_v0 = vld [vmem:[%s18895_s29 + $0x1080] ss:$8 sps:$4 sm:$0xff]  }
 0x45d   : > { %12078 = vmatpush1.bf16.msra.mxu1 %v17389_v3  ;;  %v17471_v3 = vld [vmem:[%s18895_s29 + $0x2b80] ss:$8 sps:$4 sm:$0xff]  }
 0x45e   : > { %13185 = vmatpush1.bf16.msra.mxu0 %v17392_v6  ;;  %12079 = vmatprep.subr.bf16.mxu1 %v17397_v48  ;;  %v17476_v6 = vld [vmem:[%s18895_s29 + $0x1094] ss:$8 sps:$4 sm:$0xff]  }
 0x45f   : > { %13186 = vmatprep.subr.bf16.mxu0 %v17400_v51  ;;  %v17479_v48 = vld [vmem:[%s18895_s29 + $0x2b94] ss:$8 sps:$4 sm:$0xff]   ;;  %v17474_v51 = vld [vmem:[%s18895_s29 + $0x1090] ss:$8 sps:$4 sm:$0xff]  }
 0x461   : > { %12080 = vmatpush1.bf16.msra.mxu1 %v17395_v45  ;;  %v17477_v45 = vld [vmem:[%s18895_s29 + $0x2b90] ss:$8 sps:$4 sm:$0xff]  }
 0x462   : > { %13187 = vmatpush1.bf16.msra.mxu0 %v17398_v18  ;;  %12081 = vmatprep.subr.bf16.mxu1 %v17403_v8  ;;  %v17482_v18 = vld [vmem:[%s18895_s29 + $0x10a4] ss:$8 sps:$4 sm:$0xff]  }
 0x463   : > { %13188 = vmatprep.subr.bf16.mxu0 %v17406_v36  ;;  %v17485_v8 = vld [vmem:[%s18895_s29 + $0x2ba4] ss:$8 sps:$4 sm:$0xff]   ;;  %v17480_v36 = vld [vmem:[%s18895_s29 + $0x10a0] ss:$8 sps:$4 sm:$0xff]  }
 0x465   : > { %12082 = vmatpush1.bf16.msra.mxu1 %v17401_v30  ;;  %v17483_v30 = vld [vmem:[%s18895_s29 + $0x2ba0] ss:$8 sps:$4 sm:$0xff]  }
 0x466   : > { %13189 = vmatpush1.bf16.msra.mxu0 %v17404_v26  ;;  %12083 = vmatprep.subr.bf16.mxu1 %v17409_v10  ;;  %v17488_v26 = vld [vmem:[%s18895_s29 + $0x10b4] ss:$8 sps:$4 sm:$0xff]  }
 0x467   : > { %13190 = vmatprep.subr.bf16.mxu0 %v17412_v13  ;;  %v17491_v10 = vld [vmem:[%s18895_s29 + $0x2bb4] ss:$8 sps:$4 sm:$0xff]   ;;  %v17486_v13 = vld [vmem:[%s18895_s29 + $0x10b0] ss:$8 sps:$4 sm:$0xff]  }
 0x469   : > { %12084 = vmatpush1.bf16.msra.mxu1 %v17407_v16  ;;  %v17489_v16 = vld [vmem:[%s18895_s29 + $0x2bb0] ss:$8 sps:$4 sm:$0xff]  }
 0x46a   : > { %13191 = vmatpush1.bf16.msra.mxu0 %v17410_v41  ;;  %12085 = vmatprep.subr.bf16.mxu1 %v17415_v50  ;;  %v17494_v41 = vld [vmem:[%s18895_s29 + $0x10c4] ss:$8 sps:$4 sm:$0xff]  }
 0x46b   : > { %13192 = vmatprep.subr.bf16.mxu0 %v17418_v4  ;;  %v17497_v50 = vld [vmem:[%s18895_s29 + $0x2bc4] ss:$8 sps:$4 sm:$0xff]   ;;  %v17492_v4 = vld [vmem:[%s18895_s29 + $0x10c0] ss:$8 sps:$4 sm:$0xff]  }
 0x46d   : > { %12086 = vmatpush1.bf16.msra.mxu1 %v17413_v19  ;;  %v17495_v19 = vld [vmem:[%s18895_s29 + $0x2bc0] ss:$8 sps:$4 sm:$0xff]  }
 0x46e   : > { %13193 = vmatpush1.bf16.msra.mxu0 %v17416_v38  ;;  %12096 = vmatprep.subr.bf16.mxu1 %v17421_v58  ;;  %v17500_v38 = vld [vmem:[%s18895_s29 + $0x10d4] ss:$8 sps:$4 sm:$0xff]  }
 0x46f   : > { %13203 = vmatprep.subr.bf16.mxu0 %v17425_v21  ;;  %v17503_v58 = vld [vmem:[%s18895_s29 + $0x2bd4] ss:$8 sps:$4 sm:$0xff]   ;;  %v17498_v21 = vld [vmem:[%s18895_s29 + $0x10d0] ss:$8 sps:$4 sm:$0xff]  }
 0x470   : > { %12088 = vmatmul.mubr.bf16.vlgmr.msra.gmra.mrb[0].mxu1 %v2224_v25  ;;  %v17506_v25 = vld [vmem:[%s18895_s29 + $0x10e4] ss:$8 sps:$4 sm:$0xff]  }
 0x471   : > { %13195 = vmatmul.mubr.bf16.vlgmr.msra.gmra.mrb[0].mxu0 %v20268_v27  ;;  %12097 = vmatpush1.bf16.msra.mxu1 %v17419_v28  ;;  %v17509_v28 = vld [vmem:[%s18895_s29 + $0x2be4] ss:$8 sps:$4 sm:$0xff]  }
 0x472   : > { %13204 = vmatpush1.bf16.msra.mxu0 %v17423_v9  ;;  %12098 = vmatprep.subr.bf16.mxu1 %v17428_v63  ;;  %v20334_v9 = vld [vmem:[%s18914_s4 + $0x58] sm:$0xff]  ;;  %v17504_v63 = vld [vmem:[%s18895_s29 + $0x10e0] ss:$8 sps:$4 sm:$0xff]  }
 0x473   : > { %13205 = vmatprep.subr.bf16.mxu0 %v17431_v11  ;;  %12128 = vmatprep.mubr.bf16.mxu1 %v20275_v53  ;;  %v17507_v11 = vld [vmem:[%s18895_s29 + $0x2be0] ss:$8 sps:$4 sm:$0xff]  }
 0x474   : > { %13235 = vmatprep.mubr.bf16.mxu0 %v2569_v12  ;;  %v17512_v12 = vld [vmem:[%s18895_s29 + $0x10f4] ss:$8 sps:$4 sm:$0xff]  }
 0x475   : > { %12099 = vmatpush1.bf16.msra.mxu1 %v17426_v7  ;;  %v17515_v7 = vld [vmem:[%s18895_s29 + $0x2bf4] ss:$8 sps:$4 sm:$0xff]  }
 0x476   : > { %13206 = vmatpush1.bf16.msra.mxu0 %v17429_v32  ;;  %12100 = vmatprep.subr.bf16.mxu1 %v17434_v1  ;;  %v20342_v32 = vrot.slane %v20334_v9, %v18971_v52  ;;  %v17510_v1 = vld [vmem:[%s18895_s29 + $0x10f0] ss:$8 sps:$4 sm:$0xff]  }
 0x477   : > { %13207 = vmatprep.subr.bf16.mxu0 %v17437_v56  ;;  %v17513_v56 = vld [vmem:[%s18895_s29 + $0x2bf0] ss:$8 sps:$4 sm:$0xff]  }
 0x479   : > { %12101 = vmatpush1.bf16.msra.mxu1 %v17432_v59  ;;  %v17518_v59 = vld [vmem:[%s18895_s29 + $0x1104] ss:$8 sps:$4 sm:$0xff]  }
 0x47a   : > { %13208 = vmatpush1.bf16.msra.mxu0 %v17435_v33  ;;  %12102 = vmatprep.subr.bf16.mxu1 %v17440_v39  ;;  %v17521_v33 = vld [vmem:[%s18895_s29 + $0x2c04] ss:$8 sps:$4 sm:$0xff]   ;;  %v2585_v39 = vcombine.high %v20342_v32, %v20342_v32 }
 0x47b   : > { %13209 = vmatprep.subr.bf16.mxu0 %v17443_v40  ;;  %v20352_v40 = vrot.slane %v20256_v2, %v18971_v52 }
 0x47c   : > { %v20363_v2 = vrot.slane %v2585_v39, %v18971_v52  ;;  %v17594_v39 = vld [vmem:[%s18895_s29 + $0x11d0] ss:$8 sps:$4 sm:$0xff]  }
 0x47d   : > { %12103 = vmatpush1.bf16.msra.mxu1 %v17438_v20  ;;  %v2567_v20 = vcombine.high %v20268_v27, %v20268_v27  ;;  %v17522_v27 = vld [vmem:[%s18895_s29 + $0x1110] ss:$8 sps:$4 sm:$0xff]  }
 0x47e   : > { %13210 = vmatpush1.bf16.msra.mxu0 %v17441_v23  ;;  %12104 = vmatprep.subr.bf16.mxu1 %v17446_v24  ;;  %v17516_v23 = vld [vmem:[%s18895_s29 + $0x1100] ss:$8 sps:$4 sm:$0xff]  }
 0x47f   : > { %13211 = vmatprep.subr.bf16.mxu0 %v17449_v44  ;;  %v17519_v24 = vld [vmem:[%s18895_s29 + $0x2c00] ss:$8 sps:$4 sm:$0xff]   ;;  %v17524_v44 = vld [vmem:[%s18895_s29 + $0x1114] ss:$8 sps:$4 sm:$0xff]  }
 0x481   : > { %12105 = vmatpush1.bf16.msra.mxu1 %v17444_v49  ;;  %v17527_v49 = vld [vmem:[%s18895_s29 + $0x2c14] ss:$8 sps:$4 sm:$0xff]  }
 0x482   : > { %13212 = vmatpush1.bf16.msra.mxu0 %v17447_v43  ;;  %12106 = vmatprep.subr.bf16.mxu1 %v17452_v29  ;;  %v2274_v43 = vcombine.high %v20275_v53, %v20275_v53  ;;  %v17525_v29 = vld [vmem:[%s18895_s29 + $0x2c10] ss:$8 sps:$4 sm:$0xff]   ;;  %v17533_v53 = vld [vmem:[%s18895_s29 + $0x2c24] ss:$8 sps:$4 sm:$0xff]  }
 0x483   : > { %13213 = vmatprep.subr.bf16.mxu0 %v17455_v46  ;;  %v17530_v46 = vld [vmem:[%s18895_s29 + $0x1124] ss:$8 sps:$4 sm:$0xff]  }
 0x485   : > { %12107 = vmatpush1.bf16.msra.mxu1 %v17450_v54  ;;  %v17528_v54 = vld [vmem:[%s18895_s29 + $0x1120] ss:$8 sps:$4 sm:$0xff]  }
 0x486   : > { %13214 = vmatpush1.bf16.msra.mxu0 %v17453_v55  ;;  %12108 = vmatprep.subr.bf16.mxu1 %v17458_v57  ;;  %v17531_v55 = vld [vmem:[%s18895_s29 + $0x2c20] ss:$8 sps:$4 sm:$0xff]   ;;  %v17536_v57 = vld [vmem:[%s18895_s29 + $0x1134] ss:$8 sps:$4 sm:$0xff]  }
 0x487   : > { %13215 = vmatprep.subr.bf16.mxu0 %v17461_v35  ;;  %v17539_v35 = vld [vmem:[%s18895_s29 + $0x2c34] ss:$8 sps:$4 sm:$0xff]  }
 0x489   : > { %12109 = vmatpush1.bf16.msra.mxu1 %v17456_v31  ;;  %v17534_v31 = vld [vmem:[%s18895_s29 + $0x1130] ss:$8 sps:$4 sm:$0xff]  }
 0x48a   : > { %13216 = vmatpush1.bf16.msra.mxu0 %v17459_v34  ;;  %12110 = vmatprep.subr.bf16.mxu1 %v17464_v37  ;;  %v17537_v34 = vld [vmem:[%s18895_s29 + $0x2c30] ss:$8 sps:$4 sm:$0xff]   ;;  %v17542_v37 = vld [vmem:[%s18895_s29 + $0x1144] ss:$8 sps:$4 sm:$0xff]  }
 0x48b   : > { %13217 = vmatprep.subr.bf16.mxu0 %v17467_v42  ;;  %v17545_v42 = vld [vmem:[%s18895_s29 + $0x2c44] ss:$8 sps:$4 sm:$0xff]  }
 0x48d   : > { %12111 = vmatpush1.bf16.msra.mxu1 %v17462_v60  ;;  %v17540_v60 = vld [vmem:[%s18895_s29 + $0x1140] ss:$8 sps:$4 sm:$0xff]  }
 0x48e   : > { %13218 = vmatpush1.bf16.msra.mxu0 %v17465_v17  ;;  %12112 = vmatprep.subr.bf16.mxu1 %v17470_v61  ;;  %v17543_v17 = vld [vmem:[%s18895_s29 + $0x2c40] ss:$8 sps:$4 sm:$0xff]   ;;  %v17548_v61 = vld [vmem:[%s18895_s29 + $0x1154] ss:$8 sps:$4 sm:$0xff]  }
 0x48f   : > { %13219 = vmatprep.subr.bf16.mxu0 %v17473_v62  ;;  %v17551_v62 = vld [vmem:[%s18895_s29 + $0x2c54] ss:$8 sps:$4 sm:$0xff]  }
 0x491   : > { %12113 = vmatpush1.bf16.msra.mxu1 %v17468_v0  ;;  %v17546_v0 = vld [vmem:[%s18895_s29 + $0x1150] ss:$8 sps:$4 sm:$0xff]  }
 0x492   : > { %13220 = vmatpush1.bf16.msra.mxu0 %v17471_v3  ;;  %12114 = vmatprep.subr.bf16.mxu1 %v17476_v6  ;;  %v17549_v3 = vld [vmem:[%s18895_s29 + $0x2c50] ss:$8 sps:$4 sm:$0xff]   ;;  %v17554_v6 = vld [vmem:[%s18895_s29 + $0x1164] ss:$8 sps:$4 sm:$0xff]  }
 0x493   : > { %13221 = vmatprep.subr.bf16.mxu0 %v17479_v48  ;;  %v17557_v48 = vld [vmem:[%s18895_s29 + $0x2c64] ss:$8 sps:$4 sm:$0xff]  }
 0x495   : > { %12115 = vmatpush1.bf16.msra.mxu1 %v17474_v51  ;;  %v17552_v51 = vld [vmem:[%s18895_s29 + $0x1160] ss:$8 sps:$4 sm:$0xff]  }
 0x496   : > { %13222 = vmatpush1.bf16.msra.mxu0 %v17477_v45  ;;  %12116 = vmatprep.subr.bf16.mxu1 %v17482_v18  ;;  %v17555_v45 = vld [vmem:[%s18895_s29 + $0x2c60] ss:$8 sps:$4 sm:$0xff]   ;;  %v17560_v18 = vld [vmem:[%s18895_s29 + $0x1174] ss:$8 sps:$4 sm:$0xff]  }
 0x497   : > { %13223 = vmatprep.subr.bf16.mxu0 %v17485_v8  ;;  %v17563_v8 = vld [vmem:[%s18895_s29 + $0x2c74] ss:$8 sps:$4 sm:$0xff]  }
 0x499   : > { %12117 = vmatpush1.bf16.msra.mxu1 %v17480_v36  ;;  %v17558_v36 = vld [vmem:[%s18895_s29 + $0x1170] ss:$8 sps:$4 sm:$0xff]  }
 0x49a   : > { %13224 = vmatpush1.bf16.msra.mxu0 %v17483_v30  ;;  %12118 = vmatprep.subr.bf16.mxu1 %v17488_v26  ;;  %v17561_v30 = vld [vmem:[%s18895_s29 + $0x2c70] ss:$8 sps:$4 sm:$0xff]   ;;  %v17566_v26 = vld [vmem:[%s18895_s29 + $0x1184] ss:$8 sps:$4 sm:$0xff]  }
 0x49b   : > { %13225 = vmatprep.subr.bf16.mxu0 %v17491_v10  ;;  %v17569_v10 = vld [vmem:[%s18895_s29 + $0x2c84] ss:$8 sps:$4 sm:$0xff]  }
 0x49d   : > { %12119 = vmatpush1.bf16.msra.mxu1 %v17486_v13  ;;  %v17564_v13 = vld [vmem:[%s18895_s29 + $0x1180] ss:$8 sps:$4 sm:$0xff]  }
 0x49e   : > { %13226 = vmatpush1.bf16.msra.mxu0 %v17489_v16  ;;  %12120 = vmatprep.subr.bf16.mxu1 %v17494_v41  ;;  %v17567_v16 = vld [vmem:[%s18895_s29 + $0x2c80] ss:$8 sps:$4 sm:$0xff]   ;;  %v17572_v41 = vld [vmem:[%s18895_s29 + $0x1194] ss:$8 sps:$4 sm:$0xff]  }
 0x49f   : > { %13227 = vmatprep.subr.bf16.mxu0 %v17497_v50  ;;  %v17575_v50 = vld [vmem:[%s18895_s29 + $0x2c94] ss:$8 sps:$4 sm:$0xff]  }
 0x4a1   : > { %12121 = vmatpush1.bf16.msra.mxu1 %v17492_v4  ;;  %v17570_v4 = vld [vmem:[%s18895_s29 + $0x1190] ss:$8 sps:$4 sm:$0xff]  }
 0x4a2   : > { %13228 = vmatpush1.bf16.msra.mxu0 %v17495_v19  ;;  %12122 = vmatprep.subr.bf16.mxu1 %v17500_v38  ;;  %v17573_v19 = vld [vmem:[%s18895_s29 + $0x2c90] ss:$8 sps:$4 sm:$0xff]   ;;  %v17578_v38 = vld [vmem:[%s18895_s29 + $0x11a4] ss:$8 sps:$4 sm:$0xff]  }
 0x4a3   : > { %13229 = vmatprep.subr.bf16.mxu0 %v17503_v58  ;;  %v17581_v58 = vld [vmem:[%s18895_s29 + $0x2ca4] ss:$8 sps:$4 sm:$0xff]  }
 0x4a5   : > { %12123 = vmatpush1.bf16.msra.mxu1 %v17498_v21  ;;  %v17576_v21 = vld [vmem:[%s18895_s29 + $0x11a0] ss:$8 sps:$4 sm:$0xff]  }
 0x4a6   : > { %13230 = vmatpush1.bf16.msra.mxu0 %v17501_v22  ;;  %12124 = vmatprep.subr.bf16.mxu1 %v17506_v25  ;;  %v17579_v22 = vld [vmem:[%s18895_s29 + $0x2ca0] ss:$8 sps:$4 sm:$0xff]   ;;  %v17584_v25 = vld [vmem:[%s18895_s29 + $0x11b4] ss:$8 sps:$4 sm:$0xff]  }
 0x4a7   : > { %13231 = vmatprep.subr.bf16.mxu0 %v17509_v28  ;;  %v17587_v28 = vld [vmem:[%s18895_s29 + $0x2cb4] ss:$8 sps:$4 sm:$0xff]  }
 0x4a9   : > { %12125 = vmatpush1.bf16.msra.mxu1 %v17504_v63  ;;  %v17582_v63 = vld [vmem:[%s18895_s29 + $0x11b0] ss:$8 sps:$4 sm:$0xff]  }
 0x4aa   : > { %13232 = vmatpush1.bf16.msra.mxu0 %v17507_v11  ;;  %12126 = vmatprep.subr.bf16.mxu1 %v17512_v12  ;;  %v17585_v11 = vld [vmem:[%s18895_s29 + $0x2cb0] ss:$8 sps:$4 sm:$0xff]   ;;  %v17590_v12 = vld [vmem:[%s18895_s29 + $0x11c4] ss:$8 sps:$4 sm:$0xff]  }
 0x4ab   : > { %13233 = vmatprep.subr.bf16.mxu0 %v17515_v7  ;;  %v17593_v7 = vld [vmem:[%s18895_s29 + $0x2cc4] ss:$8 sps:$4 sm:$0xff]  }
 0x4ad   : > { %12127 = vmatpush1.bf16.msra.mxu1 %v17510_v1  ;;  %v17588_v1 = vld [vmem:[%s18895_s29 + $0x11c0] ss:$8 sps:$4 sm:$0xff]  }
 0x4ae   : > { %13234 = vmatpush1.bf16.msra.mxu0 %v17513_v56  ;;  %12137 = vmatprep.subr.bf16.mxu1 %v17518_v59  ;;  %v17591_v56 = vld [vmem:[%s18895_s29 + $0x2cc0] ss:$8 sps:$4 sm:$0xff]   ;;  %v17596_v59 = vld [vmem:[%s18895_s29 + $0x11d4] ss:$8 sps:$4 sm:$0xff]  }
 0x4af   : > { %13244 = vmatprep.subr.bf16.mxu0 %v17521_v33  ;;  %v17599_v33 = vld [vmem:[%s18895_s29 + $0x2cd4] ss:$8 sps:$4 sm:$0xff]  }
 0x4b0   : > { %12129 = vmatmul.mubr.bf16.vlgmr.msra.gmra.mrb[0].mxu1 %v20352_v40 }
 0x4b1   : > { %13236 = vmatmul.mubr.bf16.vlgmr.msra.gmra.mrb[0].mxu0 %v2567_v20  ;;  %12138 = vmatpush1.bf16.msra.mxu1 %v17516_v23  ;;  %v17597_v20 = vld [vmem:[%s18895_s29 + $0x2cd0] ss:$8 sps:$4 sm:$0xff]   ;;  %v17602_v23 = vld [vmem:[%s18895_s29 + $0x11e4] ss:$8 sps:$4 sm:$0xff]  }
 0x4b2   : > { %13245 = vmatpush1.bf16.msra.mxu0 %v17519_v24  ;;  %12139 = vmatprep.subr.bf16.mxu1 %v17524_v44  ;;  %v17605_v24 = vld [vmem:[%s18895_s29 + $0x2ce4] ss:$8 sps:$4 sm:$0xff]   ;;  %v2227_v44 = vcombine.high %v20248_v14, %v20248_v14  ;;  %v17609_v14 = vld [vmem:[%s18895_s29 + $0x2cf0] ss:$8 sps:$4 sm:$0xff]  }
 0x4b3   : > { %13246 = vmatprep.subr.bf16.mxu0 %v17527_v49  ;;  %12169 = vmatprep.mubr.bf16.mxu1 %v2274_v43  ;;  %v17600_v49 = vld [vmem:[%s18895_s29 + $0x11e0] ss:$8 sps:$4 sm:$0xff]  }
 0x4b4   : > { %13276 = vmatprep.mubr.bf16.mxu0 %v20363_v2  ;;  %v17603_v43 = vld [vmem:[%s18895_s29 + $0x2ce0] ss:$8 sps:$4 sm:$0xff]  }
 0x4b5   : > { %12140 = vmatpush1.bf16.msra.mxu1 %v17522_v27  ;;  %v17608_v27 = vld [vmem:[%s18895_s29 + $0x11f4] ss:$8 sps:$4 sm:$0xff]  }
 0x4b6   : > { %13247 = vmatpush1.bf16.msra.mxu0 %v17525_v29  ;;  %12141 = vmatprep.subr.bf16.mxu1 %v17530_v46  ;;  %v17611_v29 = vld [vmem:[%s18895_s29 + $0x2cf4] ss:$8 sps:$4 sm:$0xff]   ;;  %v20426_v46 = vrot.slane %v2227_v44, %v18971_v52  ;;  %v17678_v44 = vld [vmem:[%s18895_s29 + $0x12b0] ss:$8 sps:$4 sm:$0xff]  }
 0x4b7   : > { %13248 = vmatprep.subr.bf16.mxu0 %v17533_v53  ;;  %v17606_v53 = vld [vmem:[%s18895_s29 + $0x11f0] ss:$8 sps:$4 sm:$0xff]  }
 0x4b9   : > { %12142 = vmatpush1.bf16.msra.mxu1 %v17528_v54  ;;  %v17614_v54 = vld [vmem:[%s18895_s29 + $0x1204] ss:$8 sps:$4 sm:$0xff]  }
 0x4ba   : > { %13249 = vmatpush1.bf16.msra.mxu0 %v17531_v55  ;;  %12143 = vmatprep.subr.bf16.mxu1 %v17536_v57  ;;  %v17617_v55 = vld [vmem:[%s18895_s29 + $0x2d04] ss:$8 sps:$4 sm:$0xff]   ;;  %v2243_v57 = vcombine.high %v20426_v46, %v20426_v46 }
 0x4bb   : > { %13250 = vmatprep.subr.bf16.mxu0 %v17539_v35  ;;  %v2272_v35 = vcombine.high %v20352_v40, %v20352_v40  ;;  %v2617_v40 = vcombine.high %v20363_v2, %v20363_v2  ;;  %v17624_v2 = vld [vmem:[%s18895_s29 + $0x1220] ss:$8 sps:$4 sm:$0xff]  }
 0x4bd   : > { %12144 = vmatpush1.bf16.msra.mxu1 %v17534_v31  ;;  %v20438_v31 = vrot.slane %v20342_v32, %v18971_v52  ;;  %v17618_v32 = vld [vmem:[%s18895_s29 + $0x1210] ss:$8 sps:$4 sm:$0xff]  }
 0x4be   : > { %13251 = vmatpush1.bf16.msra.mxu0 %v17537_v34  ;;  %12145 = vmatprep.subr.bf16.mxu1 %v17542_v37  ;;  %v17612_v34 = vld [vmem:[%s18895_s29 + $0x1200] ss:$8 sps:$4 sm:$0xff]  }
 0x4bf   : > { %13252 = vmatprep.subr.bf16.mxu0 %v17545_v42  ;;  %v17615_v37 = vld [vmem:[%s18895_s29 + $0x2d00] ss:$8 sps:$4 sm:$0xff]   ;;  %v17620_v42 = vld [vmem:[%s18895_s29 + $0x1214] ss:$8 sps:$4 sm:$0xff]  }
 0x4c1   : > { %12146 = vmatpush1.bf16.msra.mxu1 %v17540_v60  ;;  %v17623_v60 = vld [vmem:[%s18895_s29 + $0x2d14] ss:$8 sps:$4 sm:$0xff]  }
 0x4c2   : > { %13253 = vmatpush1.bf16.msra.mxu0 %v17543_v17  ;;  %12147 = vmatprep.subr.bf16.mxu1 %v17548_v61  ;;  %v20445_v17 = vrot.slane %v2243_v57, %v18971_v52  ;;  %v17621_v61 = vld [vmem:[%s18895_s29 + $0x2d10] ss:$8 sps:$4 sm:$0xff]  }
 0x4c3   : > { %13254 = vmatprep.subr.bf16.mxu0 %v17551_v62  ;;  %v17626_v62 = vld [vmem:[%s18895_s29 + $0x1224] ss:$8 sps:$4 sm:$0xff]   ;;  %v17693_v57 = vld [vmem:[%s18895_s29 + $0x2dd0] ss:$8 sps:$4 sm:$0xff]  }
 0x4c5   : > { %12148 = vmatpush1.bf16.msra.mxu1 %v17546_v0  ;;  %v17629_v0 = vld [vmem:[%s18895_s29 + $0x2d24] ss:$8 sps:$4 sm:$0xff]  }
 0x4c6   : > { %13255 = vmatpush1.bf16.msra.mxu0 %v17549_v3  ;;  %12149 = vmatprep.subr.bf16.mxu1 %v17554_v6  ;;  %v17627_v3 = vld [vmem:[%s18895_s29 + $0x2d20] ss:$8 sps:$4 sm:$0xff]   ;;  %v17632_v6 = vld [vmem:[%s18895_s29 + $0x1234] ss:$8 sps:$4 sm:$0xff]  }
 0x4c7   : > { %13256 = vmatprep.subr.bf16.mxu0 %v17557_v48  ;;  %v17635_v48 = vld [vmem:[%s18895_s29 + $0x2d34] ss:$8 sps:$4 sm:$0xff]  }
 0x4c9   : > { %12150 = vmatpush1.bf16.msra.mxu1 %v17552_v51  ;;  %v17630_v51 = vld [vmem:[%s18895_s29 + $0x1230] ss:$8 sps:$4 sm:$0xff]  }
 0x4ca   : > { %13257 = vmatpush1.bf16.msra.mxu0 %v17555_v45  ;;  %12151 = vmatprep.subr.bf16.mxu1 %v17560_v18  ;;  %v17633_v45 = vld [vmem:[%s18895_s29 + $0x2d30] ss:$8 sps:$4 sm:$0xff]   ;;  %v17638_v18 = vld [vmem:[%s18895_s29 + $0x1244] ss:$8 sps:$4 sm:$0xff]  }
 0x4cb   : > { %13258 = vmatprep.subr.bf16.mxu0 %v17563_v8  ;;  %v17641_v8 = vld [vmem:[%s18895_s29 + $0x2d44] ss:$8 sps:$4 sm:$0xff]  }
 0x4cd   : > { %12152 = vmatpush1.bf16.msra.mxu1 %v17558_v36  ;;  %v17636_v36 = vld [vmem:[%s18895_s29 + $0x1240] ss:$8 sps:$4 sm:$0xff]  }
 0x4ce   : > { %13259 = vmatpush1.bf16.msra.mxu0 %v17561_v30  ;;  %12153 = vmatprep.subr.bf16.mxu1 %v17566_v26  ;;  %v17639_v30 = vld [vmem:[%s18895_s29 + $0x2d40] ss:$8 sps:$4 sm:$0xff]   ;;  %v17644_v26 = vld [vmem:[%s18895_s29 + $0x1254] ss:$8 sps:$4 sm:$0xff]  }
 0x4cf   : > { %13260 = vmatprep.subr.bf16.mxu0 %v17569_v10  ;;  %v17647_v10 = vld [vmem:[%s18895_s29 + $0x2d54] ss:$8 sps:$4 sm:$0xff]  }
 0x4d1   : > { %12154 = vmatpush1.bf16.msra.mxu1 %v17564_v13  ;;  %v17642_v13 = vld [vmem:[%s18895_s29 + $0x1250] ss:$8 sps:$4 sm:$0xff]  }
 0x4d2   : > { %13261 = vmatpush1.bf16.msra.mxu0 %v17567_v16  ;;  %12155 = vmatprep.subr.bf16.mxu1 %v17572_v41  ;;  %v17645_v16 = vld [vmem:[%s18895_s29 + $0x2d50] ss:$8 sps:$4 sm:$0xff]   ;;  %v17650_v41 = vld [vmem:[%s18895_s29 + $0x1264] ss:$8 sps:$4 sm:$0xff]  }
 0x4d3   : > { %13262 = vmatprep.subr.bf16.mxu0 %v17575_v50  ;;  %v17653_v50 = vld [vmem:[%s18895_s29 + $0x2d64] ss:$8 sps:$4 sm:$0xff]  }
 0x4d5   : > { %12156 = vmatpush1.bf16.msra.mxu1 %v17570_v4  ;;  %v17648_v4 = vld [vmem:[%s18895_s29 + $0x1260] ss:$8 sps:$4 sm:$0xff]  }
 0x4d6   : > { %13263 = vmatpush1.bf16.msra.mxu0 %v17573_v19  ;;  %12157 = vmatprep.subr.bf16.mxu1 %v17578_v38  ;;  %v17651_v19 = vld [vmem:[%s18895_s29 + $0x2d60] ss:$8 sps:$4 sm:$0xff]   ;;  %v17656_v38 = vld [vmem:[%s18895_s29 + $0x1274] ss:$8 sps:$4 sm:$0xff]  }
 0x4d7   : > { %13264 = vmatprep.subr.bf16.mxu0 %v17581_v58  ;;  %v17659_v58 = vld [vmem:[%s18895_s29 + $0x2d74] ss:$8 sps:$4 sm:$0xff]  }
 0x4d9   : > { %12158 = vmatpush1.bf16.msra.mxu1 %v17576_v21  ;;  %v17654_v21 = vld [vmem:[%s18895_s29 + $0x1270] ss:$8 sps:$4 sm:$0xff]  }
 0x4da   : > { %13265 = vmatpush1.bf16.msra.mxu0 %v17579_v22  ;;  %12159 = vmatprep.subr.bf16.mxu1 %v17584_v25  ;;  %v17657_v22 = vld [vmem:[%s18895_s29 + $0x2d70] ss:$8 sps:$4 sm:$0xff]   ;;  %v17662_v25 = vld [vmem:[%s18895_s29 + $0x1284] ss:$8 sps:$4 sm:$0xff]  }
 0x4db   : > { %13266 = vmatprep.subr.bf16.mxu0 %v17587_v28  ;;  %v17665_v28 = vld [vmem:[%s18895_s29 + $0x2d84] ss:$8 sps:$4 sm:$0xff]  }
 0x4dd   : > { %12160 = vmatpush1.bf16.msra.mxu1 %v17582_v63  ;;  %v17660_v63 = vld [vmem:[%s18895_s29 + $0x1280] ss:$8 sps:$4 sm:$0xff]  }
 0x4de   : > { %13267 = vmatpush1.bf16.msra.mxu0 %v17585_v11  ;;  %12161 = vmatprep.subr.bf16.mxu1 %v17590_v12  ;;  %v17663_v11 = vld [vmem:[%s18895_s29 + $0x2d80] ss:$8 sps:$4 sm:$0xff]   ;;  %v17668_v12 = vld [vmem:[%s18895_s29 + $0x1294] ss:$8 sps:$4 sm:$0xff]  }
 0x4df   : > { %13268 = vmatprep.subr.bf16.mxu0 %v17593_v7  ;;  %v17671_v7 = vld [vmem:[%s18895_s29 + $0x2d94] ss:$8 sps:$4 sm:$0xff]  }
 0x4e1   : > { %12162 = vmatpush1.bf16.msra.mxu1 %v17588_v1  ;;  %v17666_v1 = vld [vmem:[%s18895_s29 + $0x1290] ss:$8 sps:$4 sm:$0xff]  }
 0x4e2   : > { %13269 = vmatpush1.bf16.msra.mxu0 %v17591_v56  ;;  %12163 = vmatprep.subr.bf16.mxu1 %v17596_v59  ;;  %v17669_v56 = vld [vmem:[%s18895_s29 + $0x2d90] ss:$8 sps:$4 sm:$0xff]   ;;  %v17674_v59 = vld [vmem:[%s18895_s29 + $0x12a4] ss:$8 sps:$4 sm:$0xff]  }
 0x4e3   : > { %13270 = vmatprep.subr.bf16.mxu0 %v17599_v33  ;;  %v17677_v33 = vld [vmem:[%s18895_s29 + $0x2da4] ss:$8 sps:$4 sm:$0xff]  }
 0x4e5   : > { %12164 = vmatpush1.bf16.msra.mxu1 %v17594_v39  ;;  %v17672_v39 = vld [vmem:[%s18895_s29 + $0x12a0] ss:$8 sps:$4 sm:$0xff]  }
 0x4e6   : > { %13271 = vmatpush1.bf16.msra.mxu0 %v17597_v20  ;;  %12165 = vmatprep.subr.bf16.mxu1 %v17602_v23  ;;  %v17675_v20 = vld [vmem:[%s18895_s29 + $0x2da0] ss:$8 sps:$4 sm:$0xff]   ;;  %v17680_v23 = vld [vmem:[%s18895_s29 + $0x12b4] ss:$8 sps:$4 sm:$0xff]  }
 0x4e7   : > { %13272 = vmatprep.subr.bf16.mxu0 %v17605_v24  ;;  %v17683_v24 = vld [vmem:[%s18895_s29 + $0x2db4] ss:$8 sps:$4 sm:$0xff]  }
 0x4e9   : > { %12166 = vmatpush1.bf16.msra.mxu1 %v17600_v49  ;;  %v17681_v49 = vld [vmem:[%s18895_s29 + $0x2db0] ss:$8 sps:$4 sm:$0xff]  }
 0x4ea   : > { %13273 = vmatpush1.bf16.msra.mxu0 %v17603_v43  ;;  %12167 = vmatprep.subr.bf16.mxu1 %v17608_v27  ;;  %v17686_v43 = vld [vmem:[%s18895_s29 + $0x12c4] ss:$8 sps:$4 sm:$0xff]  }
 0x4eb   : > { %13274 = vmatprep.subr.bf16.mxu0 %v17611_v29  ;;  %v17689_v27 = vld [vmem:[%s18895_s29 + $0x2dc4] ss:$8 sps:$4 sm:$0xff]   ;;  %v17684_v29 = vld [vmem:[%s18895_s29 + $0x12c0] ss:$8 sps:$4 sm:$0xff]  }
 0x4ed   : > { %12168 = vmatpush1.bf16.msra.mxu1 %v17606_v53  ;;  %v17687_v53 = vld [vmem:[%s18895_s29 + $0x2dc0] ss:$8 sps:$4 sm:$0xff]  }
 0x4ee   : > { %13275 = vmatpush1.bf16.msra.mxu0 %v17609_v14  ;;  %12178 = vmatprep.subr.bf16.mxu1 %v17614_v54  ;;  %v17692_v14 = vld [vmem:[%s18895_s29 + $0x12d4] ss:$8 sps:$4 sm:$0xff]  }
 0x4ef   : > { %13285 = vmatprep.subr.bf16.mxu0 %v17617_v55  ;;  %v17695_v54 = vld [vmem:[%s18895_s29 + $0x2dd4] ss:$8 sps:$4 sm:$0xff]   ;;  %v17690_v55 = vld [vmem:[%s18895_s29 + $0x12d0] ss:$8 sps:$4 sm:$0xff]  }
 0x4f0   : > { %12170 = vmatmul.mubr.bf16.vlgmr.msra.gmra.mrb[0].mxu1 %v2272_v35  ;;  %v17698_v35 = vld [vmem:[%s18895_s29 + $0x12e4] ss:$8 sps:$4 sm:$0xff]  }
 0x4f1   : > { %13277 = vmatmul.mubr.bf16.vlgmr.msra.gmra.mrb[0].mxu0 %v20438_v31  ;;  %12179 = vmatpush1.bf16.msra.mxu1 %v17612_v34  ;;  %v17701_v34 = vld [vmem:[%s18895_s29 + $0x2de4] ss:$8 sps:$4 sm:$0xff]  }
 0x4f2   : > { %13286 = vmatpush1.bf16.msra.mxu0 %v17615_v37  ;;  %12180 = vmatprep.subr.bf16.mxu1 %v17620_v42  ;;  %v2570_v37 = vcombine.high %v20334_v9, %v20334_v9  ;;  %v17696_v42 = vld [vmem:[%s18895_s29 + $0x12e0] ss:$8 sps:$4 sm:$0xff]   ;;  %v17705_v9 = vld [vmem:[%s18895_s29 + $0x2df0] ss:$8 sps:$4 sm:$0xff]  }
 0x4f3   : > { %13287 = vmatprep.subr.bf16.mxu0 %v17623_v60  ;;  %12210 = vmatprep.mubr.bf16.mxu1 %v20445_v17  ;;  %v17699_v60 = vld [vmem:[%s18895_s29 + $0x2de0] ss:$8 sps:$4 sm:$0xff]  }
 0x4f4   : > { %13317 = vmatprep.mubr.bf16.mxu0 %v2617_v40  ;;  %v17704_v40 = vld [vmem:[%s18895_s29 + $0x12f4] ss:$8 sps:$4 sm:$0xff]  }
 0x4f5   : > { %12181 = vmatpush1.bf16.msra.mxu1 %v17618_v32  ;;  %v17707_v32 = vld [vmem:[%s18895_s29 + $0x2df4] ss:$8 sps:$4 sm:$0xff]  }
 0x4f6   : > { %13288 = vmatpush1.bf16.msra.mxu0 %v17621_v61  ;;  %12182 = vmatprep.subr.bf16.mxu1 %v17626_v62  ;;  %v20510_v61 = vrot.slane %v2570_v37, %v18971_v52  ;;  %v17702_v62 = vld [vmem:[%s18895_s29 + $0x12f0] ss:$8 sps:$4 sm:$0xff]  }
 0x4f7   : > { %13289 = vmatprep.subr.bf16.mxu0 %v17629_v0  ;;  %v17711_v0 = vld [vmem:[%s18895_s29 + $0x1304] ss:$8 sps:$4 sm:$0xff]   ;;  %v17778_v37 = vld [vmem:[%s18895_s29 + $0x2eb0] ss:$8 sps:$4 sm:$0xff]  }
 0x4f9   : > { %12183 = vmatpush1.bf16.msra.mxu1 %v17624_v2  ;;  %v17714_v2 = vld [vmem:[%s18895_s29 + $0x2e04] ss:$8 sps:$4 sm:$0xff]  }
 0x4fa   : > { %13290 = vmatpush1.bf16.msra.mxu0 %v17627_v3  ;;  %12184 = vmatprep.subr.bf16.mxu1 %v17632_v6  ;;  %v2586_v3 = vcombine.high %v20510_v61, %v20510_v61  ;;  %v20520_v6 = vrot.slane %v20426_v46, %v18971_v52 }
 0x4fb   : > { %13291 = vmatprep.subr.bf16.mxu0 %v17635_v48  ;;  %v2615_v48 = vcombine.high %v20438_v31, %v20438_v31  ;;  %v17715_v31 = vld [vmem:[%s18895_s29 + $0x1310] ss:$8 sps:$4 sm:$0xff]  }
 0x4fc   : > { %v20531_v46 = vrot.slane %v2586_v3, %v18971_v52  ;;  %v17795_v3 = vld [vmem:[%s18895_s29 + $0x13e4] ss:$8 sps:$4 sm:$0xff]  }
 0x4fd   : > { %12185 = vmatpush1.bf16.msra.mxu1 %v17630_v51  ;;  %v17709_v51 = vld [vmem:[%s18895_s29 + $0x1300] ss:$8 sps:$4 sm:$0xff]  }
 0x4fe   : > { %13292 = vmatpush1.bf16.msra.mxu0 %v17633_v45  ;;  %12186 = vmatprep.subr.bf16.mxu1 %v17638_v18  ;;  %v17712_v45 = vld [vmem:[%s18895_s29 + $0x2e00] ss:$8 sps:$4 sm:$0xff]   ;;  %v17717_v18 = vld [vmem:[%s18895_s29 + $0x1314] ss:$8 sps:$4 sm:$0xff]  }
 0x4ff   : > { %13293 = vmatprep.subr.bf16.mxu0 %v17641_v8  ;;  %v17720_v8 = vld [vmem:[%s18895_s29 + $0x2e14] ss:$8 sps:$4 sm:$0xff]  }
 0x501   : > { %12187 = vmatpush1.bf16.msra.mxu1 %v17636_v36  ;;  %v2275_v36 = vcombine.high %v20445_v17, %v20445_v17  ;;  %v17726_v17 = vld [vmem:[%s18895_s29 + $0x2e24] ss:$8 sps:$4 sm:$0xff]  }
 0x502   : > { %13294 = vmatpush1.bf16.msra.mxu0 %v17639_v30  ;;  %12188 = vmatprep.subr.bf16.mxu1 %v17644_v26  ;;  %v17718_v30 = vld [vmem:[%s18895_s29 + $0x2e10] ss:$8 sps:$4 sm:$0xff]   ;;  %v17723_v26 = vld [vmem:[%s18895_s29 + $0x1324] ss:$8 sps:$4 sm:$0xff]  }
 0x503   : > { %13295 = vmatprep.subr.bf16.mxu0 %v17647_v10  ;;  %v17721_v10 = vld [vmem:[%s18895_s29 + $0x1320] ss:$8 sps:$4 sm:$0xff]  }
 0x505   : > { %12189 = vmatpush1.bf16.msra.mxu1 %v17642_v13  ;;  %v17724_v13 = vld [vmem:[%s18895_s29 + $0x2e20] ss:$8 sps:$4 sm:$0xff]  }
 0x506   : > { %13296 = vmatpush1.bf16.msra.mxu0 %v17645_v16  ;;  %12190 = vmatprep.subr.bf16.mxu1 %v17650_v41  ;;  %v17729_v16 = vld [vmem:[%s18895_s29 + $0x1334] ss:$8 sps:$4 sm:$0xff]  }
 0x507   : > { %13297 = vmatprep.subr.bf16.mxu0 %v17653_v50  ;;  %v17732_v41 = vld [vmem:[%s18895_s29 + $0x2e34] ss:$8 sps:$4 sm:$0xff]   ;;  %v17727_v50 = vld [vmem:[%s18895_s29 + $0x1330] ss:$8 sps:$4 sm:$0xff]  }
 0x509   : > { %12191 = vmatpush1.bf16.msra.mxu1 %v17648_v4  ;;  %v17730_v4 = vld [vmem:[%s18895_s29 + $0x2e30] ss:$8 sps:$4 sm:$0xff]  }
 0x50a   : > { %13298 = vmatpush1.bf16.msra.mxu0 %v17651_v19  ;;  %12192 = vmatprep.subr.bf16.mxu1 %v17656_v38  ;;  %v17735_v19 = vld [vmem:[%s18895_s29 + $0x1344] ss:$8 sps:$4 sm:$0xff]  }
 0x50b   : > { %13299 = vmatprep.subr.bf16.mxu0 %v17659_v58  ;;  %v17738_v38 = vld [vmem:[%s18895_s29 + $0x2e44] ss:$8 sps:$4 sm:$0xff]   ;;  %v17733_v58 = vld [vmem:[%s18895_s29 + $0x1340] ss:$8 sps:$4 sm:$0xff]  }
 0x50d   : > { %12193 = vmatpush1.bf16.msra.mxu1 %v17654_v21  ;;  %v17736_v21 = vld [vmem:[%s18895_s29 + $0x2e40] ss:$8 sps:$4 sm:$0xff]  }
 0x50e   : > { %13300 = vmatpush1.bf16.msra.mxu0 %v17657_v22  ;;  %12194 = vmatprep.subr.bf16.mxu1 %v17662_v25  ;;  %v17741_v22 = vld [vmem:[%s18895_s29 + $0x1354] ss:$8 sps:$4 sm:$0xff]  }
 0x50f   : > { %13301 = vmatprep.subr.bf16.mxu0 %v17665_v28  ;;  %v17744_v25 = vld [vmem:[%s18895_s29 + $0x2e54] ss:$8 sps:$4 sm:$0xff]   ;;  %v17739_v28 = vld [vmem:[%s18895_s29 + $0x1350] ss:$8 sps:$4 sm:$0xff]  }
 0x511   : > { %12195 = vmatpush1.bf16.msra.mxu1 %v17660_v63  ;;  %v17742_v63 = vld [vmem:[%s18895_s29 + $0x2e50] ss:$8 sps:$4 sm:$0xff]  }
 0x512   : > { %13302 = vmatpush1.bf16.msra.mxu0 %v17663_v11  ;;  %12196 = vmatprep.subr.bf16.mxu1 %v17668_v12  ;;  %v17747_v11 = vld [vmem:[%s18895_s29 + $0x1364] ss:$8 sps:$4 sm:$0xff]  }
 0x513   : > { %13303 = vmatprep.subr.bf16.mxu0 %v17671_v7  ;;  %v17750_v12 = vld [vmem:[%s18895_s29 + $0x2e64] ss:$8 sps:$4 sm:$0xff]   ;;  %v17745_v7 = vld [vmem:[%s18895_s29 + $0x1360] ss:$8 sps:$4 sm:$0xff]  }
 0x515   : > { %12197 = vmatpush1.bf16.msra.mxu1 %v17666_v1  ;;  %v17748_v1 = vld [vmem:[%s18895_s29 + $0x2e60] ss:$8 sps:$4 sm:$0xff]  }
 0x516   : > { %13304 = vmatpush1.bf16.msra.mxu0 %v17669_v56  ;;  %12198 = vmatprep.subr.bf16.mxu1 %v17674_v59  ;;  %v17753_v56 = vld [vmem:[%s18895_s29 + $0x1374] ss:$8 sps:$4 sm:$0xff]  }
 0x517   : > { %13305 = vmatprep.subr.bf16.mxu0 %v17677_v33  ;;  %v17756_v59 = vld [vmem:[%s18895_s29 + $0x2e74] ss:$8 sps:$4 sm:$0xff]   ;;  %v17751_v33 = vld [vmem:[%s18895_s29 + $0x1370] ss:$8 sps:$4 sm:$0xff]  }
 0x519   : > { %12199 = vmatpush1.bf16.msra.mxu1 %v17672_v39  ;;  %v17754_v39 = vld [vmem:[%s18895_s29 + $0x2e70] ss:$8 sps:$4 sm:$0xff]  }
 0x51a   : > { %13306 = vmatpush1.bf16.msra.mxu0 %v17675_v20  ;;  %12200 = vmatprep.subr.bf16.mxu1 %v17680_v23  ;;  %v17759_v20 = vld [vmem:[%s18895_s29 + $0x1384] ss:$8 sps:$4 sm:$0xff]  }
 0x51b   : > { %13307 = vmatprep.subr.bf16.mxu0 %v17683_v24  ;;  %v17762_v23 = vld [vmem:[%s18895_s29 + $0x2e84] ss:$8 sps:$4 sm:$0xff]   ;;  %v17757_v24 = vld [vmem:[%s18895_s29 + $0x1380] ss:$8 sps:$4 sm:$0xff]  }
 0x51d   : > { %12201 = vmatpush1.bf16.msra.mxu1 %v17678_v44  ;;  %v17760_v44 = vld [vmem:[%s18895_s29 + $0x2e80] ss:$8 sps:$4 sm:$0xff]  }
 0x51e   : > { %13308 = vmatpush1.bf16.msra.mxu0 %v17681_v49  ;;  %12202 = vmatprep.subr.bf16.mxu1 %v17686_v43  ;;  %v17765_v49 = vld [vmem:[%s18895_s29 + $0x1394] ss:$8 sps:$4 sm:$0xff]  }
 0x51f   : > { %13309 = vmatprep.subr.bf16.mxu0 %v17689_v27  ;;  %v17768_v43 = vld [vmem:[%s18895_s29 + $0x2e94] ss:$8 sps:$4 sm:$0xff]   ;;  %v17763_v27 = vld [vmem:[%s18895_s29 + $0x1390] ss:$8 sps:$4 sm:$0xff]  }
 0x521   : > { %12203 = vmatpush1.bf16.msra.mxu1 %v17684_v29  ;;  %v17766_v29 = vld [vmem:[%s18895_s29 + $0x2e90] ss:$8 sps:$4 sm:$0xff]  }
 0x522   : > { %13310 = vmatpush1.bf16.msra.mxu0 %v17687_v53  ;;  %12204 = vmatprep.subr.bf16.mxu1 %v17692_v14  ;;  %v17771_v53 = vld [vmem:[%s18895_s29 + $0x13a4] ss:$8 sps:$4 sm:$0xff]  }
 0x523   : > { %13311 = vmatprep.subr.bf16.mxu0 %v17695_v54  ;;  %v17774_v14 = vld [vmem:[%s18895_s29 + $0x2ea4] ss:$8 sps:$4 sm:$0xff]   ;;  %v17769_v54 = vld [vmem:[%s18895_s29 + $0x13a0] ss:$8 sps:$4 sm:$0xff]  }
 0x525   : > { %12205 = vmatpush1.bf16.msra.mxu1 %v17690_v55  ;;  %v17772_v55 = vld [vmem:[%s18895_s29 + $0x2ea0] ss:$8 sps:$4 sm:$0xff]  }
 0x526   : > { %13312 = vmatpush1.bf16.msra.mxu0 %v17693_v57  ;;  %12206 = vmatprep.subr.bf16.mxu1 %v17698_v35  ;;  %v17777_v57 = vld [vmem:[%s18895_s29 + $0x13b4] ss:$8 sps:$4 sm:$0xff]  }
 0x527   : > { %13313 = vmatprep.subr.bf16.mxu0 %v17701_v34  ;;  %v17780_v35 = vld [vmem:[%s18895_s29 + $0x2eb4] ss:$8 sps:$4 sm:$0xff]   ;;  %v17775_v34 = vld [vmem:[%s18895_s29 + $0x13b0] ss:$8 sps:$4 sm:$0xff]  }
 0x529   : > { %12207 = vmatpush1.bf16.msra.mxu1 %v17696_v42  ;;  %v17783_v42 = vld [vmem:[%s18895_s29 + $0x13c4] ss:$8 sps:$4 sm:$0xff]  }
 0x52a   : > { %13314 = vmatpush1.bf16.msra.mxu0 %v17699_v60  ;;  %12208 = vmatprep.subr.bf16.mxu1 %v17704_v40  ;;  %v17786_v60 = vld [vmem:[%s18895_s29 + $0x2ec4] ss:$8 sps:$4 sm:$0xff]   ;;  %v17781_v40 = vld [vmem:[%s18895_s29 + $0x13c0] ss:$8 sps:$4 sm:$0xff]  }
 0x52b   : > { %13315 = vmatprep.subr.bf16.mxu0 %v17707_v32  ;;  %v17784_v32 = vld [vmem:[%s18895_s29 + $0x2ec0] ss:$8 sps:$4 sm:$0xff]  }
 0x52d   : > { %12209 = vmatpush1.bf16.msra.mxu1 %v17702_v62  ;;  %v17789_v62 = vld [vmem:[%s18895_s29 + $0x13d4] ss:$8 sps:$4 sm:$0xff]  }
 0x52e   : > { %13316 = vmatpush1.bf16.msra.mxu0 %v17705_v9  ;;  %12219 = vmatprep.subr.bf16.mxu1 %v17711_v0  ;;  %v17792_v9 = vld [vmem:[%s18895_s29 + $0x2ed4] ss:$8 sps:$4 sm:$0xff]   ;;  %v17787_v0 = vld [vmem:[%s18895_s29 + $0x13d0] ss:$8 sps:$4 sm:$0xff]  }
 0x52f   : > { %13326 = vmatprep.subr.bf16.mxu0 %v17714_v2  ;;  %v17790_v2 = vld [vmem:[%s18895_s29 + $0x2ed0] ss:$8 sps:$4 sm:$0xff]  }
 0x530   : > { %12211 = vmatmul.mubr.bf16.vlgmr.msra.gmra.mrb[0].mxu1 %v20520_v6 }
 0x531   : > { %13318 = vmatmul.mubr.bf16.vlgmr.msra.gmra.mrb[0].mxu0 %v2615_v48  ;;  %12220 = vmatpush1.bf16.msra.mxu1 %v17709_v51  ;;  %v17798_v48 = vld [vmem:[%s18895_s29 + $0x2ee4] ss:$8 sps:$4 sm:$0xff]  }
 0x532   : > { %13327 = vmatpush1.bf16.msra.mxu0 %v17712_v45  ;;  %12221 = vmatprep.subr.bf16.mxu1 %v17717_v18  ;;  %v20588_v51 = vld [vmem:[%s18914_s4 + $0x28] sm:$0xff] }
 0x533   : > { %13328 = vmatprep.subr.bf16.mxu0 %v17720_v8  ;;  %12251 = vmatprep.mubr.bf16.mxu1 %v2275_v36  ;;  %v17793_v45 = vld [vmem:[%s18895_s29 + $0x13e0] ss:$8 sps:$4 sm:$0xff]   ;;  %v17801_v8 = vld [vmem:[%s18895_s29 + $0x13f4] ss:$8 sps:$4 sm:$0xff]  }
 0x534   : > { %13358 = vmatprep.mubr.bf16.mxu0 %v20531_v46  ;;  %v17796_v18 = vld [vmem:[%s18895_s29 + $0x2ee0] ss:$8 sps:$4 sm:$0xff]   ;;  %v17804_v36 = vld [vmem:[%s18895_s29 + $0x2ef4] ss:$8 sps:$4 sm:$0xff]  }
 0x535   : > { %12222 = vmatpush1.bf16.msra.mxu1 %v17715_v31  ;;  %v20596_v31 = vrot.slane %v20588_v51, %v18971_v52 }
 0x536   : > { %13329 = vmatpush1.bf16.msra.mxu0 %v17718_v30  ;;  %12223 = vmatprep.subr.bf16.mxu1 %v17723_v26  ;;  %v17799_v30 = vld [vmem:[%s18895_s29 + $0x13f0] ss:$8 sps:$4 sm:$0xff]  }
 0x537   : > { %13330 = vmatprep.subr.bf16.mxu0 %v17726_v17  ;;  %v17802_v26 = vld [vmem:[%s18895_s29 + $0x2ef0] ss:$8 sps:$4 sm:$0xff]   ;;  %v17807_v17 = vld [vmem:[%s18895_s29 + $0x1404] ss:$8 sps:$4 sm:$0xff]  }
 0x539   : > { %12224 = vmatpush1.bf16.msra.mxu1 %v17721_v10  ;;  %v17811_v10 = vld [vmem:[%s18895_s29 + $0x2f04] ss:$8 sps:$4 sm:$0xff]  }
 0x53a   : > { %13331 = vmatpush1.bf16.msra.mxu0 %v17724_v13  ;;  %12225 = vmatprep.subr.bf16.mxu1 %v17729_v16  ;;  %v2291_v13 = vcombine.high %v20596_v31, %v20596_v31  ;;  %v2273_v16 = vcombine.high %v20520_v6, %v20520_v6  ;;  %v2618_v6 = vcombine.high %v20531_v46, %v20531_v46  ;;  %v17818_v46 = vld [vmem:[%s18895_s29 + $0x1420] ss:$8 sps:$4 sm:$0xff]  }
 0x53b   : > { %13332 = vmatprep.subr.bf16.mxu0 %v17732_v41  ;;  %v20608_v41 = vrot.slane %v20510_v61, %v18971_v52  ;;  %v17812_v61 = vld [vmem:[%s18895_s29 + $0x1410] ss:$8 sps:$4 sm:$0xff]  }
 0x53d   : > { %12226 = vmatpush1.bf16.msra.mxu1 %v17727_v50  ;;  %v17805_v50 = vld [vmem:[%s18895_s29 + $0x1400] ss:$8 sps:$4 sm:$0xff]  }
 0x53e   : > { %13333 = vmatpush1.bf16.msra.mxu0 %v17730_v4  ;;  %12227 = vmatprep.subr.bf16.mxu1 %v17735_v19  ;;  %v17809_v4 = vld [vmem:[%s18895_s29 + $0x2f00] ss:$8 sps:$4 sm:$0xff]   ;;  %v17814_v19 = vld [vmem:[%s18895_s29 + $0x1414] ss:$8 sps:$4 sm:$0xff]  }
 0x53f   : > { %13334 = vmatprep.subr.bf16.mxu0 %v17738_v38  ;;  %v17817_v38 = vld [vmem:[%s18895_s29 + $0x2f14] ss:$8 sps:$4 sm:$0xff]  }
 0x541   : > { %12228 = vmatpush1.bf16.msra.mxu1 %v17733_v58  ;;  %v20615_v58 = vrot.slane %v2291_v13, %v18971_v52  ;;  %v17887_v13 = vld [vmem:[%s18895_s29 + $0x2fd0] ss:$8 sps:$4 sm:$0xff]  }
 0x542   : > { %13335 = vmatpush1.bf16.msra.mxu0 %v17736_v21  ;;  %12229 = vmatprep.subr.bf16.mxu1 %v17741_v22  ;;  %v17815_v21 = vld [vmem:[%s18895_s29 + $0x2f10] ss:$8 sps:$4 sm:$0xff]   ;;  %v17820_v22 = vld [vmem:[%s18895_s29 + $0x1424] ss:$8 sps:$4 sm:$0xff]  }
 0x543   : > { %13336 = vmatprep.subr.bf16.mxu0 %v17744_v25  ;;  %v17823_v25 = vld [vmem:[%s18895_s29 + $0x2f24] ss:$8 sps:$4 sm:$0xff]  }
 0x545   : > { %12230 = vmatpush1.bf16.msra.mxu1 %v17739_v28  ;;  %v17821_v28 = vld [vmem:[%s18895_s29 + $0x2f20] ss:$8 sps:$4 sm:$0xff]  }
 0x546   : > { %13337 = vmatpush1.bf16.msra.mxu0 %v17742_v63  ;;  %12231 = vmatprep.subr.bf16.mxu1 %v17747_v11  ;;  %v17826_v63 = vld [vmem:[%s18895_s29 + $0x1434] ss:$8 sps:$4 sm:$0xff]  }
 0x547   : > { %13338 = vmatprep.subr.bf16.mxu0 %v17750_v12  ;;  %v17829_v11 = vld [vmem:[%s18895_s29 + $0x2f34] ss:$8 sps:$4 sm:$0xff]   ;;  %v17824_v12 = vld [vmem:[%s18895_s29 + $0x1430] ss:$8 sps:$4 sm:$0xff]  }
 0x549   : > { %12232 = vmatpush1.bf16.msra.mxu1 %v17745_v7  ;;  %v17827_v7 = vld [vmem:[%s18895_s29 + $0x2f30] ss:$8 sps:$4 sm:$0xff]  }
 0x54a   : > { %13339 = vmatpush1.bf16.msra.mxu0 %v17748_v1  ;;  %12233 = vmatprep.subr.bf16.mxu1 %v17753_v56  ;;  %v17832_v1 = vld [vmem:[%s18895_s29 + $0x1444] ss:$8 sps:$4 sm:$0xff]  }
 0x54b   : > { %13340 = vmatprep.subr.bf16.mxu0 %v17756_v59  ;;  %v17835_v56 = vld [vmem:[%s18895_s29 + $0x2f44] ss:$8 sps:$4 sm:$0xff]   ;;  %v17830_v59 = vld [vmem:[%s18895_s29 + $0x1440] ss:$8 sps:$4 sm:$0xff]  }
 0x54d   : > { %12234 = vmatpush1.bf16.msra.mxu1 %v17751_v33  ;;  %v17833_v33 = vld [vmem:[%s18895_s29 + $0x2f40] ss:$8 sps:$4 sm:$0xff]  }
 0x54e   : > { %13341 = vmatpush1.bf16.msra.mxu0 %v17754_v39  ;;  %12235 = vmatprep.subr.bf16.mxu1 %v17759_v20  ;;  %v17838_v39 = vld [vmem:[%s18895_s29 + $0x1454] ss:$8 sps:$4 sm:$0xff]  }
 0x54f   : > { %13342 = vmatprep.subr.bf16.mxu0 %v17762_v23  ;;  %v17841_v20 = vld [vmem:[%s18895_s29 + $0x2f54] ss:$8 sps:$4 sm:$0xff]   ;;  %v17836_v23 = vld [vmem:[%s18895_s29 + $0x1450] ss:$8 sps:$4 sm:$0xff]  }
 0x551   : > { %12236 = vmatpush1.bf16.msra.mxu1 %v17757_v24  ;;  %v17839_v24 = vld [vmem:[%s18895_s29 + $0x2f50] ss:$8 sps:$4 sm:$0xff]  }
 0x552   : > { %13343 = vmatpush1.bf16.msra.mxu0 %v17760_v44  ;;  %12237 = vmatprep.subr.bf16.mxu1 %v17765_v49  ;;  %v17844_v44 = vld [vmem:[%s18895_s29 + $0x1464] ss:$8 sps:$4 sm:$0xff]  }
 0x553   : > { %13344 = vmatprep.subr.bf16.mxu0 %v17768_v43  ;;  %v17847_v49 = vld [vmem:[%s18895_s29 + $0x2f64] ss:$8 sps:$4 sm:$0xff]   ;;  %v17842_v43 = vld [vmem:[%s18895_s29 + $0x1460] ss:$8 sps:$4 sm:$0xff]  }
 0x555   : > { %12238 = vmatpush1.bf16.msra.mxu1 %v17763_v27  ;;  %v17845_v27 = vld [vmem:[%s18895_s29 + $0x2f60] ss:$8 sps:$4 sm:$0xff]  }
 0x556   : > { %13345 = vmatpush1.bf16.msra.mxu0 %v17766_v29  ;;  %12239 = vmatprep.subr.bf16.mxu1 %v17771_v53  ;;  %v17850_v29 = vld [vmem:[%s18895_s29 + $0x1474] ss:$8 sps:$4 sm:$0xff]  }
 0x557   : > { %13346 = vmatprep.subr.bf16.mxu0 %v17774_v14  ;;  %v17853_v53 = vld [vmem:[%s18895_s29 + $0x2f74] ss:$8 sps:$4 sm:$0xff]   ;;  %v17848_v14 = vld [vmem:[%s18895_s29 + $0x1470] ss:$8 sps:$4 sm:$0xff]  }
 0x559   : > { %12240 = vmatpush1.bf16.msra.mxu1 %v17769_v54  ;;  %v17851_v54 = vld [vmem:[%s18895_s29 + $0x2f70] ss:$8 sps:$4 sm:$0xff]  }
 0x55a   : > { %13347 = vmatpush1.bf16.msra.mxu0 %v17772_v55  ;;  %12241 = vmatprep.subr.bf16.mxu1 %v17777_v57  ;;  %v17856_v55 = vld [vmem:[%s18895_s29 + $0x1484] ss:$8 sps:$4 sm:$0xff]  }
 0x55b   : > { %13348 = vmatprep.subr.bf16.mxu0 %v17780_v35  ;;  %v17859_v57 = vld [vmem:[%s18895_s29 + $0x2f84] ss:$8 sps:$4 sm:$0xff]   ;;  %v17854_v35 = vld [vmem:[%s18895_s29 + $0x1480] ss:$8 sps:$4 sm:$0xff]  }
 0x55d   : > { %12242 = vmatpush1.bf16.msra.mxu1 %v17775_v34  ;;  %v17857_v34 = vld [vmem:[%s18895_s29 + $0x2f80] ss:$8 sps:$4 sm:$0xff]  }
 0x55e   : > { %13349 = vmatpush1.bf16.msra.mxu0 %v17778_v37  ;;  %12243 = vmatprep.subr.bf16.mxu1 %v17783_v42  ;;  %v17862_v37 = vld [vmem:[%s18895_s29 + $0x1494] ss:$8 sps:$4 sm:$0xff]  }
 0x55f   : > { %13350 = vmatprep.subr.bf16.mxu0 %v17786_v60  ;;  %v17865_v42 = vld [vmem:[%s18895_s29 + $0x2f94] ss:$8 sps:$4 sm:$0xff]   ;;  %v17860_v60 = vld [vmem:[%s18895_s29 + $0x1490] ss:$8 sps:$4 sm:$0xff]  }
 0x561   : > { %12244 = vmatpush1.bf16.msra.mxu1 %v17781_v40  ;;  %v17863_v40 = vld [vmem:[%s18895_s29 + $0x2f90] ss:$8 sps:$4 sm:$0xff]  }
 0x562   : > { %13351 = vmatpush1.bf16.msra.mxu0 %v17784_v32  ;;  %12245 = vmatprep.subr.bf16.mxu1 %v17789_v62  ;;  %v17868_v32 = vld [vmem:[%s18895_s29 + $0x14a4] ss:$8 sps:$4 sm:$0xff]  }
 0x563   : > { %13352 = vmatprep.subr.bf16.mxu0 %v17792_v9  ;;  %v17871_v62 = vld [vmem:[%s18895_s29 + $0x2fa4] ss:$8 sps:$4 sm:$0xff]   ;;  %v17866_v9 = vld [vmem:[%s18895_s29 + $0x14a0] ss:$8 sps:$4 sm:$0xff]  }
 0x565   : > { %12246 = vmatpush1.bf16.msra.mxu1 %v17787_v0  ;;  %v17869_v0 = vld [vmem:[%s18895_s29 + $0x2fa0] ss:$8 sps:$4 sm:$0xff]  }
 0x566   : > { %13353 = vmatpush1.bf16.msra.mxu0 %v17790_v2  ;;  %12247 = vmatprep.subr.bf16.mxu1 %v17795_v3  ;;  %v17874_v2 = vld [vmem:[%s18895_s29 + $0x14b4] ss:$8 sps:$4 sm:$0xff]  }
 0x567   : > { %13354 = vmatprep.subr.bf16.mxu0 %v17798_v48  ;;  %v17877_v3 = vld [vmem:[%s18895_s29 + $0x2fb4] ss:$8 sps:$4 sm:$0xff]   ;;  %v17872_v48 = vld [vmem:[%s18895_s29 + $0x14b0] ss:$8 sps:$4 sm:$0xff]  }
 0x569   : > { %12248 = vmatpush1.bf16.msra.mxu1 %v17793_v45  ;;  %v17875_v45 = vld [vmem:[%s18895_s29 + $0x2fb0] ss:$8 sps:$4 sm:$0xff]  }
 0x56a   : > { %13355 = vmatpush1.bf16.msra.mxu0 %v17796_v18  ;;  %12249 = vmatprep.subr.bf16.mxu1 %v17801_v8  ;;  %v17880_v18 = vld [vmem:[%s18895_s29 + $0x14c4] ss:$8 sps:$4 sm:$0xff]  }
 0x56b   : > { %13356 = vmatprep.subr.bf16.mxu0 %v17804_v36  ;;  %v17883_v8 = vld [vmem:[%s18895_s29 + $0x2fc4] ss:$8 sps:$4 sm:$0xff]   ;;  %v17878_v36 = vld [vmem:[%s18895_s29 + $0x14c0] ss:$8 sps:$4 sm:$0xff]  }
 0x56d   : > { %12250 = vmatpush1.bf16.msra.mxu1 %v17799_v30  ;;  %v17881_v30 = vld [vmem:[%s18895_s29 + $0x2fc0] ss:$8 sps:$4 sm:$0xff]  }
 0x56e   : > { %13357 = vmatpush1.bf16.msra.mxu0 %v17802_v26  ;;  %12260 = vmatprep.subr.bf16.mxu1 %v17807_v17  ;;  %v17886_v26 = vld [vmem:[%s18895_s29 + $0x14d4] ss:$8 sps:$4 sm:$0xff]  }
 0x56f   : > { %13367 = vmatprep.subr.bf16.mxu0 %v17811_v10  ;;  %v17889_v17 = vld [vmem:[%s18895_s29 + $0x2fd4] ss:$8 sps:$4 sm:$0xff]   ;;  %v17884_v10 = vld [vmem:[%s18895_s29 + $0x14d0] ss:$8 sps:$4 sm:$0xff]  }
 0x570   : > { %12252 = vmatmul.mubr.bf16.vlgmr.msra.gmra.mrb[0].mxu1 %v2273_v16  ;;  %v17892_v16 = vld [vmem:[%s18895_s29 + $0x14e4] ss:$8 sps:$4 sm:$0xff]  }
 0x571   : > { %13359 = vmatmul.mubr.bf16.vlgmr.msra.gmra.mrb[0].mxu0 %v20608_v41  ;;  %12261 = vmatpush1.bf16.msra.mxu1 %v17805_v50  ;;  %v17895_v50 = vld [vmem:[%s18895_s29 + $0x2fe4] ss:$8 sps:$4 sm:$0xff]  }
 0x572   : > { %13368 = vmatpush1.bf16.msra.mxu0 %v17809_v4  ;;  %12262 = vmatprep.subr.bf16.mxu1 %v17814_v19  ;;  %v20674_v4 = vld [vmem:[%s18914_s4 + $0x60] sm:$0xff] }
 0x573   : > { %13369 = vmatprep.subr.bf16.mxu0 %v17817_v38  ;;  %12292 = vmatprep.mubr.bf16.mxu1 %v20615_v58  ;;  %v17890_v19 = vld [vmem:[%s18895_s29 + $0x14e0] ss:$8 sps:$4 sm:$0xff]  }
 0x574   : > { %13399 = vmatprep.mubr.bf16.mxu0 %v2618_v6  ;;  %v17893_v38 = vld [vmem:[%s18895_s29 + $0x2fe0] ss:$8 sps:$4 sm:$0xff]   ;;  %v17898_v6 = vld [vmem:[%s18895_s29 + $0x14f4] ss:$8 sps:$4 sm:$0xff]  }
 0x575   : > { %12263 = vmatpush1.bf16.msra.mxu1 %v17812_v61  ;;  %v17901_v61 = vld [vmem:[%s18895_s29 + $0x2ff4] ss:$8 sps:$4 sm:$0xff]  }
 0x576   : > { %13370 = vmatpush1.bf16.msra.mxu0 %v17815_v21  ;;  %12264 = vmatprep.subr.bf16.mxu1 %v17820_v22  ;;  %v20682_v21 = vrot.slane %v20674_v4, %v18971_v52  ;;  %v17896_v22 = vld [vmem:[%s18895_s29 + $0x14f0] ss:$8 sps:$4 sm:$0xff]  }
 0x577   : > { %13371 = vmatprep.subr.bf16.mxu0 %v17823_v25  ;;  %v17899_v25 = vld [vmem:[%s18895_s29 + $0x2ff0] ss:$8 sps:$4 sm:$0xff]  }
 0x579   : > { %12265 = vmatpush1.bf16.msra.mxu1 %v17818_v46  ;;  %v17904_v46 = vld [vmem:[%s18895_s29 + $0x1504] ss:$8 sps:$4 sm:$0xff]  }
 0x57a   : > { %13372 = vmatpush1.bf16.msra.mxu0 %v17821_v28  ;;  %12266 = vmatprep.subr.bf16.mxu1 %v17826_v63  ;;  %v17907_v28 = vld [vmem:[%s18895_s29 + $0x3004] ss:$8 sps:$4 sm:$0xff]   ;;  %v2634_v63 = vcombine.high %v20682_v21, %v20682_v21 }
 0x57b   : > { %13373 = vmatprep.subr.bf16.mxu0 %v17829_v11  ;;  %v20692_v11 = vrot.slane %v20596_v31, %v18971_v52 }
 0x57c   : > { %v20703_v31 = vrot.slane %v2634_v63, %v18971_v52  ;;  %v17980_v63 = vld [vmem:[%s18895_s29 + $0x15d0] ss:$8 sps:$4 sm:$0xff]  }
 0x57d   : > { %12267 = vmatpush1.bf16.msra.mxu1 %v17824_v12  ;;  %v2616_v12 = vcombine.high %v20608_v41, %v20608_v41  ;;  %v17908_v41 = vld [vmem:[%s18895_s29 + $0x1510] ss:$8 sps:$4 sm:$0xff]  }
 0x57e   : > { %13374 = vmatpush1.bf16.msra.mxu0 %v17827_v7  ;;  %12268 = vmatprep.subr.bf16.mxu1 %v17832_v1  ;;  %v17902_v7 = vld [vmem:[%s18895_s29 + $0x1500] ss:$8 sps:$4 sm:$0xff]  }
 0x57f   : > { %13375 = vmatprep.subr.bf16.mxu0 %v17835_v56  ;;  %v17905_v1 = vld [vmem:[%s18895_s29 + $0x3000] ss:$8 sps:$4 sm:$0xff]   ;;  %v17910_v56 = vld [vmem:[%s18895_s29 + $0x1514] ss:$8 sps:$4 sm:$0xff]  }
 0x581   : > { %12269 = vmatpush1.bf16.msra.mxu1 %v17830_v59  ;;  %v17913_v59 = vld [vmem:[%s18895_s29 + $0x3014] ss:$8 sps:$4 sm:$0xff]  }
 0x582   : > { %13376 = vmatpush1.bf16.msra.mxu0 %v17833_v33  ;;  %12270 = vmatprep.subr.bf16.mxu1 %v17838_v39  ;;  %v2323_v33 = vcombine.high %v20615_v58, %v20615_v58  ;;  %v17911_v39 = vld [vmem:[%s18895_s29 + $0x3010] ss:$8 sps:$4 sm:$0xff]   ;;  %v17919_v58 = vld [vmem:[%s18895_s29 + $0x3024] ss:$8 sps:$4 sm:$0xff]  }
 0x583   : > { %13377 = vmatprep.subr.bf16.mxu0 %v17841_v20  ;;  %v17916_v20 = vld [vmem:[%s18895_s29 + $0x1524] ss:$8 sps:$4 sm:$0xff]  }
 0x585   : > { %12271 = vmatpush1.bf16.msra.mxu1 %v17836_v23  ;;  %v17914_v23 = vld [vmem:[%s18895_s29 + $0x1520] ss:$8 sps:$4 sm:$0xff]  }
 0x586   : > { %13378 = vmatpush1.bf16.msra.mxu0 %v17839_v24  ;;  %12272 = vmatprep.subr.bf16.mxu1 %v17844_v44  ;;  %v17917_v24 = vld [vmem:[%s18895_s29 + $0x3020] ss:$8 sps:$4 sm:$0xff]   ;;  %v17922_v44 = vld [vmem:[%s18895_s29 + $0x1534] ss:$8 sps:$4 sm:$0xff]  }
 0x587   : > { %13379 = vmatprep.subr.bf16.mxu0 %v17847_v49  ;;  %v17925_v49 = vld [vmem:[%s18895_s29 + $0x3034] ss:$8 sps:$4 sm:$0xff]  }
 0x589   : > { %12273 = vmatpush1.bf16.msra.mxu1 %v17842_v43  ;;  %v17920_v43 = vld [vmem:[%s18895_s29 + $0x1530] ss:$8 sps:$4 sm:$0xff]  }
 0x58a   : > { %13380 = vmatpush1.bf16.msra.mxu0 %v17845_v27  ;;  %12274 = vmatprep.subr.bf16.mxu1 %v17850_v29  ;;  %v17923_v27 = vld [vmem:[%s18895_s29 + $0x3030] ss:$8 sps:$4 sm:$0xff]   ;;  %v17928_v29 = vld [vmem:[%s18895_s29 + $0x1544] ss:$8 sps:$4 sm:$0xff]  }
 0x58b   : > { %13381 = vmatprep.subr.bf16.mxu0 %v17853_v53  ;;  %v17931_v53 = vld [vmem:[%s18895_s29 + $0x3044] ss:$8 sps:$4 sm:$0xff]  }
 0x58d   : > { %12275 = vmatpush1.bf16.msra.mxu1 %v17848_v14  ;;  %v17926_v14 = vld [vmem:[%s18895_s29 + $0x1540] ss:$8 sps:$4 sm:$0xff]  }
 0x58e   : > { %13382 = vmatpush1.bf16.msra.mxu0 %v17851_v54  ;;  %12276 = vmatprep.subr.bf16.mxu1 %v17856_v55  ;;  %v17929_v54 = vld [vmem:[%s18895_s29 + $0x3040] ss:$8 sps:$4 sm:$0xff]   ;;  %v17934_v55 = vld [vmem:[%s18895_s29 + $0x1554] ss:$8 sps:$4 sm:$0xff]  }
 0x58f   : > { %13383 = vmatprep.subr.bf16.mxu0 %v17859_v57  ;;  %v17937_v57 = vld [vmem:[%s18895_s29 + $0x3054] ss:$8 sps:$4 sm:$0xff]  }
 0x591   : > { %12277 = vmatpush1.bf16.msra.mxu1 %v17854_v35  ;;  %v17932_v35 = vld [vmem:[%s18895_s29 + $0x1550] ss:$8 sps:$4 sm:$0xff]  }
 0x592   : > { %13384 = vmatpush1.bf16.msra.mxu0 %v17857_v34  ;;  %12278 = vmatprep.subr.bf16.mxu1 %v17862_v37  ;;  %v17935_v34 = vld [vmem:[%s18895_s29 + $0x3050] ss:$8 sps:$4 sm:$0xff]   ;;  %v17940_v37 = vld [vmem:[%s18895_s29 + $0x1564] ss:$8 sps:$4 sm:$0xff]  }
 0x593   : > { %13385 = vmatprep.subr.bf16.mxu0 %v17865_v42  ;;  %v17943_v42 = vld [vmem:[%s18895_s29 + $0x3064] ss:$8 sps:$4 sm:$0xff]  }
 0x595   : > { %12279 = vmatpush1.bf16.msra.mxu1 %v17860_v60  ;;  %v17938_v60 = vld [vmem:[%s18895_s29 + $0x1560] ss:$8 sps:$4 sm:$0xff]  }
 0x596   : > { %13386 = vmatpush1.bf16.msra.mxu0 %v17863_v40  ;;  %12280 = vmatprep.subr.bf16.mxu1 %v17868_v32  ;;  %v17941_v40 = vld [vmem:[%s18895_s29 + $0x3060] ss:$8 sps:$4 sm:$0xff]   ;;  %v17946_v32 = vld [vmem:[%s18895_s29 + $0x1574] ss:$8 sps:$4 sm:$0xff]  }
 0x597   : > { %13387 = vmatprep.subr.bf16.mxu0 %v17871_v62  ;;  %v17949_v62 = vld [vmem:[%s18895_s29 + $0x3074] ss:$8 sps:$4 sm:$0xff]  }
 0x599   : > { %12281 = vmatpush1.bf16.msra.mxu1 %v17866_v9  ;;  %v17944_v9 = vld [vmem:[%s18895_s29 + $0x1570] ss:$8 sps:$4 sm:$0xff]  }
 0x59a   : > { %13388 = vmatpush1.bf16.msra.mxu0 %v17869_v0  ;;  %12282 = vmatprep.subr.bf16.mxu1 %v17874_v2  ;;  %v17947_v0 = vld [vmem:[%s18895_s29 + $0x3070] ss:$8 sps:$4 sm:$0xff]   ;;  %v17952_v2 = vld [vmem:[%s18895_s29 + $0x1584] ss:$8 sps:$4 sm:$0xff]  }
 0x59b   : > { %13389 = vmatprep.subr.bf16.mxu0 %v17877_v3  ;;  %v17955_v3 = vld [vmem:[%s18895_s29 + $0x3084] ss:$8 sps:$4 sm:$0xff]  }
 0x59d   : > { %12283 = vmatpush1.bf16.msra.mxu1 %v17872_v48  ;;  %v17950_v48 = vld [vmem:[%s18895_s29 + $0x1580] ss:$8 sps:$4 sm:$0xff]  }
 0x59e   : > { %13390 = vmatpush1.bf16.msra.mxu0 %v17875_v45  ;;  %12284 = vmatprep.subr.bf16.mxu1 %v17880_v18  ;;  %v17953_v45 = vld [vmem:[%s18895_s29 + $0x3080] ss:$8 sps:$4 sm:$0xff]   ;;  %v17958_v18 = vld [vmem:[%s18895_s29 + $0x1594] ss:$8 sps:$4 sm:$0xff]  }
 0x59f   : > { %13391 = vmatprep.subr.bf16.mxu0 %v17883_v8  ;;  %v17961_v8 = vld [vmem:[%s18895_s29 + $0x3094] ss:$8 sps:$4 sm:$0xff]  }
 0x5a1   : > { %12285 = vmatpush1.bf16.msra.mxu1 %v17878_v36  ;;  %v17956_v36 = vld [vmem:[%s18895_s29 + $0x1590] ss:$8 sps:$4 sm:$0xff]  }
 0x5a2   : > { %13392 = vmatpush1.bf16.msra.mxu0 %v17881_v30  ;;  %12286 = vmatprep.subr.bf16.mxu1 %v17886_v26  ;;  %v17959_v30 = vld [vmem:[%s18895_s29 + $0x3090] ss:$8 sps:$4 sm:$0xff]   ;;  %v17964_v26 = vld [vmem:[%s18895_s29 + $0x15a4] ss:$8 sps:$4 sm:$0xff]  }
 0x5a3   : > { %13393 = vmatprep.subr.bf16.mxu0 %v17889_v17  ;;  %v17967_v17 = vld [vmem:[%s18895_s29 + $0x30a4] ss:$8 sps:$4 sm:$0xff]  }
 0x5a5   : > { %12287 = vmatpush1.bf16.msra.mxu1 %v17884_v10  ;;  %v17962_v10 = vld [vmem:[%s18895_s29 + $0x15a0] ss:$8 sps:$4 sm:$0xff]  }
 0x5a6   : > { %13394 = vmatpush1.bf16.msra.mxu0 %v17887_v13  ;;  %12288 = vmatprep.subr.bf16.mxu1 %v17892_v16  ;;  %v17965_v13 = vld [vmem:[%s18895_s29 + $0x30a0] ss:$8 sps:$4 sm:$0xff]   ;;  %v17970_v16 = vld [vmem:[%s18895_s29 + $0x15b4] ss:$8 sps:$4 sm:$0xff]  }
 0x5a7   : > { %13395 = vmatprep.subr.bf16.mxu0 %v17895_v50  ;;  %v17973_v50 = vld [vmem:[%s18895_s29 + $0x30b4] ss:$8 sps:$4 sm:$0xff]  }
 0x5a9   : > { %12289 = vmatpush1.bf16.msra.mxu1 %v17890_v19  ;;  %v17968_v19 = vld [vmem:[%s18895_s29 + $0x15b0] ss:$8 sps:$4 sm:$0xff]  }
 0x5aa   : > { %13396 = vmatpush1.bf16.msra.mxu0 %v17893_v38  ;;  %12290 = vmatprep.subr.bf16.mxu1 %v17898_v6  ;;  %v17971_v38 = vld [vmem:[%s18895_s29 + $0x30b0] ss:$8 sps:$4 sm:$0xff]   ;;  %v17976_v6 = vld [vmem:[%s18895_s29 + $0x15c4] ss:$8 sps:$4 sm:$0xff]  }
 0x5ab   : > { %13397 = vmatprep.subr.bf16.mxu0 %v17901_v61  ;;  %v17979_v61 = vld [vmem:[%s18895_s29 + $0x30c4] ss:$8 sps:$4 sm:$0xff]  }
 0x5ad   : > { %12291 = vmatpush1.bf16.msra.mxu1 %v17896_v22  ;;  %v17974_v22 = vld [vmem:[%s18895_s29 + $0x15c0] ss:$8 sps:$4 sm:$0xff]  }
 0x5ae   : > { %13398 = vmatpush1.bf16.msra.mxu0 %v17899_v25  ;;  %12301 = vmatprep.subr.bf16.mxu1 %v17904_v46  ;;  %v17977_v25 = vld [vmem:[%s18895_s29 + $0x30c0] ss:$8 sps:$4 sm:$0xff]   ;;  %v17982_v46 = vld [vmem:[%s18895_s29 + $0x15d4] ss:$8 sps:$4 sm:$0xff]  }
 0x5af   : > { %13408 = vmatprep.subr.bf16.mxu0 %v17907_v28  ;;  %v17985_v28 = vld [vmem:[%s18895_s29 + $0x30d4] ss:$8 sps:$4 sm:$0xff]  }
 0x5b0   : > { %12293 = vmatmul.mubr.bf16.vlgmr.msra.gmra.mrb[0].mxu1 %v20692_v11 }
 0x5b1   : > { %13400 = vmatmul.mubr.bf16.vlgmr.msra.gmra.mrb[0].mxu0 %v2616_v12  ;;  %12302 = vmatpush1.bf16.msra.mxu1 %v17902_v7  ;;  %v17983_v12 = vld [vmem:[%s18895_s29 + $0x30d0] ss:$8 sps:$4 sm:$0xff]   ;;  %v17988_v7 = vld [vmem:[%s18895_s29 + $0x15e4] ss:$8 sps:$4 sm:$0xff]  }
 0x5b2   : > { %13409 = vmatpush1.bf16.msra.mxu0 %v17905_v1  ;;  %12303 = vmatprep.subr.bf16.mxu1 %v17910_v56  ;;  %v17991_v1 = vld [vmem:[%s18895_s29 + $0x30e4] ss:$8 sps:$4 sm:$0xff]   ;;  %v2276_v56 = vcombine.high %v20588_v51, %v20588_v51  ;;  %v17995_v51 = vld [vmem:[%s18895_s29 + $0x30f0] ss:$8 sps:$4 sm:$0xff]  }
 0x5b3   : > { %13410 = vmatprep.subr.bf16.mxu0 %v17913_v59  ;;  %12333 = vmatprep.mubr.bf16.mxu1 %v2323_v33  ;;  %v17986_v59 = vld [vmem:[%s18895_s29 + $0x15e0] ss:$8 sps:$4 sm:$0xff]  }
 0x5b4   : > { %13440 = vmatprep.mubr.bf16.mxu0 %v20703_v31  ;;  %v17989_v33 = vld [vmem:[%s18895_s29 + $0x30e0] ss:$8 sps:$4 sm:$0xff]  }
 0x5b5   : > { %12304 = vmatpush1.bf16.msra.mxu1 %v17908_v41  ;;  %v17994_v41 = vld [vmem:[%s18895_s29 + $0x15f4] ss:$8 sps:$4 sm:$0xff]  }
 0x5b6   : > { %13411 = vmatpush1.bf16.msra.mxu0 %v17911_v39  ;;  %12305 = vmatprep.subr.bf16.mxu1 %v17916_v20  ;;  %v17997_v39 = vld [vmem:[%s18895_s29 + $0x30f4] ss:$8 sps:$4 sm:$0xff]   ;;  %v20766_v20 = vrot.slane %v2276_v56, %v18971_v52  ;;  %v18064_v56 = vld [vmem:[%s18895_s29 + $0x16b0] ss:$8 sps:$4 sm:$0xff]  }
 0x5b7   : > { %13412 = vmatprep.subr.bf16.mxu0 %v17919_v58  ;;  %v17992_v58 = vld [vmem:[%s18895_s29 + $0x15f0] ss:$8 sps:$4 sm:$0xff]  }
 0x5b9   : > { %12306 = vmatpush1.bf16.msra.mxu1 %v17914_v23  ;;  %v18000_v23 = vld [vmem:[%s18895_s29 + $0x1604] ss:$8 sps:$4 sm:$0xff]  }
 0x5ba   : > { %13413 = vmatpush1.bf16.msra.mxu0 %v17917_v24  ;;  %12307 = vmatprep.subr.bf16.mxu1 %v17922_v44  ;;  %v18003_v24 = vld [vmem:[%s18895_s29 + $0x3104] ss:$8 sps:$4 sm:$0xff]   ;;  %v2292_v44 = vcombine.high %v20766_v20, %v20766_v20 }
 0x5bb   : > { %13414 = vmatprep.subr.bf16.mxu0 %v17925_v49  ;;  %v2321_v49 = vcombine.high %v20692_v11, %v20692_v11  ;;  %v2666_v11 = vcombine.high %v20703_v31, %v20703_v31  ;;  %v18010_v31 = vld [vmem:[%s18895_s29 + $0x1620] ss:$8 sps:$4 sm:$0xff]  }
 0x5bd   : > { %12308 = vmatpush1.bf16.msra.mxu1 %v17920_v43  ;;  %v20778_v43 = vrot.slane %v20682_v21, %v18971_v52  ;;  %v18004_v21 = vld [vmem:[%s18895_s29 + $0x1610] ss:$8 sps:$4 sm:$0xff]  }
 0x5be   : > { %13415 = vmatpush1.bf16.msra.mxu0 %v17923_v27  ;;  %12309 = vmatprep.subr.bf16.mxu1 %v17928_v29  ;;  %v17998_v27 = vld [vmem:[%s18895_s29 + $0x1600] ss:$8 sps:$4 sm:$0xff]  }
 0x5bf   : > { %13416 = vmatprep.subr.bf16.mxu0 %v17931_v53  ;;  %v18001_v29 = vld [vmem:[%s18895_s29 + $0x3100] ss:$8 sps:$4 sm:$0xff]   ;;  %v18006_v53 = vld [vmem:[%s18895_s29 + $0x1614] ss:$8 sps:$4 sm:$0xff]  }
 0x5c1   : > { %12310 = vmatpush1.bf16.msra.mxu1 %v17926_v14  ;;  %v18009_v14 = vld [vmem:[%s18895_s29 + $0x3114] ss:$8 sps:$4 sm:$0xff]  }
 0x5c2   : > { %13417 = vmatpush1.bf16.msra.mxu0 %v17929_v54  ;;  %12311 = vmatprep.subr.bf16.mxu1 %v17934_v55  ;;  %v20785_v54 = vrot.slane %v2292_v44, %v18971_v52  ;;  %v18007_v55 = vld [vmem:[%s18895_s29 + $0x3110] ss:$8 sps:$4 sm:$0xff]  }
 0x5c3   : > { %13418 = vmatprep.subr.bf16.mxu0 %v17937_v57  ;;  %v18012_v57 = vld [vmem:[%s18895_s29 + $0x1624] ss:$8 sps:$4 sm:$0xff]   ;;  %v18079_v44 = vld [vmem:[%s18895_s29 + $0x31d0] ss:$8 sps:$4 sm:$0xff]  }
 0x5c5   : > { %12312 = vmatpush1.bf16.msra.mxu1 %v17932_v35  ;;  %v18015_v35 = vld [vmem:[%s18895_s29 + $0x3124] ss:$8 sps:$4 sm:$0xff]  }
 0x5c6   : > { %13419 = vmatpush1.bf16.msra.mxu0 %v17935_v34  ;;  %12313 = vmatprep.subr.bf16.mxu1 %v17940_v37  ;;  %v18013_v34 = vld [vmem:[%s18895_s29 + $0x3120] ss:$8 sps:$4 sm:$0xff]   ;;  %v18018_v37 = vld [vmem:[%s18895_s29 + $0x1634] ss:$8 sps:$4 sm:$0xff]  }
 0x5c7   : > { %13420 = vmatprep.subr.bf16.mxu0 %v17943_v42  ;;  %v18021_v42 = vld [vmem:[%s18895_s29 + $0x3134] ss:$8 sps:$4 sm:$0xff]  }
 0x5c9   : > { %12314 = vmatpush1.bf16.msra.mxu1 %v17938_v60  ;;  %v18016_v60 = vld [vmem:[%s18895_s29 + $0x1630] ss:$8 sps:$4 sm:$0xff]  }
 0x5ca   : > { %13421 = vmatpush1.bf16.msra.mxu0 %v17941_v40  ;;  %12315 = vmatprep.subr.bf16.mxu1 %v17946_v32  ;;  %v18019_v40 = vld [vmem:[%s18895_s29 + $0x3130] ss:$8 sps:$4 sm:$0xff]   ;;  %v18024_v32 = vld [vmem:[%s18895_s29 + $0x1644] ss:$8 sps:$4 sm:$0xff]  }
 0x5cb   : > { %13422 = vmatprep.subr.bf16.mxu0 %v17949_v62  ;;  %v18027_v62 = vld [vmem:[%s18895_s29 + $0x3144] ss:$8 sps:$4 sm:$0xff]  }
 0x5cd   : > { %12316 = vmatpush1.bf16.msra.mxu1 %v17944_v9  ;;  %v18022_v9 = vld [vmem:[%s18895_s29 + $0x1640] ss:$8 sps:$4 sm:$0xff]  }
 0x5ce   : > { %13423 = vmatpush1.bf16.msra.mxu0 %v17947_v0  ;;  %12317 = vmatprep.subr.bf16.mxu1 %v17952_v2  ;;  %v18025_v0 = vld [vmem:[%s18895_s29 + $0x3140] ss:$8 sps:$4 sm:$0xff]   ;;  %v18030_v2 = vld [vmem:[%s18895_s29 + $0x1654] ss:$8 sps:$4 sm:$0xff]  }
 0x5cf   : > { %13424 = vmatprep.subr.bf16.mxu0 %v17955_v3  ;;  %v18033_v3 = vld [vmem:[%s18895_s29 + $0x3154] ss:$8 sps:$4 sm:$0xff]  }
 0x5d1   : > { %12318 = vmatpush1.bf16.msra.mxu1 %v17950_v48  ;;  %v18028_v48 = vld [vmem:[%s18895_s29 + $0x1650] ss:$8 sps:$4 sm:$0xff]  }
 0x5d2   : > { %13425 = vmatpush1.bf16.msra.mxu0 %v17953_v45  ;;  %12319 = vmatprep.subr.bf16.mxu1 %v17958_v18  ;;  %v18031_v45 = vld [vmem:[%s18895_s29 + $0x3150] ss:$8 sps:$4 sm:$0xff]   ;;  %v18036_v18 = vld [vmem:[%s18895_s29 + $0x1664] ss:$8 sps:$4 sm:$0xff]  }
 0x5d3   : > { %13426 = vmatprep.subr.bf16.mxu0 %v17961_v8  ;;  %v18039_v8 = vld [vmem:[%s18895_s29 + $0x3164] ss:$8 sps:$4 sm:$0xff]  }
 0x5d5   : > { %12320 = vmatpush1.bf16.msra.mxu1 %v17956_v36  ;;  %v18034_v36 = vld [vmem:[%s18895_s29 + $0x1660] ss:$8 sps:$4 sm:$0xff]  }
 0x5d6   : > { %13427 = vmatpush1.bf16.msra.mxu0 %v17959_v30  ;;  %12321 = vmatprep.subr.bf16.mxu1 %v17964_v26  ;;  %v18037_v30 = vld [vmem:[%s18895_s29 + $0x3160] ss:$8 sps:$4 sm:$0xff]   ;;  %v18042_v26 = vld [vmem:[%s18895_s29 + $0x1674] ss:$8 sps:$4 sm:$0xff]  }
 0x5d7   : > { %13428 = vmatprep.subr.bf16.mxu0 %v17967_v17  ;;  %v18045_v17 = vld [vmem:[%s18895_s29 + $0x3174] ss:$8 sps:$4 sm:$0xff]  }
 0x5d9   : > { %12322 = vmatpush1.bf16.msra.mxu1 %v17962_v10  ;;  %v18040_v10 = vld [vmem:[%s18895_s29 + $0x1670] ss:$8 sps:$4 sm:$0xff]  }
 0x5da   : > { %13429 = vmatpush1.bf16.msra.mxu0 %v17965_v13  ;;  %12323 = vmatprep.subr.bf16.mxu1 %v17970_v16  ;;  %v18043_v13 = vld [vmem:[%s18895_s29 + $0x3170] ss:$8 sps:$4 sm:$0xff]   ;;  %v18048_v16 = vld [vmem:[%s18895_s29 + $0x1684] ss:$8 sps:$4 sm:$0xff]  }
 0x5db   : > { %13430 = vmatprep.subr.bf16.mxu0 %v17973_v50  ;;  %v18051_v50 = vld [vmem:[%s18895_s29 + $0x3184] ss:$8 sps:$4 sm:$0xff]  }
 0x5dd   : > { %12324 = vmatpush1.bf16.msra.mxu1 %v17968_v19  ;;  %v18046_v19 = vld [vmem:[%s18895_s29 + $0x1680] ss:$8 sps:$4 sm:$0xff]  }
 0x5de   : > { %13431 = vmatpush1.bf16.msra.mxu0 %v17971_v38  ;;  %12325 = vmatprep.subr.bf16.mxu1 %v17976_v6  ;;  %v18049_v38 = vld [vmem:[%s18895_s29 + $0x3180] ss:$8 sps:$4 sm:$0xff]   ;;  %v18054_v6 = vld [vmem:[%s18895_s29 + $0x1694] ss:$8 sps:$4 sm:$0xff]  }
 0x5df   : > { %13432 = vmatprep.subr.bf16.mxu0 %v17979_v61  ;;  %v18057_v61 = vld [vmem:[%s18895_s29 + $0x3194] ss:$8 sps:$4 sm:$0xff]  }
 0x5e1   : > { %12326 = vmatpush1.bf16.msra.mxu1 %v17974_v22  ;;  %v18052_v22 = vld [vmem:[%s18895_s29 + $0x1690] ss:$8 sps:$4 sm:$0xff]  }
 0x5e2   : > { %13433 = vmatpush1.bf16.msra.mxu0 %v17977_v25  ;;  %12327 = vmatprep.subr.bf16.mxu1 %v17982_v46  ;;  %v18055_v25 = vld [vmem:[%s18895_s29 + $0x3190] ss:$8 sps:$4 sm:$0xff]   ;;  %v18060_v46 = vld [vmem:[%s18895_s29 + $0x16a4] ss:$8 sps:$4 sm:$0xff]  }
 0x5e3   : > { %13434 = vmatprep.subr.bf16.mxu0 %v17985_v28  ;;  %v18063_v28 = vld [vmem:[%s18895_s29 + $0x31a4] ss:$8 sps:$4 sm:$0xff]  }
 0x5e5   : > { %12328 = vmatpush1.bf16.msra.mxu1 %v17980_v63  ;;  %v18058_v63 = vld [vmem:[%s18895_s29 + $0x16a0] ss:$8 sps:$4 sm:$0xff]  }
 0x5e6   : > { %13435 = vmatpush1.bf16.msra.mxu0 %v17983_v12  ;;  %12329 = vmatprep.subr.bf16.mxu1 %v17988_v7  ;;  %v18061_v12 = vld [vmem:[%s18895_s29 + $0x31a0] ss:$8 sps:$4 sm:$0xff]   ;;  %v18066_v7 = vld [vmem:[%s18895_s29 + $0x16b4] ss:$8 sps:$4 sm:$0xff]  }
 0x5e7   : > { %13436 = vmatprep.subr.bf16.mxu0 %v17991_v1  ;;  %v18069_v1 = vld [vmem:[%s18895_s29 + $0x31b4] ss:$8 sps:$4 sm:$0xff]  }
 0x5e9   : > { %12330 = vmatpush1.bf16.msra.mxu1 %v17986_v59  ;;  %v18067_v59 = vld [vmem:[%s18895_s29 + $0x31b0] ss:$8 sps:$4 sm:$0xff]  }
 0x5ea   : > { %13437 = vmatpush1.bf16.msra.mxu0 %v17989_v33  ;;  %12331 = vmatprep.subr.bf16.mxu1 %v17994_v41  ;;  %v18072_v33 = vld [vmem:[%s18895_s29 + $0x16c4] ss:$8 sps:$4 sm:$0xff]  }
 0x5eb   : > { %13438 = vmatprep.subr.bf16.mxu0 %v17997_v39  ;;  %v18075_v41 = vld [vmem:[%s18895_s29 + $0x31c4] ss:$8 sps:$4 sm:$0xff]   ;;  %v18070_v39 = vld [vmem:[%s18895_s29 + $0x16c0] ss:$8 sps:$4 sm:$0xff]  }
 0x5ed   : > { %12332 = vmatpush1.bf16.msra.mxu1 %v17992_v58  ;;  %v18073_v58 = vld [vmem:[%s18895_s29 + $0x31c0] ss:$8 sps:$4 sm:$0xff]  }
 0x5ee   : > { %13439 = vmatpush1.bf16.msra.mxu0 %v17995_v51  ;;  %12342 = vmatprep.subr.bf16.mxu1 %v18000_v23  ;;  %v18078_v51 = vld [vmem:[%s18895_s29 + $0x16d4] ss:$8 sps:$4 sm:$0xff]  }
 0x5ef   : > { %13449 = vmatprep.subr.bf16.mxu0 %v18003_v24  ;;  %v18081_v23 = vld [vmem:[%s18895_s29 + $0x31d4] ss:$8 sps:$4 sm:$0xff]   ;;  %v18076_v24 = vld [vmem:[%s18895_s29 + $0x16d0] ss:$8 sps:$4 sm:$0xff]  }
 0x5f0   : > { %12334 = vmatmul.mubr.bf16.vlgmr.msra.gmra.mrb[0].mxu1 %v2321_v49  ;;  %v18084_v49 = vld [vmem:[%s18895_s29 + $0x16e4] ss:$8 sps:$4 sm:$0xff]  }
 0x5f1   : > { %13441 = vmatmul.mubr.bf16.vlgmr.msra.gmra.mrb[0].mxu0 %v20778_v43  ;;  %12343 = vmatpush1.bf16.msra.mxu1 %v17998_v27  ;;  %v18087_v27 = vld [vmem:[%s18895_s29 + $0x31e4] ss:$8 sps:$4 sm:$0xff]  }
 0x5f2   : > { %13450 = vmatpush1.bf16.msra.mxu0 %v18001_v29  ;;  %12344 = vmatprep.subr.bf16.mxu1 %v18006_v53  ;;  %v2619_v29 = vcombine.high %v20674_v4, %v20674_v4  ;;  %v18082_v53 = vld [vmem:[%s18895_s29 + $0x16e0] ss:$8 sps:$4 sm:$0xff]   ;;  %v18091_v4 = vld [vmem:[%s18895_s29 + $0x31f0] ss:$8 sps:$4 sm:$0xff]  }
 0x5f3   : > { %13451 = vmatprep.subr.bf16.mxu0 %v18009_v14  ;;  %12374 = vmatprep.mubr.bf16.mxu1 %v20785_v54  ;;  %v18085_v14 = vld [vmem:[%s18895_s29 + $0x31e0] ss:$8 sps:$4 sm:$0xff]  }
 0x5f4   : > { %13481 = vmatprep.mubr.bf16.mxu0 %v2666_v11  ;;  %v18090_v11 = vld [vmem:[%s18895_s29 + $0x16f4] ss:$8 sps:$4 sm:$0xff]  }
 0x5f5   : > { %12345 = vmatpush1.bf16.msra.mxu1 %v18004_v21  ;;  %v18093_v21 = vld [vmem:[%s18895_s29 + $0x31f4] ss:$8 sps:$4 sm:$0xff]  }
 0x5f6   : > { %13452 = vmatpush1.bf16.msra.mxu0 %v18007_v55  ;;  %12346 = vmatprep.subr.bf16.mxu1 %v18012_v57  ;;  %v20850_v55 = vrot.slane %v2619_v29, %v18971_v52  ;;  %v18088_v57 = vld [vmem:[%s18895_s29 + $0x16f0] ss:$8 sps:$4 sm:$0xff]  }
 0x5f7   : > { %13453 = vmatprep.subr.bf16.mxu0 %v18015_v35  ;;  %v18097_v35 = vld [vmem:[%s18895_s29 + $0x1704] ss:$8 sps:$4 sm:$0xff]   ;;  %v18164_v29 = vld [vmem:[%s18895_s29 + $0x32b0] ss:$8 sps:$4 sm:$0xff]  }
 0x5f9   : > { %12347 = vmatpush1.bf16.msra.mxu1 %v18010_v31  ;;  %v18100_v31 = vld [vmem:[%s18895_s29 + $0x3204] ss:$8 sps:$4 sm:$0xff]  }
 0x5fa   : > { %13454 = vmatpush1.bf16.msra.mxu0 %v18013_v34  ;;  %12348 = vmatprep.subr.bf16.mxu1 %v18018_v37  ;;  %v2635_v34 = vcombine.high %v20850_v55, %v20850_v55  ;;  %v20860_v37 = vrot.slane %v20766_v20, %v18971_v52 }
 0x5fb   : > { %13455 = vmatprep.subr.bf16.mxu0 %v18021_v42  ;;  %v2664_v42 = vcombine.high %v20778_v43, %v20778_v43  ;;  %v18101_v43 = vld [vmem:[%s18895_s29 + $0x1710] ss:$8 sps:$4 sm:$0xff]  }
 0x5fc   : > { %v20871_v20 = vrot.slane %v2635_v34, %v18971_v52  ;;  %v18181_v34 = vld [vmem:[%s18895_s29 + $0x17e4] ss:$8 sps:$4 sm:$0xff]  }
 0x5fd   : > { %12349 = vmatpush1.bf16.msra.mxu1 %v18016_v60  ;;  %v18095_v60 = vld [vmem:[%s18895_s29 + $0x1700] ss:$8 sps:$4 sm:$0xff]  }
 0x5fe   : > { %13456 = vmatpush1.bf16.msra.mxu0 %v18019_v40  ;;  %12350 = vmatprep.subr.bf16.mxu1 %v18024_v32  ;;  %v18098_v40 = vld [vmem:[%s18895_s29 + $0x3200] ss:$8 sps:$4 sm:$0xff]   ;;  %v18103_v32 = vld [vmem:[%s18895_s29 + $0x1714] ss:$8 sps:$4 sm:$0xff]  }
 0x5ff   : > { %13457 = vmatprep.subr.bf16.mxu0 %v18027_v62  ;;  %v18106_v62 = vld [vmem:[%s18895_s29 + $0x3214] ss:$8 sps:$4 sm:$0xff]  }
 0x601   : > { %12351 = vmatpush1.bf16.msra.mxu1 %v18022_v9  ;;  %v2324_v9 = vcombine.high %v20785_v54, %v20785_v54  ;;  %v18112_v54 = vld [vmem:[%s18895_s29 + $0x3224] ss:$8 sps:$4 sm:$0xff]  }
 0x602   : > { %13458 = vmatpush1.bf16.msra.mxu0 %v18025_v0  ;;  %12352 = vmatprep.subr.bf16.mxu1 %v18030_v2  ;;  %v18104_v0 = vld [vmem:[%s18895_s29 + $0x3210] ss:$8 sps:$4 sm:$0xff]   ;;  %v18109_v2 = vld [vmem:[%s18895_s29 + $0x1724] ss:$8 sps:$4 sm:$0xff]  }
 0x603   : > { %13459 = vmatprep.subr.bf16.mxu0 %v18033_v3  ;;  %v18107_v3 = vld [vmem:[%s18895_s29 + $0x1720] ss:$8 sps:$4 sm:$0xff]  }
 0x605   : > { %12353 = vmatpush1.bf16.msra.mxu1 %v18028_v48  ;;  %v18110_v48 = vld [vmem:[%s18895_s29 + $0x3220] ss:$8 sps:$4 sm:$0xff]  }
 0x606   : > { %13460 = vmatpush1.bf16.msra.mxu0 %v18031_v45  ;;  %12354 = vmatprep.subr.bf16.mxu1 %v18036_v18  ;;  %v18115_v45 = vld [vmem:[%s18895_s29 + $0x1734] ss:$8 sps:$4 sm:$0xff]  }
 0x607   : > { %13461 = vmatprep.subr.bf16.mxu0 %v18039_v8  ;;  %v18118_v18 = vld [vmem:[%s18895_s29 + $0x3234] ss:$8 sps:$4 sm:$0xff]   ;;  %v18113_v8 = vld [vmem:[%s18895_s29 + $0x1730] ss:$8 sps:$4 sm:$0xff]  }
 0x609   : > { %12355 = vmatpush1.bf16.msra.mxu1 %v18034_v36  ;;  %v18116_v36 = vld [vmem:[%s18895_s29 + $0x3230] ss:$8 sps:$4 sm:$0xff]  }
 0x60a   : > { %13462 = vmatpush1.bf16.msra.mxu0 %v18037_v30  ;;  %12356 = vmatprep.subr.bf16.mxu1 %v18042_v26  ;;  %v18121_v30 = vld [vmem:[%s18895_s29 + $0x1744] ss:$8 sps:$4 sm:$0xff]  }
 0x60b   : > { %13463 = vmatprep.subr.bf16.mxu0 %v18045_v17  ;;  %v18124_v26 = vld [vmem:[%s18895_s29 + $0x3244] ss:$8 sps:$4 sm:$0xff]   ;;  %v18119_v17 = vld [vmem:[%s18895_s29 + $0x1740] ss:$8 sps:$4 sm:$0xff]  }
 0x60d   : > { %12357 = vmatpush1.bf16.msra.mxu1 %v18040_v10  ;;  %v18122_v10 = vld [vmem:[%s18895_s29 + $0x3240] ss:$8 sps:$4 sm:$0xff]  }
 0x60e   : > { %13464 = vmatpush1.bf16.msra.mxu0 %v18043_v13  ;;  %12358 = vmatprep.subr.bf16.mxu1 %v18048_v16  ;;  %v18127_v13 = vld [vmem:[%s18895_s29 + $0x1754] ss:$8 sps:$4 sm:$0xff]  }
 0x60f   : > { %13465 = vmatprep.subr.bf16.mxu0 %v18051_v50  ;;  %v18130_v16 = vld [vmem:[%s18895_s29 + $0x3254] ss:$8 sps:$4 sm:$0xff]   ;;  %v18125_v50 = vld [vmem:[%s18895_s29 + $0x1750] ss:$8 sps:$4 sm:$0xff]  }
 0x611   : > { %12359 = vmatpush1.bf16.msra.mxu1 %v18046_v19  ;;  %v18128_v19 = vld [vmem:[%s18895_s29 + $0x3250] ss:$8 sps:$4 sm:$0xff]  }
 0x612   : > { %13466 = vmatpush1.bf16.msra.mxu0 %v18049_v38  ;;  %12360 = vmatprep.subr.bf16.mxu1 %v18054_v6  ;;  %v18133_v38 = vld [vmem:[%s18895_s29 + $0x1764] ss:$8 sps:$4 sm:$0xff]  }
 0x613   : > { %13467 = vmatprep.subr.bf16.mxu0 %v18057_v61  ;;  %v18136_v6 = vld [vmem:[%s18895_s29 + $0x3264] ss:$8 sps:$4 sm:$0xff]   ;;  %v18131_v61 = vld [vmem:[%s18895_s29 + $0x1760] ss:$8 sps:$4 sm:$0xff]  }
 0x615   : > { %12361 = vmatpush1.bf16.msra.mxu1 %v18052_v22  ;;  %v18134_v22 = vld [vmem:[%s18895_s29 + $0x3260] ss:$8 sps:$4 sm:$0xff]  }
 0x616   : > { %13468 = vmatpush1.bf16.msra.mxu0 %v18055_v25  ;;  %12362 = vmatprep.subr.bf16.mxu1 %v18060_v46  ;;  %v18139_v25 = vld [vmem:[%s18895_s29 + $0x1774] ss:$8 sps:$4 sm:$0xff]  }
 0x617   : > { %13469 = vmatprep.subr.bf16.mxu0 %v18063_v28  ;;  %v18142_v46 = vld [vmem:[%s18895_s29 + $0x3274] ss:$8 sps:$4 sm:$0xff]   ;;  %v18137_v28 = vld [vmem:[%s18895_s29 + $0x1770] ss:$8 sps:$4 sm:$0xff]  }
 0x619   : > { %12363 = vmatpush1.bf16.msra.mxu1 %v18058_v63  ;;  %v18140_v63 = vld [vmem:[%s18895_s29 + $0x3270] ss:$8 sps:$4 sm:$0xff]  }
 0x61a   : > { %13470 = vmatpush1.bf16.msra.mxu0 %v18061_v12  ;;  %12364 = vmatprep.subr.bf16.mxu1 %v18066_v7  ;;  %v18145_v12 = vld [vmem:[%s18895_s29 + $0x1784] ss:$8 sps:$4 sm:$0xff]  }
 0x61b   : > { %13471 = vmatprep.subr.bf16.mxu0 %v18069_v1  ;;  %v18148_v7 = vld [vmem:[%s18895_s29 + $0x3284] ss:$8 sps:$4 sm:$0xff]   ;;  %v18143_v1 = vld [vmem:[%s18895_s29 + $0x1780] ss:$8 sps:$4 sm:$0xff]  }
 0x61d   : > { %12365 = vmatpush1.bf16.msra.mxu1 %v18064_v56  ;;  %v18146_v56 = vld [vmem:[%s18895_s29 + $0x3280] ss:$8 sps:$4 sm:$0xff]  }
 0x61e   : > { %13472 = vmatpush1.bf16.msra.mxu0 %v18067_v59  ;;  %12366 = vmatprep.subr.bf16.mxu1 %v18072_v33  ;;  %v18151_v59 = vld [vmem:[%s18895_s29 + $0x1794] ss:$8 sps:$4 sm:$0xff]  }
 0x61f   : > { %13473 = vmatprep.subr.bf16.mxu0 %v18075_v41  ;;  %v18154_v33 = vld [vmem:[%s18895_s29 + $0x3294] ss:$8 sps:$4 sm:$0xff]   ;;  %v18149_v41 = vld [vmem:[%s18895_s29 + $0x1790] ss:$8 sps:$4 sm:$0xff]  }
 0x621   : > { %12367 = vmatpush1.bf16.msra.mxu1 %v18070_v39  ;;  %v18152_v39 = vld [vmem:[%s18895_s29 + $0x3290] ss:$8 sps:$4 sm:$0xff]  }
 0x622   : > { %13474 = vmatpush1.bf16.msra.mxu0 %v18073_v58  ;;  %12368 = vmatprep.subr.bf16.mxu1 %v18078_v51  ;;  %v18157_v58 = vld [vmem:[%s18895_s29 + $0x17a4] ss:$8 sps:$4 sm:$0xff]  }
 0x623   : > { %13475 = vmatprep.subr.bf16.mxu0 %v18081_v23  ;;  %v18160_v51 = vld [vmem:[%s18895_s29 + $0x32a4] ss:$8 sps:$4 sm:$0xff]   ;;  %v18155_v23 = vld [vmem:[%s18895_s29 + $0x17a0] ss:$8 sps:$4 sm:$0xff]  }
 0x625   : > { %12369 = vmatpush1.bf16.msra.mxu1 %v18076_v24  ;;  %v18158_v24 = vld [vmem:[%s18895_s29 + $0x32a0] ss:$8 sps:$4 sm:$0xff]  }
 0x626   : > { %13476 = vmatpush1.bf16.msra.mxu0 %v18079_v44  ;;  %12370 = vmatprep.subr.bf16.mxu1 %v18084_v49  ;;  %v18163_v44 = vld [vmem:[%s18895_s29 + $0x17b4] ss:$8 sps:$4 sm:$0xff]  }
 0x627   : > { %13477 = vmatprep.subr.bf16.mxu0 %v18087_v27  ;;  %v18166_v49 = vld [vmem:[%s18895_s29 + $0x32b4] ss:$8 sps:$4 sm:$0xff]   ;;  %v18161_v27 = vld [vmem:[%s18895_s29 + $0x17b0] ss:$8 sps:$4 sm:$0xff]  }
 0x629   : > { %12371 = vmatpush1.bf16.msra.mxu1 %v18082_v53  ;;  %v18169_v53 = vld [vmem:[%s18895_s29 + $0x17c4] ss:$8 sps:$4 sm:$0xff]  }
 0x62a   : > { %13478 = vmatpush1.bf16.msra.mxu0 %v18085_v14  ;;  %12372 = vmatprep.subr.bf16.mxu1 %v18090_v11  ;;  %v18172_v14 = vld [vmem:[%s18895_s29 + $0x32c4] ss:$8 sps:$4 sm:$0xff]   ;;  %v18167_v11 = vld [vmem:[%s18895_s29 + $0x17c0] ss:$8 sps:$4 sm:$0xff]  }
 0x62b   : > { %13479 = vmatprep.subr.bf16.mxu0 %v18093_v21  ;;  %v18170_v21 = vld [vmem:[%s18895_s29 + $0x32c0] ss:$8 sps:$4 sm:$0xff]  }
 0x62d   : > { %12373 = vmatpush1.bf16.msra.mxu1 %v18088_v57  ;;  %v18175_v57 = vld [vmem:[%s18895_s29 + $0x17d4] ss:$8 sps:$4 sm:$0xff]  }
 0x62e   : > { %13480 = vmatpush1.bf16.msra.mxu0 %v18091_v4  ;;  %12383 = vmatprep.subr.bf16.mxu1 %v18097_v35  ;;  %v18178_v4 = vld [vmem:[%s18895_s29 + $0x32d4] ss:$8 sps:$4 sm:$0xff]   ;;  %v18173_v35 = vld [vmem:[%s18895_s29 + $0x17d0] ss:$8 sps:$4 sm:$0xff]  }
 0x62f   : > { %13490 = vmatprep.subr.bf16.mxu0 %v18100_v31  ;;  %v18176_v31 = vld [vmem:[%s18895_s29 + $0x32d0] ss:$8 sps:$4 sm:$0xff]  }
 0x630   : > { %12375 = vmatmul.mubr.bf16.vlgmr.msra.gmra.mrb[0].mxu1 %v20860_v37 }
 0x631   : > { %13482 = vmatmul.mubr.bf16.vlgmr.msra.gmra.mrb[0].mxu0 %v2664_v42  ;;  %12384 = vmatpush1.bf16.msra.mxu1 %v18095_v60  ;;  %v18184_v42 = vld [vmem:[%s18895_s29 + $0x32e4] ss:$8 sps:$4 sm:$0xff]   ;;  %v18179_v60 = vld [vmem:[%s18895_s29 + $0x17e0] ss:$8 sps:$4 sm:$0xff]  }
 0x632   : > { %13491 = vmatpush1.bf16.msra.mxu0 %v18098_v40  ;;  %12385 = vmatprep.subr.bf16.mxu1 %v18103_v32  ;;  %v18182_v40 = vld [vmem:[%s18895_s29 + $0x32e0] ss:$8 sps:$4 sm:$0xff]   ;;  %v18187_v32 = vld [vmem:[%s18895_s29 + $0x17f4] ss:$8 sps:$4 sm:$0xff]  }
 0x633   : > { %13492 = vmatprep.subr.bf16.mxu0 %v18106_v62  ;;  %12415 = vmatprep.mubr.bf16.mxu1 %v2324_v9  ;;  %v18190_v62 = vld [vmem:[%s18895_s29 + $0x32f4] ss:$8 sps:$4 sm:$0xff]   ;;  %v20932_v9 = vld.sshfl [vmem:[%s18914_s4 + $0x30] sm:$0xff pattern:$0x75316420] }
 0x634   : > { %13522 = vmatprep.mubr.bf16.mxu0 %v20871_v20 }
 0x635   : > { %12386 = vmatpush1.bf16.msra.mxu1 %v18101_v43  ;;  %v18185_v43 = vld [vmem:[%s18895_s29 + $0x17f0] ss:$8 sps:$4 sm:$0xff]  }
 0x636   : > { %13493 = vmatpush1.bf16.msra.mxu0 %v18104_v0  ;;  %12387 = vmatprep.subr.bf16.mxu1 %v18109_v2  ;;  %v18188_v0 = vld [vmem:[%s18895_s29 + $0x32f0] ss:$8 sps:$4 sm:$0xff]   ;;  %v18193_v2 = vld [vmem:[%s18895_s29 + $0x1804] ss:$8 sps:$4 sm:$0xff]  }
 0x637   : > { %13494 = vmatprep.subr.bf16.mxu0 %v18112_v54  ;;  %v18197_v54 = vld [vmem:[%s18895_s29 + $0x3304] ss:$8 sps:$4 sm:$0xff]  }
 0x639   : > { %12388 = vmatpush1.bf16.msra.mxu1 %v18107_v3  ;;  %v2340_v3 = vcombine.high %v20932_v9, %v20932_v9 }
 0x63a   : > { %13495 = vmatpush1.bf16.msra.mxu0 %v18110_v48  ;;  %12389 = vmatprep.subr.bf16.mxu1 %v18115_v45  ;;  %v2322_v48 = vcombine.high %v20860_v37, %v20860_v37  ;;  %v20944_v45 = vrot.slane %v20850_v55, %v18971_v52  ;;  %v2667_v37 = vcombine.high %v20871_v20, %v20871_v20  ;;  %v18198_v55 = vld [vmem:[%s18895_s29 + $0x1810] ss:$8 sps:$4 sm:$0xff]   ;;  %v18204_v20 = vld [vmem:[%s18895_s29 + $0x1820] ss:$8 sps:$4 sm:$0xff]  }
 0x63b   : > { %13496 = vmatprep.subr.bf16.mxu0 %v18118_v18  ;;  %v18191_v18 = vld [vmem:[%s18895_s29 + $0x1800] ss:$8 sps:$4 sm:$0xff]  }
 0x63d   : > { %12390 = vmatpush1.bf16.msra.mxu1 %v18113_v8  ;;  %v18195_v8 = vld [vmem:[%s18895_s29 + $0x3300] ss:$8 sps:$4 sm:$0xff]  }
 0x63e   : > { %13497 = vmatpush1.bf16.msra.mxu0 %v18116_v36  ;;  %12391 = vmatprep.subr.bf16.mxu1 %v18121_v30  ;;  %v18200_v36 = vld [vmem:[%s18895_s29 + $0x1814] ss:$8 sps:$4 sm:$0xff]  }
 0x63f   : > { %13498 = vmatprep.subr.bf16.mxu0 %v18124_v26  ;;  %v18203_v30 = vld [vmem:[%s18895_s29 + $0x3314] ss:$8 sps:$4 sm:$0xff]   ;;  %v20951_v26 = vrot.slane %v2340_v3, %v18971_v52  ;;  %v18278_v3 = vld [vmem:[%s18895_s29 + $0x18e4] ss:$8 sps:$4 sm:$0xff]  }
 0x641   : > { %12392 = vmatpush1.bf16.msra.mxu1 %v18119_v17  ;;  %v18201_v17 = vld [vmem:[%s18895_s29 + $0x3310] ss:$8 sps:$4 sm:$0xff]  }
 0x642   : > { %13499 = vmatpush1.bf16.msra.mxu0 %v18122_v10  ;;  %12393 = vmatprep.subr.bf16.mxu1 %v18127_v13  ;;  %v18206_v10 = vld [vmem:[%s18895_s29 + $0x1824] ss:$8 sps:$4 sm:$0xff]  }
 0x643   : > { %13500 = vmatprep.subr.bf16.mxu0 %v18130_v16  ;;  %v18209_v13 = vld [vmem:[%s18895_s29 + $0x3324] ss:$8 sps:$4 sm:$0xff]   ;;  %v18207_v16 = vld [vmem:[%s18895_s29 + $0x3320] ss:$8 sps:$4 sm:$0xff]  }
 0x645   : > { %12394 = vmatpush1.bf16.msra.mxu1 %v18125_v50  ;;  %v18212_v50 = vld [vmem:[%s18895_s29 + $0x1834] ss:$8 sps:$4 sm:$0xff]  }
 0x646   : > { %13501 = vmatpush1.bf16.msra.mxu0 %v18128_v19  ;;  %12395 = vmatprep.subr.bf16.mxu1 %v18133_v38  ;;  %v18215_v19 = vld [vmem:[%s18895_s29 + $0x3334] ss:$8 sps:$4 sm:$0xff]   ;;  %v18210_v38 = vld [vmem:[%s18895_s29 + $0x1830] ss:$8 sps:$4 sm:$0xff]  }
 0x647   : > { %13502 = vmatprep.subr.bf16.mxu0 %v18136_v6  ;;  %v18213_v6 = vld [vmem:[%s18895_s29 + $0x3330] ss:$8 sps:$4 sm:$0xff]  }
 0x649   : > { %12396 = vmatpush1.bf16.msra.mxu1 %v18131_v61  ;;  %v18218_v61 = vld [vmem:[%s18895_s29 + $0x1844] ss:$8 sps:$4 sm:$0xff]  }
 0x64a   : > { %13503 = vmatpush1.bf16.msra.mxu0 %v18134_v22  ;;  %12397 = vmatprep.subr.bf16.mxu1 %v18139_v25  ;;  %v18221_v22 = vld [vmem:[%s18895_s29 + $0x3344] ss:$8 sps:$4 sm:$0xff]   ;;  %v18216_v25 = vld [vmem:[%s18895_s29 + $0x1840] ss:$8 sps:$4 sm:$0xff]  }
 0x64b   : > { %13504 = vmatprep.subr.bf16.mxu0 %v18142_v46  ;;  %v18219_v46 = vld [vmem:[%s18895_s29 + $0x3340] ss:$8 sps:$4 sm:$0xff]  }
 0x64d   : > { %12398 = vmatpush1.bf16.msra.mxu1 %v18137_v28  ;;  %v18224_v28 = vld [vmem:[%s18895_s29 + $0x1854] ss:$8 sps:$4 sm:$0xff]  }
 0x64e   : > { %13505 = vmatpush1.bf16.msra.mxu0 %v18140_v63  ;;  %12399 = vmatprep.subr.bf16.mxu1 %v18145_v12  ;;  %v18227_v63 = vld [vmem:[%s18895_s29 + $0x3354] ss:$8 sps:$4 sm:$0xff]   ;;  %v18222_v12 = vld [vmem:[%s18895_s29 + $0x1850] ss:$8 sps:$4 sm:$0xff]  }
 0x64f   : > { %13506 = vmatprep.subr.bf16.mxu0 %v18148_v7  ;;  %v18225_v7 = vld [vmem:[%s18895_s29 + $0x3350] ss:$8 sps:$4 sm:$0xff]  }
 0x651   : > { %12400 = vmatpush1.bf16.msra.mxu1 %v18143_v1  ;;  %v18230_v1 = vld [vmem:[%s18895_s29 + $0x1864] ss:$8 sps:$4 sm:$0xff]  }
 0x652   : > { %13507 = vmatpush1.bf16.msra.mxu0 %v18146_v56  ;;  %12401 = vmatprep.subr.bf16.mxu1 %v18151_v59  ;;  %v18233_v56 = vld [vmem:[%s18895_s29 + $0x3364] ss:$8 sps:$4 sm:$0xff]   ;;  %v18228_v59 = vld [vmem:[%s18895_s29 + $0x1860] ss:$8 sps:$4 sm:$0xff]  }
 0x653   : > { %13508 = vmatprep.subr.bf16.mxu0 %v18154_v33  ;;  %v18231_v33 = vld [vmem:[%s18895_s29 + $0x3360] ss:$8 sps:$4 sm:$0xff]  }
 0x655   : > { %12402 = vmatpush1.bf16.msra.mxu1 %v18149_v41  ;;  %v18236_v41 = vld [vmem:[%s18895_s29 + $0x1874] ss:$8 sps:$4 sm:$0xff]  }
 0x656   : > { %13509 = vmatpush1.bf16.msra.mxu0 %v18152_v39  ;;  %12403 = vmatprep.subr.bf16.mxu1 %v18157_v58  ;;  %v18239_v39 = vld [vmem:[%s18895_s29 + $0x3374] ss:$8 sps:$4 sm:$0xff]   ;;  %v18234_v58 = vld [vmem:[%s18895_s29 + $0x1870] ss:$8 sps:$4 sm:$0xff]  }
 0x657   : > { %13510 = vmatprep.subr.bf16.mxu0 %v18160_v51  ;;  %v18237_v51 = vld [vmem:[%s18895_s29 + $0x3370] ss:$8 sps:$4 sm:$0xff]  }
 0x659   : > { %12404 = vmatpush1.bf16.msra.mxu1 %v18155_v23  ;;  %v18242_v23 = vld [vmem:[%s18895_s29 + $0x1884] ss:$8 sps:$4 sm:$0xff]  }
 0x65a   : > { %13511 = vmatpush1.bf16.msra.mxu0 %v18158_v24  ;;  %12405 = vmatprep.subr.bf16.mxu1 %v18163_v44  ;;  %v18245_v24 = vld [vmem:[%s18895_s29 + $0x3384] ss:$8 sps:$4 sm:$0xff]   ;;  %v18240_v44 = vld [vmem:[%s18895_s29 + $0x1880] ss:$8 sps:$4 sm:$0xff]  }
 0x65b   : > { %13512 = vmatprep.subr.bf16.mxu0 %v18166_v49  ;;  %v18243_v49 = vld [vmem:[%s18895_s29 + $0x3380] ss:$8 sps:$4 sm:$0xff]  }
 0x65d   : > { %12406 = vmatpush1.bf16.msra.mxu1 %v18161_v27  ;;  %v18248_v27 = vld [vmem:[%s18895_s29 + $0x1894] ss:$8 sps:$4 sm:$0xff]  }
 0x65e   : > { %13513 = vmatpush1.bf16.msra.mxu0 %v18164_v29  ;;  %12407 = vmatprep.subr.bf16.mxu1 %v18169_v53  ;;  %v18251_v29 = vld [vmem:[%s18895_s29 + $0x3394] ss:$8 sps:$4 sm:$0xff]   ;;  %v18246_v53 = vld [vmem:[%s18895_s29 + $0x1890] ss:$8 sps:$4 sm:$0xff]  }
 0x65f   : > { %13514 = vmatprep.subr.bf16.mxu0 %v18172_v14  ;;  %v18249_v14 = vld [vmem:[%s18895_s29 + $0x3390] ss:$8 sps:$4 sm:$0xff]  }
 0x661   : > { %12408 = vmatpush1.bf16.msra.mxu1 %v18167_v11  ;;  %v18254_v11 = vld [vmem:[%s18895_s29 + $0x18a4] ss:$8 sps:$4 sm:$0xff]  }
 0x662   : > { %13515 = vmatpush1.bf16.msra.mxu0 %v18170_v21  ;;  %12409 = vmatprep.subr.bf16.mxu1 %v18175_v57  ;;  %v18257_v21 = vld [vmem:[%s18895_s29 + $0x33a4] ss:$8 sps:$4 sm:$0xff]   ;;  %v18252_v57 = vld [vmem:[%s18895_s29 + $0x18a0] ss:$8 sps:$4 sm:$0xff]  }
 0x663   : > { %13516 = vmatprep.subr.bf16.mxu0 %v18178_v4  ;;  %v18255_v4 = vld [vmem:[%s18895_s29 + $0x33a0] ss:$8 sps:$4 sm:$0xff]  }
 0x665   : > { %12410 = vmatpush1.bf16.msra.mxu1 %v18173_v35  ;;  %v18260_v35 = vld [vmem:[%s18895_s29 + $0x18b4] ss:$8 sps:$4 sm:$0xff]  }
 0x666   : > { %13517 = vmatpush1.bf16.msra.mxu0 %v18176_v31  ;;  %12411 = vmatprep.subr.bf16.mxu1 %v18181_v34  ;;  %v18263_v31 = vld [vmem:[%s18895_s29 + $0x33b4] ss:$8 sps:$4 sm:$0xff]   ;;  %v18258_v34 = vld [vmem:[%s18895_s29 + $0x18b0] ss:$8 sps:$4 sm:$0xff]  }
 0x667   : > { %13518 = vmatprep.subr.bf16.mxu0 %v18184_v42  ;;  %v18261_v42 = vld [vmem:[%s18895_s29 + $0x33b0] ss:$8 sps:$4 sm:$0xff]  }
 0x669   : > { %12412 = vmatpush1.bf16.msra.mxu1 %v18179_v60  ;;  %v18266_v60 = vld [vmem:[%s18895_s29 + $0x18c4] ss:$8 sps:$4 sm:$0xff]  }
 0x66a   : > { %13519 = vmatpush1.bf16.msra.mxu0 %v18182_v40  ;;  %12413 = vmatprep.subr.bf16.mxu1 %v18187_v32  ;;  %v18269_v40 = vld [vmem:[%s18895_s29 + $0x33c4] ss:$8 sps:$4 sm:$0xff]   ;;  %v18264_v32 = vld [vmem:[%s18895_s29 + $0x18c0] ss:$8 sps:$4 sm:$0xff]  }
 0x66b   : > { %13520 = vmatprep.subr.bf16.mxu0 %v18190_v62  ;;  %v18267_v62 = vld [vmem:[%s18895_s29 + $0x33c0] ss:$8 sps:$4 sm:$0xff]  }
 0x66d   : > { %12414 = vmatpush1.bf16.msra.mxu1 %v18185_v43  ;;  %v18272_v43 = vld [vmem:[%s18895_s29 + $0x18d4] ss:$8 sps:$4 sm:$0xff]  }
 0x66e   : > { %13521 = vmatpush1.bf16.msra.mxu0 %v18188_v0  ;;  %12424 = vmatprep.subr.bf16.mxu1 %v18193_v2  ;;  %v18275_v0 = vld [vmem:[%s18895_s29 + $0x33d4] ss:$8 sps:$4 sm:$0xff]   ;;  %v18270_v2 = vld [vmem:[%s18895_s29 + $0x18d0] ss:$8 sps:$4 sm:$0xff]  }
 0x66f   : > { %13531 = vmatprep.subr.bf16.mxu0 %v18197_v54  ;;  %v18273_v54 = vld [vmem:[%s18895_s29 + $0x33d0] ss:$8 sps:$4 sm:$0xff]  }
 0x670   : > { %12416 = vmatmul.mubr.bf16.vlgmr.msra.gmra.mrb[0].mxu1 %v2322_v48  ;;  %v18281_v48 = vld [vmem:[%s18895_s29 + $0x33e4] ss:$8 sps:$4 sm:$0xff]  }
 0x671   : > { %13523 = vmatmul.mubr.bf16.vlgmr.msra.gmra.mrb[0].mxu0 %v20944_v45  ;;  %12425 = vmatpush1.bf16.msra.mxu1 %v18191_v18  ;;  %v18276_v18 = vld [vmem:[%s18895_s29 + $0x18e0] ss:$8 sps:$4 sm:$0xff]  }
 0x672   : > { %13532 = vmatpush1.bf16.msra.mxu0 %v18195_v8  ;;  %12426 = vmatprep.subr.bf16.mxu1 %v18200_v36  ;;  %v18279_v8 = vld [vmem:[%s18895_s29 + $0x33e0] ss:$8 sps:$4 sm:$0xff]   ;;  %v18284_v36 = vld [vmem:[%s18895_s29 + $0x18f4] ss:$8 sps:$4 sm:$0xff]  }
 0x673   : > { %13533 = vmatprep.subr.bf16.mxu0 %v18203_v30  ;;  %12456 = vmatprep.mubr.bf16.mxu1 %v20951_v26  ;;  %v18287_v30 = vld [vmem:[%s18895_s29 + $0x33f4] ss:$8 sps:$4 sm:$0xff]  }
 0x674   : > { %13563 = vmatprep.mubr.bf16.mxu0 %v2667_v37  ;;  %v21014_v37 = vld.sshfl [vmem:[%s18914_s4 + $0x68] sm:$0x33 pattern:$0x75316420] }
 0x675   : > { %12427 = vmatpush1.bf16.msra.mxu1 %v18198_v55  ;;  %v18282_v55 = vld [vmem:[%s18895_s29 + $0x18f0] ss:$8 sps:$4 sm:$0xff]  }
 0x676   : > { %13534 = vmatpush1.bf16.msra.mxu0 %v18201_v17  ;;  %12428 = vmatprep.subr.bf16.mxu1 %v18206_v10  ;;  %v18285_v17 = vld [vmem:[%s18895_s29 + $0x33f0] ss:$8 sps:$4 sm:$0xff]   ;;  %v18290_v10 = vld [vmem:[%s18895_s29 + $0x1904] ss:$8 sps:$4 sm:$0xff]  }
 0x677   : > { %13535 = vmatprep.subr.bf16.mxu0 %v18209_v13  ;;  %v18293_v13 = vld [vmem:[%s18895_s29 + $0x3404] ss:$8 sps:$4 sm:$0xff]  }
 0x679   : > { %12429 = vmatpush1.bf16.msra.mxu1 %v18204_v20  ;;  %v2675_v20 = vcombine.high %v21014_v37, %v21014_v37 }
 0x67a   : > { %13536 = vmatpush1.bf16.msra.mxu0 %v18207_v16  ;;  %12430 = vmatprep.subr.bf16.mxu1 %v18212_v50  ;;  %v21024_v16 = vrot.slane %v20932_v9, %v18971_v52  ;;  %v2665_v50 = vcombine.high %v20944_v45, %v20944_v45  ;;  %v18294_v45 = vld [vmem:[%s18895_s29 + $0x1910] ss:$8 sps:$4 sm:$0xff]  }
 0x67b   : > { %13537 = vmatprep.subr.bf16.mxu0 %v18215_v19  ;;  %v18288_v19 = vld [vmem:[%s18895_s29 + $0x1900] ss:$8 sps:$4 sm:$0xff]   ;;  %v21035_v9 = vrot.slane %v2675_v20, %v18971_v52  ;;  %v18374_v20 = vld [vmem:[%s18895_s29 + $0x19e4] ss:$8 sps:$4 sm:$0xff]  }
 0x67d   : > { %12431 = vmatpush1.bf16.msra.mxu1 %v18210_v38  ;;  %v18291_v38 = vld [vmem:[%s18895_s29 + $0x3400] ss:$8 sps:$4 sm:$0xff]  }
 0x67e   : > { %13538 = vmatpush1.bf16.msra.mxu0 %v18213_v6  ;;  %12432 = vmatprep.subr.bf16.mxu1 %v18218_v61  ;;  %v18296_v6 = vld [vmem:[%s18895_s29 + $0x1914] ss:$8 sps:$4 sm:$0xff]  }
 0x67f   : > { %13539 = vmatprep.subr.bf16.mxu0 %v18221_v22  ;;  %v18299_v61 = vld [vmem:[%s18895_s29 + $0x3414] ss:$8 sps:$4 sm:$0xff]   ;;  %v2372_v22 = vcombine.high %v20951_v26, %v20951_v26  ;;  %v18305_v26 = vld [vmem:[%s18895_s29 + $0x3424] ss:$8 sps:$4 sm:$0xff]  }
 0x681   : > { %12433 = vmatpush1.bf16.msra.mxu1 %v18216_v25  ;;  %v18297_v25 = vld [vmem:[%s18895_s29 + $0x3410] ss:$8 sps:$4 sm:$0xff]  }
 0x682   : > { %13540 = vmatpush1.bf16.msra.mxu0 %v18219_v46  ;;  %12434 = vmatprep.subr.bf16.mxu1 %v18224_v28  ;;  %v18302_v46 = vld [vmem:[%s18895_s29 + $0x1924] ss:$8 sps:$4 sm:$0xff]   ;;  %v18300_v28 = vld [vmem:[%s18895_s29 + $0x1920] ss:$8 sps:$4 sm:$0xff]  }
 0x683   : > { %13541 = vmatprep.subr.bf16.mxu0 %v18227_v63  ;;  %v18303_v63 = vld [vmem:[%s18895_s29 + $0x3420] ss:$8 sps:$4 sm:$0xff]  }
 0x685   : > { %12435 = vmatpush1.bf16.msra.mxu1 %v18222_v12  ;;  %v18308_v12 = vld [vmem:[%s18895_s29 + $0x1934] ss:$8 sps:$4 sm:$0xff]  }
 0x686   : > { %13542 = vmatpush1.bf16.msra.mxu0 %v18225_v7  ;;  %12436 = vmatprep.subr.bf16.mxu1 %v18230_v1  ;;  %v18311_v7 = vld [vmem:[%s18895_s29 + $0x3434] ss:$8 sps:$4 sm:$0xff]   ;;  %v18306_v1 = vld [vmem:[%s18895_s29 + $0x1930] ss:$8 sps:$4 sm:$0xff]  }
 0x687   : > { %13543 = vmatprep.subr.bf16.mxu0 %v18233_v56  ;;  %v18309_v56 = vld [vmem:[%s18895_s29 + $0x3430] ss:$8 sps:$4 sm:$0xff]  }
 0x689   : > { %12437 = vmatpush1.bf16.msra.mxu1 %v18228_v59  ;;  %v18314_v59 = vld [vmem:[%s18895_s29 + $0x1944] ss:$8 sps:$4 sm:$0xff]  }
 0x68a   : > { %13544 = vmatpush1.bf16.msra.mxu0 %v18231_v33  ;;  %12438 = vmatprep.subr.bf16.mxu1 %v18236_v41  ;;  %v18317_v33 = vld [vmem:[%s18895_s29 + $0x3444] ss:$8 sps:$4 sm:$0xff]   ;;  %v18312_v41 = vld [vmem:[%s18895_s29 + $0x1940] ss:$8 sps:$4 sm:$0xff]  }
 0x68b   : > { %13545 = vmatprep.subr.bf16.mxu0 %v18239_v39  ;;  %v18315_v39 = vld [vmem:[%s18895_s29 + $0x3440] ss:$8 sps:$4 sm:$0xff]  }
 0x68d   : > { %12439 = vmatpush1.bf16.msra.mxu1 %v18234_v58  ;;  %v18320_v58 = vld [vmem:[%s18895_s29 + $0x1954] ss:$8 sps:$4 sm:$0xff]  }
 0x68e   : > { %13546 = vmatpush1.bf16.msra.mxu0 %v18237_v51  ;;  %12440 = vmatprep.subr.bf16.mxu1 %v18242_v23  ;;  %v18323_v51 = vld [vmem:[%s18895_s29 + $0x3454] ss:$8 sps:$4 sm:$0xff]   ;;  %v18318_v23 = vld [vmem:[%s18895_s29 + $0x1950] ss:$8 sps:$4 sm:$0xff]  }
 0x68f   : > { %13547 = vmatprep.subr.bf16.mxu0 %v18245_v24  ;;  %v18321_v24 = vld [vmem:[%s18895_s29 + $0x3450] ss:$8 sps:$4 sm:$0xff]  }
 0x691   : > { %12441 = vmatpush1.bf16.msra.mxu1 %v18240_v44  ;;  %v18326_v44 = vld [vmem:[%s18895_s29 + $0x1964] ss:$8 sps:$4 sm:$0xff]  }
 0x692   : > { %13548 = vmatpush1.bf16.msra.mxu0 %v18243_v49  ;;  %12442 = vmatprep.subr.bf16.mxu1 %v18248_v27  ;;  %v18329_v49 = vld [vmem:[%s18895_s29 + $0x3464] ss:$8 sps:$4 sm:$0xff]   ;;  %v18324_v27 = vld [vmem:[%s18895_s29 + $0x1960] ss:$8 sps:$4 sm:$0xff]  }
 0x693   : > { %13549 = vmatprep.subr.bf16.mxu0 %v18251_v29  ;;  %v18327_v29 = vld [vmem:[%s18895_s29 + $0x3460] ss:$8 sps:$4 sm:$0xff]  }
 0x695   : > { %12443 = vmatpush1.bf16.msra.mxu1 %v18246_v53  ;;  %v18332_v53 = vld [vmem:[%s18895_s29 + $0x1974] ss:$8 sps:$4 sm:$0xff]  }
 0x696   : > { %13550 = vmatpush1.bf16.msra.mxu0 %v18249_v14  ;;  %12444 = vmatprep.subr.bf16.mxu1 %v18254_v11  ;;  %v18335_v14 = vld [vmem:[%s18895_s29 + $0x3474] ss:$8 sps:$4 sm:$0xff]   ;;  %v18330_v11 = vld [vmem:[%s18895_s29 + $0x1970] ss:$8 sps:$4 sm:$0xff]  }
 0x697   : > { %13551 = vmatprep.subr.bf16.mxu0 %v18257_v21  ;;  %v18333_v21 = vld [vmem:[%s18895_s29 + $0x3470] ss:$8 sps:$4 sm:$0xff]  }
 0x699   : > { %12445 = vmatpush1.bf16.msra.mxu1 %v18252_v57  ;;  %v18338_v57 = vld [vmem:[%s18895_s29 + $0x1984] ss:$8 sps:$4 sm:$0xff]  }
 0x69a   : > { %13552 = vmatpush1.bf16.msra.mxu0 %v18255_v4  ;;  %12446 = vmatprep.subr.bf16.mxu1 %v18260_v35  ;;  %v18341_v4 = vld [vmem:[%s18895_s29 + $0x3484] ss:$8 sps:$4 sm:$0xff]   ;;  %v18336_v35 = vld [vmem:[%s18895_s29 + $0x1980] ss:$8 sps:$4 sm:$0xff]  }
 0x69b   : > { %13553 = vmatprep.subr.bf16.mxu0 %v18263_v31  ;;  %v18339_v31 = vld [vmem:[%s18895_s29 + $0x3480] ss:$8 sps:$4 sm:$0xff]  }
 0x69d   : > { %12447 = vmatpush1.bf16.msra.mxu1 %v18258_v34  ;;  %v18344_v34 = vld [vmem:[%s18895_s29 + $0x1994] ss:$8 sps:$4 sm:$0xff]  }
 0x69e   : > { %13554 = vmatpush1.bf16.msra.mxu0 %v18261_v42  ;;  %12448 = vmatprep.subr.bf16.mxu1 %v18266_v60  ;;  %v18347_v42 = vld [vmem:[%s18895_s29 + $0x3494] ss:$8 sps:$4 sm:$0xff]   ;;  %v18342_v60 = vld [vmem:[%s18895_s29 + $0x1990] ss:$8 sps:$4 sm:$0xff]  }
 0x69f   : > { %13555 = vmatprep.subr.bf16.mxu0 %v18269_v40  ;;  %v18345_v40 = vld [vmem:[%s18895_s29 + $0x3490] ss:$8 sps:$4 sm:$0xff]  }
 0x6a1   : > { %12449 = vmatpush1.bf16.msra.mxu1 %v18264_v32  ;;  %v18350_v32 = vld [vmem:[%s18895_s29 + $0x19a4] ss:$8 sps:$4 sm:$0xff]  }
 0x6a2   : > { %13556 = vmatpush1.bf16.msra.mxu0 %v18267_v62  ;;  %12450 = vmatprep.subr.bf16.mxu1 %v18272_v43  ;;  %v18353_v62 = vld [vmem:[%s18895_s29 + $0x34a4] ss:$8 sps:$4 sm:$0xff]   ;;  %v18348_v43 = vld [vmem:[%s18895_s29 + $0x19a0] ss:$8 sps:$4 sm:$0xff]  }
 0x6a3   : > { %13557 = vmatprep.subr.bf16.mxu0 %v18275_v0  ;;  %v18351_v0 = vld [vmem:[%s18895_s29 + $0x34a0] ss:$8 sps:$4 sm:$0xff]  }
 0x6a5   : > { %12451 = vmatpush1.bf16.msra.mxu1 %v18270_v2  ;;  %v18356_v2 = vld [vmem:[%s18895_s29 + $0x19b4] ss:$8 sps:$4 sm:$0xff]  }
 0x6a6   : > { %13558 = vmatpush1.bf16.msra.mxu0 %v18273_v54  ;;  %12452 = vmatprep.subr.bf16.mxu1 %v18278_v3  ;;  %v18359_v54 = vld [vmem:[%s18895_s29 + $0x34b4] ss:$8 sps:$4 sm:$0xff]   ;;  %v18354_v3 = vld [vmem:[%s18895_s29 + $0x19b0] ss:$8 sps:$4 sm:$0xff]  }
 0x6a7   : > { %13559 = vmatprep.subr.bf16.mxu0 %v18281_v48  ;;  %v18357_v48 = vld [vmem:[%s18895_s29 + $0x34b0] ss:$8 sps:$4 sm:$0xff]  }
 0x6a9   : > { %12453 = vmatpush1.bf16.msra.mxu1 %v18276_v18  ;;  %v18362_v18 = vld [vmem:[%s18895_s29 + $0x19c4] ss:$8 sps:$4 sm:$0xff]  }
 0x6aa   : > { %13560 = vmatpush1.bf16.msra.mxu0 %v18279_v8  ;;  %12454 = vmatprep.subr.bf16.mxu1 %v18284_v36  ;;  %v18365_v8 = vld [vmem:[%s18895_s29 + $0x34c4] ss:$8 sps:$4 sm:$0xff]   ;;  %v18360_v36 = vld [vmem:[%s18895_s29 + $0x19c0] ss:$8 sps:$4 sm:$0xff]  }
 0x6ab   : > { %13561 = vmatprep.subr.bf16.mxu0 %v18287_v30  ;;  %v18363_v30 = vld [vmem:[%s18895_s29 + $0x34c0] ss:$8 sps:$4 sm:$0xff]  }
 0x6ad   : > { %12455 = vmatpush1.bf16.msra.mxu1 %v18282_v55  ;;  %v18368_v55 = vld [vmem:[%s18895_s29 + $0x19d4] ss:$8 sps:$4 sm:$0xff]  }
 0x6ae   : > { %13562 = vmatpush1.bf16.msra.mxu0 %v18285_v17  ;;  %12465 = vmatprep.subr.bf16.mxu1 %v18290_v10  ;;  %v18371_v17 = vld [vmem:[%s18895_s29 + $0x34d4] ss:$8 sps:$4 sm:$0xff]   ;;  %v18366_v10 = vld [vmem:[%s18895_s29 + $0x19d0] ss:$8 sps:$4 sm:$0xff]  }
 0x6af   : > { %13572 = vmatprep.subr.bf16.mxu0 %v18293_v13  ;;  %v18369_v13 = vld [vmem:[%s18895_s29 + $0x34d0] ss:$8 sps:$4 sm:$0xff]  }
 0x6b0   : > { %12457 = vmatmul.mubr.bf16.vlgmr.msra.gmra.mrb[0].mxu1 %v21024_v16 }
 0x6b1   : > { %13564 = vmatmul.mubr.bf16.vlgmr.msra.gmra.mrb[0].mxu0 %v2665_v50  ;;  %12466 = vmatpush1.bf16.msra.mxu1 %v18288_v19  ;;  %v18377_v50 = vld [vmem:[%s18895_s29 + $0x34e4] ss:$8 sps:$4 sm:$0xff]   ;;  %v18372_v19 = vld [vmem:[%s18895_s29 + $0x19e0] ss:$8 sps:$4 sm:$0xff]  }
 0x6b2   : > { %13573 = vmatpush1.bf16.msra.mxu0 %v18291_v38  ;;  %12467 = vmatprep.subr.bf16.mxu1 %v18296_v6  ;;  %v18375_v38 = vld [vmem:[%s18895_s29 + $0x34e0] ss:$8 sps:$4 sm:$0xff]   ;;  %v18380_v6 = vld [vmem:[%s18895_s29 + $0x19f4] ss:$8 sps:$4 sm:$0xff]  }
 0x6b3   : > { %13574 = vmatprep.subr.bf16.mxu0 %v18299_v61  ;;  %12497 = vmatprep.mubr.bf16.mxu1 %v2372_v22  ;;  %v18383_v61 = vld [vmem:[%s18895_s29 + $0x34f4] ss:$8 sps:$4 sm:$0xff]   ;;  %v18378_v22 = vld [vmem:[%s18895_s29 + $0x19f0] ss:$8 sps:$4 sm:$0xff]  }
 0x6b4   : > { %13604 = vmatprep.mubr.bf16.mxu0 %v21035_v9 }
 0x6b5   : > { %12468 = vmatpush1.bf16.msra.mxu1 %v18294_v45  ;;  %v18381_v45 = vld [vmem:[%s18895_s29 + $0x34f0] ss:$8 sps:$4 sm:$0xff]  }
 0x6b6   : > { %13575 = vmatpush1.bf16.msra.mxu0 %v18297_v25  ;;  %12469 = vmatprep.subr.bf16.mxu1 %v18302_v46  ;;  %v18386_v25 = vld [vmem:[%s18895_s29 + $0x1a04] ss:$8 sps:$4 sm:$0xff]  }
 0x6b7   : > { %13576 = vmatprep.subr.bf16.mxu0 %v18305_v26  ;;  %v18389_v46 = vld [vmem:[%s18895_s29 + $0x3504] ss:$8 sps:$4 sm:$0xff]   ;;  %v2370_v26 = vcombine.high %v21024_v16, %v21024_v16 }
 0x6b8   : > { %v18398_v16 = vld [vmem:[%s18895_s29 + $0x1a24] ss:$8 sps:$4 sm:$0xff]  }
 0x6b9   : > { %12470 = vmatpush1.bf16.msra.mxu1 %v18300_v28  ;;  %v21103_v28 = vrot.slane %v21014_v37, %v18971_v52  ;;  %v18390_v52 = vld [vmem:[%s18895_s29 + $0x1a10] ss:$8 sps:$4 sm:$0xff]  }
 0x6ba   : > { %13577 = vmatpush1.bf16.msra.mxu0 %v18303_v63  ;;  %12471 = vmatprep.subr.bf16.mxu1 %v18308_v12  ;;  %v18384_v63 = vld [vmem:[%s18895_s29 + $0x1a00] ss:$8 sps:$4 sm:$0xff]   ;;  %v18393_v37 = vld [vmem:[%s18895_s29 + $0x3510] ss:$8 sps:$4 sm:$0xff]  }
 0x6bb   : > { %13578 = vmatprep.subr.bf16.mxu0 %v18311_v7  ;;  %v18387_v12 = vld [vmem:[%s18895_s29 + $0x3500] ss:$8 sps:$4 sm:$0xff]   ;;  %v18392_v7 = vld [vmem:[%s18895_s29 + $0x1a14] ss:$8 sps:$4 sm:$0xff]  }
 0x6bd   : > { %12472 = vmatpush1.bf16.msra.mxu1 %v18306_v1  ;;  %v18395_v1 = vld [vmem:[%s18895_s29 + $0x3514] ss:$8 sps:$4 sm:$0xff]  }
 0x6be   : > { %13579 = vmatpush1.bf16.msra.mxu0 %v18309_v56  ;;  %12473 = vmatprep.subr.bf16.mxu1 %v18314_v59  ;;  %v2691_v56 = vcombine.high %v21035_v9, %v21035_v9  ;;  %v18401_v59 = vld [vmem:[%s18895_s29 + $0x3524] ss:$8 sps:$4 sm:$0xff]   ;;  %v18396_v9 = vld [vmem:[%s18895_s29 + $0x1a20] ss:$8 sps:$4 sm:$0xff]  }
 0x6bf   : > { %13580 = vmatprep.subr.bf16.mxu0 %v18317_v33  ;;  %v18399_v33 = vld [vmem:[%s18895_s29 + $0x3520] ss:$8 sps:$4 sm:$0xff]  }
 0x6c1   : > { %12474 = vmatpush1.bf16.msra.mxu1 %v18312_v41  ;;  %v18404_v41 = vld [vmem:[%s18895_s29 + $0x1a34] ss:$8 sps:$4 sm:$0xff]  }
 0x6c2   : > { %13581 = vmatpush1.bf16.msra.mxu0 %v18315_v39  ;;  %12475 = vmatprep.subr.bf16.mxu1 %v18320_v58  ;;  %v18407_v39 = vld [vmem:[%s18895_s29 + $0x3534] ss:$8 sps:$4 sm:$0xff]   ;;  %v18402_v58 = vld [vmem:[%s18895_s29 + $0x1a30] ss:$8 sps:$4 sm:$0xff]  }
 0x6c3   : > { %13582 = vmatprep.subr.bf16.mxu0 %v18323_v51  ;;  %v18410_v51 = vld [vmem:[%s18895_s29 + $0x1a44] ss:$8 sps:$4 sm:$0xff]  }
 0x6c5   : > { %12476 = vmatpush1.bf16.msra.mxu1 %v18318_v23  ;;  %v18413_v23 = vld [vmem:[%s18895_s29 + $0x3544] ss:$8 sps:$4 sm:$0xff]  }
 0x6c6   : > { %13583 = vmatpush1.bf16.msra.mxu0 %v18321_v24  ;;  %12477 = vmatprep.subr.bf16.mxu1 %v18326_v44  ;;  %v18408_v24 = vld [vmem:[%s18895_s29 + $0x1a40] ss:$8 sps:$4 sm:$0xff]  }
 0x6c7   : > { %13584 = vmatprep.subr.bf16.mxu0 %v18329_v49  ;;  %v18411_v44 = vld [vmem:[%s18895_s29 + $0x3540] ss:$8 sps:$4 sm:$0xff]   ;;  %v18416_v49 = vld [vmem:[%s18895_s29 + $0x1a54] ss:$8 sps:$4 sm:$0xff]  }
 0x6c9   : > { %12478 = vmatpush1.bf16.msra.mxu1 %v18324_v27  ;;  %v18419_v27 = vld [vmem:[%s18895_s29 + $0x3554] ss:$8 sps:$4 sm:$0xff]  }
 0x6ca   : > { %13585 = vmatpush1.bf16.msra.mxu0 %v18327_v29  ;;  %12479 = vmatprep.subr.bf16.mxu1 %v18332_v53  ;;  %v18414_v29 = vld [vmem:[%s18895_s29 + $0x1a50] ss:$8 sps:$4 sm:$0xff]  }
 0x6cb   : > { %13586 = vmatprep.subr.bf16.mxu0 %v18335_v14  ;;  %v18417_v53 = vld [vmem:[%s18895_s29 + $0x3550] ss:$8 sps:$4 sm:$0xff]   ;;  %v18422_v14 = vld [vmem:[%s18895_s29 + $0x1a64] ss:$8 sps:$4 sm:$0xff]  }
 0x6cd   : > { %12480 = vmatpush1.bf16.msra.mxu1 %v18330_v11  ;;  %v18425_v11 = vld [vmem:[%s18895_s29 + $0x3564] ss:$8 sps:$4 sm:$0xff]  }
 0x6ce   : > { %13587 = vmatpush1.bf16.msra.mxu0 %v18333_v21  ;;  %12481 = vmatprep.subr.bf16.mxu1 %v18338_v57  ;;  %v18420_v21 = vld [vmem:[%s18895_s29 + $0x1a60] ss:$8 sps:$4 sm:$0xff]  }
 0x6cf   : > { %13588 = vmatprep.subr.bf16.mxu0 %v18341_v4  ;;  %v18423_v57 = vld [vmem:[%s18895_s29 + $0x3560] ss:$8 sps:$4 sm:$0xff]   ;;  %v18428_v4 = vld [vmem:[%s18895_s29 + $0x1a74] ss:$8 sps:$4 sm:$0xff]  }
 0x6d1   : > { %12482 = vmatpush1.bf16.msra.mxu1 %v18336_v35  ;;  %v18431_v35 = vld [vmem:[%s18895_s29 + $0x3574] ss:$8 sps:$4 sm:$0xff]  }
 0x6d2   : > { %13589 = vmatpush1.bf16.msra.mxu0 %v18339_v31  ;;  %12483 = vmatprep.subr.bf16.mxu1 %v18344_v34  ;;  %v18426_v31 = vld [vmem:[%s18895_s29 + $0x1a70] ss:$8 sps:$4 sm:$0xff]  }
 0x6d3   : > { %13590 = vmatprep.subr.bf16.mxu0 %v18347_v42  ;;  %v18429_v34 = vld [vmem:[%s18895_s29 + $0x3570] ss:$8 sps:$4 sm:$0xff]   ;;  %v18434_v42 = vld [vmem:[%s18895_s29 + $0x1a84] ss:$8 sps:$4 sm:$0xff]  }
 0x6d5   : > { %12484 = vmatpush1.bf16.msra.mxu1 %v18342_v60  ;;  %v18437_v60 = vld [vmem:[%s18895_s29 + $0x3584] ss:$8 sps:$4 sm:$0xff]  }
 0x6d6   : > { %13591 = vmatpush1.bf16.msra.mxu0 %v18345_v40  ;;  %12485 = vmatprep.subr.bf16.mxu1 %v18350_v32  ;;  %v18432_v40 = vld [vmem:[%s18895_s29 + $0x1a80] ss:$8 sps:$4 sm:$0xff]  }
 0x6d7   : > { %13592 = vmatprep.subr.bf16.mxu0 %v18353_v62  ;;  %v18435_v32 = vld [vmem:[%s18895_s29 + $0x3580] ss:$8 sps:$4 sm:$0xff]   ;;  %v18440_v62 = vld [vmem:[%s18895_s29 + $0x1a94] ss:$8 sps:$4 sm:$0xff]  }
 0x6d9   : > { %12486 = vmatpush1.bf16.msra.mxu1 %v18348_v43  ;;  %v18443_v43 = vld [vmem:[%s18895_s29 + $0x3594] ss:$8 sps:$4 sm:$0xff]  }
 0x6da   : > { %13593 = vmatpush1.bf16.msra.mxu0 %v18351_v0  ;;  %12487 = vmatprep.subr.bf16.mxu1 %v18356_v2  ;;  %v18438_v0 = vld [vmem:[%s18895_s29 + $0x1a90] ss:$8 sps:$4 sm:$0xff]  }
 0x6db   : > { %13594 = vmatprep.subr.bf16.mxu0 %v18359_v54  ;;  %v18441_v2 = vld [vmem:[%s18895_s29 + $0x3590] ss:$8 sps:$4 sm:$0xff]   ;;  %v18446_v54 = vld [vmem:[%s18895_s29 + $0x1aa4] ss:$8 sps:$4 sm:$0xff]  }
 0x6dd   : > { %12488 = vmatpush1.bf16.msra.mxu1 %v18354_v3  ;;  %v18449_v3 = vld [vmem:[%s18895_s29 + $0x35a4] ss:$8 sps:$4 sm:$0xff]  }
 0x6de   : > { %13595 = vmatpush1.bf16.msra.mxu0 %v18357_v48  ;;  %12489 = vmatprep.subr.bf16.mxu1 %v18362_v18  ;;  %v18444_v48 = vld [vmem:[%s18895_s29 + $0x1aa0] ss:$8 sps:$4 sm:$0xff]  }
 0x6df   : > { %13596 = vmatprep.subr.bf16.mxu0 %v18365_v8  ;;  %v18447_v18 = vld [vmem:[%s18895_s29 + $0x35a0] ss:$8 sps:$4 sm:$0xff]   ;;  %v18452_v8 = vld [vmem:[%s18895_s29 + $0x1ab4] ss:$8 sps:$4 sm:$0xff]  }
 0x6e1   : > { %12490 = vmatpush1.bf16.msra.mxu1 %v18360_v36  ;;  %v18455_v36 = vld [vmem:[%s18895_s29 + $0x35b4] ss:$8 sps:$4 sm:$0xff]  }
 0x6e2   : > { %13597 = vmatpush1.bf16.msra.mxu0 %v18363_v30  ;;  %12491 = vmatprep.subr.bf16.mxu1 %v18368_v55  ;;  %v18450_v30 = vld [vmem:[%s18895_s29 + $0x1ab0] ss:$8 sps:$4 sm:$0xff]  }
 0x6e3   : > { %13598 = vmatprep.subr.bf16.mxu0 %v18371_v17  ;;  %v18453_v55 = vld [vmem:[%s18895_s29 + $0x35b0] ss:$8 sps:$4 sm:$0xff]   ;;  %v18458_v17 = vld [vmem:[%s18895_s29 + $0x1ac4] ss:$8 sps:$4 sm:$0xff]  }
 0x6e5   : > { %12492 = vmatpush1.bf16.msra.mxu1 %v18366_v10  ;;  %v18461_v10 = vld [vmem:[%s18895_s29 + $0x35c4] ss:$8 sps:$4 sm:$0xff]  }
 0x6e6   : > { %13599 = vmatpush1.bf16.msra.mxu0 %v18369_v13  ;;  %12493 = vmatprep.subr.bf16.mxu1 %v18374_v20  ;;  %v18456_v13 = vld [vmem:[%s18895_s29 + $0x1ac0] ss:$8 sps:$4 sm:$0xff]  }
 0x6e7   : > { %13600 = vmatprep.subr.bf16.mxu0 %v18377_v50  ;;  %v18459_v20 = vld [vmem:[%s18895_s29 + $0x35c0] ss:$8 sps:$4 sm:$0xff]   ;;  %v18464_v50 = vld [vmem:[%s18895_s29 + $0x1ad4] ss:$8 sps:$4 sm:$0xff]  }
 0x6e9   : > { %12494 = vmatpush1.bf16.msra.mxu1 %v18372_v19  ;;  %v18467_v19 = vld [vmem:[%s18895_s29 + $0x35d4] ss:$8 sps:$4 sm:$0xff]  }
 0x6ea   : > { %13601 = vmatpush1.bf16.msra.mxu0 %v18375_v38  ;;  %12495 = vmatprep.subr.bf16.mxu1 %v18380_v6  ;;  %v18462_v38 = vld [vmem:[%s18895_s29 + $0x1ad0] ss:$8 sps:$4 sm:$0xff]  }
 0x6eb   : > { %13602 = vmatprep.subr.bf16.mxu0 %v18383_v61  ;;  %v18465_v6 = vld [vmem:[%s18895_s29 + $0x35d0] ss:$8 sps:$4 sm:$0xff]   ;;  %v18470_v61 = vld [vmem:[%s18895_s29 + $0x1ae4] ss:$8 sps:$4 sm:$0xff]  }
 0x6ed   : > { %12496 = vmatpush1.bf16.msra.mxu1 %v18378_v22  ;;  %v18473_v22 = vld [vmem:[%s18895_s29 + $0x35e4] ss:$8 sps:$4 sm:$0xff]  }
 0x6ee   : > { %13603 = vmatpush1.bf16.msra.mxu0 %v18381_v45  ;;  %12506 = vmatprep.subr.bf16.mxu1 %v18386_v25  ;;  %v18468_v45 = vld [vmem:[%s18895_s29 + $0x1ae0] ss:$8 sps:$4 sm:$0xff]  }
 0x6ef   : > { %13613 = vmatprep.subr.bf16.mxu0 %v18389_v46  ;;  %v18471_v25 = vld [vmem:[%s18895_s29 + $0x35e0] ss:$8 sps:$4 sm:$0xff]   ;;  %v18476_v46 = vld [vmem:[%s18895_s29 + $0x1af4] ss:$8 sps:$4 sm:$0xff]  }
 0x6f0   : > { %12498 = vmatmul.mubr.bf16.vlgmr.msra.gmra.mrb[0].mxu1 %v2370_v26  ;;  %v18479_v26 = vld [vmem:[%s18895_s29 + $0x35f4] ss:$8 sps:$4 sm:$0xff]  }
 0x6f1   : > { %13605 = vmatmul.mubr.bf16.vlgmr.msra.gmra.mrb[0].mxu0 %v21103_v28  ;;  %12507 = vmatpush1.bf16.msra.mxu1 %v18384_v63  ;;  %v18474_v63 = vld [vmem:[%s18895_s29 + $0x1af0] ss:$8 sps:$4 sm:$0xff]  }
 0x6f2   : > { %13614 = vmatpush1.bf16.msra.mxu0 %v18387_v12  ;;  %12508 = vmatprep.subr.bf16.mxu1 %v18392_v7  ;;  %v18477_v12 = vld [vmem:[%s18895_s29 + $0x35f0] ss:$8 sps:$4 sm:$0xff]   ;;  %v2690_v7 = vcombine.high %v21103_v28, %v21103_v28 }
 0x6f3   : > { %13615 = vmatprep.subr.bf16.mxu0 %v18395_v1  ;;  %12538 = vmatprep.mubr.bf16.mxu1 %v18990_v5  ;;  %v18405_v5 = vld [vmem:[%s18895_s29 + $0x3530] ss:$8 sps:$4 sm:$0xff]   ;;  %v18655_v1 = vmov 1983009808  }
 0x6f4   : > { %13645 = vmatprep.mubr.bf16.mxu0 %v2691_v56  ;;  %v13658_v56 = vunpack.c.l.s4 %v18655_v1 }
 0x6f5   : > { %12509 = vmatpush1.bf16.msra.mxu1 %v18390_v52 }
 0x6f6   : > { %13616 = vmatpush1.bf16.msra.mxu0 %v18393_v37  ;;  %12510 = vmatprep.subr.bf16.mxu1 %v18398_v16  ;;  %v13659_v52 = vunpack.c.0.s8 %v13658_v56 }
 0x6f7   : > { %13617 = vmatprep.subr.bf16.mxu0 %v18401_v59 }
 0x6f9   : > { %12511 = vmatpush1.bf16.msra.mxu1 %v18396_v9 }
 0x6fa   : > { %13618 = vmatpush1.bf16.msra.mxu0 %v18399_v33  ;;  %12512 = vmatprep.subr.bf16.mxu1 %v18404_v41 }
 0x6fb   : > { %13619 = vmatprep.subr.bf16.mxu0 %v18407_v39  ;;  %v13662_v39 = vsub.s32 %v13659_v52, %v18964_v47 }
 0x6fd   : > { %12513 = vmatpush1.bf16.msra.mxu1 %v18402_v58 }
 0x6fe   : > { %13620 = vmatpush1.bf16.msra.mxu0 %v18405_v5  ;;  %12514 = vmatprep.subr.bf16.mxu1 %v18410_v51 }
 0x6ff   : > { %13621 = vmatprep.subr.bf16.mxu0 %v18413_v23 }
 0x701   : > { %12515 = vmatpush1.bf16.msra.mxu1 %v18408_v24  ;;  %v274_v24 = vld [vmem:[#allocation2] sm:$0xf] }
 0x702   : > { %13622 = vmatpush1.bf16.msra.mxu0 %v18411_v44  ;;  %12516 = vmatprep.subr.bf16.mxu1 %v18416_v49  ;;  %v13672_v49 = vld [vmem:[%s223_s6] sm:$0x3] (!%p15552_p3) }
 0x703   : > { %13623 = vmatprep.subr.bf16.mxu0 %v18419_v27  ;;  %v13676_v27 = vsub.s32 (!%p15552_p3), 0, %v18964_v47 }
 0x705   : > { %12517 = vmatpush1.bf16.msra.mxu1 %v18414_v29  ;;  %v13680_v29 = vsub.s32 (!%p15552_p3), 1, %v18964_v47 }
 0x706   : > { %13624 = vmatpush1.bf16.msra.mxu0 %v18417_v53  ;;  %12518 = vmatprep.subr.bf16.mxu1 %v18422_v14  ;;  %v13677_v53 = vrot.slane (!%p15552_p3), %v13672_v49, %v13676_v27 }
 0x707   : > { %13625 = vmatprep.subr.bf16.mxu0 %v18425_v11  ;;  %v13681_v14 = vrot.slane (!%p15552_p3), %v13672_v49, %v13680_v29 }
 0x709   : > { %12519 = vmatpush1.bf16.msra.mxu1 %v18420_v21  ;;  %v13682_v11 = vcombine.low (!%p15552_p3), %v13677_v53, %v13681_v14 }
 0x70a   : > { %13626 = vmatpush1.bf16.msra.mxu0 %v18423_v57  ;;  %12520 = vmatprep.subr.bf16.mxu1 %v18428_v4 }
 0x70b   : > { %13627 = vmatprep.subr.bf16.mxu0 %v18431_v35  ;;  %v13689_v57 = vrot.slane (!%p15552_p3), %v13682_v11, %v13662_v39 }
 0x70d   : > { %12521 = vmatpush1.bf16.msra.mxu1 %v18426_v31 }
 0x70e   : > { %13628 = vmatpush1.bf16.msra.mxu0 %v18429_v34  ;;  %12522 = vmatprep.subr.bf16.mxu1 %v18434_v42 }
 0x70f   : > { %13629 = vmatprep.subr.bf16.mxu0 %v18437_v60 }
 0x711   : > { %12523 = vmatpush1.bf16.msra.mxu1 %v18432_v40 }
 0x712   : > { %13630 = vmatpush1.bf16.msra.mxu0 %v18435_v32  ;;  %12524 = vmatprep.subr.bf16.mxu1 %v18440_v62 }
 0x713   : > { %13631 = vmatprep.subr.bf16.mxu0 %v18443_v43 }
 0x715   : > { %12525 = vmatpush1.bf16.msra.mxu1 %v18438_v0 }
 0x716   : > { %13632 = vmatpush1.bf16.msra.mxu0 %v18441_v2  ;;  %12526 = vmatprep.subr.bf16.mxu1 %v18446_v54 }
 0x717   : > { %13633 = vmatprep.subr.bf16.mxu0 %v18449_v3 }
 0x719   : > { %12527 = vmatpush1.bf16.msra.mxu1 %v18444_v48 }
 0x71a   : > { %13634 = vmatpush1.bf16.msra.mxu0 %v18447_v18  ;;  %12528 = vmatprep.subr.bf16.mxu1 %v18452_v8 }
 0x71b   : > { %13635 = vmatprep.subr.bf16.mxu0 %v18455_v36 }
 0x71d   : > { %12529 = vmatpush1.bf16.msra.mxu1 %v18450_v30 }
 0x71e   : > { %13636 = vmatpush1.bf16.msra.mxu0 %v18453_v55  ;;  %12530 = vmatprep.subr.bf16.mxu1 %v18458_v17 }
 0x71f   : > { %13637 = vmatprep.subr.bf16.mxu0 %v18461_v10 }
 0x721   : > { %12531 = vmatpush1.bf16.msra.mxu1 %v18456_v13 }
 0x722   : > { %13638 = vmatpush1.bf16.msra.mxu0 %v18459_v20  ;;  %12532 = vmatprep.subr.bf16.mxu1 %v18464_v50 }
 0x723   : > { %13639 = vmatprep.subr.bf16.mxu0 %v18467_v19 }
 0x725   : > { %12533 = vmatpush1.bf16.msra.mxu1 %v18462_v38 }
 0x726   : > { %13640 = vmatpush1.bf16.msra.mxu0 %v18465_v6  ;;  %12534 = vmatprep.subr.bf16.mxu1 %v18470_v61 }
 0x727   : > { %13641 = vmatprep.subr.bf16.mxu0 %v18473_v22 }
 0x729   : > { %12535 = vmatpush1.bf16.msra.mxu1 %v18468_v45 }
 0x72a   : > { %13642 = vmatpush1.bf16.msra.mxu0 %v18471_v25  ;;  %12536 = vmatprep.subr.bf16.mxu1 %v18476_v46 }
 0x72b   : > { %13643 = vmatprep.subr.bf16.mxu0 %v18479_v26 }
 0x72d   : > { %12537 = vmatpush1.bf16.msra.mxu1 %v18474_v63 }
 0x72e   : > { %13644 = vmatpush1.bf16.msra.mxu0 %v18477_v12 }
 0x730   : > { %12539 = vmatmul.mubr.bf16.vlgmr.msra.gmra.mrb[0].mxu1 %v19003_v15 }
 0x731   : > { %13646 = vmatmul.mubr.bf16.vlgmr.msra.gmra.mrb[0].mxu0 %v2690_v7 }
 0x803   : > { %v12540_v37 = vpop.f32.mrb[0].mxu1 }
 0x804   : > { %v13647_v16 = vpop.f32.mrb[0].mxu0  ;;  %v12542_v9 = vpop.f32.mrb[1].mxu1 }
 0x805   : > { %v15557_v59 = vadd.f32 %v13647_v16, %v12540_v37  ;;  %v13649_v33 = vpop.f32.mrb[1].mxu0  ;;  %v12544_v58 = vpop.f32.mrb[2].mxu1 }
 0x806   : > { %v15558_v41 = vadd.f32 %v13649_v33, %v12542_v9  ;;  %v13651_v5 = vpop.f32.mrb[2].mxu0  ;;  %v12545_v51 = vpop.f32.mrb[3].mxu1 }
 0x807   : > { %v13652_v28 = vpop.f32.mrb[3].mxu0 }
 0x808   : > { %v13656_v23 = vcombine.low %v15557_v59, %v15558_v41  ;;  %13670 = sbr.rel (%p15552_p3) target bundleno = 2075 (0x81b), region = 48 }
 0x80a   : > { %v13663_v44 = vrot.slane %v13656_v23, %v13662_v39 }
 0x80c   : > { %v13665_v15 = vadd.f32 %v13663_v44, %v274_v24 }
 0x80e   : > { %13666 = vst [vmem:[#allocation2] sm:$0xf] %v13665_v15 }
 0x815   : > { %v13671_v21 = vld [vmem:[#allocation2] sm:$0xf] }
 0x816   : > { %v13691_v4 = vadd.f32 %v13689_v57, %v13671_v21 }
 0x818   : > { %v13692_v35 = vmax.f32 %v13691_v4, 0.0 }
 0x81a   : > { %13693 = vst [vmem:[%s18919_s26] sm:$0xf] %v13692_v35 }
 0x81b PF: > { %s19_s22 = sadd.s32 1, %s18646_s22   ;;  %s21241_s9 = sld [smem:[#allocation9_spill]] }
 0x81c   : > { %p16_p11 = scmp.ge.s32.totalorder %s19_s22, 6   ;;  %s21242_s12 = smov %s18610_s13 }
 0x81d   : > { %s21243_s13 = smov %s18614_s14  ;;  %s21244_s14 = smov %s18844_s10 }
 0x81e   : > { %s21245_s15 = smov %s18622_s16  ;;  %s21246_s16 = smov %s18626_s17 }
 0x81f   : > { %s21247_s17 = smov %s18849_s28  ;;  %s21248_s18 = smov %s18638_s20 }
 0x820   : > { %s21249_s19 = smov %s18642_s21  ;;  %s21250_s20 = smov %s21253_s23 }
 0x821   : > { %s21251_s21 = smov %s21241_s9  ;;  %18 = sbr.rel (!%p16_p11) target bundleno = 11 (0xb), region = 96 }
 0x828   :  { %13716 = vsyncpa [#allocation4], 1 }
 0x829   :  { %13718 = vsyncpa [#allocation4 + $0x1], 1 }
 0x82a   :  { %13719 = vsyncpa [#allocation6], 1 }
 0x82b   :  { %13721 = vsyncpa [#allocation6 + $0x1], 1 }

</bundles_post_ra>
